<compile_context>
chip_gen: v5e
topology: v5e:2x2
jax: 0.10.0
libtpu: 0.0.40
codegen_flags: <defaults>
</compile_context>

<pallas_src>
import functools

import jax
import jax.numpy as jnp
from jax import lax
from jax.experimental import pallas as pl
from jax.experimental.pallas import tpu as pltpu

EPS = 1e-5      # nn.BatchNorm2d default
LANE = 128      # TPU lane width


def _round_up(x, m):
    return (x + m - 1) // m * m


def _vmem_capacity_bytes():
    try:
        return int(pltpu.get_tpu_info().vmem_capacity_bytes)
    except Exception:
        return 64 * 1024 * 1024          # conservative fallback (v7x per-TC)


def _vmem_bytes(th, *, s, hq, wq, wea, wop, cp, pp, has_ds, out_itemsize):
    """Rough per-core VMEM footprint: pipeline buffers + in-kernel temporaries."""
    he, lx = th + 2, th * s + s + 3
    b = 0
    b += 2 * hq * wq * cp * 2                      # input block (double buffered)
    b += 2 * th * wop * pp * out_itemsize          # output block (double buffered)
    b += 2 * (9 * cp + 9 * pp + (cp if has_ds else 0)) * pp * 2   # weights
    b += he * wea * pp * 2                         # y1 scratch
    b += lx * wea * 3 * cp * 2                     # conv1 width-concat (xw)
    b += he * wea * 3 * cp * 2                     # one kh slab (worst-case copy)
    b += 2 * he * wea * pp * 4                     # conv1 f32 acc + relu temp
    b += 2 * he * wop * 3 * pp * 2                 # conv2 width-concat + kh slab
    b += 3 * th * wop * pp * 4                     # conv2 acc / shortcut / out f32
    b += th * wop * cp * 2                         # shortcut input slice
    return b


def _choose_tile_rows(ho, wop, est_fn, vmem_budget, row_target=2048):
    """Largest divisor of `ho` whose tile fits the VMEM budget and yields at most
    ~row_target matmul rows per grid step (fewer, larger steps amortize the
    ~0.35us/step overhead and keep the MXU pipeline full)."""
    best = 1
    for t in range(1, ho + 1):
        if ho % t != 0:
            continue
        if t * wop > max(row_target, wop):
            continue
        if t > 1 and est_fn(t) > vmem_budget:
            continue
        best = t
    return best


# ----------------------------- Pallas kernel ------------------------------ #
def _basic_block_kernel(x_ref, w1_ref, b1_ref, w2_ref, b2_ref, *rest,
                        stride, tile_h, out_w, out_w_pad, has_downsample):
    # x_ref  : (Hq, Wq, Cp)    bf16  zero-padded full image (revisited across j)
    # w1_ref : (9*Cp, Pp)      bf16  conv1 weights (kh,kw,ci im2col order) * bn1 scale
    # b1_ref : (1, Pp)         f32   bn1 bias
    # w2_ref : (9*Pp, Pp)      bf16  conv2 weights * bn2 scale
    # b2_ref : (1, Pp)         f32   bn2 bias
    # [wd_ref: (Cp, Pp) bf16, bd_ref: (1, Pp) f32]  projection shortcut only
    # out_ref: (TH*Wop, Pp)    bf16  lane-dense output slab for this tile
    # y1_scr : (TH+2, Wea, Pp) bf16  conv1 output incl. conv2 halo
    if has_downsample:
        wd_ref, bd_ref, out_ref, y1_scr = rest
    else:
        out_ref, y1_scr = rest

    s = stride
    TH = tile_h
    Wo, Wop = out_w, out_w_pad
    Pp = out_ref.shape[-1]
    Cp = x_ref.shape[-1]
    He, Wea = y1_scr.shape[0], y1_scr.shape[1]         # TH + 2, align8(Wop + 2)
    Lx = TH * s + s + 3                                 # input rows this tile uses

    j = pl.program_id(1)
    nj = pl.num_programs(1)

    # --- input row slab for this tile (dynamic offset along the major dim) ---
    row0 = pl.multiple_of(j * (TH * s), TH * s)
    xs = x_ref[pl.ds(row0, Lx), :, :]                   # (Lx, Wq, Cp) bf16

    def shift_w(a, k, n):                                # a[:, k : k+n*s : s, :]
        if s == 1:
            return a[:, k:k + n, :]
        return a[:, k:k + (n - 1) * s + 1:s, :]

    def shift_h(a, k, n):
        if s == 1:
            return a[k:k + n]
        return a[k:k + (n - 1) * s + 1:s]

    # --- conv1 + bn1 + relu over the haloed (He, Wea) tile --------------------
    # Only the width taps are lane-concatenated (K = 3*Cp); the three height taps
    # are ACCUMULATING matmuls over leading-dim slice views of xw.  Compared to a
    # full 9*Cp im2col this drops ~2/3 of the copy traffic feeding the MXU.
    xw = jnp.concatenate([shift_w(xs, kw, Wea) for kw in range(3)], axis=-1)
    K1 = 3 * Cp
    acc1 = jnp.dot(shift_h(xw, 0, He).reshape(He * Wea, K1), w1_ref[0:K1, :],
                   preferred_element_type=jnp.float32)
    for kh in (1, 2):
        acc1 += jnp.dot(shift_h(xw, kh, He).reshape(He * Wea, K1),
                        w1_ref[kh * K1:(kh + 1) * K1, :],
                        preferred_element_type=jnp.float32)
    y1 = jnp.maximum(acc1 + b1_ref[...], 0.0)            # bn1 scale folded into w1
    y1_scr[...] = y1.reshape(He, Wea, Pp).astype(jnp.bfloat16)

    # conv2 zero halo: columns 0 and Wo+1 always; the padding rows only when
    # this tile touches the top / bottom of the image.  Columns >= Wo+2 hold
    # conv1-of-zero-padding values: they are only read by output columns >= Wo,
    # which are sliced off in the wrapper.
    y1_scr[:, 0:1, :] = jnp.zeros((He, 1, Pp), jnp.bfloat16)
    y1_scr[:, Wo + 1:Wo + 2, :] = jnp.zeros((He, 1, Pp), jnp.bfloat16)

    @pl.when(j == 0)
    def _():
        y1_scr[0:1, :, :] = jnp.zeros((1, Wea, Pp), jnp.bfloat16)

    @pl.when(j == nj - 1)
    def _():
        y1_scr[He - 1:He, :, :] = jnp.zeros((1, Wea, Pp), jnp.bfloat16)

    # --- conv2 + bn2 (stride 1, pad 1), same kh-split accumulation ------------
    y1p = y1_scr[...]
    yw = jnp.concatenate([y1p[:, kw:kw + Wop, :] for kw in range(3)], axis=-1)
    K2 = 3 * Pp
    acc2 = jnp.dot(yw[0:TH].reshape(TH * Wop, K2), w2_ref[0:K2, :],
                   preferred_element_type=jnp.float32)
    for kh in (1, 2):
        acc2 += jnp.dot(yw[kh:kh + TH].reshape(TH * Wop, K2),
                        w2_ref[kh * K2:(kh + 1) * K2, :],
                        preferred_element_type=jnp.float32)
    y2 = acc2 + b2_ref[...]                               # bn2 scale folded into w2

    # --- shortcut --------------------------------------------------------------
    if has_downsample:
        if s == 1:
            xd = xs[2:2 + TH, 2:2 + Wop, :]
        else:
            # TODO(synk): stride>1 uses strided in-VMEM slices; pre-deinterleaving
            # even/odd columns (or a strided DMA) in the producer would be cheaper.
            xd = xs[s + 1:s + 1 + (TH - 1) * s + 1:s,
                    s + 1:s + 1 + (Wop - 1) * s + 1:s, :]
        # TODO(synk): for Pp==128 the 1x1 shortcut could be fused into conv1's
        # matmul as extra output columns to fill the 256-wide v6e/v7x MXU.
        sc = jnp.dot(xd.reshape(TH * Wop, Cp), wd_ref[...],
                     preferred_element_type=jnp.float32) + bd_ref[...]
    else:
        # identity shortcut (stride == 1, Cp == Pp): just add the input
        # TODO(synk): residual uses the bf16-cast input, not the original f32 x.
        xd = xs[2:2 + TH, 2:2 + Wop, :]
        sc = xd.reshape(TH * Wop, Pp).astype(jnp.float32)

    out_ref[...] = jnp.maximum(y2 + sc, 0.0).astype(out_ref.dtype)


# ------------------------- one-time weight preparation ---------------------- #
def prepare_basic_block_params(params):
    """Fold BN scales into conv weights, zero-pad channels to lane multiples,
    cast to bf16 and reshape to the kernel's im2col layout.  Pure constant work:
    do it ONCE per parameter set, not per inference call."""
    w1, w2 = params["w1"], params["w2"]
    Cin, P = int(w1.shape[2]), int(w1.shape[3])
    Cp, Pp = _round_up(Cin, LANE), _round_up(P, LANE)
    has_ds = bool(params["has_downsample"])

    def pad_bias(b):
        return jnp.zeros((1, Pp), jnp.float32).at[0, :P].set(b)

    w1s = w1 * params["s1"][None, None, None, :]          # (3,3,Cin,P)
    w1f = (jnp.zeros((3, 3, Cp, Pp), jnp.float32)
           .at[:, :, :Cin, :P].set(w1s).reshape(9 * Cp, Pp).astype(jnp.bfloat16))
    w2s = w2 * params["s2"][None, None, None, :]
    w2f = (jnp.zeros((3, 3, Pp, Pp), jnp.float32)
           .at[:, :, :P, :P].set(w2s).reshape(9 * Pp, Pp).astype(jnp.bfloat16))
    prep = dict(cin=Cin, planes=P, cp=Cp, pp=Pp, has_downsample=has_ds,
                w1f=w1f, b1p=pad_bias(params["b1"]),
                w2f=w2f, b2p=pad_bias(params["b2"]))
    if has_ds:
        wds = params["wd"] * params["sd"][None, :]         # (Cin, P)
        prep["wdf"] = (jnp.zeros((Cp, Pp), jnp.float32)
                       .at[:Cin, :P].set(wds).astype(jnp.bfloat16))
        prep["bdp"] = pad_bias(params["bd"])
    return prep


# ------------------------------- wrapper ----------------------------------- #
def basic_block_pallas(x_nchw, prep, stride=1, tile_rows=None):
    """x_nchw: (N, Cin, H, W) float32. prep: prepare_basic_block_params(params).
    Returns (N, planes, Ho, Wo) float32."""
    s = int(stride)
    has_ds = prep["has_downsample"]
    Cin, P, Cp, Pp = prep["cin"], prep["planes"], prep["cp"], prep["pp"]
    if not has_ds:
        assert s == 1 and Cp == Pp

    # TODO(synk): the NCHW->NHWC transpose + zero-pad + bf16 cast is a full extra
    # HBM pass over x every call; keeping the whole network NHWC/bf16 (pad fused
    # into the producer of x) would remove it.
    x = jnp.transpose(x_nchw, (0, 2, 3, 1))                  # NHWC
    N, H, W, _ = x.shape
    Ho = (H - 1) // s + 1
    Wo = (W - 1) // s + 1
    Wop = _round_up(Wo, 8)            # sublane-aligned conv2/output width (extra
                                      # columns are sliced off below)
    Wea = _round_up(Wop + 2, 8)       # conv1 eval width incl. conv2 halo
    Hq = Ho * s + s + 3               # padded rows: s halo | 1 pad | H | 1 pad | halo
    Wq = (Wea - 1) * s + 3            # padded cols

    vmem_cap = _vmem_capacity_bytes()             # 64 MiB v7x, 128 MiB v5e/v6e
    budget = vmem_cap * 7 // 10
    est_fn = functools.partial(_vmem_bytes, s=s, hq=Hq, wq=Wq, wea=Wea, wop=Wop,
                               cp=Cp, pp=Pp, has_ds=has_ds, out_itemsize=2)
    if tile_rows is None:
        TH = _choose_tile_rows(Ho, Wop, est_fn, budget)
        # TODO(synk): for tiny spatial stages (Ho*Wo <~ 256) fold batch into the
        # matmul M instead of row-tiling a single image.
    else:
        TH = int(tile_rows)
        assert Ho % TH == 0, "tile_rows must divide the output height"
    NJ = Ho // TH

    xq = jnp.pad(x, ((0, 0), (s + 1, Hq - H - s - 1), (s + 1, Wq - W - s - 1),
                     (0, Cp - Cin))).astype(jnp.bfloat16)

    inputs = [xq, prep["w1f"], prep["b1p"], prep["w2f"], prep["b2p"]]
    # TODO(synk): the weight/bias specs are grid-constant; single-buffering them
    # (pipeline_mode=pl.Buffered(1)) would halve their VMEM footprint.
    in_specs = [
        pl.BlockSpec((None, Hq, Wq, Cp), lambda n, j: (n, 0, 0, 0)),
        pl.BlockSpec((9 * Cp, Pp), lambda n, j: (0, 0)),
        pl.BlockSpec((1, Pp), lambda n, j: (0, 0)),
        pl.BlockSpec((9 * Pp, Pp), lambda n, j: (0, 0)),
        pl.BlockSpec((1, Pp), lambda n, j: (0, 0)),
    ]
    if has_ds:
        inputs += [prep["wdf"], prep["bdp"]]
        in_specs += [pl.BlockSpec((Cp, Pp), lambda n, j: (0, 0)),
                     pl.BlockSpec((1, Pp), lambda n, j: (0, 0))]

    est = est_fn(TH)
    cp_kwargs = {}
    if est + est // 4 > 16 * 1024 * 1024:      # only raise the scoped limit if needed
        cp_kwargs["vmem_limit_bytes"] = int(min(est + est // 2, vmem_cap * 9 // 10))

    out = pl.pallas_call(
        functools.partial(_basic_block_kernel, stride=s, tile_h=TH, out_w=Wo,
                          out_w_pad=Wop, has_downsample=has_ds),
        out_shape=jax.ShapeDtypeStruct((N, NJ, TH * Wop, Pp), jnp.bfloat16),
        grid=(N, NJ),
        in_specs=in_specs,
        out_specs=pl.BlockSpec((None, None, TH * Wop, Pp),
                               lambda n, j: (n, j, 0, 0)),
        scratch_shapes=[pltpu.VMEM((TH + 2, Wea, Pp), jnp.bfloat16)],
        compiler_params=pltpu.CompilerParams(
            # no cross-step carries (scratch fully rewritten each step, output
            # blocks disjoint) -> both axes are megacore-shardable (v7x 2 TCs).
            dimension_semantics=("parallel", "parallel"), **cp_kwargs),
    )(*inputs)

    out = out.reshape(N, Ho, Wop, Pp)[:, :, :Wo, :P].astype(jnp.float32)
    return jnp.transpose(out, (0, 3, 1, 2))                   # back to NCHW


# ------------------------ deterministic parameters -------------------------- #
def _fold_bn(gamma, beta, mean, var):
    scale = gamma / jnp.sqrt(var + EPS)
    bias = beta - mean * scale
    return scale, bias


def init_basic_block_params(key, in_planes, planes, stride=1):
    ks = jax.random.split(key, 16)
    w1 = 0.1 * jax.random.normal(ks[0], (3, 3, in_planes, planes), jnp.float32)
    w2 = 0.1 * jax.random.normal(ks[1], (3, 3, planes, planes), jnp.float32)

    g1 = 1.0 + 0.1 * jax.random.normal(ks[2], (planes,), jnp.float32)
    be1 = 0.1 * jax.random.normal(ks[3], (planes,), jnp.float32)
    m1 = 0.1 * jax.random.normal(ks[4], (planes,), jnp.float32)
    v1 = jax.random.uniform(ks[5], (planes,), jnp.float32, 0.5, 1.5)
    g2 = 1.0 + 0.1 * jax.random.normal(ks[6], (planes,), jnp.float32)
    be2 = 0.1 * jax.random.normal(ks[7], (planes,), jnp.float32)
    m2 = 0.1 * jax.random.normal(ks[8], (planes,), jnp.float32)
    v2 = jax.random.uniform(ks[9], (planes,), jnp.float32, 0.5, 1.5)
    s1, b1 = _fold_bn(g1, be1, m1, v1)
    s2, b2 = _fold_bn(g2, be2, m2, v2)

    has_downsample = (stride != 1) or (in_planes != planes)
    if has_downsample:
        wd = 0.1 * jax.random.normal(ks[10], (in_planes, planes), jnp.float32)
        gd = 1.0 + 0.1 * jax.random.normal(ks[11], (planes,), jnp.float32)
        bed = 0.1 * jax.random.normal(ks[12], (planes,), jnp.float32)
        md = 0.1 * jax.random.normal(ks[13], (planes,), jnp.float32)
        vd = jax.random.uniform(ks[14], (planes,), jnp.float32, 0.5, 1.5)
        sd, bd = _fold_bn(gd, bed, md, vd)
    else:
        wd = jnp.eye(in_planes, planes, dtype=jnp.float32)
        sd = jnp.ones((planes,), jnp.float32)
        bd = jnp.zeros((planes,), jnp.float32)

    return dict(w1=w1, s1=s1, b1=b1, w2=w2, s2=s2, b2=b2,
                wd=wd, sd=sd, bd=bd, has_downsample=has_downsample)


# ---------------------------- pure-JAX reference ---------------------------- #
def basic_block_ref(x_nchw, params, stride=1):
    dn = ("NCHW", "HWIO", "NCHW")

    def bn(y, s, b):
        return y * s[None, :, None, None] + b[None, :, None, None]

    out = lax.conv_general_dilated(x_nchw, params["w1"], (stride, stride),
                                   ((1, 1), (1, 1)), dimension_numbers=dn)
    out = jnp.maximum(bn(out, params["s1"], params["b1"]), 0.0)
    out = lax.conv_general_dilated(out, params["w2"], (1, 1),
                                   ((1, 1), (1, 1)), dimension_numbers=dn)
    out = bn(out, params["s2"], params["b2"])
    if params["has_downsample"]:
        sc = lax.conv_general_dilated(x_nchw, params["wd"][None, None],
                                      (stride, stride), ((0, 0), (0, 0)),
                                      dimension_numbers=dn)
        sc = bn(sc, params["sd"], params["bd"])
    else:
        sc = x_nchw
    return jnp.maximum(out + sc, 0.0)


# ----------------------------------- main ----------------------------------- #
if __name__ == "__main__":
    key = jax.random.PRNGKey(0)
    kx, kp1, kp2 = jax.random.split(key, 3)

    N, C, H, W = 2, 4, 16, 16
    x = jax.random.normal(kx, (N, C, H, W), jnp.float32)

    # bf16 activations/weights/output with f32 accumulation -> loosened tolerance
    TOL = 3e-2

    # Case A: identity shortcut (stride=1, in_planes == planes), auto row tile
    params_a = init_basic_block_params(kp1, in_planes=4, planes=4, stride=1)
    prep_a = prepare_basic_block_params(params_a)
    out_a = jax.block_until_ready(basic_block_pallas(x, prep_a, stride=1))
    ref_a = basic_block_ref(x, params_a, stride=1)
    assert out_a.shape == (N, 4, H, W)
    err_a = float(jnp.max(jnp.abs(out_a - ref_a)))
    assert jnp.allclose(out_a, ref_a, atol=TOL, rtol=TOL), f"case A mismatch ({err_a})"

    # Case B: projection shortcut (1x1 conv + bn), channel change, 4 row tiles
    params_b = init_basic_block_params(kp2, in_planes=4, planes=8, stride=1)
    prep_b = prepare_basic_block_params(params_b)
    out_b = jax.block_until_ready(basic_block_pallas(x, prep_b, stride=1,
                                                     tile_rows=4))
    ref_b = basic_block_ref(x, params_b, stride=1)
    assert out_b.shape == (N, 8, H, W)
    err_b = float(jnp.max(jnp.abs(out_b - ref_b)))
    assert jnp.allclose(out_b, ref_b, atol=TOL, rtol=TOL), f"case B mismatch ({err_b})"

    # Case C: identity shortcut with 2 row tiles (exercises the halo masking)
    out_c = jax.block_until_ready(basic_block_pallas(x, prep_a, stride=1,
                                                     tile_rows=8))
    err_c = float(jnp.max(jnp.abs(out_c - ref_a)))
    assert jnp.allclose(out_c, ref_a, atol=TOL, rtol=TOL), f"case C mismatch ({err_c})"

    # TODO(synk): stride > 1 is implemented (strided tap slices, generic halo
    # arithmetic) but only stride == 1 is exercised in this demo.
    print("KERNEL_OK")
</pallas_src>

<mosaic_0001>
module attributes {stable_mosaic.version = 11 : i64} {
  func.func @_basic_block_kernel(%arg0: i32, %arg1: i32, %arg2: memref<1x20x26x128xbf16, #tpu.memory_space<vmem>>, %arg3: memref<1152x128xbf16, #tpu.memory_space<vmem>>, %arg4: memref<1x128xf32, #tpu.memory_space<vmem>>, %arg5: memref<1152x128xbf16, #tpu.memory_space<vmem>>, %arg6: memref<1x128xf32, #tpu.memory_space<vmem>>, %arg7: memref<1x1x256x128xbf16, #tpu.memory_space<vmem>>, %arg8: memref<18x24x128xbf16, #tpu.memory_space<vmem>>) attributes {dimension_semantics = [#tpu.dimension_semantics<parallel>, #tpu.dimension_semantics<parallel>], iteration_bounds = array<i64: 2, 1>, scalar_prefetch = 0 : i64, scratch_operands = 1 : i64, tpu.core_type = #tpu.core_type<tc>, window_params = [{transform_indices = @transform_0, window_bounds = array<i64: 1, 20, 26, 128>}, {pipeline_mode = #tpu.pipeline_mode<synchronous>, transform_indices = @transform_1, window_bounds = array<i64: 1152, 128>}, {pipeline_mode = #tpu.pipeline_mode<synchronous>, transform_indices = @transform_2, window_bounds = array<i64: 1, 128>}, {pipeline_mode = #tpu.pipeline_mode<synchronous>, transform_indices = @transform_3, window_bounds = array<i64: 1152, 128>}, {pipeline_mode = #tpu.pipeline_mode<synchronous>, transform_indices = @transform_4, window_bounds = array<i64: 1, 128>}, {transform_indices = @transform_5, window_bounds = array<i64: 1, 1, 256, 128>}]} {
    %c16_i32 = arith.constant 16 : i32
    %0 = arith.muli %arg1, %c16_i32 : i32
    %1 = tpu.assume_multiple %0, 16 : i32
    %c0 = arith.constant 0 : index
    %2 = arith.index_cast %1 : i32 to index
    %c0_0 = arith.constant 0 : index
    %c0_1 = arith.constant 0 : index
    %3 = vector.load %arg2[%c0, %2, %c0_0, %c0_1] : memref<1x20x26x128xbf16, #tpu.memory_space<vmem>>, vector<1x20x26x128xbf16>
    %4 = vector.shape_cast %3 : vector<1x20x26x128xbf16> to vector<20x26x128xbf16>
    %5 = vector.extract_strided_slice %4 {offsets = [0, 0, 0], sizes = [20, 24, 128], strides = [1, 1, 1]} : vector<20x26x128xbf16> to vector<20x24x128xbf16>
    %6 = vector.extract_strided_slice %4 {offsets = [0, 1, 0], sizes = [20, 24, 128], strides = [1, 1, 1]} : vector<20x26x128xbf16> to vector<20x24x128xbf16>
    %7 = vector.extract_strided_slice %4 {offsets = [0, 2, 0], sizes = [20, 24, 128], strides = [1, 1, 1]} : vector<20x26x128xbf16> to vector<20x24x128xbf16>
    %8 = tpu.concatenate %5, %6, %7 in 2 : vector<20x24x128xbf16>, vector<20x24x128xbf16>, vector<20x24x128xbf16> -> vector<20x24x384xbf16>
    %9 = vector.extract_strided_slice %8 {offsets = [0, 0, 0], sizes = [18, 24, 384], strides = [1, 1, 1]} : vector<20x24x384xbf16> to vector<18x24x384xbf16>
    %10 = vector.shape_cast %9 : vector<18x24x384xbf16> to vector<432x384xbf16>
    %c0_2 = arith.constant 0 : index
    %c0_3 = arith.constant 0 : index
    %11 = vector.load %arg3[%c0_2, %c0_3] : memref<1152x128xbf16, #tpu.memory_space<vmem>>, vector<384x128xbf16>
    %cst = arith.constant dense<0.000000e+00> : vector<432x128xf32>
    %12 = tpu.matmul %10, %11, %cst {dimension_numbers = #tpu.dot_dimension_numbers<[1], [0], [0], [1], [0, 0, 1, 1], [], []>} : vector<432x384xbf16>, vector<384x128xbf16>, vector<432x128xf32> -> vector<432x128xf32>
    %13 = vector.extract_strided_slice %8 {offsets = [1, 0, 0], sizes = [18, 24, 384], strides = [1, 1, 1]} : vector<20x24x384xbf16> to vector<18x24x384xbf16>
    %14 = vector.shape_cast %13 : vector<18x24x384xbf16> to vector<432x384xbf16>
    %c384 = arith.constant 384 : index
    %c0_4 = arith.constant 0 : index
    %15 = vector.load %arg3[%c384, %c0_4] : memref<1152x128xbf16, #tpu.memory_space<vmem>>, vector<384x128xbf16>
    %cst_5 = arith.constant dense<0.000000e+00> : vector<432x128xf32>
    %16 = tpu.matmul %14, %15, %cst_5 {dimension_numbers = #tpu.dot_dimension_numbers<[1], [0], [0], [1], [0, 0, 1, 1], [], []>} : vector<432x384xbf16>, vector<384x128xbf16>, vector<432x128xf32> -> vector<432x128xf32>
    %17 = arith.addf %12, %16 : vector<432x128xf32>
    %18 = vector.extract_strided_slice %8 {offsets = [2, 0, 0], sizes = [18, 24, 384], strides = [1, 1, 1]} : vector<20x24x384xbf16> to vector<18x24x384xbf16>
    %19 = vector.shape_cast %18 : vector<18x24x384xbf16> to vector<432x384xbf16>
    %c768 = arith.constant 768 : index
    %c0_6 = arith.constant 0 : index
    %20 = vector.load %arg3[%c768, %c0_6] : memref<1152x128xbf16, #tpu.memory_space<vmem>>, vector<384x128xbf16>
    %cst_7 = arith.constant dense<0.000000e+00> : vector<432x128xf32>
    %21 = tpu.matmul %19, %20, %cst_7 {dimension_numbers = #tpu.dot_dimension_numbers<[1], [0], [0], [1], [0, 0, 1, 1], [], []>} : vector<432x384xbf16>, vector<384x128xbf16>, vector<432x128xf32> -> vector<432x128xf32>
    %22 = arith.addf %17, %21 : vector<432x128xf32>
    %c0_8 = arith.constant 0 : index
    %c0_9 = arith.constant 0 : index
    %23 = vector.load %arg4[%c0_8, %c0_9] : memref<1x128xf32, #tpu.memory_space<vmem>>, vector<1x128xf32>
    %24 = vector.broadcast %23 : vector<1x128xf32> to vector<432x128xf32>
    %25 = arith.addf %22, %24 : vector<432x128xf32>
    %cst_10 = arith.constant 0.000000e+00 : f32
    %26 = vector.broadcast %cst_10 : f32 to vector<432x128xf32>
    %27 = arith.maximumf %25, %26 : vector<432x128xf32>
    %28 = vector.shape_cast %27 : vector<432x128xf32> to vector<18x24x128xf32>
    %29 = arith.truncf %28 : vector<18x24x128xf32> to vector<18x24x128xbf16>
    %c0_11 = arith.constant 0 : index
    %c0_12 = arith.constant 0 : index
    %c0_13 = arith.constant 0 : index
    %30 = vector.load %arg8[%c0_11, %c0_12, %c0_13] : memref<18x24x128xbf16, #tpu.memory_space<vmem>>, vector<18x24x128xbf16>
    tpu.vector_store %arg8[%c0_11, %c0_12, %c0_13], %29 {strides = array<i32>} : memref<18x24x128xbf16, #tpu.memory_space<vmem>>, vector<18x24x128xbf16>,
    %cst_14 = arith.constant 0.000000e+00 : bf16
    %31 = vector.broadcast %cst_14 : bf16 to vector<18x1x128xbf16>
    %c0_15 = arith.constant 0 : index
    %c0_16 = arith.constant 0 : index
    %c0_17 = arith.constant 0 : index
    %32 = vector.load %arg8[%c0_15, %c0_16, %c0_17] : memref<18x24x128xbf16, #tpu.memory_space<vmem>>, vector<18x1x128xbf16>
    tpu.vector_store %arg8[%c0_15, %c0_16, %c0_17], %31 {strides = array<i32>} : memref<18x24x128xbf16, #tpu.memory_space<vmem>>, vector<18x1x128xbf16>,
    %cst_18 = arith.constant 0.000000e+00 : bf16
    %33 = vector.broadcast %cst_18 : bf16 to vector<18x1x128xbf16>
    %c0_19 = arith.constant 0 : index
    %c17 = arith.constant 17 : index
    %c0_20 = arith.constant 0 : index
    %34 = vector.load %arg8[%c0_19, %c17, %c0_20] : memref<18x24x128xbf16, #tpu.memory_space<vmem>>, vector<18x1x128xbf16>
    tpu.vector_store %arg8[%c0_19, %c17, %c0_20], %33 {strides = array<i32>} : memref<18x24x128xbf16, #tpu.memory_space<vmem>>, vector<18x1x128xbf16>,
    %c0_i32 = arith.constant 0 : i32
    %35 = arith.cmpi eq, %arg1, %c0_i32 : i32
    %36 = arith.extui %35 : i1 to i32
    %c0_i32_21 = arith.constant 0 : i32
    %37 = arith.cmpi ne, %36, %c0_i32_21 : i32
    scf.if %37 {
      %cst_43 = arith.constant 0.000000e+00 : bf16
      %73 = vector.broadcast %cst_43 : bf16 to vector<1x24x128xbf16>
      %c0_44 = arith.constant 0 : index
      %c0_45 = arith.constant 0 : index
      %c0_46 = arith.constant 0 : index
      %74 = vector.load %arg8[%c0_44, %c0_45, %c0_46] : memref<18x24x128xbf16, #tpu.memory_space<vmem>>, vector<1x24x128xbf16>
      tpu.vector_store %arg8[%c0_44, %c0_45, %c0_46], %73 {strides = array<i32>} : memref<18x24x128xbf16, #tpu.memory_space<vmem>>, vector<1x24x128xbf16>,
    } else {
    }
    %c0_i32_22 = arith.constant 0 : i32
    %38 = arith.cmpi eq, %arg1, %c0_i32_22 : i32
    %39 = arith.extui %38 : i1 to i32
    %c0_i32_23 = arith.constant 0 : i32
    %40 = arith.cmpi ne, %39, %c0_i32_23 : i32
    scf.if %40 {
      %cst_43 = arith.constant 0.000000e+00 : bf16
      %73 = vector.broadcast %cst_43 : bf16 to vector<1x24x128xbf16>
      %c17_44 = arith.constant 17 : index
      %c0_45 = arith.constant 0 : index
      %c0_46 = arith.constant 0 : index
      %74 = vector.load %arg8[%c17_44, %c0_45, %c0_46] : memref<18x24x128xbf16, #tpu.memory_space<vmem>>, vector<1x24x128xbf16>
      tpu.vector_store %arg8[%c17_44, %c0_45, %c0_46], %73 {strides = array<i32>} : memref<18x24x128xbf16, #tpu.memory_space<vmem>>, vector<1x24x128xbf16>,
    } else {
    }
    %c0_24 = arith.constant 0 : index
    %c0_25 = arith.constant 0 : index
    %c0_26 = arith.constant 0 : index
    %41 = vector.load %arg8[%c0_24, %c0_25, %c0_26] : memref<18x24x128xbf16, #tpu.memory_space<vmem>>, vector<18x24x128xbf16>
    %42 = vector.extract_strided_slice %41 {offsets = [0, 0, 0], sizes = [18, 16, 128], strides = [1, 1, 1]} : vector<18x24x128xbf16> to vector<18x16x128xbf16>
    %43 = vector.extract_strided_slice %41 {offsets = [0, 1, 0], sizes = [18, 16, 128], strides = [1, 1, 1]} : vector<18x24x128xbf16> to vector<18x16x128xbf16>
    %44 = vector.extract_strided_slice %41 {offsets = [0, 2, 0], sizes = [18, 16, 128], strides = [1, 1, 1]} : vector<18x24x128xbf16> to vector<18x16x128xbf16>
    %45 = tpu.concatenate %42, %43, %44 in 2 : vector<18x16x128xbf16>, vector<18x16x128xbf16>, vector<18x16x128xbf16> -> vector<18x16x384xbf16>
    %46 = vector.extract_strided_slice %45 {offsets = [0, 0, 0], sizes = [16, 16, 384], strides = [1, 1, 1]} : vector<18x16x384xbf16> to vector<16x16x384xbf16>
    %47 = vector.shape_cast %46 : vector<16x16x384xbf16> to vector<256x384xbf16>
    %c0_27 = arith.constant 0 : index
    %c0_28 = arith.constant 0 : index
    %48 = vector.load %arg5[%c0_27, %c0_28] : memref<1152x128xbf16, #tpu.memory_space<vmem>>, vector<384x128xbf16>
    %cst_29 = arith.constant dense<0.000000e+00> : vector<256x128xf32>
    %49 = tpu.matmul %47, %48, %cst_29 {dimension_numbers = #tpu.dot_dimension_numbers<[1], [0], [0], [1], [0, 0, 1, 1], [], []>} : vector<256x384xbf16>, vector<384x128xbf16>, vector<256x128xf32> -> vector<256x128xf32>
    %50 = vector.extract_strided_slice %45 {offsets = [1, 0, 0], sizes = [16, 16, 384], strides = [1, 1, 1]} : vector<18x16x384xbf16> to vector<16x16x384xbf16>
    %51 = vector.shape_cast %50 : vector<16x16x384xbf16> to vector<256x384xbf16>
    %c384_30 = arith.constant 384 : index
    %c0_31 = arith.constant 0 : index
    %52 = vector.load %arg5[%c384_30, %c0_31] : memref<1152x128xbf16, #tpu.memory_space<vmem>>, vector<384x128xbf16>
    %cst_32 = arith.constant dense<0.000000e+00> : vector<256x128xf32>
    %53 = tpu.matmul %51, %52, %cst_32 {dimension_numbers = #tpu.dot_dimension_numbers<[1], [0], [0], [1], [0, 0, 1, 1], [], []>} : vector<256x384xbf16>, vector<384x128xbf16>, vector<256x128xf32> -> vector<256x128xf32>
    %54 = arith.addf %49, %53 : vector<256x128xf32>
    %55 = vector.extract_strided_slice %45 {offsets = [2, 0, 0], sizes = [16, 16, 384], strides = [1, 1, 1]} : vector<18x16x384xbf16> to vector<16x16x384xbf16>
    %56 = vector.shape_cast %55 : vector<16x16x384xbf16> to vector<256x384xbf16>
    %c768_33 = arith.constant 768 : index
    %c0_34 = arith.constant 0 : index
    %57 = vector.load %arg5[%c768_33, %c0_34] : memref<1152x128xbf16, #tpu.memory_space<vmem>>, vector<384x128xbf16>
    %cst_35 = arith.constant dense<0.000000e+00> : vector<256x128xf32>
    %58 = tpu.matmul %56, %57, %cst_35 {dimension_numbers = #tpu.dot_dimension_numbers<[1], [0], [0], [1], [0, 0, 1, 1], [], []>} : vector<256x384xbf16>, vector<384x128xbf16>, vector<256x128xf32> -> vector<256x128xf32>
    %59 = arith.addf %54, %58 : vector<256x128xf32>
    %c0_36 = arith.constant 0 : index
    %c0_37 = arith.constant 0 : index
    %60 = vector.load %arg6[%c0_36, %c0_37] : memref<1x128xf32, #tpu.memory_space<vmem>>, vector<1x128xf32>
    %61 = vector.broadcast %60 : vector<1x128xf32> to vector<256x128xf32>
    %62 = arith.addf %59, %61 : vector<256x128xf32>
    %63 = vector.extract_strided_slice %4 {offsets = [2, 2, 0], sizes = [16, 16, 128], strides = [1, 1, 1]} : vector<20x26x128xbf16> to vector<16x16x128xbf16>
    %64 = vector.shape_cast %63 : vector<16x16x128xbf16> to vector<256x128xbf16>
    %65 = arith.extf %64 : vector<256x128xbf16> to vector<256x128xf32>
    %66 = arith.addf %62, %65 : vector<256x128xf32>
    %cst_38 = arith.constant 0.000000e+00 : f32
    %67 = vector.broadcast %cst_38 : f32 to vector<256x128xf32>
    %68 = arith.maximumf %66, %67 : vector<256x128xf32>
    %69 = arith.truncf %68 : vector<256x128xf32> to vector<256x128xbf16>
    %c0_39 = arith.constant 0 : index
    %c0_40 = arith.constant 0 : index
    %c0_41 = arith.constant 0 : index
    %c0_42 = arith.constant 0 : index
    %70 = vector.load %arg7[%c0_39, %c0_40, %c0_41, %c0_42] : memref<1x1x256x128xbf16, #tpu.memory_space<vmem>>, vector<1x1x256x128xbf16>
    %71 = vector.shape_cast %70 : vector<1x1x256x128xbf16> to vector<256x128xbf16>
    %72 = vector.shape_cast %69 : vector<256x128xbf16> to vector<1x1x256x128xbf16>
    tpu.vector_store %arg7[%c0_39, %c0_40, %c0_41, %c0_42], %72 {strides = array<i32>} : memref<1x1x256x128xbf16, #tpu.memory_space<vmem>>, vector<1x1x256x128xbf16>,
    return
  }
  func.func @transform_0(%arg0: i32, %arg1: i32) -> (i32, i32, i32, i32) {
    %c0_i32 = arith.constant 0 : i32
    %c0_i32_0 = arith.constant 0 : i32
    %c0_i32_1 = arith.constant 0 : i32
    %c0_i32_2 = arith.constant 0 : i32
    return %arg0, %c0_i32, %c0_i32_0, %c0_i32_1 : i32, i32, i32, i32
  }
  func.func @transform_1(%arg0: i32, %arg1: i32) -> (i32, i32) {
    %c0_i32 = arith.constant 0 : i32
    %c0_i32_0 = arith.constant 0 : i32
    %c0_i32_1 = arith.constant 0 : i32
    return %c0_i32, %c0_i32_0 : i32, i32
  }
  func.func @transform_2(%arg0: i32, %arg1: i32) -> (i32, i32) {
    %c0_i32 = arith.constant 0 : i32
    %c0_i32_0 = arith.constant 0 : i32
    %c0_i32_1 = arith.constant 0 : i32
    return %c0_i32, %c0_i32_0 : i32, i32
  }
  func.func @transform_3(%arg0: i32, %arg1: i32) -> (i32, i32) {
    %c0_i32 = arith.constant 0 : i32
    %c0_i32_0 = arith.constant 0 : i32
    %c0_i32_1 = arith.constant 0 : i32
    return %c0_i32, %c0_i32_0 : i32, i32
  }
  func.func @transform_4(%arg0: i32, %arg1: i32) -> (i32, i32) {
    %c0_i32 = arith.constant 0 : i32
    %c0_i32_0 = arith.constant 0 : i32
    %c0_i32_1 = arith.constant 0 : i32
    return %c0_i32, %c0_i32_0 : i32, i32
  }
  func.func @transform_5(%arg0: i32, %arg1: i32) -> (i32, i32, i32, i32) {
    %c0_i32 = arith.constant 0 : i32
    %c0_i32_0 = arith.constant 0 : i32
    %c0_i32_1 = arith.constant 0 : i32
    return %arg0, %arg1, %c0_i32, %c0_i32_0 : i32, i32, i32, i32
  }
}

</mosaic_0001>

<bundles_post_ra>
// kernel: tpu_custom_call.1
= control target key start
LH: loop header
LB: loop body
LE: loop exit
PB: predicated region body
PF: predicated region fallthrough
CT: control target
= control target key end

     0   :  { %10 = vsyncpa [#allocation4], 0  ;;  %s11044_s0 = inlined_call_operand.vmem [shape: bf16[2,20,26,128], index: 0, kind: input, shape index: {}]   ;;  %s11045_s1 = inlined_call_operand.vmem [shape: bf16[1152,128], index: 1, kind: input, shape index: {}]   ;;  %s11046_s2 = inlined_call_operand.vmem [shape: f32[1,128], index: 2, kind: input, shape index: {}]   ;;  %s11047_s3 = inlined_call_operand.vmem [shape: bf16[1152,128], index: 3, kind: input, shape index: {}]   ;;  %s11048_s4 = inlined_call_operand.vmem [shape: f32[1,128], index: 4, kind: input, shape index: {}]   ;;  %s11049_s5 = inlined_call_operand.hbm [shape: bf16[2,1,256,128], index: 5, kind: output, shape index: {}]  }
   0x1   :  { %12 = vsyncpa [#allocation4 + $0x1], 0  ;;  %s7333_s18 = smov 0   ;;  %s7335_s19 = smov 0  }
   0x2   :  { %s7337_s20 = smov 0   ;;  %s7339_s21 = smov 0  }
   0x3   :  { %s7341_s22 = smov 0   ;;  %s7343_s23 = smov 0  }
   0x4 LB: > { %s5964_s24 = sadd.s32 4294967295, %s7298_s23   ;;  %s5965_s25 = sadd.s32 4294967294, %s7298_s23   ;;  %s7298_s23 = sphi %s7343_s23, %s18_s23   ;;  %s7294_s22 = sphi %s7341_s22, %s11974_s22   ;;  %s7290_s21 = sphi %s7339_s21, %s11973_s21   ;;  %s7286_s20 = sphi %s7337_s20, %s11972_s20   ;;  %s7282_s19 = sphi %s7335_s19, %s11971_s19   ;;  %s7278_s18 = sphi %s7333_s18, %s11970_s18  }
   0x5   : > { %s30_s26 = sadd.s32 1, %s7294_s22  ;;  %s149_s27 = sadd.s32 1, %s7286_s20 }
   0x6   : > { %p32_p0 = scmp.ge.s32.totalorder %s30_s26, 2  ;;  %p159_p1 = scmp.ne.s32.totalorder %s7286_s20, %s7282_s19 }
   0x7   : > { %p160_p2 = scmp.eq.s32.totalorder %s5964_s24, 1  ;;  %p165_p3 = scmp.ne.s32.totalorder %s7282_s19, %s7278_s18 }
   0x8   : > { %s11976_s26 = smov (%p32_p0, %s30_s26), 0  ;;  %p166_p5 = scmp.eq.s32.totalorder %s5965_s25, 1 }
   0x9   : > { %p7373_p4 = por %p160_p2, %p159_p1  ;;  %s144_s29 = ssub.s32 %s7294_s22, %s11976_s26 }
   0xa   : > { %p5968_p6 = scmp.ge.s32.totalorder %s7298_s23, 1  ;;  %p147_p7 = scmp.eq.s32.totalorder %s144_s29, 0 }
   0xb   : > { %p7380_p8 = por %p166_p5, %p165_p3  ;;  %p204_p9 = scmp.lt.s32.totalorder %s7298_s23, 3 }
   0xc   : > { %s7386_s6 = scalar_select %p147_p7, %s7286_s20, %s149_s27  }
   0xd   : > { %p205_p10 = pnand %p5968_p6, %p204_p9 }
   0xf   : > { %208 = sbr.rel (%p205_p10) target bundleno = 2155 (0x86b), region = 40 }
  0x14   : > { %v6676_v0 = vld [vmem:[%s11045_s1 + $0xf8] sm:$0xff]  ;;  %p232_p11 = scmp.lt.s32.totalorder %s7290_s21, 1  ;;  %v6675_v3 = vld [vmem:[%s11045_s1 + $0xf0] sm:$0xff]  ;;  %v6674_v6 = vld [vmem:[%s11045_s1 + $0xe8] sm:$0xff]  ;;  %vm522_vm0 = vsmask.f32 7424 }
  0x15   : > { %v6684_v1 = vld [vmem:[%s11045_s1 + $0x138] sm:$0xff]  ;;  %1391 = vmatpush.bf16.msra.mxu0 %v6676_v0  ;;  %v6683_v4 = vld [vmem:[%s11045_s1 + $0x130] sm:$0xff]  ;;  %v6682_v7 = vld [vmem:[%s11045_s1 + $0x128] sm:$0xff]  ;;  %vm823_vm1 = vcmask 1046528   ;;  %vm3473_vm2 = vcmask 1040384   ;;  %vm5564_vm7 = vcmask 1042432  }
  0x16   : > { %v7397_v2 = vld [vmem:[%s11045_s1 + $0x178] sm:$0xff]  ;;  %1535 = vmatpush.bf16.msra.mxu1 %v6684_v1  ;;  %s233_s17 = scalar_select %p232_p11, %s7290_s21, 1  ;;  %7079 = vmatpush.bf16.msra.mxu3 %v6684_v1  ;;  %v7411_v5 = vld [vmem:[%s11045_s1 + $0x170] sm:$0xff]  ;;  %v7428_v8 = vld [vmem:[%s11045_s1 + $0x168] sm:$0xff]  ;;  %vm3474_vm3 = vsmask.f32 256 }
  0x17   : > { %1679 = vmatpush.bf16.msra.mxu2 %v7397_v2  ;;  %v6673_v9 = vld [vmem:[%s11045_s1 + $0xe0] sm:$0xff]  ;;  %v6672_v27 = vld [vmem:[%s11045_s1 + $0xd8] sm:$0xff]  ;;  %v6671_v44 = vld [vmem:[%s11045_s1 + $0xd0] sm:$0xff]  ;;  %vm3530_vm5 = vsmask.f32 7938  ;;  %vm5565_vm8 = vcmask 1046532  }
  0x18   : > { %s7095_s27 = smul.u32 320, %s233_s17  ;;  %v6681_v10 = vld [vmem:[%s11045_s1 + $0x120] sm:$0xff]  ;;  %v6680_v28 = vld [vmem:[%s11045_s1 + $0x118] sm:$0xff]  ;;  %v6679_v45 = vld [vmem:[%s11045_s1 + $0x110] sm:$0xff]  ;;  %s229_s10 = sand.u32 1, %s7282_s19  }
  0x19   : > { %1392 = vmatpush.bf16.msra.mxu0 %v6675_v3  ;;  %v7453_v20 = vld [vmem:[%s11045_s1 + $0x160] sm:$0xff]  ;;  %v7480_v32 = vld [vmem:[%s11045_s1 + $0x158] sm:$0xff]  ;;  %v7518_v50 = vld [vmem:[%s11045_s1 + $0x150] sm:$0xff]  ;;  %s5969_s11 = sshll.u32 %s229_s10, 7  ;;  %s7240_s8 = scalar_lea.hbm %s11049_s5, 256 }
  0x1a   : > { %1536 = vmatpush.bf16.msra.mxu1 %v6683_v4  ;;  %s7422_s12 = scalar_lea.vmem %s11044_s0, %s7095_s27  ;;  %7080 = vmatpush.bf16.msra.mxu3 %v6683_v4  ;;  %v6670_v58 = vld [vmem:[%s11045_s1 + $0xc8] sm:$0xff]  ;;  %vm9493_vm4 = vmand %vm3473_vm2, %vm3474_vm3  ;;  %s10621_s13 = scalar_lea.vmem [#allocation3], %s5969_s11 }
  0x1b   : > { %1680 = vmatpush.bf16.msra.mxu2 %v7411_v5  ;;  %v248_v11 = vld [vmem:[%s7422_s12 + $0x18] sm:$0xf]  ;;  %v249_v12 = vld [vmem:[%s7422_s12 + $0x1c] sm:$0x1]  ;;  %v7441_v15 = vld [vmem:[%s7422_s12 + $0x100] sm:$0xf] }
  0x1c   : > { %v304_v13 = vld [vmem:[%s7422_s12 + $0xf8] sm:$0xf]  ;;  %v305_v14 = vld [vmem:[%s7422_s12 + $0xfc] sm:$0x1]  ;;  %v7444_v16 = vld [vmem:[%s7422_s12 + $0x104] sm:$0xf]  ;;  %v11057_v22 = vunpack.c.l.b16 %v7441_v15  ;;  %v7469_v29 = vunpack.c.l.b16 %v248_v11  ;;  %v463_v30 = vunpack.c.l.b16 %v249_v12 }
  0x1d   : > { %1393 = vmatpush.bf16.msra.mxu0 %v6674_v6  ;;  %v308_v17 = vld [vmem:[%s7422_s12 + $0x108] sm:$0xf]  ;;  %v7447_v18 = vunpack.c.l.b16 %v304_v13  ;;  %v477_v19 = vunpack.c.l.b16 %v305_v14  ;;  %v309_v21 = vld [vmem:[%s7422_s12 + $0x10c] sm:$0x1]  ;;  %v11056_v23 = vunpack.c.l.b16 %v7444_v16  ;;  %v7483_v33 = vld [vmem:[%s7422_s12 + $0x10] sm:$0xff]   ;;  %s5886_s17 = sshll.u32 %s10621_s13, 4  ;;  %s5887_s17 = int_to_ptr.vmem [resolvable:$true] %s5886_s17 }
  0x1e   : > { %1537 = vmatpush.bf16.msra.mxu1 %v6682_v7  ;;  %7081 = vmatpush.bf16.msra.mxu3 %v6682_v7  ;;  %v7458_v24 = vunpack.c.l.b16 %v308_v17  ;;  %v478_v25 = vunpack.c.l.b16 %v309_v21  ;;  %v7493_v38 = vld [vmem:[%s7422_s12 + $0x20] sm:$0xf]  ;;  %v7496_v39 = vld [vmem:[%s7422_s12 + $0x24] sm:$0xf]  ;;  %v7500_v41 = vpack.c.b16 %v463_v30, %v7469_v29  ;;  %v541_v42 = vshll.u32 %v7483_v33, 16  ;;  %v6678_v59 = vld [vmem:[%s11045_s1 + $0x108] sm:$0xff] }
  0x1f   : > { %1681 = vmatpush.bf16.msra.mxu2 %v7428_v8  ;;  %v7461_v26 = vpack.c.b16 %v477_v19, %v7447_v18  ;;  %v7475_v31 = vpack.c.b16 %v11056_v23, %v11057_v22  ;;  %v388_v48 = vunpack.c.l.b16 %v7493_v38  ;;  %v389_v49 = vunpack.c.l.b16 %v7496_v39  ;;  %v252_v53 = vld [vmem:[%s7422_s12 + $0x28] sm:$0xf]  ;;  %v253_v54 = vld [vmem:[%s7422_s12 + $0x2c] sm:$0x1]  ;;  %v6669_v6 = vld [vmem:[%s11045_s1 + $0xc0] sm:$0xff] }
  0x20   : > { %v7486_v34 = vpack.c.b16 %v478_v25, %v7458_v24  ;;  %v539_v55 = vshrl.u32 %v7483_v33, 16  ;;  %v543_v56 = vrot.slane %v541_v42, 1  ;;  %v546_v57 = vshll.u32 %v7500_v41, 16  ;;  %v7545_v0 = vld [vmem:[%s11045_s1 + $0x148] sm:$0xff]  ;;  %v6677_v7 = vld [vmem:[%s11045_s1 + $0x100] sm:$0xff]  ;;  %v6660_v19 = vld [vmem:[%s11045_s1 + $0x78] sm:$0xff] }
  0x21   : > { %11272 = vst [vmem:[#allocation6_spill] sm:$0xff] %v7475_v31  ;;  %1394 = vmatpush.bf16.msra.mxu0 %v6673_v9  ;;  %v756_v35 = vshll.u32 %v7461_v26, 16  ;;  %v764_v36 = vshrl.u32 %v7475_v31, 16  ;;  %v766_v37 = vshll.u32 %v7475_v31, 16  ;;  %v760_v47 = vshrl.u32 %v7461_v26, 16  ;;  %v7566_v13 = vld [vmem:[%s11045_s1 + $0x140] sm:$0xff]  ;;  %vm9538_vm6 = vmand %vm3473_vm2, %vm3530_vm5 }
  0x22   : > { %1538 = vmatpush.bf16.msra.mxu1 %v6681_v10  ;;  %7082 = vmatpush.bf16.msra.mxu3 %v6681_v10  ;;  %v771_v40 = vshll.u32 %v7486_v34, 16  ;;  %v7537_v61 = vpack.c.b16 %v389_v49, %v388_v48  ;;  %v7539_v62 = vunpack.c.l.b16 %v252_v53  ;;  %v464_v63 = vunpack.c.l.b16 %v253_v54  ;;  %v7607_v53 = vld [vmem:[%s7422_s12 + $0x114] sm:$0xf]  ;;  %vm10546_vm9 = vmor %vm5564_vm7, %vm5565_vm8 }
  0x23   : > { %1682 = vmatpush.bf16.msra.mxu2 %v7453_v20  ;;  %v768_v43 = vrot.slane %v766_v37, 1  ;;  %v7509_v46 = vrot.slane %v756_v35, 1  ;;  %v544_v3 = vor.u32 %v543_v56, %v539_v55  ;;  %v548_v4 = vrot.slane %v546_v57, 1  ;;  %11283 = vst [vmem:[#allocation17_spill] sm:$0xff] %v7607_v53 }
  0x24   : > { %v773_v52 = vrot.slane %v771_v40, 1  ;;  %11274 = vst [vmem:[#allocation8_spill] sm:$0xff] %v7537_v61  ;;  %v7559_v11 = vpack.c.b16 %v464_v63, %v7539_v62  ;;  %v556_v12 = vshll.u32 %v7537_v61, 16  ;;  %v827_v14 = vrot.slane %v7483_v33, 1  ;;  %v312_v63 = vld [vmem:[%s7422_s12 + $0x118] sm:$0xf] }
  0x25   : > { %1395 = vmatpush.bf16.msra.mxu0 %v6672_v27  ;;  %v769_v51 = vor.u32 %v768_v43, %v764_v36  ;;  %v7531_v60 = vor.u32 %v760_v47, %v7509_v46  ;;  %v828_v17 = vrot.slane %v7500_v41, 1  ;;  %v7574_v21 = vsel %vm522_vm0, %v544_v3, %v548_v4  ;;  %v313_v3 = vld [vmem:[%s7422_s12 + $0x11c] sm:$0x1] }
  0x26   : > { %1539 = vmatpush.bf16.msra.mxu1 %v6680_v28  ;;  %7083 = vmatpush.bf16.msra.mxu3 %v6680_v28  ;;  %11276 = vst [vmem:[#allocation10_spill] sm:$0xff] %v7574_v21  ;;  %v554_v27 = vshrl.u32 %v7537_v61, 16  ;;  %v558_v28 = vrot.slane %v556_v12, 1  ;;  %v561_v30 = vshll.u32 %v7559_v11, 16  ;;  %v550_v36 = vshrl.u32 %v7500_v41, 16 }
  0x27   : > { %1683 = vmatpush.bf16.msra.mxu2 %v7480_v32  ;;  %11273 = vst [vmem:[#allocation7_spill] sm:$0xff] %v7531_v60  ;;  %v7548_v1 = vsel %vm522_vm0, %v769_v51, %v773_v52  ;;  %v11051_v9 = vunpack.c.l.b16 %v7531_v60  ;;  %v7582_v35 = vsel %vm823_vm1, %v827_v14, %v828_v17  ;;  %v775_v42 = vshrl.u32 %v7486_v34, 16  ;;  %v7604_v51 = vld [vmem:[%s7422_s12 + $0x110] sm:$0xf] }
  0x28   : > { %11275 = vst [vmem:[#allocation9_spill] sm:$0xff] %v7548_v1  ;;  %v980_v10 = vunpack.c.l.b16 %v7548_v1  ;;  %v559_v37 = vor.u32 %v558_v28, %v554_v27  ;;  %v563_v40 = vrot.slane %v561_v30, 1  ;;  %v830_v43 = vrot.slane %v7537_v61, 1  ;;  %v7654_v27 = vld [vmem:[%s7422_s12 + $0x30] sm:$0xf] }
  0x29   : > { %1396 = vmatpush.bf16.msra.mxu0 %v6671_v44  ;;  %11277 = vst [vmem:[#allocation11_spill] sm:$0xff] %v7582_v35  ;;  %v831_v44 = vrot.slane %v7559_v11, 1  ;;  %v7598_v41 = vor.u32 %v775_v42, %v773_v52  ;;  %v982_v55 = vunpack.c.h.b16 %v7548_v1  ;;  %v7614_v57 = vunpack.c.l.b16 %v828_v17  ;;  %v7657_v28 = vld [vmem:[%s7422_s12 + $0x34] sm:$0xf]  ;;  %v7804_v1 = vld [vmem:[%s7422_s12 + $0x64] sm:$0xf] }
  0x2a   : > { %1540 = vmatpush.bf16.msra.mxu1 %v6679_v45  ;;  %7084 = vmatpush.bf16.msra.mxu3 %v6679_v45  ;;  %v1153_v25 = vpack.c.b16 %v980_v10, %v11051_v9  ;;  %v7596_v45 = vsel %vm522_vm0, %v559_v37, %v563_v40  ;;  %11282 = vst [vmem:[#allocation16_spill] sm:$0xff] %v7604_v51  ;;  %v7630_v10 = vunpack.c.l.b16 %v312_v63  ;;  %v479_v12 = vunpack.c.l.b16 %v313_v3  ;;  %v256_v3 = vld [vmem:[%s7422_s12 + $0x38] sm:$0xf] }
  0x2b   : > { %1684 = vmatpush.bf16.msra.mxu2 %v7518_v50  ;;  %11279 = vst [vmem:[#allocation13_spill] sm:$0xff] %v7596_v45  ;;  %v7601_v47 = vsel %vm823_vm1, %v830_v43, %v831_v44  ;;  %v896_v54 = vunpack.c.l.b16 %v7596_v45  ;;  %v11050_v56 = vunpack.c.l.b16 %v7598_v41  ;;  %v565_v38 = vshrl.u32 %v7559_v11, 16  ;;  %v7663_v43 = vld [vmem:[%s7422_s12 + $0x120] sm:$0xff]  }
  0x2c   : > { %11280 = vst [vmem:[#allocation14_spill] sm:$0xff] %v7598_v41  ;;  %v897_v52 = vunpack.c.l.b16 %v7601_v47  ;;  %v7644_v14 = vpack.c.b16 %v479_v12, %v7630_v10  ;;  %v7671_v63 = vunpack.c.l.b16 %v831_v44  ;;  %v1099_v12 = vpack.c.b16 %v7539_v62, %v389_v49 }
  0x2d   : > { %1397 = vmatpush.bf16.msra.mxu0 %v6670_v58  ;;  %11281 = vst [vmem:[#allocation15_spill] sm:$0xff] %v7601_v47  ;;  %v11053_v58 = vunpack.c.l.b16 %v7604_v51 }
  0x2e   : > { %1541 = vmatpush.bf16.msra.mxu1 %v6678_v59  ;;  %7085 = vmatpush.bf16.msra.mxu3 %v6678_v59  ;;  %11284 = vst [vmem:[#allocation18_spill] sm:$0xff] %v7614_v57  ;;  %v11052_v59 = vunpack.c.l.b16 %v7607_v53 }
  0x2f   : > { %1685 = vmatpush.bf16.msra.mxu2 %v7545_v0  ;;  %11285 = vst [vmem:[#allocation19_spill] sm:$0xff] %v7630_v10 }
  0x30   : > { %11288 = vst [vmem:[#allocation22_spill] sm:$0xff] %v7671_v63 }
  0x31   : > { %1398 = vmatpush.bf16.msra.mxu0 %v6669_v6  ;;  %v1156_v6 = vpack.c.b16 %v11050_v56, %v982_v55  ;;  %v11059_v55 = vunpack.c.l.b16 %v7657_v28  ;;  %v261_v56 = vld [vmem:[%s7422_s12 + $0x4c] sm:$0x1] }
  0x32   : > { %1542 = vmatpush.bf16.msra.mxu1 %v6677_v7  ;;  %7086 = vmatpush.bf16.msra.mxu3 %v6677_v7  ;;  %v1098_v7 = vpack.c.b16 %v897_v52, %v7614_v57  ;;  %v899_v52 = vunpack.c.h.b16 %v7601_v47 }
  0x33   : > { %1686 = vmatpush.bf16.msra.mxu2 %v7566_v13 }
  0x34   : > { %1399 = vmatmul.bf16.vlgmr.msra.gmra.mxu0 %v7483_v33 }
  0x35   : > { %2264 = vmatpush.bf16.msrb.mxu0 %v6660_v19  ;;  %1543 = vmatmul.bf16.vlgmr.msra.gmra.mxu1 %v7574_v21  ;;  %v316_v19 = vld [vmem:[%s7422_s12 + $0x128] sm:$0xf] }
  0x36   : > { %7087 = vmatpush.bf16.msrb.mxu3 %v7397_v2  ;;  %1687 = vmatmul.bf16.vlgmr.msra.gmra.mxu2 %v7582_v35  ;;  %v7593_v2 = vor.u32 %v550_v36, %v548_v4  ;;  %v786_v36 = vshll.u32 %v7644_v14, 16  ;;  %v7660_v37 = vunpack.c.l.b16 %v316_v19  ;;  %v1101_v19 = vpack.c.b16 %v7671_v63, %v899_v52 }
  0x37   : > { %1653 = vmatmul.bf16.vlgmr.msra.gmra.mxu3 %v1153_v25  ;;  %v317_v25 = vld [vmem:[%s7422_s12 + $0x12c] sm:$0x1] }
  0x38   : > { %11278 = vst [vmem:[#allocation12_spill] sm:$0xff] %v7593_v2  ;;  %v480_v42 = vunpack.c.l.b16 %v317_v25  ;;  %v794_v25 = vshrl.u32 %v7663_v43, 16 }
  0x39   : > { %11287 = vst [vmem:[#allocation21_spill] sm:$0xff] %v7660_v37 }
  0x3a   : > { %7088 = vmatpush.bf16.msrb.mxu3 %v7411_v5  ;;  %v11055_v5 = vunpack.c.l.b16 %v7593_v2  ;;  %v8043_v2 = vld [vmem:[%s7422_s12 + $0xa4] sm:$0xf] }
  0x3c   : > { %v1097_v4 = vpack.c.b16 %v896_v54, %v11055_v5  ;;  %v11060_v54 = vunpack.c.l.b16 %v7654_v27 }
  0x3e   : > { %7089 = vmatpush.bf16.msrb.mxu3 %v7428_v8  ;;  %v1096_v8 = vpack.c.b16 %v388_v48, %v7469_v29  ;;  %v6659_v48 = vld [vmem:[%s11045_s1 + $0x70] sm:$0xff] }
  0x3f   : > { %2265 = vmatpush.bf16.msrb.mxu0 %v6659_v48  ;;  %v7689_v48 = vunpack.c.l.b16 %v256_v3 }
  0x42   : > { %7090 = vmatpush.bf16.msrb.mxu3 %v7453_v20  ;;  %v7636_v20 = vpack.c.b16 %v11052_v59, %v11053_v58 }
  0x44   : > { %1404 = vmatmul.bf16.gmra.mxu0 %v1096_v8  ;;  %v781_v17 = vshll.u32 %v7636_v20, 16  ;;  %v779_v11 = vshrl.u32 %v7636_v20, 16  ;;  %v257_v8 = vld [vmem:[%s7422_s12 + $0x3c] sm:$0x1] }
  0x45   : > { %1548 = vmatmul.bf16.gmra.mxu1 %v1097_v4 }
  0x46   : > { %7091 = vmatpush.bf16.msrb.mxu3 %v7480_v32  ;;  %1692 = vmatmul.bf16.gmra.mxu2 %v1098_v7  ;;  %v7650_v32 = vor.u32 %v565_v38, %v563_v40  ;;  %v783_v30 = vrot.slane %v781_v17, 1  ;;  %v796_v7 = vshll.u32 %v7663_v43, 16  ;;  %v488_v38 = vpack.c.b16 %v11059_v55, %v11060_v54 }
  0x47   : > { %1658 = vmatmul.bf16.gmra.mxu3 %v1156_v6  ;;  %v788_v6 = vrot.slane %v786_v36, 1  ;;  %v465_v17 = vunpack.c.l.b16 %v257_v8  ;;  %v873_v54 = vrot.slane %v7486_v34, 1 }
  0x48   : > { %11286 = vst [vmem:[#allocation20_spill] sm:$0xff] %v7650_v32  ;;  %v11054_v40 = vunpack.c.l.b16 %v7650_v32  ;;  %v784_v4 = vor.u32 %v783_v30, %v779_v11  ;;  %v798_v49 = vrot.slane %v796_v7, 1  ;;  %v258_v11 = vld [vmem:[%s7422_s12 + $0x40] sm:$0xf]  ;;  %v7699_v30 = vld [vmem:[%s7422_s12 + $0x44] sm:$0xf] }
  0x49   : > { %v489_v36 = vpack.c.b16 %v465_v17, %v7689_v48  ;;  %v394_v52 = vunpack.c.l.b16 %v258_v11  ;;  %v395_v3 = vunpack.c.l.b16 %v7699_v30  ;;  %v260_v7 = vld [vmem:[%s7422_s12 + $0x48] sm:$0xf]  ;;  %v569_v9 = vshrl.u32 %v488_v38, 16  ;;  %v266_v30 = vld [vmem:[%s7422_s12 + $0x60] sm:$0xf] }
  0x4a   : > { %7092 = vmatpush.bf16.msrb.mxu3 %v7518_v50  ;;  %v898_v50 = vunpack.c.h.b16 %v7596_v45  ;;  %v7694_v39 = vsel %vm522_vm0, %v784_v4, %v788_v6  ;;  %v799_v8 = vor.u32 %v798_v49, %v794_v25  ;;  %v7713_v17 = vunpack.c.l.b16 %v260_v7 }
  0x4b   : > { %11289 = vst [vmem:[#allocation23_spill] sm:$0xff] %v7694_v39  ;;  %v576_v58 = vshll.u32 %v489_v36, 16  ;;  %v834_v5 = vrot.slane %v489_v36, 1  ;;  %v580_v7 = vshrl.u32 %v489_v36, 16 }
  0x4c   : > { %v1100_v44 = vpack.c.b16 %v11054_v40, %v898_v50  ;;  %v790_v50 = vshrl.u32 %v7644_v14, 16 }
  0x4d   : > { %v578_v25 = vrot.slane %v576_v58, 1 }
  0x4e   : > { %7093 = vmatpush.bf16.msrb.mxu3 %v7545_v0  ;;  %v7676_v0 = vpack.c.b16 %v480_v42, %v7660_v37  ;;  %v571_v42 = vshll.u32 %v488_v38, 16 }
  0x4f   : > { %v7735_v55 = vor.u32 %v580_v7, %v578_v25  ;;  %v1104_v7 = vpack.c.b16 %v394_v52, %v7689_v48 }
  0x50   : > { %v573_v59 = vrot.slane %v571_v42, 1  ;;  %v805_v22 = vshrl.u32 %v7676_v0, 16 }
  0x51   : > { %11295 = vst [vmem:[#allocation29_spill] sm:$0xff] %v7735_v55  ;;  %v11062_v36 = vunpack.c.l.b16 %v7735_v55 }
  0x52   : > { %7094 = vmatpush.bf16.msrb.mxu3 %v7566_v13  ;;  %v801_v13 = vshll.u32 %v7676_v0, 16  ;;  %v574_v40 = vor.u32 %v573_v59, %v569_v9 }
  0x54   : > { %1409 = vmatmul.bf16.gmra.mxu0 %v1099_v12  ;;  %v803_v4 = vrot.slane %v801_v13, 1  ;;  %v7707_v12 = vor.u32 %v790_v50, %v788_v6  ;;  %v833_v50 = vrot.slane %v488_v38, 1  ;;  %v7723_v23 = vsel %vm522_vm0, %v574_v40, %v578_v25 }
  0x55   : > { %1553 = vmatmul.bf16.gmra.mxu1 %v1100_v44  ;;  %v7711_v44 = vpack.c.b16 %v395_v3, %v394_v52  ;;  %11293 = vst [vmem:[#allocation27_spill] sm:$0xff] %v7723_v23  ;;  %v872_v52 = vrot.slane %v7475_v31, 1 }
  0x56   : > { %1697 = vmatmul.bf16.gmra.mxu2 %v1101_v19  ;;  %11290 = vst [vmem:[#allocation24_spill] sm:$0xff] %v7707_v12  ;;  %v466_v19 = vunpack.c.l.b16 %v261_v56  ;;  %v7716_v11 = vsel %vm522_vm0, %v799_v8, %v803_v4  ;;  %v11058_v49 = vunpack.c.l.b16 %v7707_v12  ;;  %v7729_v59 = vsel %vm823_vm1, %v833_v50, %v834_v5 }
  0x57   : > { %1663 = vmatmul.bf16.gmra.mxu3 %v7694_v39  ;;  %11291 = vst [vmem:[#allocation25_spill] sm:$0xff] %v7711_v44  ;;  %v1040_v13 = vunpack.c.l.b16 %v7716_v11  ;;  %v586_v6 = vshll.u32 %v7711_v44, 16  ;;  %v584_v8 = vshrl.u32 %v7711_v44, 16  ;;  %v7740_v50 = vor.u32 %v805_v22, %v803_v4 }
  0x58   : > { %11292 = vst [vmem:[#allocation26_spill] sm:$0xff] %v7716_v11  ;;  %v491_v42 = vpack.c.b16 %v466_v19, %v7713_v17 }
  0x59   : > { %v1161_v56 = vpack.c.b16 %v1040_v13, %v11058_v49  ;;  %v588_v9 = vrot.slane %v586_v6, 1  ;;  %11294 = vst [vmem:[#allocation28_spill] sm:$0xff] %v7729_v59  ;;  %v836_v13 = vrot.slane %v7711_v44, 1 }
  0x5a   : > { %v591_v58 = vshll.u32 %v491_v42, 16  ;;  %v837_v49 = vrot.slane %v491_v42, 1  ;;  %11297 = vst [vmem:[#allocation31_spill] sm:$0xff] %v7740_v50 }
  0x5b   : > { %v589_v19 = vor.u32 %v588_v9, %v584_v8  ;;  %v1042_v8 = vunpack.c.h.b16 %v7716_v11  ;;  %v11061_v9 = vunpack.c.l.b16 %v7740_v50 }
  0x5c   : > { %v593_v40 = vrot.slane %v591_v58, 1  ;;  %v7749_v58 = vunpack.c.l.b16 %v834_v5  ;;  %v6658_v5 = vld [vmem:[%s11045_s1 + $0x68] sm:$0xff] }
  0x5d   : > { %v1164_v4 = vpack.c.b16 %v11061_v9, %v1042_v8  ;;  %2266 = vmatpush.bf16.msrb.mxu0 %v6658_v5  ;;  %v11065_v8 = vrot.slane %v7461_v26, 1  ;;  %v264_v9 = vld [vmem:[%s7422_s12 + $0x58] sm:$0xf] }
  0x5e   : > { %v7738_v6 = vsel %vm522_vm0, %v589_v19, %v593_v40  ;;  %11299 = vst [vmem:[#allocation33_spill] sm:$0xff] %v7749_v58  ;;  %v7800_v41 = vunpack.c.l.b16 %v264_v9 }
  0x5f   : > { %11296 = vst [vmem:[#allocation30_spill] sm:$0xff] %v7738_v6  ;;  %v7784_v5 = vunpack.c.l.b16 %v11065_v8 }
  0x61   : > { %11303 = vst [vmem:[#allocation37_spill] sm:$0xff] %v7784_v5 }
  0x64   : > { %1414 = vmatmul.bf16.gmra.mxu0 %v488_v38  ;;  %v7743_v38 = vsel %vm823_vm1, %v836_v13, %v837_v49  ;;  %v595_v13 = vshrl.u32 %v491_v42, 16  ;;  %v7770_v42 = vld [vmem:[%s7422_s12 + $0x54] sm:$0xf] }
  0x65   : > { %1558 = vmatmul.bf16.gmra.mxu1 %v7723_v23  ;;  %11298 = vst [vmem:[#allocation32_spill] sm:$0xff] %v7743_v38  ;;  %v909_v25 = vunpack.c.l.b16 %v7743_v38 }
  0x66   : > { %1702 = vmatmul.bf16.gmra.mxu2 %v7729_v59 }
  0x67   : > { %1668 = vmatmul.bf16.gmra.mxu3 %v1161_v56  ;;  %v908_v56 = vunpack.c.l.b16 %v7738_v6  ;;  %v1106_v19 = vpack.c.b16 %v909_v25, %v7749_v58  ;;  %v7767_v25 = vld [vmem:[%s7422_s12 + $0x50] sm:$0xf] }
  0x69   : > { %v1105_v22 = vpack.c.b16 %v908_v56, %v11062_v36  ;;  %v7763_v56 = vor.u32 %v595_v13, %v593_v40  ;;  %v7780_v13 = vunpack.c.l.b16 %v837_v49  ;;  %v265_v36 = vld [vmem:[%s7422_s12 + $0x5c] sm:$0x1]  ;;  %v11305_v40 = vunpack.c.l.b16 %v7767_v25 }
  0x6a   : > { %v11306_v49 = vunpack.c.l.b16 %v7770_v42  ;;  %v467_v39 = vunpack.c.l.b16 %v265_v36 }
  0x6b   : > { %11300 = vst [vmem:[#allocation34_spill] sm:$0xff] %v7763_v56  ;;  %v11304_v34 = vunpack.c.l.b16 %v7763_v56 }
  0x6c   : > { %11302 = vst [vmem:[#allocation36_spill] sm:$0xff] %v7780_v13  ;;  %v492_v11 = vpack.c.b16 %v11306_v49, %v11305_v40  ;;  %v11078_v40 = vunpack.c.l.b16 %v7804_v1  ;;  %v268_v49 = vld [vmem:[%s7422_s12 + $0x68] sm:$0xf] }
  0x6e   : > { %v599_v60 = vshrl.u32 %v492_v11, 16  ;;  %v839_v51 = vrot.slane %v492_v11, 1 }
  0x74   : > { %1419 = vmatmul.bf16.gmra.mxu0 %v1104_v7  ;;  %v7773_v7 = vsel %vm823_vm1, %v872_v52, %v873_v54 }
  0x75   : > { %1563 = vmatmul.bf16.gmra.mxu1 %v1105_v22  ;;  %11301 = vst [vmem:[#allocation35_spill] sm:$0xff] %v7773_v7  ;;  %v910_v22 = vunpack.c.h.b16 %v7738_v6  ;;  %v981_v52 = vunpack.c.l.b16 %v7773_v7 }
  0x76   : > { %1707 = vmatmul.bf16.gmra.mxu2 %v1106_v19  ;;  %v911_v19 = vunpack.c.h.b16 %v7743_v38 }
  0x77   : > { %1673 = vmatmul.bf16.gmra.mxu3 %v1164_v4  ;;  %v1107_v4 = vpack.c.b16 %v7713_v17, %v395_v3  ;;  %v1108_v50 = vpack.c.b16 %v11304_v34, %v910_v22  ;;  %v1154_v12 = vpack.c.b16 %v981_v52, %v7784_v5  ;;  %v601_v3 = vshll.u32 %v492_v11, 16 }
  0x78   : > { %v1109_v8 = vpack.c.b16 %v7780_v13, %v911_v19  ;;  %v493_v22 = vpack.c.b16 %v467_v39, %v7800_v41  ;;  %v400_v34 = vunpack.c.l.b16 %v266_v30  ;;  %v269_v19 = vld [vmem:[%s7422_s12 + $0x6c] sm:$0x1]  ;;  %v7814_v5 = vunpack.c.l.b16 %v268_v49 }
  0x79   : > { %v603_v52 = vrot.slane %v601_v3, 1 }
  0x7a   : > { %v606_v9 = vshll.u32 %v493_v22, 16  ;;  %v7812_v36 = vpack.c.b16 %v11078_v40, %v400_v34  ;;  %v840_v3 = vrot.slane %v493_v22, 1 }
  0x7b   : > { %v604_v39 = vor.u32 %v603_v52, %v599_v60  ;;  %v610_v60 = vshrl.u32 %v493_v22, 16  ;;  %v6652_v52 = vld [vmem:[%s11045_s1 + $0x38] sm:$0xff] }
  0x7c   : > { %11307 = vst [vmem:[#allocation38_spill] sm:$0xff] %v7812_v36  ;;  %v616_v53 = vshll.u32 %v7812_v36, 16  ;;  %v614_v49 = vshrl.u32 %v7812_v36, 16  ;;  %2120 = vmatpush.bf16.msra.mxu3 %v6652_v52  ;;  %v876_v52 = vrot.slane %v7644_v14, 1 }
  0x84   : > { %1424 = vmatmul.bf16.gmra.mxu0 %v1107_v4  ;;  %v608_v4 = vrot.slane %v606_v9, 1 }
  0x85   : > { %1568 = vmatmul.bf16.gmra.mxu1 %v1108_v50  ;;  %v468_v50 = vunpack.c.l.b16 %v269_v19  ;;  %v618_v19 = vrot.slane %v616_v53, 1 }
  0x86   : > { %1712 = vmatmul.bf16.gmra.mxu2 %v1109_v8  ;;  %v983_v8 = vunpack.c.h.b16 %v7773_v7  ;;  %v7823_v40 = vsel %vm522_vm0, %v604_v39, %v608_v4  ;;  %v7835_v39 = vor.u32 %v610_v60, %v608_v4  ;;  %v875_v60 = vrot.slane %v7636_v20, 1 }
  0x87   : > { %1797 = vmatmul.bf16.vlgmr.msrb.gmra.mxu3 %v1154_v12  ;;  %v7817_v12 = vunpack.c.l.b16 %v873_v54  ;;  %v495_v30 = vpack.c.b16 %v468_v50, %v7814_v5  ;;  %11309 = vst [vmem:[#allocation40_spill] sm:$0xff] %v7823_v40  ;;  %v7827_v54 = vsel %vm823_vm1, %v839_v51, %v840_v3  ;;  %v619_v9 = vor.u32 %v618_v19, %v614_v49  ;;  %v6651_v51 = vld [vmem:[%s11045_s1 + $0x30] sm:$0xff] }
  0x88   : > { %11310 = vst [vmem:[#allocation41_spill] sm:$0xff] %v7827_v54  ;;  %2121 = vmatpush.bf16.msra.mxu3 %v6651_v51  ;;  %v7851_v49 = vunpack.c.l.b16 %v840_v3  ;;  %v6649_v51 = vld [vmem:[%s11045_s1 + $0x20] sm:$0xff]  ;;  %v11320_v7 = vunpack.c.l.b16 %v7804_v1 }
  0x89   : > { %11308 = vst [vmem:[#allocation39_spill] sm:$0xff] %v7817_v12  ;;  %v1157_v31 = vpack.c.b16 %v7817_v12, %v983_v8  ;;  %v621_v56 = vshll.u32 %v495_v30, 16  ;;  %v842_v8 = vrot.slane %v7812_v36, 1  ;;  %v843_v53 = vrot.slane %v495_v30, 1 }
  0x8a   : > { %11311 = vst [vmem:[#allocation42_spill] sm:$0xff] %v7835_v39  ;;  %v7864_v12 = vsel %vm823_vm1, %v875_v60, %v876_v52  ;;  %v625_v14 = vshrl.u32 %v495_v30, 16  ;;  %v6647_v30 = vld [vmem:[%s11045_s1 + $0x10] sm:$0xff] }
  0x8b   : > { %v623_v50 = vrot.slane %v621_v56, 1  ;;  %v7844_v22 = vsel %vm823_vm1, %v842_v8, %v843_v53  ;;  %v11081_v56 = vunpack.c.l.b16 %v7835_v39  ;;  %11314 = vst [vmem:[#allocation45_spill] sm:$0xff] %v7851_v49  ;;  %v7878_v60 = vld [vmem:[%s7422_s12 + $0x70] sm:$0xf] }
  0x8c   : > { %11313 = vst [vmem:[#allocation44_spill] sm:$0xff] %v7844_v22  ;;  %v921_v19 = vunpack.c.l.b16 %v7844_v22 }
  0x8d   : > { %11315 = vst [vmem:[#allocation46_spill] sm:$0xff] %v7864_v12 }
  0x8e   : > { %v1114_v3 = vpack.c.b16 %v921_v19, %v7851_v49  ;;  %v7872_v19 = vor.u32 %v625_v14, %v623_v50  ;;  %v923_v14 = vunpack.c.h.b16 %v7844_v22 }
  0x90   : > { %11316 = vst [vmem:[#allocation47_spill] sm:$0xff] %v7872_v19 }
  0x94   : > { %1429 = vmatmul.bf16.gmra.mxu0 %v492_v11  ;;  %v7841_v11 = vsel %vm522_vm0, %v619_v9, %v623_v50  ;;  %v1112_v9 = vpack.c.b16 %v400_v34, %v7800_v41  ;;  %v6648_v34 = vld [vmem:[%s11045_s1 + $0x18] sm:$0xff]  ;;  %v1115_v50 = vpack.c.b16 %v7814_v5, %v11320_v7 }
  0x95   : > { %1573 = vmatmul.bf16.gmra.mxu1 %v7823_v40  ;;  %11312 = vst [vmem:[#allocation43_spill] sm:$0xff] %v7841_v11  ;;  %v920_v4 = vunpack.c.l.b16 %v7841_v11  ;;  %v6645_v40 = vld [vmem:[%s11045_s1] sm:$0xff] }
  0x96   : > { %1717 = vmatmul.bf16.gmra.mxu2 %v7827_v54 }
  0x97   : > { %1802 = vmatmul.bf16.gmra.mxu3 %v1157_v31  ;;  %v6650_v31 = vld [vmem:[%s11045_s1 + $0x28] sm:$0xff]  ;;  %v1113_v8 = vpack.c.b16 %v920_v4, %v11081_v56  ;;  %v879_v4 = vrot.slane %v7676_v0, 1  ;;  %v922_v0 = vunpack.c.h.b16 %v7841_v11  ;;  %v7896_v56 = vunpack.c.l.b16 %v876_v52 }
  0x98   : > { %2122 = vmatpush.bf16.msra.mxu3 %v6650_v31  ;;  %v878_v31 = vrot.slane %v7663_v43, 1  ;;  %v6646_v43 = vld [vmem:[%s11045_s1 + $0x8] sm:$0xff]  ;;  %v11322_v11 = vunpack.c.l.b16 %v7878_v60 }
  0x99   : > { %11319 = vst [vmem:[#allocation50_spill] sm:$0xff] %v7896_v56  ;;  %v7942_v55 = vunpack.c.l.b16 %v879_v4 }
  0x9b   : > { %11326 = vst [vmem:[#allocation53_spill] sm:$0xff] %v7942_v55 }
  0x9c   : > { %2123 = vmatpush.bf16.msra.mxu3 %v6649_v51  ;;  %v11321_v51 = vunpack.c.l.b16 %v7872_v19 }
  0xa0   : > { %2124 = vmatpush.bf16.msra.mxu3 %v6648_v34  ;;  %v7894_v34 = vunpack.c.l.b16 %v843_v53 }
  0xa2   : > { %11318 = vst [vmem:[#allocation49_spill] sm:$0xff] %v7894_v34  ;;  %v1117_v1 = vpack.c.b16 %v7894_v34, %v923_v14 }
  0xa4   : > { %1434 = vmatmul.bf16.gmra.mxu0 %v1112_v9  ;;  %v7881_v9 = vld [vmem:[%s7422_s12 + $0x74] sm:$0xf]  ;;  %2125 = vmatpush.bf16.msra.mxu3 %v6647_v30  ;;  %v272_v30 = vld [vmem:[%s7422_s12 + $0x78] sm:$0xf] }
  0xa5   : > { %1578 = vmatmul.bf16.gmra.mxu1 %v1113_v8  ;;  %v7884_v8 = vsel %vm823_vm1, %v878_v31, %v879_v4  ;;  %v11323_v53 = vunpack.c.l.b16 %v7881_v9  ;;  %v7910_v39 = vunpack.c.l.b16 %v272_v30 }
  0xa6   : > { %1722 = vmatmul.bf16.gmra.mxu2 %v1114_v3  ;;  %11317 = vst [vmem:[#allocation48_spill] sm:$0xff] %v7884_v8  ;;  %v1041_v31 = vunpack.c.l.b16 %v7884_v8  ;;  %v1116_v3 = vpack.c.b16 %v11321_v51, %v922_v0  ;;  %v7918_v51 = vld [vmem:[%s7422_s12 + $0x80] sm:$0xf] }
  0xa7   : > { %1807 = vmatmul.bf16.gmra.mxu3 %v7864_v12  ;;  %v273_v12 = vld [vmem:[%s7422_s12 + $0x7c] sm:$0x1]  ;;  %v496_v52 = vpack.c.b16 %v11323_v53, %v11322_v11  ;;  %v7921_v11 = vld [vmem:[%s7422_s12 + $0x84] sm:$0xf]  ;;  %v406_v53 = vunpack.c.l.b16 %v7918_v51 }
  0xa8   : > { %2126 = vmatpush.bf16.msra.mxu3 %v6646_v43  ;;  %v469_v22 = vunpack.c.l.b16 %v273_v12  ;;  %v1162_v7 = vpack.c.b16 %v1041_v31, %v7896_v56  ;;  %v11106_v14 = vunpack.c.l.b16 %v7921_v11  ;;  %v277_v31 = vld [vmem:[%s7422_s12 + $0x8c] sm:$0x1] }
  0xa9   : > { %v631_v30 = vshll.u32 %v496_v52, 16  ;;  %v470_v6 = vunpack.c.l.b16 %v277_v31 }
  0xaa   : > { %v497_v12 = vpack.c.b16 %v469_v22, %v7910_v39  ;;  %v7937_v51 = vpack.c.b16 %v11106_v14, %v406_v53 }
  0xab   : > { %v633_v56 = vrot.slane %v631_v30, 1 }
  0xac   : > { %2127 = vmatpush.bf16.msra.mxu3 %v6645_v40  ;;  %v276_v40 = vld [vmem:[%s7422_s12 + $0x88] sm:$0xf]  ;;  %v636_v22 = vshll.u32 %v497_v12, 16  ;;  %11325 = vst [vmem:[#allocation52_spill] sm:$0xff] %v7937_v51  ;;  %v846_v38 = vrot.slane %v497_v12, 1 }
  0xad   : > { %v7939_v34 = vunpack.c.l.b16 %v276_v40 }
  0xaf   : > { %v7945_v30 = vpack.c.b16 %v470_v6, %v7939_v34 }
  0xb1   : > { %v1400_v43 = vpop.f32.mrf.mxu0 }
  0xb2   : > { %v1544_v49 = vpop.f32.mrf.mxu1 }
  0xb3   : > { %v1545_v0 = vadd.f32 %v1544_v49, %v1400_v43  ;;  %v6657_v49 = vld [vmem:[%s11045_s1 + $0x60] sm:$0xff] }
  0xb4   : > { %1439 = vmatmul.bf16.gmra.mxu0 %v1115_v50 }
  0xb5   : > { %1583 = vmatmul.bf16.gmra.mxu1 %v1116_v3  ;;  %2267 = vmatpush.bf16.msrb.mxu0 %v6657_v49  ;;  %v629_v3 = vshrl.u32 %v496_v52, 16  ;;  %v638_v49 = vrot.slane %v636_v22, 1  ;;  %v644_v22 = vshrl.u32 %v7937_v51, 16 }
  0xb6   : > { %1727 = vmatmul.bf16.gmra.mxu2 %v1117_v1 }
  0xb7   : > { %1812 = vmatmul.bf16.gmra.mxu3 %v1162_v7  ;;  %v634_v54 = vor.u32 %v633_v56, %v629_v3 }
  0xb9   : > { %v1688_v50 = vpop.f32.mrf.mxu2  ;;  %v1402_v1 = vpop.f32.mrf.mxu0  ;;  %v7951_v40 = vsel %vm522_vm0, %v634_v54, %v638_v49  ;;  %v640_v54 = vshrl.u32 %v497_v12, 16 }
  0xba   : > { %v7931_v43 = vpop.f32.mrf.mxu3  ;;  %v7933_v19 = vadd.f32 %v1688_v50, %v1545_v0  ;;  %v1546_v7 = vpop.f32.mrf.mxu1  ;;  %v646_v0 = vshll.u32 %v7937_v51, 16  ;;  %v845_v50 = vrot.slane %v496_v52, 1  ;;  %11328 = vst [vmem:[#allocation55_spill] sm:$0xff] %v7951_v40 }
  0xbb   : > { %11324 = vst [vmem:[#allocation51_spill] sm:$0xff] %v7931_v43  ;;  %v1547_v13 = vadd.f32 %v1546_v7, %v1402_v1  ;;  %v1043_v43 = vunpack.c.h.b16 %v7884_v8  ;;  %v651_v1 = vshll.u32 %v7945_v30, 16 }
  0xbc   : > { %v648_v6 = vrot.slane %v646_v0, 1  ;;  %v7959_v8 = vsel %vm823_vm1, %v845_v50, %v846_v38 }
  0xbd   : > { %v1165_v56 = vpack.c.b16 %v7942_v55, %v1043_v43  ;;  %11329 = vst [vmem:[#allocation56_spill] sm:$0xff] %v7959_v8  ;;  %v848_v43 = vrot.slane %v7937_v51, 1  ;;  %v849_v55 = vrot.slane %v7945_v30, 1 }
  0xc1   : > { %v1690_v14 = vpop.f32.mrf.mxu2  ;;  %v1405_v3 = vpop.f32.mrf.mxu0 }
  0xc2   : > { %v7948_v32 = vpop.f32.mrf.mxu3  ;;  %v7954_v31 = vadd.f32 %v1690_v14, %v1547_v13  ;;  %v1549_v4 = vpop.f32.mrf.mxu1  ;;  %v649_v13 = vor.u32 %v648_v6, %v644_v22  ;;  %v653_v14 = vrot.slane %v651_v1, 1  ;;  %v7975_v22 = vsel %vm823_vm1, %v848_v43, %v849_v55 }
  0xc3   : > { %11327 = vst [vmem:[#allocation54_spill] sm:$0xff] %v7948_v32  ;;  %v1550_v7 = vadd.f32 %v1549_v4, %v1405_v3  ;;  %v7967_v3 = vor.u32 %v640_v54, %v638_v49  ;;  %v933_v49 = vunpack.c.l.b16 %v7975_v22  ;;  %v1120_v54 = vpack.c.b16 %v406_v53, %v7910_v39 }
  0xc4   : > { %1444 = vmatmul.bf16.gmra.mxu0 %v496_v52  ;;  %v7972_v12 = vsel %vm522_vm0, %v649_v13, %v653_v14  ;;  %11333 = vst [vmem:[#allocation60_spill] sm:$0xff] %v7975_v22 }
  0xc5   : > { %1588 = vmatmul.bf16.gmra.mxu1 %v7951_v40  ;;  %11331 = vst [vmem:[#allocation58_spill] sm:$0xff] %v7967_v3  ;;  %v11113_v6 = vunpack.c.l.b16 %v7967_v3  ;;  %v932_v1 = vunpack.c.l.b16 %v7972_v12  ;;  %v8002_v3 = vld [vmem:[%s7422_s12 + $0x90] sm:$0xf] }
  0xc6   : > { %1732 = vmatmul.bf16.gmra.mxu2 %v7959_v8  ;;  %11332 = vst [vmem:[#allocation59_spill] sm:$0xff] %v7972_v12 }
  0xc7   : > { %1817 = vmatmul.bf16.gmra.mxu3 %v1165_v56  ;;  %v1121_v13 = vpack.c.b16 %v932_v1, %v11113_v6 }
  0xc9   : > { %v1693_v32 = vpop.f32.mrf.mxu2  ;;  %v1407_v52 = vpop.f32.mrf.mxu0 }
  0xca   : > { %v7965_v0 = vpop.f32.mrf.mxu3  ;;  %v7969_v50 = vadd.f32 %v1693_v32, %v1550_v7  ;;  %v1551_v4 = vpop.f32.mrf.mxu1 }
  0xcb   : > { %11330 = vst [vmem:[#allocation57_spill] sm:$0xff] %v7965_v0  ;;  %v1552_v56 = vadd.f32 %v1551_v4, %v1407_v52  ;;  %v7979_v0 = vunpack.c.l.b16 %v846_v38  ;;  %v7991_v38 = vld [vmem:[%s7422_s12] sm:$0xff] }
  0xcc   : > { %11336 = vst [vmem:[#allocation63_spill] sm:$0xff] %v7991_v38 }
  0xcd   : > { %11334 = vst [vmem:[#allocation61_spill] sm:$0xff] %v7979_v0  ;;  %v1122_v40 = vpack.c.b16 %v933_v49, %v7979_v0 }
  0xd1   : > { %v1695_v7 = vpop.f32.mrf.mxu2  ;;  %v1410_v43 = vpop.f32.mrf.mxu0 }
  0xd2   : > { %v7982_v32 = vpop.f32.mrf.mxu3  ;;  %v7987_v52 = vadd.f32 %v1695_v7, %v1552_v56  ;;  %v1554_v4 = vpop.f32.mrf.mxu1 }
  0xd3   : > { %11335 = vst [vmem:[#allocation62_spill] sm:$0xff] %v7982_v32  ;;  %v1555_v8 = vadd.f32 %v1554_v4, %v1410_v43  ;;  %v655_v32 = vshrl.u32 %v7945_v30, 16  ;;  %v8008_v30 = vld [vmem:[%s7422_s12 + $0x8] sm:$0xf]  ;;  %v8015_v4 = vunpack.c.l.b16 %v849_v55  ;;  %v11344_v55 = vunpack.c.l.b16 %v8002_v3 }
  0xd4   : > { %1449 = vmatmul.bf16.gmra.mxu0 %v1120_v54  ;;  %v8005_v54 = vld [vmem:[%s7422_s12 + $0x94] sm:$0xf]  ;;  %11339 = vst [vmem:[#allocation66_spill] sm:$0xff] %v8008_v30  ;;  %v11346_v59 = vunpack.c.l.b16 %v8008_v30 }
  0xd5   : > { %1593 = vmatmul.bf16.gmra.mxu1 %v1121_v13  ;;  %v7997_v1 = vor.u32 %v655_v32, %v653_v14  ;;  %11340 = vst [vmem:[#allocation67_spill] sm:$0xff] %v8015_v4  ;;  %v11345_v23 = vunpack.c.l.b16 %v8005_v54 }
  0xd6   : > { %1737 = vmatmul.bf16.gmra.mxu2 %v1122_v40  ;;  %v934_v40 = vunpack.c.h.b16 %v7972_v12  ;;  %v11341_v12 = vunpack.c.l.b16 %v7921_v11 }
  0xd7   : > { %2128 = vmatmul.bf16.vlgmr.msra.gmra.mxu3 %v7991_v38  ;;  %11338 = vst [vmem:[#allocation65_spill] sm:$0xff] %v7997_v1  ;;  %v11343_v32 = vunpack.c.l.b16 %v7997_v1  ;;  %v500_v58 = vpack.c.b16 %v11345_v23, %v11344_v55 }
  0xd8   : > { %v1123_v43 = vpack.c.b16 %v7939_v34, %v11341_v12 }
  0xd9   : > { %v1698_v56 = vpop.f32.mrf.mxu2  ;;  %v1412_v49 = vpop.f32.mrf.mxu0 }
  0xda   : > { %v7995_v53 = vpop.f32.mrf.mxu3  ;;  %v7999_v7 = vadd.f32 %v1698_v56, %v1555_v8  ;;  %v1556_v6 = vpop.f32.mrf.mxu1  ;;  %v935_v8 = vunpack.c.h.b16 %v7975_v22  ;;  %v6810_v56 = vunpack.c.l.b16 %v7483_v33  ;;  %v1124_v22 = vpack.c.b16 %v11343_v32, %v934_v40  ;;  %v8040_v32 = vld [vmem:[%s7422_s12 + $0xa0] sm:$0xf] }
  0xdb   : > { %11337 = vst [vmem:[#allocation64_spill] sm:$0xff] %v7995_v53  ;;  %v1557_v13 = vadd.f32 %v1556_v6, %v1412_v49  ;;  %v280_v6 = vld [vmem:[%s7422_s12 + $0x98] sm:$0xf]  ;;  %v281_v49 = vld [vmem:[%s7422_s12 + $0x9c] sm:$0x1] }
  0xdc   : > { %v8032_v53 = vunpack.c.l.b16 %v280_v6  ;;  %v471_v45 = vunpack.c.l.b16 %v281_v49  ;;  %v1825_v1 = vpack.c.b16 %v6810_v56, %v11346_v59  ;;  %v11134_v6 = vunpack.c.l.b16 %v8043_v2  ;;  %v285_v49 = vld [vmem:[%s7422_s12 + $0xac] sm:$0x1] }
  0xdd   : > { %v659_v56 = vshrl.u32 %v500_v58, 16 }
  0xde   : > { %v501_v23 = vpack.c.b16 %v471_v45, %v8032_v53 }
  0xe0   : > { %v852_v35 = vrot.slane %v501_v23, 1 }
  0xe1   : > { %v1700_v14 = vpop.f32.mrf.mxu2  ;;  %v1415_v11 = vpop.f32.mrf.mxu0 }
  0xe2   : > { %v8024_v0 = vpop.f32.mrf.mxu3  ;;  %v8034_v63 = vadd.f32 %v1700_v14, %v1557_v13  ;;  %v1559_v12 = vpop.f32.mrf.mxu1  ;;  %v661_v13 = vshll.u32 %v500_v58, 16  ;;  %v412_v14 = vunpack.c.l.b16 %v8040_v32 }
  0xe3   : > { %11342 = vst [vmem:[#allocation68_spill] sm:$0xff] %v8024_v0  ;;  %v1125_v0 = vpack.c.b16 %v8015_v4, %v935_v8  ;;  %v1560_v40 = vadd.f32 %v1559_v12, %v1415_v11  ;;  %v284_v8 = vld [vmem:[%s7422_s12 + $0xa8] sm:$0xf]  ;;  %v666_v12 = vshll.u32 %v501_v23, 16 }
  0xe4   : > { %1454 = vmatmul.bf16.gmra.mxu0 %v1123_v43  ;;  %v663_v11 = vrot.slane %v661_v13, 1  ;;  %v8056_v45 = vpack.c.b16 %v11134_v6, %v412_v14  ;;  %v6811_v13 = vunpack.c.h.b16 %v7483_v33  ;;  %v851_v6 = vrot.slane %v500_v58, 1 }
  0xe5   : > { %1598 = vmatmul.bf16.gmra.mxu1 %v1124_v22  ;;  %v668_v57 = vrot.slane %v666_v12, 1 }
  0xe6   : > { %1742 = vmatmul.bf16.gmra.mxu2 %v1125_v0  ;;  %11348 = vst [vmem:[#allocation70_spill] sm:$0xff] %v8056_v45  ;;  %v8058_v0 = vunpack.c.l.b16 %v284_v8  ;;  %v664_v47 = vor.u32 %v663_v11, %v659_v56  ;;  %v8079_v21 = vsel %vm823_vm1, %v851_v6, %v852_v35 }
  0xe7   : > { %2133 = vmatmul.bf16.gmra.mxu3 %v1825_v1  ;;  %v472_v1 = vunpack.c.l.b16 %v285_v49  ;;  %11352 = vst [vmem:[#allocation74_spill] sm:$0xff] %v8079_v21 }
  0xe8   : > { %11349 = vst [vmem:[#allocation71_spill] sm:$0xff] %v8058_v0 }
  0xe9   : > { %v1703_v59 = vpop.f32.mrf.mxu2  ;;  %v1417_v22 = vpop.f32.mrf.mxu0 }
  0xea   : > { %v8050_v55 = vpop.f32.mrf.mxu3  ;;  %v8052_v4 = vadd.f32 %v1703_v59, %v1560_v40  ;;  %v1561_v43 = vpop.f32.mrf.mxu1  ;;  %v8065_v40 = vpack.c.b16 %v472_v1, %v8058_v0  ;;  %v676_v59 = vshll.u32 %v8056_v45, 16 }
  0xeb   : > { %11347 = vst [vmem:[#allocation69_spill] sm:$0xff] %v8050_v55  ;;  %v1562_v32 = vadd.f32 %v1561_v43, %v1417_v22  ;;  %v6656_v55 = vld [vmem:[%s11045_s1 + $0x58] sm:$0xff]  ;;  %v8071_v22 = vsel %vm522_vm0, %v664_v47, %v668_v57  ;;  %v1828_v43 = vpack.c.b16 %v7469_v29, %v6811_v13  ;;  %v670_v47 = vshrl.u32 %v501_v23, 16 }
  0xec   : > { %2268 = vmatpush.bf16.msrb.mxu0 %v6656_v55  ;;  %11351 = vst [vmem:[#allocation73_spill] sm:$0xff] %v8071_v22  ;;  %v674_v55 = vshrl.u32 %v8056_v45, 16  ;;  %v678_v12 = vrot.slane %v676_v59, 1  ;;  %v681_v1 = vshll.u32 %v8065_v40, 16  ;;  %v854_v13 = vrot.slane %v8056_v45, 1 }
  0xee   : > { %v679_v29 = vor.u32 %v678_v12, %v674_v55 }
  0xf1   : > { %v1705_v49 = vpop.f32.mrf.mxu2  ;;  %v1420_v11 = vpop.f32.mrf.mxu0 }
  0xf2   : > { %v8068_v8 = vpop.f32.mrf.mxu3  ;;  %v8074_v56 = vadd.f32 %v1705_v49, %v1562_v32  ;;  %v1564_v33 = vpop.f32.mrf.mxu1  ;;  %v683_v32 = vrot.slane %v681_v1, 1  ;;  %v855_v49 = vrot.slane %v8065_v40, 1  ;;  %v8099_v1 = vunpack.c.l.b16 %v852_v35 }
  0xf3   : > { %11350 = vst [vmem:[#allocation72_spill] sm:$0xff] %v8068_v8  ;;  %v1565_v37 = vadd.f32 %v1564_v33, %v1420_v11  ;;  %v8087_v11 = vor.u32 %v670_v47, %v668_v57 }
  0xf4   : > { %1459 = vmatmul.bf16.gmra.mxu0 %v500_v58  ;;  %v8092_v23 = vsel %vm522_vm0, %v679_v29, %v683_v32  ;;  %11357 = vst [vmem:[#allocation79_spill] sm:$0xff] %v8099_v1 }
  0xf5   : > { %1603 = vmatmul.bf16.gmra.mxu1 %v8071_v22  ;;  %11354 = vst [vmem:[#allocation76_spill] sm:$0xff] %v8087_v11  ;;  %v11145_v55 = vunpack.c.l.b16 %v8087_v11  ;;  %v944_v12 = vunpack.c.l.b16 %v8092_v23  ;;  %v11364_v11 = vunpack.c.l.b16 %v8043_v2 }
  0xf6   : > { %1747 = vmatmul.bf16.gmra.mxu2 %v8079_v21  ;;  %11355 = vst [vmem:[#allocation77_spill] sm:$0xff] %v8092_v23  ;;  %v685_v21 = vshrl.u32 %v8065_v40, 16  ;;  %v946_v40 = vunpack.c.h.b16 %v8092_v23 }
  0xf7   : > { %2138 = vmatmul.bf16.gmra.mxu3 %v1828_v43  ;;  %v8095_v43 = vsel %vm823_vm1, %v854_v13, %v855_v49  ;;  %v1129_v29 = vpack.c.b16 %v944_v12, %v11145_v55 }
  0xf8   : > { %11356 = vst [vmem:[#allocation78_spill] sm:$0xff] %v8095_v43  ;;  %v945_v57 = vunpack.c.l.b16 %v8095_v43 }
  0xf9   : > { %v1708_v8 = vpop.f32.mrf.mxu2  ;;  %v1422_v58 = vpop.f32.mrf.mxu0 }
  0xfa   : > { %v8085_v59 = vpop.f32.mrf.mxu3  ;;  %v8089_v6 = vadd.f32 %v1708_v8, %v1565_v37  ;;  %v1566_v33 = vpop.f32.mrf.mxu1  ;;  %v1128_v8 = vpack.c.b16 %v412_v14, %v8032_v53 }
  0xfb   : > { %11353 = vst [vmem:[#allocation75_spill] sm:$0xff] %v8085_v59  ;;  %v1567_v22 = vadd.f32 %v1566_v33, %v1422_v58  ;;  %v1130_v59 = vpack.c.b16 %v945_v57, %v8099_v1  ;;  %v8119_v57 = vld [vmem:[%s7422_s12 + $0xb0] sm:$0xf] }
  0xfc   : > { %11361 = vst [vmem:[#allocation83_spill] sm:$0xff] %v8119_v57 }
 0x101   : > { %v1710_v37 = vpop.f32.mrf.mxu2  ;;  %v1425_v13 = vpop.f32.mrf.mxu0 }
 0x102   : > { %v8102_v47 = vpop.f32.mrf.mxu3  ;;  %v8107_v58 = vadd.f32 %v1710_v37, %v1567_v22  ;;  %v1569_v33 = vpop.f32.mrf.mxu1  ;;  %v8114_v22 = vor.u32 %v685_v21, %v683_v32  ;;  %v947_v21 = vunpack.c.h.b16 %v8095_v43  ;;  %v8129_v32 = vunpack.c.l.b16 %v855_v49 }
 0x103   : > { %11358 = vst [vmem:[#allocation80_spill] sm:$0xff] %v8102_v47  ;;  %v1570_v35 = vadd.f32 %v1569_v33, %v1425_v13  ;;  %v11366_v33 = vunpack.c.l.b16 %v8119_v57 }
 0x104   : > { %1464 = vmatmul.bf16.gmra.mxu0 %v1128_v8  ;;  %11360 = vst [vmem:[#allocation82_spill] sm:$0xff] %v8114_v22  ;;  %v8122_v8 = vld [vmem:[%s7422_s12 + $0xb4] sm:$0xf] }
 0x105   : > { %1608 = vmatmul.bf16.gmra.mxu1 %v1129_v29  ;;  %11362 = vst [vmem:[#allocation84_spill] sm:$0xff] %v8122_v8  ;;  %v11367_v43 = vunpack.c.l.b16 %v8122_v8 }
 0x106   : > { %1752 = vmatmul.bf16.gmra.mxu2 %v1130_v59  ;;  %v11155_v59 = vunpack.c.l.b16 %v8114_v22  ;;  %11363 = vst [vmem:[#allocation85_spill] sm:$0xff] %v8129_v32  ;;  %v11369_v22 = vunpack.c.l.b16 %v7654_v27  ;;  %v292_v27 = vld [vmem:[%s7422_s12 + $0xc8] sm:$0xf] }
 0x107   : > { %2143 = vmatmul.bf16.gmra.mxu3 %v7537_v61  ;;  %v504_v49 = vpack.c.b16 %v11367_v43, %v11366_v33  ;;  %v8158_v43 = vld [vmem:[%s7422_s12 + $0xc4] sm:$0xf] }
 0x108   : > { %v1132_v13 = vpack.c.b16 %v11155_v59, %v946_v40  ;;  %v8152_v40 = vpack.c.b16 %v11369_v22, %v7539_v62  ;;  %v293_v62 = vld [vmem:[%s7422_s12 + $0xcc] sm:$0x1] }
 0x109   : > { %v1713_v14 = vpop.f32.mrf.mxu2  ;;  %v1427_v55 = vpop.f32.mrf.mxu0  ;;  %v691_v33 = vshll.u32 %v504_v49, 16 }
 0x10a   : > { %v8112_v12 = vpop.f32.mrf.mxu3  ;;  %v8116_v37 = vadd.f32 %v1713_v14, %v1570_v35  ;;  %v1571_v47 = vpop.f32.mrf.mxu1  ;;  %v288_v35 = vld [vmem:[%s7422_s12 + $0xb8] sm:$0xf]  ;;  %v289_v14 = vld [vmem:[%s7422_s12 + $0xbc] sm:$0x1]  ;;  %11370 = vst [vmem:[#allocation88_spill] sm:$0xff] %v8152_v40 }
 0x10b   : > { %11359 = vst [vmem:[#allocation81_spill] sm:$0xff] %v8112_v12  ;;  %v1572_v29 = vadd.f32 %v1571_v47, %v1427_v55  ;;  %v1131_v55 = vpack.c.b16 %v8058_v0, %v11364_v11  ;;  %v8144_v12 = vunpack.c.l.b16 %v288_v35  ;;  %v473_v1 = vunpack.c.l.b16 %v289_v14 }
 0x10c   : > { %v1133_v0 = vpack.c.b16 %v8129_v32, %v947_v21  ;;  %v11164_v35 = vunpack.c.l.b16 %v8158_v43  ;;  %v8174_v32 = vunpack.c.l.b16 %v292_v27  ;;  %v11376_v27 = vunpack.c.l.b16 %v7657_v28  ;;  %v6655_v28 = vld [vmem:[%s11045_s1 + $0x50] sm:$0xff] }
 0x10d   : > { %11368 = vst [vmem:[#allocation87_spill] sm:$0xff] %v8144_v12  ;;  %2269 = vmatpush.bf16.msrb.mxu0 %v6655_v28 }
 0x10e   : > { %11373 = vst [vmem:[#allocation91_spill] sm:$0xff] %v8174_v32 }
 0x111   : > { %v1715_v47 = vpop.f32.mrf.mxu2  ;;  %v1430_v2 = vpop.f32.mrf.mxu0 }
 0x112   : > { %v8136_v23 = vpop.f32.mrf.mxu3  ;;  %v8146_v61 = vadd.f32 %v1715_v47, %v1572_v29  ;;  %v1574_v11 = vpop.f32.mrf.mxu1  ;;  %v505_v29 = vpack.c.b16 %v473_v1, %v8144_v12  ;;  %v689_v47 = vshrl.u32 %v504_v49, 16 }
 0x113   : > { %11365 = vst [vmem:[#allocation86_spill] sm:$0xff] %v8136_v23  ;;  %v1575_v59 = vadd.f32 %v1574_v11, %v1430_v2  ;;  %v8155_v23 = vld [vmem:[%s7422_s12 + $0xc0] sm:$0xf]  ;;  %v693_v2 = vrot.slane %v691_v33, 1 }
 0x114   : > { %1469 = vmatmul.bf16.gmra.mxu0 %v1131_v55  ;;  %v418_v21 = vunpack.c.l.b16 %v8155_v23  ;;  %v696_v11 = vshll.u32 %v505_v29, 16  ;;  %v474_v23 = vunpack.c.l.b16 %v293_v62  ;;  %v8188_v62 = vpack.c.b16 %v7689_v48, %v11376_v27 }
 0x115   : > { %1613 = vmatmul.bf16.gmra.mxu1 %v1132_v13  ;;  %v694_v8 = vor.u32 %v693_v2, %v689_v47  ;;  %v700_v48 = vshrl.u32 %v505_v29, 16 }
 0x116   : > { %1757 = vmatmul.bf16.gmra.mxu2 %v1133_v0  ;;  %v8172_v0 = vpack.c.b16 %v11164_v35, %v418_v21  ;;  %v698_v57 = vrot.slane %v696_v11, 1  ;;  %v8177_v45 = vpack.c.b16 %v474_v23, %v8174_v32  ;;  %11377 = vst [vmem:[#allocation94_spill] sm:$0xff] %v8188_v62 }
 0x117   : > { %2148 = vmatmul.bf16.gmra.mxu3 %v8152_v40 }
 0x118   : > { %11372 = vst [vmem:[#allocation90_spill] sm:$0xff] %v8172_v0  ;;  %v706_v33 = vshll.u32 %v8172_v0, 16  ;;  %v8183_v30 = vsel %vm522_vm0, %v694_v8, %v698_v57  ;;  %v711_v23 = vshll.u32 %v8177_v45, 16 }
 0x119   : > { %v1718_v22 = vpop.f32.mrf.mxu2  ;;  %v1432_v13 = vpop.f32.mrf.mxu0  ;;  %11375 = vst [vmem:[#allocation93_spill] sm:$0xff] %v8183_v30 }
 0x11a   : > { %v8166_v14 = vpop.f32.mrf.mxu3  ;;  %v8168_v55 = vadd.f32 %v1718_v22, %v1575_v59  ;;  %v1576_v1 = vpop.f32.mrf.mxu1  ;;  %v858_v59 = vrot.slane %v505_v29, 1 }
 0x11b   : > { %11371 = vst [vmem:[#allocation89_spill] sm:$0xff] %v8166_v14  ;;  %v1577_v40 = vadd.f32 %v1576_v1, %v1432_v13  ;;  %v857_v14 = vrot.slane %v504_v49, 1  ;;  %v704_v13 = vshrl.u32 %v8172_v0, 16  ;;  %v708_v1 = vrot.slane %v706_v33, 1 }
 0x11c   : > { %v860_v33 = vrot.slane %v8172_v0, 1  ;;  %v8219_v28 = vunpack.c.l.b16 %v858_v59 }
 0x11d   : > { %v709_v8 = vor.u32 %v708_v1, %v704_v13 }
 0x11e   : > { %11383 = vst [vmem:[#allocation100_spill] sm:$0xff] %v8219_v28 }
 0x121   : > { %v1720_v22 = vpop.f32.mrf.mxu2  ;;  %v1435_v2 = vpop.f32.mrf.mxu0 }
 0x122   : > { %v8180_v38 = vpop.f32.mrf.mxu3  ;;  %v8190_v47 = vadd.f32 %v1720_v22, %v1577_v40  ;;  %v1579_v11 = vpop.f32.mrf.mxu1  ;;  %v713_v40 = vrot.slane %v711_v23, 1  ;;  %v861_v22 = vrot.slane %v8177_v45, 1 }
 0x123   : > { %11374 = vst [vmem:[#allocation92_spill] sm:$0xff] %v8180_v38  ;;  %v1580_v35 = vadd.f32 %v1579_v11, %v1435_v2  ;;  %v8195_v38 = vsel %vm823_vm1, %v857_v14, %v858_v59  ;;  %v8207_v2 = vor.u32 %v700_v48, %v698_v57 }
 0x124   : > { %11378 = vst [vmem:[#allocation95_spill] sm:$0xff] %v8195_v38  ;;  %1474 = vmatmul.bf16.gmra.mxu0 %v504_v49  ;;  %v8215_v13 = vsel %vm823_vm1, %v860_v33, %v861_v22 }
 0x125   : > { %1618 = vmatmul.bf16.gmra.mxu1 %v8183_v30  ;;  %11380 = vst [vmem:[#allocation97_spill] sm:$0xff] %v8207_v2  ;;  %v8212_v30 = vsel %vm522_vm0, %v709_v8, %v713_v40  ;;  %v11170_v1 = vunpack.c.l.b16 %v8207_v2  ;;  %v957_v57 = vunpack.c.l.b16 %v8215_v13 }
 0x126   : > { %1762 = vmatmul.bf16.gmra.mxu2 %v8195_v38  ;;  %11381 = vst [vmem:[#allocation98_spill] sm:$0xff] %v8212_v30  ;;  %v956_v23 = vunpack.c.l.b16 %v8212_v30 }
 0x127   : > { %2153 = vmatmul.bf16.gmra.mxu3 %v8188_v62  ;;  %11382 = vst [vmem:[#allocation99_spill] sm:$0xff] %v8215_v13  ;;  %v715_v62 = vshrl.u32 %v8177_v45, 16  ;;  %v958_v45 = vunpack.c.h.b16 %v8212_v30 }
 0x128   : > { %v1137_v8 = vpack.c.b16 %v956_v23, %v11170_v1 }
 0x129   : > { %v1723_v14 = vpop.f32.mrf.mxu2  ;;  %v1437_v11 = vpop.f32.mrf.mxu0 }
 0x12a   : > { %v8205_v27 = vpop.f32.mrf.mxu3  ;;  %v8209_v49 = vadd.f32 %v1723_v14, %v1580_v35  ;;  %v1581_v29 = vpop.f32.mrf.mxu1  ;;  %v1136_v14 = vpack.c.b16 %v418_v21, %v8144_v12 }
 0x12b   : > { %11379 = vst [vmem:[#allocation96_spill] sm:$0xff] %v8205_v27  ;;  %v1582_v38 = vadd.f32 %v1581_v29, %v1437_v11  ;;  %v1138_v27 = vpack.c.b16 %v957_v57, %v8219_v28  ;;  %v8239_v57 = vld [vmem:[%s7422_s12 + $0xd0] sm:$0xf] }
 0x12c   : > { %11387 = vst [vmem:[#allocation104_spill] sm:$0xff] %v8239_v57 }
 0x131   : > { %v1725_v48 = vpop.f32.mrf.mxu2  ;;  %v1440_v33 = vpop.f32.mrf.mxu0 }
 0x132   : > { %v8222_v35 = vpop.f32.mrf.mxu3  ;;  %v8227_v11 = vadd.f32 %v1725_v48, %v1582_v38  ;;  %v1584_v29 = vpop.f32.mrf.mxu1  ;;  %v8234_v38 = vor.u32 %v715_v62, %v713_v40  ;;  %v959_v62 = vunpack.c.h.b16 %v8215_v13  ;;  %v8249_v40 = vunpack.c.l.b16 %v861_v22 }
 0x133   : > { %11384 = vst [vmem:[#allocation101_spill] sm:$0xff] %v8222_v35  ;;  %v1585_v59 = vadd.f32 %v1584_v29, %v1440_v33  ;;  %v11392_v29 = vunpack.c.l.b16 %v8239_v57 }
 0x134   : > { %1479 = vmatmul.bf16.gmra.mxu0 %v1136_v14  ;;  %11386 = vst [vmem:[#allocation103_spill] sm:$0xff] %v8234_v38  ;;  %v8242_v14 = vld [vmem:[%s7422_s12 + $0xd4] sm:$0xf] }
 0x135   : > { %1623 = vmatmul.bf16.gmra.mxu1 %v1137_v8  ;;  %11388 = vst [vmem:[#allocation105_spill] sm:$0xff] %v8242_v14  ;;  %v11393_v13 = vunpack.c.l.b16 %v8242_v14 }
 0x136   : > { %1767 = vmatmul.bf16.gmra.mxu2 %v1138_v27  ;;  %v11180_v27 = vunpack.c.l.b16 %v8234_v38  ;;  %11389 = vst [vmem:[#allocation106_spill] sm:$0xff] %v8249_v40  ;;  %v11394_v38 = vunpack.c.l.b16 %v7767_v25  ;;  %v300_v25 = vld [vmem:[%s7422_s12 + $0xe8] sm:$0xf] }
 0x137   : > { %2158 = vmatmul.bf16.gmra.mxu3 %v7711_v44  ;;  %v508_v22 = vpack.c.b16 %v11393_v13, %v11392_v29  ;;  %v8278_v13 = vld [vmem:[%s7422_s12 + $0xe4] sm:$0xf] }
 0x138   : > { %v1140_v33 = vpack.c.b16 %v11180_v27, %v958_v45  ;;  %v8272_v45 = vpack.c.b16 %v11394_v38, %v7713_v17  ;;  %v301_v17 = vld [vmem:[%s7422_s12 + $0xec] sm:$0x1] }
 0x139   : > { %v1728_v21 = vpop.f32.mrf.mxu2  ;;  %v1442_v1 = vpop.f32.mrf.mxu0  ;;  %v721_v29 = vshll.u32 %v508_v22, 16 }
 0x13a   : > { %v8232_v23 = vpop.f32.mrf.mxu3  ;;  %v8236_v48 = vadd.f32 %v1728_v21, %v1585_v59  ;;  %v1586_v2 = vpop.f32.mrf.mxu1  ;;  %v296_v59 = vld [vmem:[%s7422_s12 + $0xd8] sm:$0xf]  ;;  %v297_v21 = vld [vmem:[%s7422_s12 + $0xdc] sm:$0x1]  ;;  %11395 = vst [vmem:[#allocation108_spill] sm:$0xff] %v8272_v45 }
 0x13b   : > { %11385 = vst [vmem:[#allocation102_spill] sm:$0xff] %v8232_v23  ;;  %v1587_v8 = vadd.f32 %v1586_v2, %v1442_v1  ;;  %v11390_v23 = vunpack.c.l.b16 %v8158_v43  ;;  %v8264_v35 = vunpack.c.l.b16 %v296_v59  ;;  %v475_v28 = vunpack.c.l.b16 %v297_v21 }
 0x13c   : > { %v11188_v59 = vunpack.c.l.b16 %v8278_v13 }
 0x13d   : > { %v1139_v2 = vpack.c.b16 %v8174_v32, %v11390_v23  ;;  %v1141_v32 = vpack.c.b16 %v8249_v40, %v959_v62  ;;  %v8294_v40 = vunpack.c.l.b16 %v300_v25  ;;  %v11401_v25 = vunpack.c.l.b16 %v7770_v42 }
 0x141   : > { %v1730_v1 = vpop.f32.mrf.mxu2  ;;  %v1445_v43 = vpop.f32.mrf.mxu0 }
 0x142   : > { %v8256_v30 = vpop.f32.mrf.mxu3  ;;  %v8266_v44 = vadd.f32 %v1730_v1, %v1587_v8  ;;  %v1589_v23 = vpop.f32.mrf.mxu1  ;;  %v509_v8 = vpack.c.b16 %v475_v28, %v8264_v35  ;;  %v719_v1 = vshrl.u32 %v508_v22, 16 }
 0x143   : > { %11391 = vst [vmem:[#allocation107_spill] sm:$0xff] %v8256_v30  ;;  %v1590_v27 = vadd.f32 %v1589_v23, %v1445_v43  ;;  %v8275_v30 = vld [vmem:[%s7422_s12 + $0xe0] sm:$0xf]  ;;  %v723_v43 = vrot.slane %v721_v29, 1 }
 0x144   : > { %1484 = vmatmul.bf16.gmra.mxu0 %v1139_v2  ;;  %v424_v62 = vunpack.c.l.b16 %v8275_v30  ;;  %v726_v23 = vshll.u32 %v509_v8, 16  ;;  %v476_v30 = vunpack.c.l.b16 %v301_v17  ;;  %v8308_v17 = vpack.c.b16 %v7800_v41, %v11401_v25 }
 0x145   : > { %1628 = vmatmul.bf16.gmra.mxu1 %v1140_v33  ;;  %v724_v14 = vor.u32 %v723_v43, %v719_v1  ;;  %v730_v42 = vshrl.u32 %v509_v8, 16 }
 0x146   : > { %1772 = vmatmul.bf16.gmra.mxu2 %v1141_v32  ;;  %v8292_v32 = vpack.c.b16 %v11188_v59, %v424_v62  ;;  %v728_v57 = vrot.slane %v726_v23, 1  ;;  %v8297_v0 = vpack.c.b16 %v476_v30, %v8294_v40  ;;  %11402 = vst [vmem:[#allocation114_spill] sm:$0xff] %v8308_v17 }
 0x147   : > { %2163 = vmatmul.bf16.gmra.mxu3 %v8272_v45 }
 0x148   : > { %11398 = vst [vmem:[#allocation111_spill] sm:$0xff] %v8292_v32  ;;  %v736_v29 = vshll.u32 %v8292_v32, 16  ;;  %v8303_v12 = vsel %vm522_vm0, %v724_v14, %v728_v57  ;;  %v741_v30 = vshll.u32 %v8297_v0, 16 }
 0x149   : > { %v1733_v38 = vpop.f32.mrf.mxu2  ;;  %v1447_v33 = vpop.f32.mrf.mxu0  ;;  %11400 = vst [vmem:[#allocation113_spill] sm:$0xff] %v8303_v12 }
 0x14a   : > { %v8286_v21 = vpop.f32.mrf.mxu3  ;;  %v8288_v2 = vadd.f32 %v1733_v38, %v1590_v27  ;;  %v1591_v28 = vpop.f32.mrf.mxu1  ;;  %v864_v27 = vrot.slane %v509_v8, 1  ;;  %v743_v14 = vrot.slane %v741_v30, 1 }
 0x14b   : > { %11396 = vst [vmem:[#allocation109_spill] sm:$0xff] %v8286_v21  ;;  %v1592_v45 = vadd.f32 %v1591_v28, %v1447_v33  ;;  %v863_v21 = vrot.slane %v508_v22, 1  ;;  %v734_v33 = vshrl.u32 %v8292_v32, 16  ;;  %v738_v28 = vrot.slane %v736_v29, 1 }
 0x14c   : > { %11397 = vst [vmem:[#allocation110_spill] sm:$0xff] %v8288_v2  ;;  %v867_v29 = vrot.slane %v8297_v0, 1 }
 0x14d   : > { %v739_v41 = vor.u32 %v738_v28, %v734_v33  ;;  %v6654_v28 = vld [vmem:[%s11045_s1 + $0x48] sm:$0xff] }
 0x14e   : > { %2270 = vmatpush.bf16.msrb.mxu0 %v6654_v28 }
 0x14f   : > { %v8334_v33 = vsel %vm522_vm0, %v739_v41, %v743_v14 }
 0x150   : > { %11406 = vst [vmem:[#allocation118_spill] sm:$0xff] %v8334_v33 }
 0x151   : > { %v1735_v38 = vpop.f32.mrf.mxu2  ;;  %v1450_v43 = vpop.f32.mrf.mxu0 }
 0x152   : > { %v8300_v2 = vpop.f32.mrf.mxu3  ;;  %v8310_v1 = vadd.f32 %v1735_v38, %v1592_v45  ;;  %v1594_v23 = vpop.f32.mrf.mxu1  ;;  %v866_v45 = vrot.slane %v8292_v32, 1 }
 0x153   : > { %11399 = vst [vmem:[#allocation112_spill] sm:$0xff] %v8300_v2  ;;  %v1595_v59 = vadd.f32 %v1594_v23, %v1450_v43  ;;  %v8315_v2 = vsel %vm823_vm1, %v863_v21, %v864_v27  ;;  %v8322_v43 = vor.u32 %v730_v42, %v728_v57 }
 0x154   : > { %11403 = vst [vmem:[#allocation115_spill] sm:$0xff] %v8315_v2  ;;  %1489 = vmatmul.bf16.gmra.mxu0 %v508_v22  ;;  %v8340_v30 = vsel %vm823_vm1, %v866_v45, %v867_v29 }
 0x155   : > { %1633 = vmatmul.bf16.gmra.mxu1 %v8303_v12  ;;  %11404 = vst [vmem:[#allocation116_spill] sm:$0xff] %v8322_v43  ;;  %v11195_v57 = vunpack.c.l.b16 %v8322_v43  ;;  %v969_v42 = vunpack.c.l.b16 %v8340_v30 }
 0x156   : > { %1777 = vmatmul.bf16.gmra.mxu2 %v8315_v2  ;;  %11407 = vst [vmem:[#allocation119_spill] sm:$0xff] %v8340_v30 }
 0x157   : > { %2168 = vmatmul.bf16.gmra.mxu3 %v8308_v17 }
 0x159   : > { %v1738_v38 = vpop.f32.mrf.mxu2  ;;  %v8329_v8 = vpop.f32.mrf.mxu0 }
 0x15a   : > { %v2129_v25 = vpop.f32.mrf.mxu3  ;;  %v8324_v21 = vadd.f32 %v1738_v38, %v1595_v59  ;;  %v8331_v23 = vpop.f32.mrf.mxu1  ;;  %v8344_v59 = vunpack.c.l.b16 %v864_v27 }
 0x15b   : > { %v8327_v22 = vadd.f32 %v2129_v25, %v7933_v19  ;;  %v968_v19 = vunpack.c.l.b16 %v8334_v33  ;;  %v1144_v25 = vpack.c.b16 %v424_v62, %v8264_v35 }
 0x15c   : > { %11408 = vst [vmem:[#allocation120_spill] sm:$0xff] %v8344_v59  ;;  %v1146_v27 = vpack.c.b16 %v969_v42, %v8344_v59 }
 0x15d   : > { %11405 = vst [vmem:[#allocation117_spill] sm:$0xff] %v8327_v22  ;;  %v1145_v12 = vpack.c.b16 %v968_v19, %v11195_v57  ;;  %v745_v22 = vshrl.u32 %v8297_v0, 16  ;;  %v970_v0 = vunpack.c.h.b16 %v8334_v33 }
 0x15f   : > { %v8358_v19 = vor.u32 %v745_v22, %v743_v14  ;;  %v971_v14 = vunpack.c.h.b16 %v8340_v30  ;;  %v8378_v22 = vunpack.c.l.b16 %v867_v29 }
 0x161   : > { %v8347_v38 = vpop.f32.mrf.mxu2  ;;  %v1455_v28 = vpop.f32.mrf.mxu0  ;;  %11410 = vst [vmem:[#allocation122_spill] sm:$0xff] %v8358_v19 }
 0x162   : > { %v2131_v41 = vpop.f32.mrf.mxu3  ;;  %v1599_v2 = vpop.f32.mrf.mxu1  ;;  %11412 = vst [vmem:[#allocation124_spill] sm:$0xff] %v8378_v22 }
 0x163   : > { %v8353_v45 = vadd.f32 %v2131_v41, %v7954_v31  ;;  %v1600_v17 = vadd.f32 %v1599_v2, %v1455_v28  ;;  %v8370_v2 = vld [vmem:[%s7422_s12 + $0xf0] sm:$0xf] }
 0x164   : > { %1494 = vmatmul.bf16.gmra.mxu0 %v1144_v25  ;;  %v11202_v25 = vunpack.c.l.b16 %v8358_v19 }
 0x165   : > { %11409 = vst [vmem:[#allocation121_spill] sm:$0xff] %v8353_v45  ;;  %1638 = vmatmul.bf16.gmra.mxu1 %v1145_v12  ;;  %v8373_v12 = vld [vmem:[%s7422_s12 + $0xf4] sm:$0xf] }
 0x166   : > { %1782 = vmatmul.bf16.gmra.mxu2 %v1146_v27  ;;  %v11413_v27 = vunpack.c.l.b16 %v8278_v13  ;;  %v1148_v33 = vpack.c.b16 %v11202_v25, %v970_v0  ;;  %v11418_v13 = vunpack.c.l.b16 %v8373_v12 }
 0x167   : > { %2173 = vmatmul.bf16.gmra.mxu3 %v7812_v36  ;;  %v1149_v36 = vpack.c.b16 %v8378_v22, %v971_v14 }
 0x169   : > { %v1743_v62 = vpop.f32.mrf.mxu2  ;;  %v8365_v57 = vpop.f32.mrf.mxu0 }
 0x16a   : > { %v2134_v43 = vpop.f32.mrf.mxu3  ;;  %v8360_v31 = vadd.f32 %v1743_v62, %v1600_v17  ;;  %v8367_v42 = vpop.f32.mrf.mxu1  ;;  %v1147_v62 = vpack.c.b16 %v8294_v40, %v11413_v27 }
 0x16b   : > { %v8363_v41 = vadd.f32 %v2134_v43, %v7969_v50  ;;  %v11415_v50 = vunpack.c.l.b16 %v7878_v60 }
 0x16d   : > { %11411 = vst [vmem:[#allocation123_spill] sm:$0xff] %v8363_v41  ;;  %v8396_v17 = vpack.c.b16 %v11415_v50, %v7814_v5  ;;  %v11417_v41 = vunpack.c.l.b16 %v8370_v2 }
 0x16f   : > { %11416 = vst [vmem:[#allocation126_spill] sm:$0xff] %v8396_v17  ;;  %v512_v27 = vpack.c.b16 %v11418_v13, %v11417_v41 }
 0x171   : > { %v8382_v43 = vpop.f32.mrf.mxu2  ;;  %v1460_v30 = vpop.f32.mrf.mxu0  ;;  %v749_v25 = vshrl.u32 %v512_v27, 16 }
 0x172   : > { %v2136_v28 = vpop.f32.mrf.mxu3  ;;  %v1604_v29 = vpop.f32.mrf.mxu1 }
 0x173   : > { %v8390_v59 = vadd.f32 %v2136_v28, %v7987_v52  ;;  %v1605_v45 = vadd.f32 %v1604_v29, %v1460_v30  ;;  %v751_v52 = vshll.u32 %v512_v27, 16 }
 0x174   : > { %1499 = vmatmul.bf16.gmra.mxu0 %v1147_v62  ;;  %v869_v62 = vrot.slane %v512_v27, 1 }
 0x175   : > { %11414 = vst [vmem:[#allocation125_spill] sm:$0xff] %v8390_v59  ;;  %1643 = vmatmul.bf16.gmra.mxu1 %v1148_v33  ;;  %v753_v41 = vrot.slane %v751_v52, 1 }
 0x176   : > { %1787 = vmatmul.bf16.gmra.mxu2 %v1149_v36 }
 0x177   : > { %2178 = vmatmul.bf16.gmra.mxu3 %v8396_v17  ;;  %v754_v30 = vor.u32 %v753_v41, %v749_v25  ;;  %v11424_v25 = vrot.slane %v7461_v26, 1 }
 0x179   : > { %v1748_v0 = vpop.f32.mrf.mxu2  ;;  %v8408_v5 = vpop.f32.mrf.mxu0  ;;  %v8429_v41 = vsel %vm823_vm1, %v869_v62, %v11424_v25 }
 0x17a   : > { %v2139_v28 = vpop.f32.mrf.mxu3  ;;  %v8403_v14 = vadd.f32 %v1748_v0, %v1605_v45  ;;  %v8410_v50 = vpop.f32.mrf.mxu1  ;;  %v11422_v0 = vunpack.c.l.b16 %v7881_v9  ;;  %11425 = vst [vmem:[#allocation131_spill] sm:$0xff] %v8429_v41 }
 0x17b   : > { %v8406_v60 = vadd.f32 %v2139_v28, %v7999_v7  ;;  %v8419_v7 = vsel %vm522_vm0, %v754_v30, %v7509_v46 }
 0x17c   : > { %11421 = vst [vmem:[#allocation129_spill] sm:$0xff] %v8419_v7  ;;  %v8424_v28 = vpack.c.b16 %v7910_v39, %v11422_v0 }
 0x17d   : > { %11419 = vst [vmem:[#allocation127_spill] sm:$0xff] %v8406_v60  ;;  %v11452_v60 = vld [vmem:[#allocation71_spill] sm:$0xff] }
 0x17e   : > { %11423 = vst [vmem:[#allocation130_spill] sm:$0xff] %v8424_v28 }
 0x181   : > { %v8412_v33 = vpop.f32.mrf.mxu2  ;;  %v1465_v13 = vpop.f32.mrf.mxu0 }
 0x182   : > { %v2141_v36 = vpop.f32.mrf.mxu3  ;;  %v1609_v45 = vpop.f32.mrf.mxu1 }
 0x183   : > { %v8415_v29 = vadd.f32 %v2141_v36, %v8034_v63  ;;  %v1610_v52 = vadd.f32 %v1609_v45, %v1465_v13  ;;  %v11427_v13 = vunpack.c.l.b16 %v7441_v15 }
 0x184   : > { %1504 = vmatmul.bf16.gmra.mxu0 %v512_v27  ;;  %v6653_v27 = vld [vmem:[%s11045_s1 + $0x40] sm:$0xff] }
 0x185   : > { %11420 = vst [vmem:[#allocation128_spill] sm:$0xff] %v8415_v29  ;;  %1648 = vmatmul.bf16.gmra.mxu1 %v8419_v7  ;;  %2271 = vmatpush.bf16.msrb.mxu0 %v6653_v27  ;;  %v1152_v45 = vpack.c.b16 %v11427_v13, %v7447_v18 }
 0x186   : > { %1792 = vmatmul.bf16.gmra.mxu2 %v8429_v41 }
 0x187   : > { %2183 = vmatmul.bf16.gmra.mxu3 %v8424_v28 }
 0x189   : > { %v1753_v46 = vpop.f32.mrf.mxu2  ;;  %v8439_v9 = vpop.f32.mrf.mxu0 }
 0x18a   : > { %v2144_v63 = vpop.f32.mrf.mxu3  ;;  %v8434_v30 = vadd.f32 %v1753_v46, %v1610_v52  ;;  %v8441_v26 = vpop.f32.mrf.mxu1 }
 0x18b   : > { %v8437_v39 = vadd.f32 %v2144_v63, %v8052_v4 }
 0x18d   : > { %11426 = vst [vmem:[#allocation132_spill] sm:$0xff] %v8437_v39  ;;  %v11450_v39 = vld [vmem:[#allocation11_spill] sm:$0xff] }
 0x191   : > { %v8446_v62 = vpop.f32.mrf.mxu2  ;;  %v1470_v4 = vpop.f32.mrf.mxu0 }
 0x192   : > { %v2146_v36 = vpop.f32.mrf.mxu3  ;;  %v1614_v52 = vpop.f32.mrf.mxu1 }
 0x193   : > { %v8452_v0 = vadd.f32 %v2146_v36, %v8074_v56  ;;  %v1615_v25 = vadd.f32 %v1614_v52, %v1470_v4  ;;  %v11430_v36 = vunpack.c.l.b16 %v7444_v16  ;;  %v6668_v16 = vld [vmem:[%s11045_s1 + $0xb8] sm:$0xff] }
 0x194   : > { %1509 = vmatmul.bf16.gmra.mxu0 %v1152_v45  ;;  %2408 = vmatpush.bf16.msrb.mxu1 %v6668_v16  ;;  %v11436_v16 = vunpack.c.l.b16 %v8005_v54 }
 0x195   : > { %11428 = vst [vmem:[#allocation133_spill] sm:$0xff] %v8452_v0  ;;  %v1155_v45 = vpack.c.b16 %v7458_v24, %v11430_v36 }
 0x197   : > { %2188 = vmatmul.bf16.gmra.mxu3 %v7937_v51 }
 0x199   : > { %v1758_v46 = vpop.f32.mrf.mxu2  ;;  %v8460_v7 = vpop.f32.mrf.mxu0 }
 0x19a   : > { %v2149_v63 = vpop.f32.mrf.mxu3  ;;  %v8455_v19 = vadd.f32 %v1758_v46, %v1615_v25  ;;  %v8462_v15 = vpop.f32.mrf.mxu1 }
 0x19b   : > { %v8458_v27 = vadd.f32 %v2149_v63, %v8089_v6  ;;  %v11432_v6 = vunpack.c.l.b16 %v8002_v3  ;;  %v6667_v3 = vld [vmem:[%s11045_s1 + $0xb0] sm:$0xff] }
 0x19c   : > { %2409 = vmatpush.bf16.msrb.mxu1 %v6667_v3 }
 0x19d   : > { %11429 = vst [vmem:[#allocation134_spill] sm:$0xff] %v8458_v27  ;;  %v8475_v46 = vpack.c.b16 %v11432_v6, %v7939_v34 }
 0x19f   : > { %11433 = vst [vmem:[#allocation136_spill] sm:$0xff] %v8475_v46 }
 0x1a1   : > { %v8464_v13 = vpop.f32.mrf.mxu2  ;;  %v1475_v52 = vpop.f32.mrf.mxu0 }
 0x1a2   : > { %v2151_v56 = vpop.f32.mrf.mxu3  ;;  %v1619_v25 = vpop.f32.mrf.mxu1 }
 0x1a3   : > { %v8470_v4 = vadd.f32 %v2151_v56, %v8107_v58  ;;  %v1620_v63 = vadd.f32 %v1619_v25, %v1475_v52 }
 0x1a4   : > { %1514 = vmatmul.bf16.gmra.mxu0 %v1155_v45  ;;  %v6700_v45 = vld [vmem:[%s11045_s1 + $0x1b8] sm:$0xff] }
 0x1a5   : > { %11431 = vst [vmem:[#allocation135_spill] sm:$0xff] %v8470_v4  ;;  %2767 = vmatpush.bf16.msrb.mxu2 %v6700_v45  ;;  %v6665_v45 = vld [vmem:[%s11045_s1 + $0xa0] sm:$0xff] }
 0x1a7   : > { %2193 = vmatmul.bf16.gmra.mxu3 %v8475_v46 }
 0x1a9   : > { %v1763_v22 = vpop.f32.mrf.mxu2  ;;  %v8486_v41 = vpop.f32.mrf.mxu0 }
 0x1aa   : > { %v2154_v36 = vpop.f32.mrf.mxu3  ;;  %v8481_v58 = vadd.f32 %v1763_v22, %v1620_v63  ;;  %v8488_v34 = vpop.f32.mrf.mxu1  ;;  %v6666_v22 = vld [vmem:[%s11045_s1 + $0xa8] sm:$0xff] }
 0x1ab   : > { %v8484_v56 = vadd.f32 %v2154_v36, %v8116_v37  ;;  %2410 = vmatpush.bf16.msrb.mxu1 %v6666_v22  ;;  %v8507_v36 = vpack.c.b16 %v8032_v53, %v11436_v16  ;;  %v6708_v16 = vld [vmem:[%s11045_s1 + $0x1f8] sm:$0xff] }
 0x1ac   : > { %2911 = vmatpush.bf16.msrb.mxu3 %v6708_v16 }
 0x1ad   : > { %11434 = vst [vmem:[#allocation137_spill] sm:$0xff] %v8484_v56  ;;  %v11442_v56 = vld [vmem:[#allocation63_spill] sm:$0xff] }
 0x1ae   : > { %11437 = vst [vmem:[#allocation139_spill] sm:$0xff] %v8507_v36  ;;  %v824_v4 = vrot.slane %v11442_v56, 1 }
 0x1af   : > { %2411 = vmatpush.bf16.msrb.mxu1 %v6665_v45  ;;  %v245_v45 = vld [vmem:[%s7422_s12 + $0xc] sm:$0x1] }
 0x1b1   : > { %v8499_v37 = vpop.f32.mrf.mxu2  ;;  %v1480_v6 = vpop.f32.mrf.mxu0 }
 0x1b2   : > { %v2156_v52 = vpop.f32.mrf.mxu3  ;;  %v1624_v63 = vpop.f32.mrf.mxu1 }
 0x1b3   : > { %v8502_v25 = vadd.f32 %v2156_v52, %v8146_v61  ;;  %v1625_v3 = vadd.f32 %v1624_v63, %v1480_v6  ;;  %v6664_v61 = vld [vmem:[%s11045_s1 + $0x98] sm:$0xff] }
 0x1b4   : > { %1519 = vmatmul.bf16.gmra.mxu0 %v7636_v20  ;;  %2412 = vmatpush.bf16.msrb.mxu1 %v6664_v61  ;;  %v6663_v20 = vld [vmem:[%s11045_s1 + $0x90] sm:$0xff] }
 0x1b5   : > { %11435 = vst [vmem:[#allocation138_spill] sm:$0xff] %v8502_v25 }
 0x1b7   : > { %2198 = vmatmul.bf16.gmra.mxu3 %v8507_v36  ;;  %v7156_v36 = vld [vmem:[%s7422_s12 + $0x120] sm:$0xff]  }
 0x1b8   : > { %v6814_v61 = vunpack.c.l.b16 %v7156_v36  ;;  %2413 = vmatpush.bf16.msrb.mxu1 %v6663_v20 }
 0x1b9   : > { %v1768_v54 = vpop.f32.mrf.mxu2  ;;  %v8522_v6 = vpop.f32.mrf.mxu0 }
 0x1ba   : > { %v2159_v22 = vpop.f32.mrf.mxu3  ;;  %v8517_v53 = vadd.f32 %v1768_v54, %v1625_v3  ;;  %v8524_v63 = vpop.f32.mrf.mxu1  ;;  %v462_v3 = vunpack.c.l.b16 %v245_v45  ;;  %v1160_v46 = vpack.c.b16 %v6814_v61, %v7630_v10  ;;  %v6661_v45 = vld [vmem:[%s11045_s1 + $0x80] sm:$0xff]  ;;  %v11443_v61 = vld [vmem:[#allocation70_spill] sm:$0xff] }
 0x1bb   : > { %v8520_v52 = vadd.f32 %v2159_v22, %v8168_v55  ;;  %v6662_v55 = vld [vmem:[%s11045_s1 + $0x88] sm:$0xff] }
 0x1bc   : > { %2414 = vmatpush.bf16.msrb.mxu1 %v6662_v55 }
 0x1bd   : > { %11438 = vst [vmem:[#allocation140_spill] sm:$0xff] %v8520_v52  ;;  %v11440_v52 = vld [vmem:[#allocation66_spill] sm:$0xff] }
 0x1be   : > { %v11441_v25 = vunpack.c.l.b16 %v11440_v52 }
 0x1c0   : > { %v483_v20 = vpack.c.b16 %v462_v3, %v11441_v25  ;;  %2415 = vmatpush.bf16.msrb.mxu1 %v6661_v45 }
 0x1c1   : > { %v8537_v54 = vpop.f32.mrf.mxu2  ;;  %v1485_v28 = vpop.f32.mrf.mxu0 }
 0x1c2   : > { %v2161_v22 = vpop.f32.mrf.mxu3  ;;  %v1629_v17 = vpop.f32.mrf.mxu1  ;;  %v825_v27 = vrot.slane %v483_v20, 1  ;;  %v531_v3 = vshll.u32 %v483_v20, 16 }
 0x1c3   : > { %v8541_v51 = vadd.f32 %v2161_v22, %v8190_v47  ;;  %v1630_v16 = vadd.f32 %v1629_v17, %v1485_v28  ;;  %v6716_v47 = vld [vmem:[%s11045_s1 + $0x238] sm:$0xff]  ;;  %v6815_v22 = vunpack.c.h.b16 %v7156_v36  ;;  %v11453_v36 = vld [vmem:[#allocation83_spill] sm:$0xff] }
 0x1c4   : > { %1524 = vmatmul.bf16.gmra.mxu0 %v1160_v46  ;;  %v826_v55 = vsel %vm823_vm1, %v824_v4, %v825_v27  ;;  %v533_v45 = vrot.slane %v531_v3, 1  ;;  %v11454_v3 = vunpack.c.l.b16 %v11453_v36 }
 0x1c5   : > { %11439 = vst [vmem:[#allocation141_spill] sm:$0xff] %v8541_v51  ;;  %3055 = vmatpush.bf16.msra.mxu0 %v6716_v47  ;;  %2416 = vmatmul.bf16.vlgmr.msrb.gmra.mxu1 %v826_v55  ;;  %v11447_v51 = vld [vmem:[#allocation10_spill] sm:$0xff] }
 0x1c6   : > { %v890_v0 = vunpack.c.l.b16 %v11447_v51 }
 0x1c7   : > { %2203 = vmatmul.bf16.gmra.mxu3 %v11443_v61  ;;  %v535_v61 = vshrl.u32 %v483_v20, 16  ;;  %v8574_v20 = vpack.c.b16 %v11454_v3, %v11452_v60  ;;  %v11459_v3 = vld [vmem:[#allocation87_spill] sm:$0xff] }
 0x1c9   : > { %v1773_v17 = vpop.f32.mrf.mxu2  ;;  %v8559_v52 = vpop.f32.mrf.mxu0  ;;  %v537_v4 = vor.u32 %v535_v61, %v533_v45  ;;  %11455 = vst [vmem:[#allocation71_spill] sm:$0xff] %v8574_v20 }
 0x1ca   : > { %v2164_v28 = vpop.f32.mrf.mxu3  ;;  %v8554_v25 = vadd.f32 %v1773_v17, %v1630_v16  ;;  %11445 = vst [vmem:[#allocation63_spill] sm:$0xff] %v8559_v52  ;;  %v8561_v56 = vpop.f32.mrf.mxu1  ;;  %v11449_v16 = vld [vmem:[#allocation21_spill] sm:$0xff] }
 0x1cb   : > { %v8557_v46 = vadd.f32 %v2164_v28, %v8209_v49  ;;  %11446 = vst [vmem:[#allocation142_spill] sm:$0xff] %v8561_v56  ;;  %v1163_v17 = vpack.c.b16 %v11449_v16, %v6815_v22  ;;  %v891_v49 = vunpack.c.l.b16 %v11450_v39  ;;  %v888_v59 = vunpack.c.l.b16 %v537_v4  ;;  %v7157_v22 = vld [vmem:[%s7422_s12] sm:$0xff] }
 0x1cc   : > { %v889_v56 = vunpack.c.l.b16 %v825_v27  ;;  %v526_v16 = vshll.u32 %v7157_v22, 16 }
 0x1cd   : > { %11444 = vst [vmem:[#allocation66_spill] sm:$0xff] %v8557_v46  ;;  %v1826_v61 = vpack.c.b16 %v890_v0, %v888_v59  ;;  %v524_v59 = vshrl.u32 %v7157_v22, 16  ;;  %v6699_v0 = vld [vmem:[%s11045_s1 + $0x1b0] sm:$0xff] }
 0x1ce   : > { %2768 = vmatpush.bf16.msrb.mxu2 %v6699_v0  ;;  %v11462_v0 = vld [vmem:[#allocation110_spill] sm:$0xff] }
 0x1d1   : > { %v8564_v47 = vpop.f32.mrf.mxu2  ;;  %v1490_v46 = vpop.f32.mrf.mxu0 }
 0x1d2   : > { %11448 = vst [vmem:[#allocation10_spill] sm:$0xff] %v8564_v47  ;;  %v2166_v55 = vpop.f32.mrf.mxu3  ;;  %v1634_v29 = vpop.f32.mrf.mxu1  ;;  %v1827_v47 = vpack.c.b16 %v891_v49, %v889_v56  ;;  %v11457_v49 = vld [vmem:[#allocation84_spill] sm:$0xff] }
 0x1d3   : > { %v8569_v28 = vadd.f32 %v2166_v55, %v8227_v11  ;;  %v1635_v10 = vadd.f32 %v1634_v29, %v1490_v46  ;;  %v528_v29 = vrot.slane %v526_v16, 1  ;;  %v11458_v36 = vunpack.c.l.b16 %v11457_v49 }
 0x1d4   : > { %1529 = vmatmul.bf16.gmra.mxu0 %v1163_v17 }
 0x1d5   : > { %11451 = vst [vmem:[#allocation11_spill] sm:$0xff] %v8569_v28  ;;  %2421 = vmatmul.bf16.gmra.mxu1 %v1827_v47  ;;  %v529_v27 = vor.u32 %v528_v29, %v524_v59  ;;  %v8599_v16 = vpack.c.b16 %v11459_v3, %v11458_v36 }
 0x1d7   : > { %2208 = vmatmul.bf16.gmra.mxu3 %v8574_v20  ;;  %11460 = vst [vmem:[#allocation84_spill] sm:$0xff] %v8599_v16  ;;  %v534_v22 = vsel %vm522_vm0, %v529_v27, %v533_v45 }
 0x1d9   : > { %v1778_v11 = vpop.f32.mrf.mxu2  ;;  %v8583_v60 = vpop.f32.mrf.mxu0 }
 0x1da   : > { %v2169_v55 = vpop.f32.mrf.mxu3  ;;  %v8578_v28 = vadd.f32 %v1778_v11, %v1635_v10  ;;  %v8585_v4 = vpop.f32.mrf.mxu1  ;;  %v893_v10 = vunpack.c.h.b16 %v11450_v39 }
 0x1db   : > { %v8581_v52 = vadd.f32 %v2169_v55, %v8236_v48  ;;  %v11461_v55 = vld [vmem:[#allocation18_spill] sm:$0xff] }
 0x1dc   : > { %v1830_v59 = vpack.c.b16 %v11461_v55, %v893_v10  ;;  %v11466_v55 = vld [vmem:[#allocation15_spill] sm:$0xff] }
 0x1e1   : > { %v8590_v46 = vpop.f32.mrf.mxu2  ;;  %v1495_v47 = vpop.f32.mrf.mxu0 }
 0x1e2   : > { %v2171_v56 = vpop.f32.mrf.mxu3  ;;  %v1639_v17 = vpop.f32.mrf.mxu1 }
 0x1e3   : > { %v8594_v48 = vadd.f32 %v2171_v56, %v8266_v44  ;;  %v1640_v11 = vadd.f32 %v1639_v17, %v1495_v47 }
 0x1e4   : > { %2272 = vmatmul.bf16.vlgmr.msrb.gmra.mxu0 %v534_v22  ;;  %v6707_v22 = vld [vmem:[%s11045_s1 + $0x1f0] sm:$0xff] }
 0x1e5   : > { %11456 = vst [vmem:[#allocation83_spill] sm:$0xff] %v8594_v48  ;;  %2426 = vmatmul.bf16.gmra.mxu1 %v1830_v59  ;;  %2912 = vmatpush.bf16.msrb.mxu3 %v6707_v22 }
 0x1e7   : > { %2213 = vmatmul.bf16.gmra.mxu3 %v8599_v16 }
 0x1e9   : > { %v1783_v39 = vpop.f32.mrf.mxu2  ;;  %v8609_v49 = vpop.f32.mrf.mxu0 }
 0x1ea   : > { %v2174_v29 = vpop.f32.mrf.mxu3  ;;  %v8604_v44 = vadd.f32 %v1783_v39, %v1640_v11  ;;  %v8611_v36 = vpop.f32.mrf.mxu1  ;;  %v11465_v11 = vld [vmem:[#allocation90_spill] sm:$0xff] }
 0x1eb   : > { %v8607_v56 = vadd.f32 %v2174_v29, %v11462_v0 }
 0x1ed   : > { %11463 = vst [vmem:[#allocation87_spill] sm:$0xff] %v8607_v56  ;;  %v11471_v56 = vld [vmem:[#allocation91_spill] sm:$0xff] }
 0x1f1   : > { %v8613_v3 = vpop.f32.mrf.mxu2  ;;  %v1500_v47 = vpop.f32.mrf.mxu0 }
 0x1f2   : > { %v2176_v45 = vpop.f32.mrf.mxu3  ;;  %v1644_v10 = vpop.f32.mrf.mxu1 }
 0x1f3   : > { %v8616_v27 = vadd.f32 %v2176_v45, %v8310_v1  ;;  %v1645_v17 = vadd.f32 %v1644_v10, %v1500_v47  ;;  %v892_v47 = vunpack.c.h.b16 %v11447_v51  ;;  %v1597_v10 = vadd.f32 %v8331_v23, %v8329_v8  ;;  %v11472_v51 = vld [vmem:[#allocation104_spill] sm:$0xff]  ;;  %v11475_v23 = vld [vmem:[#allocation22_spill] sm:$0xff] }
 0x1f4   : > { %2277 = vmatmul.bf16.gmra.mxu0 %v1826_v61  ;;  %v6715_v61 = vld [vmem:[%s11045_s1 + $0x230] sm:$0xff] }
 0x1f5   : > { %11464 = vst [vmem:[#allocation18_spill] sm:$0xff] %v8616_v27  ;;  %2431 = vmatmul.bf16.gmra.mxu1 %v11466_v55  ;;  %3056 = vmatpush.bf16.msra.mxu0 %v6715_v61  ;;  %v11473_v61 = vunpack.c.l.b16 %v11472_v51 }
 0x1f7   : > { %2218 = vmatmul.bf16.gmra.mxu3 %v11465_v11  ;;  %v11470_v11 = vld [vmem:[#allocation28_spill] sm:$0xff]  ;;  %v8649_v48 = vpack.c.b16 %v11473_v61, %v11471_v56  ;;  %v11477_v61 = vld [vmem:[#allocation105_spill] sm:$0xff] }
 0x1f8   : > { %v903_v16 = vunpack.c.l.b16 %v11470_v11 }
 0x1f9   : > { %v1788_v59 = vpop.f32.mrf.mxu2  ;;  %v8628_v0 = vpop.f32.mrf.mxu0 }
 0x1fa   : > { %v2179_v39 = vpop.f32.mrf.mxu3  ;;  %v8623_v29 = vadd.f32 %v1788_v59, %v1645_v17  ;;  %v8630_v45 = vpop.f32.mrf.mxu1  ;;  %v1741_v17 = vadd.f32 %v8347_v38, %v1597_v10  ;;  %v11468_v59 = vld [vmem:[#allocation12_spill] sm:$0xff]  ;;  %v8653_v38 = vpack.c.b16 %v903_v16, %v11475_v23  ;;  %v1602_v16 = vadd.f32 %v8367_v42, %v8365_v57 }
 0x1fb   : > { %v8626_v1 = vadd.f32 %v2179_v39, %v8324_v21  ;;  %v11469_v39 = vunpack.c.l.b16 %v11468_v59  ;;  %11474 = vst [vmem:[#allocation12_spill] sm:$0xff] %v8649_v48  ;;  %v905_v59 = vunpack.c.h.b16 %v11470_v11 }
 0x1fc   : > { %11476 = vst [vmem:[#allocation28_spill] sm:$0xff] %v8653_v38 }
 0x1fd   : > { %11467 = vst [vmem:[#allocation110_spill] sm:$0xff] %v8626_v1  ;;  %v1829_v55 = vpack.c.b16 %v11469_v39, %v892_v47  ;;  %v6698_v47 = vld [vmem:[%s11045_s1 + $0x1a8] sm:$0xff] }
 0x1fe   : > { %2769 = vmatpush.bf16.msrb.mxu2 %v6698_v47  ;;  %v11481_v47 = vld [vmem:[#allocation33_spill] sm:$0xff] }
 0x1ff   : > { %v8682_v57 = vpack.c.b16 %v11481_v47, %v905_v59 }
 0x201   : > { %v8639_v22 = vpop.f32.mrf.mxu2  ;;  %v1505_v1 = vpop.f32.mrf.mxu0  ;;  %11482 = vst [vmem:[#allocation104_spill] sm:$0xff] %v8682_v57 }
 0x202   : > { %v2181_v21 = vpop.f32.mrf.mxu3  ;;  %v1649_v27 = vpop.f32.mrf.mxu1 }
 0x203   : > { %v8644_v20 = vadd.f32 %v2181_v21, %v1741_v17  ;;  %v1650_v8 = vadd.f32 %v1649_v27, %v1505_v1 }
 0x204   : > { %2282 = vmatmul.bf16.gmra.mxu0 %v1829_v55  ;;  %v1746_v55 = vadd.f32 %v8382_v43, %v1602_v16 }
 0x205   : > { %2436 = vmatmul.bf16.gmra.mxu1 %v8653_v38  ;;  %v11506_v38 = vld [vmem:[#allocation44_spill] sm:$0xff] }
 0x207   : > { %2223 = vmatmul.bf16.gmra.mxu3 %v8649_v48 }
 0x209   : > { %v1793_v10 = vpop.f32.mrf.mxu2  ;;  %v8664_v27 = vpop.f32.mrf.mxu0 }
 0x20a   : > { %v2184_v17 = vpop.f32.mrf.mxu3  ;;  %v8659_v21 = vadd.f32 %v1793_v10, %v1650_v8  ;;  %v11478_v8 = vunpack.c.l.b16 %v11477_v61  ;;  %v11483_v10 = vld [vmem:[#allocation27_spill] sm:$0xff] }
 0x20b   : > { %v8662_v56 = vadd.f32 %v2184_v17, %v8360_v31  ;;  %v11480_v31 = vld [vmem:[#allocation13_spill] sm:$0xff]  ;;  %v902_v17 = vunpack.c.l.b16 %v11483_v10 }
 0x20c   : > { %v8677_v23 = vpack.c.b16 %v8264_v35, %v11478_v8  ;;  %v1607_v35 = vadd.f32 %v8410_v50, %v8408_v5 }
 0x20e   : > { %11479 = vst [vmem:[#allocation91_spill] sm:$0xff] %v8677_v23  ;;  %v1751_v16 = vadd.f32 %v8412_v33, %v1607_v35  ;;  %v6706_v33 = vld [vmem:[%s11045_s1 + $0x1e8] sm:$0xff]  ;;  %v1612_v35 = vadd.f32 %v8441_v26, %v8439_v9  ;;  %v6697_v26 = vld [vmem:[%s11045_s1 + $0x1a0] sm:$0xff] }
 0x20f   : > { %2913 = vmatpush.bf16.msrb.mxu3 %v6706_v33  ;;  %v11490_v33 = vunpack.c.l.b16 %v8370_v2  ;;  %v6714_v9 = vld [vmem:[%s11045_s1 + $0x228] sm:$0xff]  ;;  %2770 = vmatpush.bf16.msrb.mxu2 %v6697_v26  ;;  %v11495_v26 = vunpack.c.l.b16 %v8373_v12 }
 0x210   : > { %3057 = vmatpush.bf16.msra.mxu0 %v6714_v9  ;;  %v11501_v12 = vld [vmem:[#allocation40_spill] sm:$0xff] }
 0x211   : > { %v8672_v51 = vpop.f32.mrf.mxu0 }
 0x212   : > { %v2186_v1 = vpop.f32.mrf.mxu3 }
 0x213   : > { %v8670_v39 = vadd.f32 %v2186_v1, %v1746_v55  ;;  %v11484_v1 = vld [vmem:[#allocation20_spill] sm:$0xff] }
 0x214   : > { %2287 = vmatmul.bf16.gmra.mxu0 %v11480_v31  ;;  %v11485_v61 = vunpack.c.l.b16 %v11484_v1  ;;  %v11487_v1 = vld [vmem:[#allocation29_spill] sm:$0xff] }
 0x215   : > { %2441 = vmatmul.bf16.gmra.mxu1 %v8682_v57 }
 0x216   : > { %v8696_v59 = vpack.c.b16 %v902_v17, %v11485_v61  ;;  %v904_v17 = vunpack.c.h.b16 %v11483_v10  ;;  %v11488_v61 = vunpack.c.l.b16 %v11487_v1  ;;  %v8729_v10 = vpack.c.b16 %v11490_v33, %v8294_v40 }
 0x217   : > { %2228 = vmatmul.bf16.gmra.mxu3 %v8677_v23 }
 0x218   : > { %11491 = vst [vmem:[#allocation22_spill] sm:$0xff] %v8729_v10 }
 0x219   : > { %v8688_v11 = vpop.f32.mrf.mxu0 }
 0x21a   : > { %v2189_v42 = vpop.f32.mrf.mxu3 }
 0x21b   : > { %v8686_v43 = vadd.f32 %v2189_v42, %v8403_v14  ;;  %v11486_v14 = vld [vmem:[#allocation32_spill] sm:$0xff] }
 0x221   : > { %v8700_v47 = vpop.f32.mrf.mxu0 }
 0x222   : > { %v2191_v55 = vpop.f32.mrf.mxu3 }
 0x223   : > { %v8698_v8 = vadd.f32 %v2191_v55, %v1751_v16  ;;  %v1756_v16 = vadd.f32 %v8446_v62, %v1612_v35  ;;  %v11492_v62 = vld [vmem:[#allocation36_spill] sm:$0xff] }
 0x224   : > { %2292 = vmatmul.bf16.gmra.mxu0 %v8696_v59 }
 0x225   : > { %2446 = vmatmul.bf16.gmra.mxu1 %v11486_v14  ;;  %v8719_v14 = vpack.c.b16 %v11488_v61, %v904_v17 }
 0x227   : > { %2233 = vmatmul.bf16.gmra.mxu3 %v8292_v32 }
 0x229   : > { %v8708_v50 = vpop.f32.mrf.mxu0 }
 0x22a   : > { %v2194_v42 = vpop.f32.mrf.mxu3 }
 0x22b   : > { %v8706_v5 = vadd.f32 %v2194_v42, %v8434_v30  ;;  %v11489_v30 = vld [vmem:[#allocation41_spill] sm:$0xff] }
 0x22c   : > { %v915_v42 = vunpack.c.l.b16 %v11489_v30  ;;  %v917_v33 = vunpack.c.h.b16 %v11489_v30 }
 0x22e   : > { %v8740_v17 = vpack.c.b16 %v915_v42, %v11492_v62  ;;  %v11497_v62 = vld [vmem:[#allocation30_spill] sm:$0xff] }
 0x230   : > { %11493 = vst [vmem:[#allocation105_spill] sm:$0xff] %v8740_v17 }
 0x231   : > { %v8724_v32 = vpop.f32.mrf.mxu0 }
 0x232   : > { %v2196_v55 = vpop.f32.mrf.mxu3 }
 0x233   : > { %v8722_v57 = vadd.f32 %v2196_v55, %v1756_v16  ;;  %v8748_v16 = vpop.f32.mrf.mxu1  ;;  %v1617_v55 = vadd.f32 %v8462_v15, %v8460_v7  ;;  %v11498_v7 = vld [vmem:[#allocation45_spill] sm:$0xff] }
 0x234   : > { %2297 = vmatmul.bf16.gmra.mxu0 %v8719_v14  ;;  %v8766_v15 = vpack.c.b16 %v11498_v7, %v917_v33 }
 0x235   : > { %2451 = vmatmul.bf16.gmra.mxu1 %v8740_v17  ;;  %v1761_v1 = vadd.f32 %v8464_v13, %v1617_v55 }
 0x236   : > { %11499 = vst [vmem:[#allocation27_spill] sm:$0xff] %v8766_v15 }
 0x237   : > { %2238 = vmatmul.bf16.gmra.mxu3 %v8729_v10 }
 0x239   : > { %v8746_v35 = vpop.f32.mrf.mxu0 }
 0x23a   : > { %v2199_v40 = vpop.f32.mrf.mxu3 }
 0x23b   : > { %v8744_v2 = vadd.f32 %v2199_v40, %v8455_v19  ;;  %v8761_v19 = vpack.c.b16 %v7447_v18, %v11495_v26 }
 0x23d   : > { %11496 = vst [vmem:[#allocation33_spill] sm:$0xff] %v8761_v19 }
 0x241   : > { %v8756_v9 = vpop.f32.mrf.mxu0 }
 0x242   : > { %v2201_v61 = vpop.f32.mrf.mxu3  ;;  %v2417_v40 = vpop.f32.mrf.mxu1 }
 0x243   : > { %v8754_v42 = vadd.f32 %v2201_v61, %v1761_v1  ;;  %v914_v1 = vunpack.c.l.b16 %v11501_v12  ;;  %v1622_v61 = vadd.f32 %v8488_v34, %v8486_v41 }
 0x244   : > { %2302 = vmatmul.bf16.gmra.mxu0 %v11497_v62 }
 0x245   : > { %11494 = vst [vmem:[#allocation13_spill] sm:$0xff] %v8754_v42  ;;  %2456 = vmatmul.bf16.gmra.mxu1 %v8766_v15  ;;  %v1766_v26 = vadd.f32 %v8499_v37, %v1622_v61  ;;  %v916_v37 = vunpack.c.h.b16 %v11501_v12  ;;  %v1627_v61 = vadd.f32 %v8524_v63, %v8522_v6  ;;  %v11509_v12 = vld [vmem:[#allocation42_spill] sm:$0xff]  ;;  %v11514_v6 = vld [vmem:[#allocation117_spill] sm:$0xff] }
 0x247   : > { %2243 = vmatmul.bf16.gmra.mxu3 %v8761_v19  ;;  %v11502_v19 = vld [vmem:[#allocation34_spill] sm:$0xff] }
 0x248   : > { %v11503_v33 = vunpack.c.l.b16 %v11502_v19 }
 0x249   : > { %v8772_v55 = vpop.f32.mrf.mxu0 }
 0x24a   : > { %v2204_v13 = vpop.f32.mrf.mxu3  ;;  %v2419_v18 = vpop.f32.mrf.mxu1  ;;  %v8780_v7 = vpack.c.b16 %v914_v1, %v11503_v33  ;;  %v6705_v1 = vld [vmem:[%s11045_s1 + $0x1e0] sm:$0xff] }
 0x24b   : > { %v8770_v30 = vadd.f32 %v2204_v13, %v8481_v58  ;;  %v11505_v13 = vld [vmem:[#allocation6_spill] sm:$0xff]  ;;  %2914 = vmatpush.bf16.msrb.mxu3 %v6705_v1  ;;  %v11516_v1 = vld [vmem:[#allocation49_spill] sm:$0xff] }
 0x24d   : > { %11500 = vst [vmem:[#allocation20_spill] sm:$0xff] %v8770_v30 }
 0x251   : > { %v8784_v10 = vpop.f32.mrf.mxu0 }
 0x252   : > { %v2206_v17 = vpop.f32.mrf.mxu3  ;;  %v2422_v58 = vpop.f32.mrf.mxu1 }
 0x253   : > { %v8782_v15 = vadd.f32 %v2206_v17, %v1766_v26  ;;  %v6696_v17 = vld [vmem:[%s11045_s1 + $0x198] sm:$0xff] }
 0x254   : > { %2307 = vmatmul.bf16.gmra.mxu0 %v8780_v7  ;;  %2771 = vmatpush.bf16.msrb.mxu2 %v6696_v17 }
 0x255   : > { %11504 = vst [vmem:[#allocation29_spill] sm:$0xff] %v8782_v15  ;;  %2461 = vmatmul.bf16.gmra.mxu1 %v11506_v38  ;;  %v11510_v38 = vunpack.c.l.b16 %v11509_v12  ;;  %v11511_v15 = vld [vmem:[#allocation16_spill] sm:$0xff] }
 0x256   : > { %v11512_v30 = vunpack.c.l.b16 %v11511_v15 }
 0x257   : > { %2248 = vmatmul.bf16.gmra.mxu3 %v11505_v13  ;;  %v8807_v13 = vpack.c.b16 %v11510_v38, %v916_v37  ;;  %v6713_v38 = vld [vmem:[%s11045_s1 + $0x220] sm:$0xff] }
 0x258   : > { %v8814_v42 = vpack.c.b16 %v11512_v30, %v7458_v24  ;;  %3058 = vmatpush.bf16.msra.mxu0 %v6713_v38  ;;  %v11519_v30 = vld [vmem:[#allocation121_spill] sm:$0xff] }
 0x259   : > { %v8792_v34 = vpop.f32.mrf.mxu0 }
 0x25a   : > { %v2209_v23 = vpop.f32.mrf.mxu3  ;;  %v2424_v19 = vpop.f32.mrf.mxu1  ;;  %11513 = vst [vmem:[#allocation36_spill] sm:$0xff] %v8814_v42 }
 0x25b   : > { %v8790_v41 = vadd.f32 %v2209_v23, %v8517_v53  ;;  %v1771_v53 = vadd.f32 %v8537_v54, %v1627_v61  ;;  %v11508_v23 = vld [vmem:[#allocation56_spill] sm:$0xff] }
 0x25c   : > { %v927_v26 = vunpack.c.l.b16 %v11508_v23 }
 0x25d   : > { %11507 = vst [vmem:[#allocation41_spill] sm:$0xff] %v8790_v41 }
 0x25e   : > { %v8821_v61 = vpack.c.b16 %v927_v26, %v11516_v1  ;;  %v11520_v26 = vld [vmem:[#allocation63_spill] sm:$0xff]  ;;  %v929_v1 = vunpack.c.h.b16 %v11508_v23 }
 0x260   : > { %11517 = vst [vmem:[#allocation45_spill] sm:$0xff] %v8821_v61 }
 0x261   : > { %v2273_v41 = vpop.f32.mrf.mxu0 }
 0x262   : > { %v2211_v33 = vpop.f32.mrf.mxu3  ;;  %v2274_v63 = vadd.f32 %v2273_v41, %v11514_v6  ;;  %v2427_v54 = vpop.f32.mrf.mxu1  ;;  %v11522_v6 = vld [vmem:[#allocation10_spill] sm:$0xff] }
 0x263   : > { %v8809_v48 = vadd.f32 %v2211_v33, %v1771_v53  ;;  %v11521_v33 = vld [vmem:[#allocation142_spill] sm:$0xff] }
 0x264   : > { %v8817_v17 = vadd.f32 %v2417_v40, %v2274_v63  ;;  %2312 = vmatmul.bf16.gmra.mxu0 %v8807_v13  ;;  %v1632_v12 = vadd.f32 %v11521_v33, %v11520_v26  ;;  %v11529_v33 = vld [vmem:[#allocation61_spill] sm:$0xff] }
 0x265   : > { %2466 = vmatmul.bf16.gmra.mxu1 %v8821_v61 }
 0x266   : > { %11515 = vst [vmem:[#allocation30_spill] sm:$0xff] %v8817_v17  ;;  %v1776_v63 = vadd.f32 %v11522_v6, %v1632_v12  ;;  %v8850_v12 = vpack.c.b16 %v11529_v33, %v929_v1  ;;  %v6704_v1 = vld [vmem:[%s11045_s1 + $0x1d8] sm:$0xff]  ;;  %v11533_v33 = vld [vmem:[#allocation47_spill] sm:$0xff] }
 0x267   : > { %2253 = vmatmul.bf16.gmra.mxu3 %v8814_v42  ;;  %v11523_v42 = vld [vmem:[#allocation17_spill] sm:$0xff] }
 0x268   : > { %2915 = vmatpush.bf16.msrb.mxu3 %v6704_v1  ;;  %v6694_v1 = vld [vmem:[%s11045_s1 + $0x188] sm:$0xff] }
 0x269   : > { %v2275_v40 = vpop.f32.mrf.mxu0 }
 0x26a   : > { %v2214_v24 = vpop.f32.mrf.mxu3  ;;  %v2276_v41 = vadd.f32 %v2275_v40, %v11519_v30  ;;  %v2429_v53 = vpop.f32.mrf.mxu1  ;;  %v11526_v40 = vld [vmem:[#allocation123_spill] sm:$0xff] }
 0x26b   : > { %v8829_v15 = vadd.f32 %v2214_v24, %v8554_v25  ;;  %v11524_v25 = vunpack.c.l.b16 %v11523_v42  ;;  %v11525_v24 = vld [vmem:[#allocation19_spill] sm:$0xff] }
 0x26c   : > { %v8832_v37 = vadd.f32 %v2419_v18, %v2276_v41  ;;  %v11528_v41 = vld [vmem:[#allocation43_spill] sm:$0xff] }
 0x26d   : > { %11518 = vst [vmem:[#allocation40_spill] sm:$0xff] %v8829_v15  ;;  %v8843_v15 = vpack.c.b16 %v11525_v24, %v11524_v25 }
 0x271   : > { %v2278_v61 = vpop.f32.mrf.mxu0 }
 0x272   : > { %v2216_v38 = vpop.f32.mrf.mxu3  ;;  %v2279_v18 = vadd.f32 %v2278_v61, %v11526_v40  ;;  %v2432_v26 = vpop.f32.mrf.mxu1  ;;  %v11531_v61 = vld [vmem:[#allocation55_spill] sm:$0xff]  ;;  %v1637_v40 = vadd.f32 %v8585_v4, %v8583_v60  ;;  %v6695_v60 = vld [vmem:[%s11045_s1 + $0x190] sm:$0xff] }
 0x273   : > { %v8838_v17 = vadd.f32 %v2216_v38, %v1776_v63  ;;  %v11530_v63 = vld [vmem:[#allocation125_spill] sm:$0xff]  ;;  %2772 = vmatpush.bf16.msrb.mxu2 %v6695_v60 }
 0x274   : > { %v8846_v30 = vadd.f32 %v2422_v58, %v2279_v18  ;;  %2317 = vmatmul.bf16.gmra.mxu0 %v11528_v41  ;;  %v926_v58 = vunpack.c.l.b16 %v11531_v61  ;;  %v1781_v18 = vadd.f32 %v8590_v46, %v1637_v40  ;;  %v11537_v40 = vld [vmem:[#allocation60_spill] sm:$0xff] }
 0x275   : > { %2471 = vmatmul.bf16.gmra.mxu1 %v8850_v12 }
 0x276   : > { %11527 = vst [vmem:[#allocation34_spill] sm:$0xff] %v8846_v30 }
 0x277   : > { %2258 = vmatmul.bf16.gmra.mxu3 %v8843_v15  ;;  %2773 = vmatpush.bf16.msrb.mxu2 %v6694_v1  ;;  %v11540_v1 = vld [vmem:[#allocation8_spill] sm:$0xff] }
 0x279   : > { %v2280_v6 = vpop.f32.mrf.mxu0 }
 0x27a   : > { %v2219_v23 = vpop.f32.mrf.mxu3  ;;  %v2281_v38 = vadd.f32 %v2280_v6, %v11530_v63  ;;  %v2434_v24 = vpop.f32.mrf.mxu1 }
 0x27b   : > { %v8855_v42 = vadd.f32 %v2219_v23, %v8578_v28  ;;  %v11534_v23 = vunpack.c.l.b16 %v11533_v33  ;;  %v11538_v33 = vld [vmem:[#allocation128_spill] sm:$0xff] }
 0x27c   : > { %v8859_v25 = vadd.f32 %v2424_v19, %v2281_v38  ;;  %v6703_v19 = vld [vmem:[%s11045_s1 + $0x1d0] sm:$0xff]  ;;  %v11535_v38 = vld [vmem:[#allocation127_spill] sm:$0xff] }
 0x27d   : > { %v8869_v30 = vpack.c.b16 %v926_v58, %v11534_v23  ;;  %2916 = vmatpush.bf16.msrb.mxu3 %v6703_v19  ;;  %v6702_v58 = vld [vmem:[%s11045_s1 + $0x1c8] sm:$0xff]  ;;  %v6693_v19 = vld [vmem:[%s11045_s1 + $0x180] sm:$0xff] }
 0x27e   : > { %11532 = vst [vmem:[#allocation56_spill] sm:$0xff] %v8859_v25  ;;  %2774 = vmatpush.bf16.msrb.mxu2 %v6693_v19 }
 0x281   : > { %v2283_v63 = vpop.f32.mrf.mxu0  ;;  %2917 = vmatpush.bf16.msrb.mxu3 %v6702_v58  ;;  %v1642_v58 = vadd.f32 %v8611_v36, %v8609_v49  ;;  %2775 = vmatmul.bf16.vlgmr.msrb.gmra.mxu2 %v11540_v1  ;;  %v11545_v36 = vld [vmem:[#allocation67_spill] sm:$0xff] }
 0x282   : > { %v2221_v28 = vpop.f32.mrf.mxu3  ;;  %v2284_v25 = vadd.f32 %v2283_v63, %v11535_v38  ;;  %v2437_v46 = vpop.f32.mrf.mxu1  ;;  %v928_v63 = vunpack.c.h.b16 %v11531_v61 }
 0x283   : > { %v8874_v6 = vadd.f32 %v2221_v28, %v1781_v18 }
 0x284   : > { %v8880_v4 = vadd.f32 %v2427_v54, %v2284_v25  ;;  %2322 = vmatmul.bf16.gmra.mxu0 %v8869_v30  ;;  %v6701_v54 = vld [vmem:[%s11045_s1 + $0x1c0] sm:$0xff] }
 0x285   : > { %2476 = vmatmul.bf16.gmra.mxu1 %v11537_v40  ;;  %2918 = vmatpush.bf16.msrb.mxu3 %v6701_v54 }
 0x286   : > { %11536 = vst [vmem:[#allocation42_spill] sm:$0xff] %v8880_v4 }
 0x288   : > { %2919 = vmatmul.bf16.vlgmr.msrb.gmra.mxu3 %v11480_v31 }
 0x289   : > { %v2285_v28 = vpop.f32.mrf.mxu0 }
 0x28a   : > { %v2224_v18 = vpop.f32.mrf.mxu3  ;;  %v2286_v23 = vadd.f32 %v2285_v28, %v11538_v33  ;;  %v2439_v60 = vpop.f32.mrf.mxu1  ;;  %v11542_v33 = vld [vmem:[#allocation58_spill] sm:$0xff] }
 0x28b   : > { %v8894_v25 = vadd.f32 %v2224_v18, %v8604_v44  ;;  %v1786_v44 = vadd.f32 %v8613_v3, %v1642_v58  ;;  %v11541_v18 = vld [vmem:[#allocation74_spill] sm:$0xff]  ;;  %v11543_v4 = vunpack.c.l.b16 %v11542_v33 }
 0x28c   : > { %v8901_v38 = vadd.f32 %v2429_v53, %v2286_v23  ;;  %v939_v54 = vunpack.c.l.b16 %v11541_v18  ;;  %v11544_v23 = vld [vmem:[#allocation132_spill] sm:$0xff] }
 0x28d   : > { %v8911_v40 = vpack.c.b16 %v11543_v4, %v928_v63  ;;  %v11546_v63 = vld [vmem:[#allocation133_spill] sm:$0xff] }
 0x28e   : > { %11539 = vst [vmem:[#allocation16_spill] sm:$0xff] %v8901_v38  ;;  %v8920_v3 = vpack.c.b16 %v939_v54, %v11545_v36  ;;  %v1647_v54 = vadd.f32 %v8630_v45, %v8628_v0  ;;  %v11549_v36 = vld [vmem:[#allocation134_spill] sm:$0xff]  ;;  %v11552_v45 = vld [vmem:[#allocation79_spill] sm:$0xff] }
 0x290   : > { %v1791_v33 = vadd.f32 %v8639_v22, %v1647_v54 }
 0x291   : > { %v2288_v61 = vpop.f32.mrf.mxu0 }
 0x292   : > { %v2226_v28 = vpop.f32.mrf.mxu3  ;;  %v2289_v19 = vadd.f32 %v2288_v61, %v11544_v23  ;;  %v2442_v49 = vpop.f32.mrf.mxu1  ;;  %v941_v61 = vunpack.c.h.b16 %v11541_v18 }
 0x293   : > { %v8913_v53 = vadd.f32 %v2226_v28, %v1786_v44 }
 0x294   : > { %v8916_v38 = vadd.f32 %v2432_v26, %v2289_v19  ;;  %2327 = vmatmul.bf16.gmra.mxu0 %v8911_v40  ;;  %v6712_v26 = vld [vmem:[%s11045_s1 + $0x218] sm:$0xff] }
 0x295   : > { %2481 = vmatmul.bf16.gmra.mxu1 %v8920_v3  ;;  %3059 = vmatpush.bf16.msra.mxu0 %v6712_v26  ;;  %v11554_v26 = vld [vmem:[#allocation135_spill] sm:$0xff] }
 0x298   : > { %2924 = vmatmul.bf16.gmra.mxu3 %v8696_v59  ;;  %v8945_v59 = vpack.c.b16 %v11552_v45, %v941_v61 }
 0x299   : > { %v2290_v4 = vpop.f32.mrf.mxu0 }
 0x29a   : > { %v2229_v31 = vpop.f32.mrf.mxu3  ;;  %v2291_v44 = vadd.f32 %v2290_v4, %v11546_v63  ;;  %v2444_v28 = vpop.f32.mrf.mxu1  ;;  %v11551_v63 = vld [vmem:[#allocation59_spill] sm:$0xff]  ;;  %11553 = vst [vmem:[#allocation121_spill] sm:$0xff] %v8945_v59 }
 0x29b   : > { %v8924_v58 = vadd.f32 %v2229_v31, %v8623_v29  ;;  %v11548_v29 = vld [vmem:[#allocation88_spill] sm:$0xff] }
 0x29c   : > { %v8927_v1 = vadd.f32 %v2434_v24, %v2291_v44  ;;  %2780 = vmatmul.bf16.gmra.mxu2 %v11548_v29 }
 0x29e   : > { %11547 = vst [vmem:[#allocation117_spill] sm:$0xff] %v8927_v1  ;;  %v11560_v1 = vld [vmem:[#allocation137_spill] sm:$0xff] }
 0x2a1   : > { %v2293_v19 = vpop.f32.mrf.mxu0 }
 0x2a2   : > { %v2231_v23 = vpop.f32.mrf.mxu3  ;;  %v2294_v31 = vadd.f32 %v2293_v19, %v11549_v36  ;;  %v2447_v0 = vpop.f32.mrf.mxu1  ;;  %v1652_v36 = vadd.f32 %v8748_v16, %v8664_v27 }
 0x2a3   : > { %v8938_v24 = vadd.f32 %v2231_v23, %v1791_v33  ;;  %v11555_v33 = vld [vmem:[#allocation73_spill] sm:$0xff]  ;;  %v1795_v23 = vpop.f32.mrf.mxu2 }
 0x2a4   : > { %v8941_v4 = vadd.f32 %v2437_v46, %v2294_v31  ;;  %2332 = vmatmul.bf16.gmra.mxu0 %v11551_v63  ;;  %v938_v29 = vunpack.c.l.b16 %v11555_v33  ;;  %v1796_v61 = vadd.f32 %v1795_v23, %v1652_v36  ;;  %v11557_v31 = vld [vmem:[#allocation94_spill] sm:$0xff] }
 0x2a5   : > { %2486 = vmatmul.bf16.gmra.mxu1 %v8945_v59  ;;  %v11564_v23 = vld [vmem:[#allocation78_spill] sm:$0xff] }
 0x2a6   : > { %11550 = vst [vmem:[#allocation49_spill] sm:$0xff] %v8941_v4 }
 0x2a8   : > { %2929 = vmatmul.bf16.gmra.mxu3 %v8719_v14  ;;  %v11563_v14 = vld [vmem:[#allocation81_spill] sm:$0xff] }
 0x2a9   : > { %v2295_v18 = vpop.f32.mrf.mxu0 }
 0x2aa   : > { %v2234_v22 = vpop.f32.mrf.mxu3  ;;  %v2296_v54 = vadd.f32 %v2295_v18, %v11554_v26  ;;  %v2449_v19 = vpop.f32.mrf.mxu1 }
 0x2ab   : > { %v8949_v44 = vadd.f32 %v2234_v22, %v8659_v21  ;;  %v11558_v21 = vld [vmem:[#allocation65_spill] sm:$0xff] }
 0x2ac   : > { %v8953_v46 = vadd.f32 %v2439_v60, %v2296_v54  ;;  %2785 = vmatmul.bf16.gmra.mxu2 %v11557_v31  ;;  %v11559_v22 = vunpack.c.l.b16 %v11558_v21  ;;  %v11561_v54 = vld [vmem:[#allocation51_spill] sm:$0xff]  ;;  %v11565_v31 = vld [vmem:[#allocation138_spill] sm:$0xff] }
 0x2ae   : > { %11556 = vst [vmem:[#allocation63_spill] sm:$0xff] %v8953_v46  ;;  %v8961_v4 = vpack.c.b16 %v938_v29, %v11559_v22  ;;  %v1655_v46 = vadd.f32 %v11561_v54, %v8672_v51  ;;  %v940_v51 = vunpack.c.h.b16 %v11555_v33  ;;  %v11570_v54 = vld [vmem:[#allocation95_spill] sm:$0xff]  ;;  %v11573_v33 = vld [vmem:[#allocation140_spill] sm:$0xff] }
 0x2b0   : > { %v1799_v16 = vadd.f32 %v11563_v14, %v1655_v46  ;;  %v951_v14 = vunpack.c.l.b16 %v11570_v54 }
 0x2b1   : > { %v2298_v26 = vpop.f32.mrf.mxu0 }
 0x2b2   : > { %v2236_v45 = vpop.f32.mrf.mxu3  ;;  %v2299_v60 = vadd.f32 %v2298_v26, %v11560_v1  ;;  %v2452_v27 = vpop.f32.mrf.mxu1  ;;  %v11566_v1 = vld [vmem:[#allocation54_spill] sm:$0xff] }
 0x2b3   : > { %v8963_v18 = vadd.f32 %v2236_v45, %v1796_v61  ;;  %v1657_v21 = vadd.f32 %v11566_v1, %v8688_v11  ;;  %v11568_v26 = vld [vmem:[#allocation86_spill] sm:$0xff] }
 0x2b4   : > { %v8968_v59 = vadd.f32 %v2442_v49, %v2299_v60  ;;  %2337 = vmatmul.bf16.gmra.mxu0 %v8961_v4  ;;  %v11569_v60 = vld [vmem:[#allocation25_spill] sm:$0xff] }
 0x2b5   : > { %2491 = vmatmul.bf16.gmra.mxu1 %v11564_v23  ;;  %v1801_v46 = vadd.f32 %v11568_v26, %v1657_v21  ;;  %v11576_v26 = vld [vmem:[#allocation85_spill] sm:$0xff] }
 0x2b6   : > { %11562 = vst [vmem:[#allocation142_spill] sm:$0xff] %v8968_v59 }
 0x2b8   : > { %2934 = vmatmul.bf16.gmra.mxu3 %v11497_v62 }
 0x2b9   : > { %v2300_v61 = vpop.f32.mrf.mxu0 }
 0x2ba   : > { %v2239_v36 = vpop.f32.mrf.mxu3  ;;  %v2301_v45 = vadd.f32 %v2300_v61, %v11565_v31  ;;  %v2454_v22 = vpop.f32.mrf.mxu1 }
 0x2bb   : > { %v8973_v29 = vadd.f32 %v2239_v36, %v1799_v16  ;;  %v11571_v36 = vld [vmem:[#allocation76_spill] sm:$0xff] }
 0x2bc   : > { %v8979_v49 = vadd.f32 %v2444_v28, %v2301_v45  ;;  %2790 = vmatmul.bf16.gmra.mxu2 %v11569_v60  ;;  %v11572_v59 = vunpack.c.l.b16 %v11571_v36  ;;  %v11574_v45 = vld [vmem:[#allocation57_spill] sm:$0xff]  ;;  %v8998_v60 = vpack.c.b16 %v951_v14, %v11576_v26  ;;  %v11581_v14 = vld [vmem:[#allocation92_spill] sm:$0xff] }
 0x2bd   : > { %v1660_v1 = vadd.f32 %v11574_v45, %v8700_v47  ;;  %v11579_v47 = vld [vmem:[#allocation62_spill] sm:$0xff]  ;;  %v11582_v26 = vld [vmem:[#allocation108_spill] sm:$0xff] }
 0x2be   : > { %11567 = vst [vmem:[#allocation10_spill] sm:$0xff] %v8979_v49  ;;  %v8987_v61 = vpack.c.b16 %v11572_v59, %v940_v51  ;;  %v11577_v49 = vld [vmem:[#allocation89_spill] sm:$0xff] }
 0x2bf   : > { %v1804_v36 = vadd.f32 %v11577_v49, %v1660_v1  ;;  %v953_v49 = vunpack.c.h.b16 %v11570_v54 }
 0x2c1   : > { %v2303_v11 = vpop.f32.mrf.mxu0 }
 0x2c2   : > { %v2241_v16 = vpop.f32.mrf.mxu3  ;;  %v2304_v28 = vadd.f32 %v2303_v11, %v11573_v33  ;;  %v2457_v21 = vpop.f32.mrf.mxu1 }
 0x2c3   : > { %v8989_v31 = vadd.f32 %v2241_v16, %v1801_v46  ;;  %v11578_v16 = vld [vmem:[#allocation141_spill] sm:$0xff] }
 0x2c4   : > { %v8994_v62 = vadd.f32 %v2447_v0, %v2304_v28  ;;  %2342 = vmatmul.bf16.gmra.mxu0 %v8987_v61  ;;  %v1662_v0 = vadd.f32 %v11579_v47, %v8708_v50  ;;  %v6711_v50 = vld [vmem:[%s11045_s1 + $0x210] sm:$0xff] }
 0x2c5   : > { %2496 = vmatmul.bf16.gmra.mxu1 %v8998_v60  ;;  %3060 = vmatpush.bf16.msra.mxu0 %v6711_v50  ;;  %v11594_v50 = vld [vmem:[#allocation101_spill] sm:$0xff] }
 0x2c6   : > { %11575 = vst [vmem:[#allocation17_spill] sm:$0xff] %v8994_v62  ;;  %v1806_v45 = vadd.f32 %v11581_v14, %v1662_v0  ;;  %v11583_v62 = vld [vmem:[#allocation66_spill] sm:$0xff]  ;;  %v11587_v0 = vld [vmem:[#allocation100_spill] sm:$0xff] }
 0x2c7   : > { %v9025_v54 = vpack.c.b16 %v11587_v0, %v953_v49  ;;  %v11589_v14 = vld [vmem:[#allocation96_spill] sm:$0xff]  ;;  %v11595_v0 = vld [vmem:[#allocation114_spill] sm:$0xff] }
 0x2c8   : > { %2939 = vmatmul.bf16.gmra.mxu3 %v8780_v7 }
 0x2c9   : > { %v2305_v46 = vpop.f32.mrf.mxu0  ;;  %11588 = vst [vmem:[#allocation43_spill] sm:$0xff] %v9025_v54 }
 0x2ca   : > { %v2244_v59 = vpop.f32.mrf.mxu3  ;;  %v2306_v11 = vadd.f32 %v2305_v46, %v11578_v16  ;;  %v2459_v28 = vpop.f32.mrf.mxu1 }
 0x2cb   : > { %v9002_v51 = vadd.f32 %v2244_v59, %v1804_v36 }
 0x2cc   : > { %v9007_v33 = vadd.f32 %v2449_v19, %v2306_v11  ;;  %2795 = vmatmul.bf16.gmra.mxu2 %v11582_v26  ;;  %v11584_v19 = vld [vmem:[#allocation64_spill] sm:$0xff]  ;;  %v11586_v11 = vld [vmem:[#allocation77_spill] sm:$0xff] }
 0x2cd   : > { %v1665_v16 = vadd.f32 %v11584_v19, %v8724_v32  ;;  %v11591_v32 = vld [vmem:[#allocation68_spill] sm:$0xff] }
 0x2ce   : > { %11580 = vst [vmem:[#allocation19_spill] sm:$0xff] %v9007_v33 }
 0x2d1   : > { %v2308_v59 = vpop.f32.mrf.mxu0 }
 0x2d2   : > { %v2246_v1 = vpop.f32.mrf.mxu3  ;;  %v2309_v46 = vadd.f32 %v2308_v59, %v11583_v62  ;;  %v2462_v47 = vpop.f32.mrf.mxu1  ;;  %v11590_v59 = vld [vmem:[#allocation11_spill] sm:$0xff] }
 0x2d3   : > { %v9013_v36 = vadd.f32 %v2246_v1, %v1806_v45  ;;  %v1809_v45 = vadd.f32 %v11589_v14, %v1665_v16 }
 0x2d4   : > { %v9021_v7 = vadd.f32 %v2452_v27, %v2309_v46  ;;  %2347 = vmatmul.bf16.gmra.mxu0 %v11586_v11  ;;  %v1667_v27 = vadd.f32 %v11591_v32, %v8746_v35  ;;  %v11592_v46 = vld [vmem:[#allocation93_spill] sm:$0xff] }
 0x2d5   : > { %2501 = vmatmul.bf16.gmra.mxu1 %v9025_v54  ;;  %v950_v19 = vunpack.c.l.b16 %v11592_v46 }
 0x2d6   : > { %11585 = vst [vmem:[#allocation123_spill] sm:$0xff] %v9021_v7  ;;  %v1811_v16 = vadd.f32 %v11594_v50, %v1667_v27  ;;  %v11600_v27 = vld [vmem:[#allocation102_spill] sm:$0xff] }
 0x2d8   : > { %2944 = vmatmul.bf16.gmra.mxu3 %v8807_v13 }
 0x2d9   : > { %v2310_v1 = vpop.f32.mrf.mxu0 }
 0x2da   : > { %v2249_v62 = vpop.f32.mrf.mxu3  ;;  %v2311_v33 = vadd.f32 %v2310_v1, %v11590_v59  ;;  %v2464_v49 = vpop.f32.mrf.mxu1 }
 0x2db   : > { %v9029_v26 = vadd.f32 %v2249_v62, %v1809_v45  ;;  %v11596_v45 = vld [vmem:[#allocation82_spill] sm:$0xff] }
 0x2dc   : > { %v9035_v7 = vadd.f32 %v2454_v22, %v2311_v33  ;;  %2800 = vmatmul.bf16.gmra.mxu2 %v11595_v0  ;;  %v11597_v62 = vunpack.c.l.b16 %v11596_v45  ;;  %v11598_v22 = vld [vmem:[#allocation69_spill] sm:$0xff]  ;;  %v11601_v0 = vld [vmem:[#allocation99_spill] sm:$0xff] }
 0x2dd   : > { %v1670_v33 = vadd.f32 %v11598_v22, %v8756_v9  ;;  %v952_v9 = vunpack.c.h.b16 %v11592_v46  ;;  %v11605_v22 = vld [vmem:[#allocation107_spill] sm:$0xff] }
 0x2de   : > { %11593 = vst [vmem:[#allocation61_spill] sm:$0xff] %v9035_v7  ;;  %v9042_v54 = vpack.c.b16 %v950_v19, %v11597_v62  ;;  %v11608_v7 = vld [vmem:[#allocation97_spill] sm:$0xff]  ;;  %v11610_v46 = vld [vmem:[#allocation87_spill] sm:$0xff] }
 0x2df   : > { %v1814_v50 = vadd.f32 %v11600_v27, %v1670_v33  ;;  %v11606_v27 = vld [vmem:[#allocation38_spill] sm:$0xff] }
 0x2e1   : > { %v2313_v59 = vpop.f32.mrf.mxu0 }
 0x2e2   : > { %v2251_v14 = vpop.f32.mrf.mxu3  ;;  %v2314_v35 = vadd.f32 %v2313_v59, %v8581_v52  ;;  %v2467_v13 = vpop.f32.mrf.mxu1  ;;  %v11603_v52 = vld [vmem:[#allocation72_spill] sm:$0xff] }
 0x2e3   : > { %v9044_v1 = vadd.f32 %v2251_v14, %v1811_v16  ;;  %v11602_v14 = vld [vmem:[#allocation83_spill] sm:$0xff]  ;;  %v1672_v59 = vadd.f32 %v11603_v52, %v8772_v55 }
 0x2e4   : > { %v9049_v32 = vadd.f32 %v2457_v21, %v2314_v35  ;;  %2352 = vmatmul.bf16.gmra.mxu0 %v9042_v54 }
 0x2e5   : > { %2506 = vmatmul.bf16.gmra.mxu1 %v11601_v0  ;;  %v1816_v33 = vadd.f32 %v11605_v22, %v1672_v59  ;;  %v11609_v0 = vunpack.c.l.b16 %v11608_v7  ;;  %v11613_v22 = vld [vmem:[#allocation106_spill] sm:$0xff] }
 0x2e6   : > { %11599 = vst [vmem:[#allocation125_spill] sm:$0xff] %v9049_v32  ;;  %v11607_v32 = vld [vmem:[#allocation115_spill] sm:$0xff] }
 0x2e8   : > { %2949 = vmatmul.bf16.gmra.mxu3 %v11528_v41 }
 0x2e9   : > { %v2315_v16 = vpop.f32.mrf.mxu0 }
 0x2ea   : > { %v2254_v45 = vpop.f32.mrf.mxu3  ;;  %v2316_v62 = vadd.f32 %v2315_v16, %v11602_v14  ;;  %v2469_v35 = vpop.f32.mrf.mxu1  ;;  %v9068_v16 = vpack.c.b16 %v11609_v0, %v952_v9 }
 0x2eb   : > { %v9054_v19 = vadd.f32 %v2254_v45, %v1814_v50  ;;  %v963_v50 = vunpack.c.l.b16 %v11607_v32 }
 0x2ec   : > { %v9060_v21 = vadd.f32 %v2459_v28, %v2316_v62  ;;  %2805 = vmatmul.bf16.gmra.mxu2 %v11606_v27  ;;  %v11611_v62 = vld [vmem:[#allocation75_spill] sm:$0xff] }
 0x2ed   : > { %v1675_v52 = vadd.f32 %v11611_v62, %v8784_v10  ;;  %v9079_v27 = vpack.c.b16 %v963_v50, %v11613_v22  ;;  %v11616_v10 = vld [vmem:[#allocation80_spill] sm:$0xff]  ;;  %v11619_v22 = vld [vmem:[#allocation126_spill] sm:$0xff] }
 0x2ee   : > { %11604 = vst [vmem:[#allocation55_spill] sm:$0xff] %v9060_v21  ;;  %v11614_v21 = vld [vmem:[#allocation109_spill] sm:$0xff]  ;;  %v11618_v50 = vld [vmem:[#allocation112_spill] sm:$0xff] }
 0x2ef   : > { %v1819_v7 = vadd.f32 %v11614_v21, %v1675_v52  ;;  %v965_v21 = vunpack.c.h.b16 %v11607_v32 }
 0x2f1   : > { %v2318_v55 = vpop.f32.mrf.mxu0 }
 0x2f2   : > { %v2256_v45 = vpop.f32.mrf.mxu3  ;;  %v2319_v28 = vadd.f32 %v2318_v55, %v11610_v46  ;;  %v2472_v59 = vpop.f32.mrf.mxu1 }
 0x2f3   : > { %v9070_v14 = vadd.f32 %v2256_v45, %v1816_v33  ;;  %v11615_v45 = vld [vmem:[#allocation18_spill] sm:$0xff] }
 0x2f4   : > { %v9075_v41 = vadd.f32 %v2462_v47, %v2319_v28  ;;  %2357 = vmatmul.bf16.gmra.mxu0 %v9068_v16  ;;  %v1677_v47 = vadd.f32 %v11616_v10, %v8792_v34  ;;  %v11622_v34 = vld [vmem:[#allocation98_spill] sm:$0xff] }
 0x2f5   : > { %2511 = vmatmul.bf16.gmra.mxu1 %v9079_v27 }
 0x2f6   : > { %11612 = vst [vmem:[#allocation47_spill] sm:$0xff] %v9075_v41  ;;  %v1821_v62 = vadd.f32 %v11618_v50, %v1677_v47  ;;  %v11620_v41 = vld [vmem:[#allocation110_spill] sm:$0xff]  ;;  %v11625_v50 = vld [vmem:[#allocation113_spill] sm:$0xff] }
 0x2f8   : > { %2954 = vmatmul.bf16.gmra.mxu3 %v8869_v30  ;;  %v6710_v30 = vld [vmem:[%s11045_s1 + $0x208] sm:$0xff] }
 0x2f9   : > { %v2320_v33 = vpop.f32.mrf.mxu0  ;;  %3061 = vmatpush.bf16.msra.mxu0 %v6710_v30 }
 0x2fa   : > { %v2259_v0 = vpop.f32.mrf.mxu3  ;;  %v2321_v55 = vadd.f32 %v2320_v33, %v11615_v45  ;;  %v2474_v28 = vpop.f32.mrf.mxu1 }
 0x2fb   : > { %v9083_v9 = vadd.f32 %v2259_v0, %v1819_v7 }
 0x2fc   : > { %v9088_v46 = vadd.f32 %v2464_v49, %v2321_v55  ;;  %2810 = vmatmul.bf16.gmra.mxu2 %v11619_v22  ;;  %v11623_v55 = vld [vmem:[#allocation120_spill] sm:$0xff]  ;;  %v6774_v22 = vld [vmem:[%s11047_s3 + $0x138] sm:$0xff] }
 0x2fd   : > { %v9101_v10 = vpack.c.b16 %v11623_v55, %v965_v21  ;;  %4448 = vmatpush.bf16.msra.mxu2 %v6774_v22  ;;  %v11627_v21 = vld [vmem:[#allocation130_spill] sm:$0xff]  ;;  %v11631_v22 = vld [vmem:[#allocation119_spill] sm:$0xff] }
 0x2fe   : > { %11617 = vst [vmem:[#allocation127_spill] sm:$0xff] %v9088_v46 }
 0x2ff   : > { %11624 = vst [vmem:[#allocation8_spill] sm:$0xff] %v9101_v10 }
 0x301   : > { %v2323_v0 = vpop.f32.mrf.mxu0 }
 0x302   : > { %v2261_v52 = vpop.f32.mrf.mxu3  ;;  %v2324_v33 = vadd.f32 %v2323_v0, %v11620_v41  ;;  %v2477_v49 = vpop.f32.mrf.mxu1  ;;  %v962_v41 = vunpack.c.l.b16 %v11625_v50 }
 0x303   : > { %v9094_v7 = vadd.f32 %v2261_v52, %v1821_v62  ;;  %v11628_v52 = vld [vmem:[#allocation103_spill] sm:$0xff] }
 0x304   : > { %v9097_v45 = vadd.f32 %v2467_v13, %v2324_v33  ;;  %2362 = vmatmul.bf16.gmra.mxu0 %v11622_v34  ;;  %v11629_v0 = vunpack.c.l.b16 %v11628_v52 }
 0x305   : > { %2516 = vmatmul.bf16.gmra.mxu1 %v9101_v10  ;;  %v11680_v10 = vld [vmem:[#allocation40_spill] sm:$0xff] }
 0x306   : > { %11621 = vst [vmem:[#allocation128_spill] sm:$0xff] %v9097_v45  ;;  %v9118_v33 = vpack.c.b16 %v962_v41, %v11629_v0 }
 0x308   : > { %2959 = vmatmul.bf16.gmra.mxu3 %v8911_v40 }
 0x309   : > { %v2325_v32 = vpop.f32.mrf.mxu0 }
 0x30a   : > { %v2326_v47 = vadd.f32 %v2325_v32, %v8644_v20  ;;  %v2479_v62 = vpop.f32.mrf.mxu1  ;;  %v6766_v32 = vld [vmem:[%s11047_s3 + $0xf8] sm:$0xff] }
 0x30b   : > { %v2920_v55 = vpop.f32.mrf.mxu3  ;;  %4359 = vmatpush.bf16.msra.mxu1 %v6766_v32  ;;  %v11635_v32 = vld [vmem:[#allocation116_spill] sm:$0xff] }
 0x30c   : > { %v9109_v13 = vadd.f32 %v2469_v35, %v2326_v47  ;;  %2815 = vmatmul.bf16.gmra.mxu2 %v11627_v21  ;;  %v2776_v35 = vpop.f32.mrf.mxu2 }
 0x30d   : > { %v9124_v47 = vadd.f32 %v2920_v55, %v2776_v35 }
 0x30e   : > { %11626 = vst [vmem:[#allocation74_spill] sm:$0xff] %v9109_v13 }
 0x311   : > { %v2328_v20 = vpop.f32.mrf.mxu0 }
 0x312   : > { %v2329_v30 = vadd.f32 %v2328_v20, %v8662_v56  ;;  %v2482_v40 = vpop.f32.mrf.mxu1  ;;  %v964_v20 = vunpack.c.h.b16 %v11625_v50  ;;  %v11638_v50 = vld [vmem:[#allocation124_spill] sm:$0xff] }
 0x313   : > { %v2922_v41 = vpop.f32.mrf.mxu3 }
 0x314   : > { %v9126_v13 = vadd.f32 %v2472_v59, %v2329_v30  ;;  %2367 = vmatmul.bf16.gmra.mxu0 %v9118_v33  ;;  %v2778_v56 = vpop.f32.mrf.mxu2  ;;  %v11633_v59 = vld [vmem:[#allocation52_spill] sm:$0xff]  ;;  %v11634_v30 = vld [vmem:[#allocation131_spill] sm:$0xff] }
 0x315   : > { %2521 = vmatmul.bf16.gmra.mxu1 %v11631_v22  ;;  %v9131_v0 = vadd.f32 %v2922_v41, %v2778_v56  ;;  %v975_v35 = vunpack.c.l.b16 %v11634_v30 }
 0x316   : > { %11630 = vst [vmem:[#allocation58_spill] sm:$0xff] %v9126_v13  ;;  %v11636_v13 = vunpack.c.l.b16 %v11635_v32 }
 0x318   : > { %2964 = vmatmul.bf16.gmra.mxu3 %v11551_v63  ;;  %v9141_v22 = vpack.c.b16 %v11636_v13, %v964_v20 }
 0x319   : > { %v2330_v21 = vpop.f32.mrf.mxu0 }
 0x31a   : > { %v2331_v52 = vadd.f32 %v2330_v21, %v8670_v39  ;;  %v2484_v55 = vpop.f32.mrf.mxu1 }
 0x31b   : > { %v2925_v46 = vpop.f32.mrf.mxu3 }
 0x31c   : > { %v9134_v45 = vadd.f32 %v2474_v28, %v2331_v52  ;;  %2820 = vmatmul.bf16.gmra.mxu2 %v11633_v59  ;;  %v9150_v52 = vpack.c.b16 %v975_v35, %v11638_v50 }
 0x31e   : > { %11632 = vst [vmem:[#allocation132_spill] sm:$0xff] %v9134_v45 }
 0x31f   : > { %v2781_v21 = vpop.f32.mrf.mxu2  ;;  %11639 = vst [vmem:[#allocation133_spill] sm:$0xff] %v9150_v52 }
 0x320   : > { %v9144_v56 = vadd.f32 %v2925_v46, %v2781_v21 }
 0x321   : > { %v2333_v39 = vpop.f32.mrf.mxu0 }
 0x322   : > { %v2334_v41 = vadd.f32 %v2333_v39, %v8686_v43  ;;  %v2487_v63 = vpop.f32.mrf.mxu1  ;;  %v977_v39 = vunpack.c.h.b16 %v11634_v30 }
 0x323   : > { %v2927_v59 = vpop.f32.mrf.mxu3 }
 0x324   : > { %v9146_v28 = vadd.f32 %v2477_v49, %v2334_v41  ;;  %2372 = vmatmul.bf16.gmra.mxu0 %v9141_v22  ;;  %v11641_v49 = vld [vmem:[#allocation136_spill] sm:$0xff] }
 0x325   : > { %2526 = vmatmul.bf16.gmra.mxu1 %v9150_v52 }
 0x326   : > { %11637 = vst [vmem:[#allocation67_spill] sm:$0xff] %v9146_v28 }
 0x327   : > { %v2783_v32 = vpop.f32.mrf.mxu2 }
 0x328   : > { %v9154_v45 = vadd.f32 %v2927_v59, %v2783_v32  ;;  %2969 = vmatmul.bf16.gmra.mxu3 %v8961_v4  ;;  %v11643_v59 = vld [vmem:[#allocation118_spill] sm:$0xff] }
 0x329   : > { %v2335_v13 = vpop.f32.mrf.mxu0 }
 0x32a   : > { %v2336_v20 = vadd.f32 %v2335_v13, %v8698_v8  ;;  %v2489_v46 = vpop.f32.mrf.mxu1  ;;  %v11644_v13 = vld [vmem:[#allocation37_spill] sm:$0xff] }
 0x32b   : > { %v2930_v35 = vpop.f32.mrf.mxu3 }
 0x32c   : > { %v9156_v43 = vadd.f32 %v2479_v62, %v2336_v20  ;;  %2825 = vmatmul.bf16.gmra.mxu2 %v11641_v49  ;;  %v9168_v20 = vpack.c.b16 %v11644_v13, %v977_v39  ;;  %v6709_v39 = vld [vmem:[%s11045_s1 + $0x200] sm:$0xff] }
 0x32d   : > { %3062 = vmatpush.bf16.msra.mxu0 %v6709_v39  ;;  %v11653_v39 = vld [vmem:[#allocation35_spill] sm:$0xff] }
 0x32e   : > { %11640 = vst [vmem:[#allocation88_spill] sm:$0xff] %v9156_v43 }
 0x32f   : > { %v2786_v50 = vpop.f32.mrf.mxu2  ;;  %11645 = vst [vmem:[#allocation59_spill] sm:$0xff] %v9168_v20 }
 0x330   : > { %v9162_v28 = vadd.f32 %v2930_v35, %v2786_v50  ;;  %v11650_v50 = vld [vmem:[#allocation122_spill] sm:$0xff] }
 0x331   : > { %v2338_v41 = vpop.f32.mrf.mxu0 }
 0x332   : > { %v2339_v21 = vadd.f32 %v2338_v41, %v8706_v5  ;;  %v2492_v62 = vpop.f32.mrf.mxu1  ;;  %v11646_v5 = vld [vmem:[#allocation129_spill] sm:$0xff] }
 0x333   : > { %v2932_v4 = vpop.f32.mrf.mxu3  ;;  %v974_v35 = vunpack.c.l.b16 %v11646_v5 }
 0x334   : > { %v9164_v8 = vadd.f32 %v2482_v40, %v2339_v21  ;;  %2377 = vmatmul.bf16.gmra.mxu0 %v11643_v59  ;;  %v11649_v21 = vld [vmem:[#allocation139_spill] sm:$0xff] }
 0x335   : > { %2531 = vmatmul.bf16.gmra.mxu1 %v9168_v20 }
 0x336   : > { %11642 = vst [vmem:[#allocation134_spill] sm:$0xff] %v9164_v8 }
 0x337   : > { %v2788_v49 = vpop.f32.mrf.mxu2 }
 0x338   : > { %v9172_v43 = vadd.f32 %v2932_v4, %v2788_v49  ;;  %2974 = vmatmul.bf16.gmra.mxu3 %v8987_v61  ;;  %v6773_v61 = vld [vmem:[%s11047_s3 + $0x130] sm:$0xff] }
 0x339   : > { %v2340_v32 = vpop.f32.mrf.mxu0  ;;  %4449 = vmatpush.bf16.msra.mxu2 %v6773_v61  ;;  %v11658_v61 = vld [vmem:[#allocation46_spill] sm:$0xff] }
 0x33a   : > { %v2341_v30 = vadd.f32 %v2340_v32, %v8722_v57  ;;  %v9177_v40 = vpop.f32.mrf.mxu1  ;;  %v11651_v57 = vunpack.c.l.b16 %v11650_v50  ;;  %v11654_v50 = vld [vmem:[#allocation13_spill] sm:$0xff] }
 0x33b   : > { %11648 = vst [vmem:[#allocation135_spill] sm:$0xff] %v9177_v40  ;;  %v2935_v4 = vpop.f32.mrf.mxu3 }
 0x33c   : > { %v9175_v41 = vadd.f32 %v2484_v55, %v2341_v30  ;;  %2830 = vmatmul.bf16.gmra.mxu2 %v11649_v21  ;;  %v9186_v13 = vpack.c.b16 %v974_v35, %v11651_v57  ;;  %v6765_v35 = vld [vmem:[%s11047_s3 + $0xf0] sm:$0xff] }
 0x33d   : > { %4360 = vmatpush.bf16.msra.mxu1 %v6765_v35  ;;  %v987_v35 = vunpack.c.l.b16 %v11658_v61 }
 0x33e   : > { %11647 = vst [vmem:[#allocation79_spill] sm:$0xff] %v9175_v41 }
 0x33f   : > { %v2791_v30 = vpop.f32.mrf.mxu2 }
 0x340   : > { %v9189_v49 = vadd.f32 %v2935_v4, %v2791_v30 }
 0x341   : > { %v2343_v32 = vpop.f32.mrf.mxu0 }
 0x342   : > { %v2344_v55 = vadd.f32 %v2343_v32, %v8744_v2  ;;  %v2497_v41 = vpop.f32.mrf.mxu1  ;;  %v976_v32 = vunpack.c.h.b16 %v11646_v5 }
 0x343   : > { %v2937_v2 = vpop.f32.mrf.mxu3 }
 0x344   : > { %v9191_v40 = vadd.f32 %v2487_v63, %v2344_v55  ;;  %2382 = vmatmul.bf16.gmra.mxu0 %v9186_v13 }
 0x345   : > { %2536 = vmatmul.bf16.gmra.mxu1 %v11653_v39  ;;  %v11659_v39 = vld [vmem:[#allocation7_spill] sm:$0xff] }
 0x346   : > { %11652 = vst [vmem:[#allocation73_spill] sm:$0xff] %v9191_v40  ;;  %v11657_v40 = vld [vmem:[#allocation70_spill] sm:$0xff]  ;;  %v11660_v8 = vunpack.c.l.b16 %v11659_v39 }
 0x347   : > { %v2793_v57 = vpop.f32.mrf.mxu2 }
 0x348   : > { %v9202_v4 = vadd.f32 %v2937_v2, %v2793_v57  ;;  %2979 = vmatmul.bf16.gmra.mxu3 %v11586_v11  ;;  %v9214_v20 = vpack.c.b16 %v11660_v8, %v976_v32  ;;  %v11661_v2 = vld [vmem:[#allocation20_spill] sm:$0xff]  ;;  %v11665_v32 = vld [vmem:[#allocation29_spill] sm:$0xff] }
 0x349   : > { %v2345_v21 = vpop.f32.mrf.mxu0 }
 0x34a   : > { %v2346_v63 = vadd.f32 %v2345_v21, %v11654_v50  ;;  %v9207_v30 = vpop.f32.mrf.mxu1 }
 0x34b   : > { %11656 = vst [vmem:[#allocation65_spill] sm:$0xff] %v9207_v30  ;;  %v2940_v21 = vpop.f32.mrf.mxu3 }
 0x34c   : > { %v9205_v55 = vadd.f32 %v2489_v46, %v2346_v63  ;;  %2835 = vmatmul.bf16.gmra.mxu2 %v11657_v40  ;;  %v11663_v63 = vld [vmem:[#allocation39_spill] sm:$0xff] }
 0x34d   : > { %v9223_v40 = vpack.c.b16 %v987_v35, %v11663_v63 }
 0x34e   : > { %11655 = vst [vmem:[#allocation94_spill] sm:$0xff] %v9205_v55 }
 0x34f   : > { %v2796_v52 = vpop.f32.mrf.mxu2  ;;  %11664 = vst [vmem:[#allocation51_spill] sm:$0xff] %v9223_v40 }
 0x350   : > { %v9217_v5 = vadd.f32 %v2940_v21, %v2796_v52  ;;  %v989_v21 = vunpack.c.h.b16 %v11658_v61 }
 0x351   : > { %v2348_v50 = vpop.f32.mrf.mxu0 }
 0x352   : > { %v2349_v57 = vadd.f32 %v2348_v50, %v11661_v2  ;;  %v2502_v11 = vpop.f32.mrf.mxu1 }
 0x353   : > { %v2942_v39 = vpop.f32.mrf.mxu3 }
 0x354   : > { %v9219_v46 = vadd.f32 %v2492_v62, %v2349_v57  ;;  %2387 = vmatmul.bf16.gmra.mxu0 %v9214_v20  ;;  %v11668_v62 = vld [vmem:[#allocation71_spill] sm:$0xff]  ;;  %v11669_v57 = vld [vmem:[#allocation41_spill] sm:$0xff] }
 0x355   : > { %2541 = vmatmul.bf16.gmra.mxu1 %v9223_v40 }
 0x356   : > { %11662 = vst [vmem:[#allocation137_spill] sm:$0xff] %v9219_v46 }
 0x357   : > { %v2798_v55 = vpop.f32.mrf.mxu2 }
 0x358   : > { %v9229_v50 = vadd.f32 %v2942_v39, %v2798_v55  ;;  %2984 = vmatmul.bf16.gmra.mxu3 %v9042_v54  ;;  %v11672_v39 = vld [vmem:[#allocation50_spill] sm:$0xff] }
 0x359   : > { %v2350_v8 = vpop.f32.mrf.mxu0 }
 0x35a   : > { %v9227_v30 = vadd.f32 %v2350_v8, %v11665_v32  ;;  %v9231_v52 = vpop.f32.mrf.mxu1  ;;  %v11671_v32 = vld [vmem:[#allocation9_spill] sm:$0xff] }
 0x35b   : > { %11667 = vst [vmem:[#allocation78_spill] sm:$0xff] %v9231_v52  ;;  %v2945_v35 = vpop.f32.mrf.mxu3  ;;  %v9243_v52 = vpack.c.b16 %v11672_v39, %v989_v21  ;;  %v11678_v21 = vld [vmem:[#allocation14_spill] sm:$0xff] }
 0x35c   : > { %11666 = vst [vmem:[#allocation81_spill] sm:$0xff] %v9227_v30  ;;  %2840 = vmatmul.bf16.gmra.mxu2 %v11668_v62 }
 0x35d   : > { %11673 = vst [vmem:[#allocation54_spill] sm:$0xff] %v9243_v52 }
 0x35f   : > { %v2801_v46 = vpop.f32.mrf.mxu2 }
 0x360   : > { %v9237_v40 = vadd.f32 %v2945_v35, %v2801_v46  ;;  %v11675_v46 = vld [vmem:[#allocation23_spill] sm:$0xff] }
 0x361   : > { %v2353_v2 = vpop.f32.mrf.mxu0  ;;  %v986_v35 = vunpack.c.l.b16 %v11675_v46 }
 0x362   : > { %v2354_v63 = vadd.f32 %v2353_v2, %v11669_v57  ;;  %v2507_v55 = vpop.f32.mrf.mxu1  ;;  %v11677_v57 = vld [vmem:[#allocation84_spill] sm:$0xff] }
 0x363   : > { %v2947_v54 = vpop.f32.mrf.mxu3 }
 0x364   : > { %v9239_v8 = vadd.f32 %v2497_v41, %v2354_v63  ;;  %2392 = vmatmul.bf16.gmra.mxu0 %v11671_v32  ;;  %v11679_v63 = vunpack.c.l.b16 %v11678_v21 }
 0x365   : > { %2546 = vmatmul.bf16.gmra.mxu1 %v9243_v52 }
 0x366   : > { %11670 = vst [vmem:[#allocation138_spill] sm:$0xff] %v9239_v8  ;;  %v9258_v39 = vpack.c.b16 %v986_v35, %v11679_v63  ;;  %v6772_v35 = vld [vmem:[%s11047_s3 + $0x128] sm:$0xff] }
 0x367   : > { %v2803_v30 = vpop.f32.mrf.mxu2  ;;  %4450 = vmatpush.bf16.msra.mxu2 %v6772_v35 }
 0x368   : > { %v9249_v2 = vadd.f32 %v2947_v54, %v2803_v30  ;;  %2989 = vmatmul.bf16.gmra.mxu3 %v9068_v16 }
 0x369   : > { %v2355_v62 = vpop.f32.mrf.mxu0 }
 0x36a   : > { %v9247_v61 = vadd.f32 %v2355_v62, %v8809_v48  ;;  %v9252_v41 = vpop.f32.mrf.mxu1 }
 0x36b   : > { %11676 = vst [vmem:[#allocation25_spill] sm:$0xff] %v9252_v41  ;;  %v2950_v8 = vpop.f32.mrf.mxu3 }
 0x36c   : > { %11674 = vst [vmem:[#allocation86_spill] sm:$0xff] %v9247_v61  ;;  %2845 = vmatmul.bf16.gmra.mxu2 %v11677_v57 }
 0x36f   : > { %v2806_v62 = vpop.f32.mrf.mxu2 }
 0x370   : > { %v9261_v61 = vadd.f32 %v2950_v8, %v2806_v62  ;;  %v11684_v8 = vld [vmem:[#allocation24_spill] sm:$0xff] }
 0x371   : > { %v2358_v52 = vpop.f32.mrf.mxu0 }
 0x372   : > { %v2359_v48 = vadd.f32 %v2358_v52, %v11680_v10  ;;  %v2512_v54 = vpop.f32.mrf.mxu1  ;;  %v988_v10 = vunpack.c.h.b16 %v11675_v46 }
 0x373   : > { %v2952_v41 = vpop.f32.mrf.mxu3 }
 0x374   : > { %v9263_v30 = vadd.f32 %v2502_v11, %v2359_v48  ;;  %2397 = vmatmul.bf16.gmra.mxu0 %v9258_v39  ;;  %v6764_v11 = vld [vmem:[%s11047_s3 + $0xe8] sm:$0xff]  ;;  %v11685_v48 = vunpack.c.l.b16 %v11684_v8 }
 0x375   : > { %4361 = vmatpush.bf16.msra.mxu1 %v6764_v11 }
 0x376   : > { %v9284_v62 = vpack.c.b16 %v11685_v48, %v988_v10  ;;  %v11688_v48 = vld [vmem:[#allocation12_spill] sm:$0xff] }
 0x377   : > { %v2808_v21 = vpop.f32.mrf.mxu2 }
 0x378   : > { %v9272_v63 = vadd.f32 %v2952_v41, %v2808_v21  ;;  %2994 = vmatmul.bf16.gmra.mxu3 %v11622_v34 }
 0x379   : > { %v2360_v16 = vpop.f32.mrf.mxu0 }
 0x37a   : > { %v9267_v57 = vadd.f32 %v2360_v16, %v8838_v17  ;;  %v9279_v52 = vpop.f32.mrf.mxu1  ;;  %v11683_v17 = vld [vmem:[#allocation90_spill] sm:$0xff] }
 0x37b   : > { %11682 = vst [vmem:[#allocation76_spill] sm:$0xff] %v9279_v52  ;;  %v2955_v41 = vpop.f32.mrf.mxu3 }
 0x37c   : > { %11681 = vst [vmem:[#allocation95_spill] sm:$0xff] %v9267_v57  ;;  %2850 = vmatmul.bf16.gmra.mxu2 %v11683_v17 }
 0x37f   : > { %v2811_v21 = vpop.f32.mrf.mxu2 }
 0x380   : > { %v9287_v35 = vadd.f32 %v2955_v41, %v2811_v21 }
 0x381   : > { %v2363_v16 = vpop.f32.mrf.mxu0 }
 0x382   : > { %v2364_v46 = vadd.f32 %v2363_v16, %v8855_v42  ;;  %v2517_v52 = vpop.f32.mrf.mxu1 }
 0x383   : > { %v2957_v34 = vpop.f32.mrf.mxu3 }
 0x384   : > { %v9289_v57 = vadd.f32 %v2507_v55, %v2364_v46  ;;  %2402 = vmatmul.bf16.gmra.mxu0 %v9284_v62 }
 0x386   : > { %11686 = vst [vmem:[#allocation140_spill] sm:$0xff] %v9289_v57 }
 0x387   : > { %v2813_v8 = vpop.f32.mrf.mxu2 }
 0x388   : > { %v9295_v10 = vadd.f32 %v2957_v34, %v2813_v8  ;;  %2999 = vmatmul.bf16.gmra.mxu3 %v9118_v33 }
 0x389   : > { %v2365_v11 = vpop.f32.mrf.mxu0 }
 0x38a   : > { %v9293_v17 = vadd.f32 %v2365_v11, %v8874_v6  ;;  %v9300_v46 = vpop.f32.mrf.mxu1  ;;  %v11691_v6 = vld [vmem:[#allocation15_spill] sm:$0xff] }
 0x38b   : > { %v2960_v42 = vpop.f32.mrf.mxu3  ;;  %11689 = vst [vmem:[#allocation85_spill] sm:$0xff] %v9300_v46  ;;  %v11695_v46 = vld [vmem:[#allocation28_spill] sm:$0xff] }
 0x38c   : > { %11687 = vst [vmem:[#allocation57_spill] sm:$0xff] %v9293_v17  ;;  %2855 = vmatmul.bf16.gmra.mxu2 %v11688_v48 }
 0x38f   : > { %v2816_v16 = vpop.f32.mrf.mxu2 }
 0x390   : > { %v9302_v21 = vadd.f32 %v2960_v42, %v2816_v16 }
 0x391   : > { %v2368_v41 = vpop.f32.mrf.mxu0 }
 0x392   : > { %v2369_v55 = vadd.f32 %v2368_v41, %v8894_v25  ;;  %v2522_v17 = vpop.f32.mrf.mxu1  ;;  %v11693_v25 = vld [vmem:[#allocation91_spill] sm:$0xff] }
 0x393   : > { %v2962_v11 = vpop.f32.mrf.mxu3 }
 0x394   : > { %v9304_v57 = vadd.f32 %v2512_v54, %v2369_v55  ;;  %3063 = vmatmul.bf16.vlgmr.msra.gmra.mxu0 %v11691_v6 }
 0x396   : > { %11690 = vst [vmem:[#allocation89_spill] sm:$0xff] %v9304_v57 }
 0x397   : > { %v2818_v33 = vpop.f32.mrf.mxu2 }
 0x398   : > { %v9310_v48 = vadd.f32 %v2962_v11, %v2818_v33  ;;  %3004 = vmatmul.bf16.gmra.mxu3 %v9141_v22 }
 0x399   : > { %v2370_v34 = vpop.f32.mrf.mxu0 }
 0x39a   : > { %v9308_v8 = vadd.f32 %v2370_v34, %v8913_v53  ;;  %v9320_v53 = vpop.f32.mrf.mxu1 }
 0x39b   : > { %v2965_v41 = vpop.f32.mrf.mxu3  ;;  %11696 = vst [vmem:[#allocation92_spill] sm:$0xff] %v9320_v53 }
 0x39c   : > { %11692 = vst [vmem:[#allocation141_spill] sm:$0xff] %v9308_v8  ;;  %2860 = vmatmul.bf16.gmra.mxu2 %v11693_v25  ;;  %v11734_v8 = vld [vmem:[#allocation56_spill] sm:$0xff] }
 0x39f   : > { %v2821_v55 = vpop.f32.mrf.mxu2 }
 0x3a0   : > { %v9315_v16 = vadd.f32 %v2965_v41, %v2821_v55 }
 0x3a1   : > { %v2373_v42 = vpop.f32.mrf.mxu0 }
 0x3a2   : > { %v2374_v54 = vadd.f32 %v2373_v42, %v8924_v58  ;;  %v6771_v58 = vld [vmem:[%s11047_s3 + $0x120] sm:$0xff]  ;;  %v2527_v42 = vpop.f32.mrf.mxu1 }
 0x3a3   : > { %v2967_v11 = vpop.f32.mrf.mxu3  ;;  %4451 = vmatpush.bf16.msra.mxu2 %v6771_v58 }
 0x3a4   : > { %v9317_v6 = vadd.f32 %v2517_v52, %v2374_v54  ;;  %3068 = vmatmul.bf16.gmra.mxu0 %v11695_v46  ;;  %v11698_v52 = vld [vmem:[#allocation111_spill] sm:$0xff] }
 0x3a6   : > { %11694 = vst [vmem:[#allocation62_spill] sm:$0xff] %v9317_v6 }
 0x3a7   : > { %v2823_v22 = vpop.f32.mrf.mxu2 }
 0x3a8   : > { %v9325_v25 = vadd.f32 %v2967_v11, %v2823_v22  ;;  %3009 = vmatmul.bf16.gmra.mxu3 %v11643_v59  ;;  %v11700_v11 = vld [vmem:[#allocation104_spill] sm:$0xff]  ;;  %v6763_v22 = vld [vmem:[%s11047_s3 + $0xe0] sm:$0xff] }
 0x3a9   : > { %v2375_v34 = vpop.f32.mrf.mxu0  ;;  %4362 = vmatpush.bf16.msra.mxu1 %v6763_v22 }
 0x3aa   : > { %v9323_v33 = vadd.f32 %v2375_v34, %v8938_v24 }
 0x3ab   : > { %v2970_v46 = vpop.f32.mrf.mxu3 }
 0x3ac   : > { %11697 = vst [vmem:[#allocation108_spill] sm:$0xff] %v9323_v33  ;;  %2865 = vmatmul.bf16.gmra.mxu2 %v11698_v52  ;;  %v9344_v33 = vpop.f32.mrf.mxu1 }
 0x3ad   : > { %11702 = vst [vmem:[#allocation77_spill] sm:$0xff] %v9344_v33 }
 0x3af   : > { %v2826_v55 = vpop.f32.mrf.mxu2 }
 0x3b0   : > { %v9333_v24 = vadd.f32 %v2970_v46, %v2826_v55 }
 0x3b1   : > { %v2378_v41 = vpop.f32.mrf.mxu0 }
 0x3b2   : > { %v2379_v54 = vadd.f32 %v2378_v41, %v8949_v44 }
 0x3b3   : > { %v2972_v59 = vpop.f32.mrf.mxu3 }
 0x3b4   : > { %v9335_v34 = vadd.f32 %v2522_v17, %v2379_v54  ;;  %3073 = vmatmul.bf16.gmra.mxu0 %v11700_v11  ;;  %v11703_v17 = vld [vmem:[#allocation22_spill] sm:$0xff] }
 0x3b6   : > { %11699 = vst [vmem:[#allocation66_spill] sm:$0xff] %v9335_v34  ;;  %v6782_v34 = vld [vmem:[%s11047_s3 + $0x178] sm:$0xff] }
 0x3b7   : > { %v2828_v53 = vpop.f32.mrf.mxu2  ;;  %4537 = vmatpush.bf16.msra.mxu3 %v6782_v34 }
 0x3b8   : > { %v9346_v44 = vadd.f32 %v2972_v59, %v2828_v53  ;;  %3014 = vmatmul.bf16.gmra.mxu3 %v9186_v13 }
 0x3b9   : > { %v2380_v58 = vpop.f32.mrf.mxu0 }
 0x3ba   : > { %v9342_v52 = vadd.f32 %v2380_v58, %v8963_v18  ;;  %v11705_v18 = vld [vmem:[#allocation32_spill] sm:$0xff]  ;;  %v2532_v58 = vpop.f32.mrf.mxu1 }
 0x3bb   : > { %v2975_v46 = vpop.f32.mrf.mxu3 }
 0x3bc   : > { %11701 = vst [vmem:[#allocation64_spill] sm:$0xff] %v9342_v52  ;;  %2870 = vmatmul.bf16.gmra.mxu2 %v11703_v17 }
 0x3bf   : > { %v2831_v55 = vpop.f32.mrf.mxu2 }
 0x3c0   : > { %v9351_v11 = vadd.f32 %v2975_v46, %v2831_v55 }
 0x3c1   : > { %v2383_v41 = vpop.f32.mrf.mxu0 }
 0x3c2   : > { %v2384_v54 = vadd.f32 %v2383_v41, %v8973_v29  ;;  %v9362_v17 = vpop.f32.mrf.mxu1  ;;  %v11708_v29 = vld [vmem:[#allocation33_spill] sm:$0xff] }
 0x3c3   : > { %v2977_v52 = vpop.f32.mrf.mxu3  ;;  %11707 = vst [vmem:[#allocation11_spill] sm:$0xff] %v9362_v17 }
 0x3c4   : > { %v9353_v22 = vadd.f32 %v2527_v42, %v2384_v54  ;;  %3078 = vmatmul.bf16.gmra.mxu0 %v11705_v18 }
 0x3c6   : > { %11704 = vst [vmem:[#allocation100_spill] sm:$0xff] %v9353_v22 }
 0x3c7   : > { %v2833_v13 = vpop.f32.mrf.mxu2 }
 0x3c8   : > { %v9359_v59 = vadd.f32 %v2977_v52, %v2833_v13  ;;  %3019 = vmatmul.bf16.gmra.mxu3 %v9214_v20 }
 0x3c9   : > { %v2385_v33 = vpop.f32.mrf.mxu0 }
 0x3ca   : > { %v9357_v53 = vadd.f32 %v2385_v33, %v8989_v31  ;;  %v11710_v31 = vld [vmem:[#allocation105_spill] sm:$0xff]  ;;  %v2537_v13 = vpop.f32.mrf.mxu1 }
 0x3cb   : > { %v2980_v46 = vpop.f32.mrf.mxu3 }
 0x3cc   : > { %11706 = vst [vmem:[#allocation96_spill] sm:$0xff] %v9357_v53  ;;  %2875 = vmatmul.bf16.gmra.mxu2 %v11708_v29  ;;  %v11712_v29 = vld [vmem:[#allocation6_spill] sm:$0xff] }
 0x3cf   : > { %v2836_v54 = vpop.f32.mrf.mxu2 }
 0x3d0   : > { %v9366_v55 = vadd.f32 %v2980_v46, %v2836_v54 }
 0x3d1   : > { %v2388_v42 = vpop.f32.mrf.mxu0 }
 0x3d2   : > { %v2389_v41 = vadd.f32 %v2388_v42, %v9002_v51 }
 0x3d3   : > { %v2982_v33 = vpop.f32.mrf.mxu3 }
 0x3d4   : > { %v9368_v18 = vadd.f32 %v2532_v58, %v2389_v41  ;;  %3083 = vmatmul.bf16.gmra.mxu0 %v11710_v31  ;;  %v9379_v41 = vpop.f32.mrf.mxu1 }
 0x3d5   : > { %11713 = vst [vmem:[#allocation101_spill] sm:$0xff] %v9379_v41  ;;  %v11719_v41 = vld [vmem:[#allocation44_spill] sm:$0xff] }
 0x3d6   : > { %11709 = vst [vmem:[#allocation68_spill] sm:$0xff] %v9368_v18 }
 0x3d7   : > { %v2838_v17 = vpop.f32.mrf.mxu2 }
 0x3d8   : > { %v9374_v53 = vadd.f32 %v2982_v33, %v2838_v17  ;;  %3024 = vmatmul.bf16.gmra.mxu3 %v11671_v32  ;;  %v6770_v17 = vld [vmem:[%s11047_s3 + $0x118] sm:$0xff] }
 0x3d9   : > { %v2390_v52 = vpop.f32.mrf.mxu0  ;;  %4452 = vmatpush.bf16.msra.mxu2 %v6770_v17 }
 0x3da   : > { %v9372_v20 = vadd.f32 %v2390_v52, %v9013_v36  ;;  %v11715_v36 = vld [vmem:[#allocation27_spill] sm:$0xff] }
 0x3db   : > { %v2985_v51 = vpop.f32.mrf.mxu3 }
 0x3dc   : > { %11711 = vst [vmem:[#allocation93_spill] sm:$0xff] %v9372_v20  ;;  %2880 = vmatmul.bf16.gmra.mxu2 %v11712_v29  ;;  %v6762_v29 = vld [vmem:[%s11047_s3 + $0xd8] sm:$0xff] }
 0x3dd   : > { %4363 = vmatpush.bf16.msra.mxu1 %v6762_v29 }
 0x3df   : > { %v2841_v42 = vpop.f32.mrf.mxu2 }
 0x3e0   : > { %v9381_v54 = vadd.f32 %v2985_v51, %v2841_v42 }
 0x3e1   : > { %v2393_v46 = vpop.f32.mrf.mxu0 }
 0x3e2   : > { %v2394_v58 = vadd.f32 %v2393_v46, %v9029_v26  ;;  %v11717_v46 = vld [vmem:[#allocation36_spill] sm:$0xff] }
 0x3e3   : > { %v2987_v32 = vpop.f32.mrf.mxu3 }
 0x3e4   : > { %v9383_v31 = vadd.f32 %v2537_v13, %v2394_v58  ;;  %3088 = vmatmul.bf16.gmra.mxu0 %v11715_v36  ;;  %v2542_v13 = vpop.f32.mrf.mxu1 }
 0x3e6   : > { %11714 = vst [vmem:[#allocation114_spill] sm:$0xff] %v9383_v31 }
 0x3e7   : > { %v2843_v26 = vpop.f32.mrf.mxu2 }
 0x3e8   : > { %v9395_v51 = vadd.f32 %v2987_v32, %v2843_v26  ;;  %3029 = vmatmul.bf16.gmra.mxu3 %v9258_v39 }
 0x3e9   : > { %v2395_v33 = vpop.f32.mrf.mxu0 }
 0x3ea   : > { %v9390_v52 = vadd.f32 %v2395_v33, %v9044_v1 }
 0x3eb   : > { %v2990_v58 = vpop.f32.mrf.mxu3 }
 0x3ec   : > { %11716 = vst [vmem:[#allocation82_spill] sm:$0xff] %v9390_v52  ;;  %2885 = vmatmul.bf16.gmra.mxu2 %v11717_v46  ;;  %v9405_v52 = vpop.f32.mrf.mxu1 }
 0x3ed   : > { %11720 = vst [vmem:[#allocation102_spill] sm:$0xff] %v9405_v52  ;;  %v7158_v52 = vld [vmem:[%s7422_s12 + $0x120] sm:$0xff]  }
 0x3ef   : > { %v2846_v17 = vpop.f32.mrf.mxu2 }
 0x3f0   : > { %v9400_v1 = vadd.f32 %v2990_v58, %v2846_v17 }
 0x3f1   : > { %v2398_v42 = vpop.f32.mrf.mxu0 }
 0x3f2   : > { %v2399_v36 = vadd.f32 %v2398_v42, %v9054_v19 }
 0x3f3   : > { %v2992_v32 = vpop.f32.mrf.mxu3 }
 0x3f4   : > { %v9402_v33 = vadd.f32 %v2542_v13, %v2399_v36  ;;  %3093 = vmatmul.bf16.gmra.mxu0 %v11719_v41  ;;  %v2547_v41 = vpop.f32.mrf.mxu1 }
 0x3f6   : > { %11718 = vst [vmem:[#allocation69_spill] sm:$0xff] %v9402_v33 }
 0x3f7   : > { %v2848_v39 = vpop.f32.mrf.mxu2 }
 0x3f8   : > { %v9410_v46 = vadd.f32 %v2992_v32, %v2848_v39  ;;  %3034 = vmatmul.bf16.gmra.mxu3 %v9284_v62 }
 0x3f9   : > { %v2400_v26 = vpop.f32.mrf.mxu0 }
 0x3fa   : > { %v9408_v29 = vadd.f32 %v2400_v26, %v9070_v14  ;;  %v11723_v14 = vld [vmem:[#allocation45_spill] sm:$0xff]  ;;  %v11725_v26 = vld [vmem:[#allocation26_spill] sm:$0xff] }
 0x3fb   : > { %v2995_v19 = vpop.f32.mrf.mxu3 }
 0x3fc   : > { %11721 = vst [vmem:[#allocation83_spill] sm:$0xff] %v9408_v29  ;;  %2890 = vmatmul.bf16.gmra.mxu2 %v8843_v15  ;;  %v9435_v29 = vld [vmem:[%s7422_s12 + $0x130] sm:$0xff]  }
 0x3ff   : > { %v2851_v42 = vpop.f32.mrf.mxu2 }
 0x400   : > { %v9426_v39 = vadd.f32 %v2995_v19, %v2851_v42  ;;  %v811_v19 = vshll.u32 %v9435_v29, 16 }
 0x401   : > { %v2403_v13 = vpop.f32.mrf.mxu0 }
 0x402   : > { %v2404_v58 = vadd.f32 %v2403_v13, %v9083_v9  ;;  %v9430_v9 = vld [vmem:[%s7422_s12 + $0x138] sm:$0xf]  ;;  %v321_v13 = vld [vmem:[%s7422_s12 + $0x13c] sm:$0x1]  ;;  %v813_v33 = vrot.slane %v811_v19, 1  ;;  %v11727_v19 = vld [vmem:[#allocation31_spill] sm:$0xff] }
 0x403   : > { %v9418_v17 = vpop.f32.mrf.mxu3  ;;  %v11728_v18 = vunpack.c.l.b16 %v11727_v19 }
 0x404   : > { %v9415_v36 = vadd.f32 %v2547_v41, %v2404_v58  ;;  %3098 = vmatmul.bf16.gmra.mxu0 %v11723_v14  ;;  %v11235_v58 = vunpack.c.l.b16 %v9430_v9  ;;  %v481_v14 = vunpack.c.l.b16 %v321_v13 }
 0x406   : > { %11722 = vst [vmem:[#allocation72_spill] sm:$0xff] %v9415_v36 }
 0x407   : > { %v9423_v15 = vpop.f32.mrf.mxu2 }
 0x408   : > { %3039 = vmatmul.bf16.gmra.mxu3 %v11725_v26  ;;  %v9440_v26 = vpack.c.b16 %v481_v14, %v11235_v58 }
 0x409   : > { %v2405_v32 = vpop.f32.mrf.mxu0 }
 0x40a   : > { %v9421_v62 = vadd.f32 %v2405_v32, %v9094_v7  ;;  %v816_v13 = vshll.u32 %v9440_v26, 16 }
 0x40b   : > { %v3000_v41 = vpop.f32.mrf.mxu3 }
 0x40c   : > { %11724 = vst [vmem:[#allocation107_spill] sm:$0xff] %v9421_v62  ;;  %2895 = vmatmul.bf16.gmra.mxu2 %v7158_v52  ;;  %v11726_v52 = vld [vmem:[#allocation30_spill] sm:$0xff]  ;;  %v809_v62 = vshrl.u32 %v9435_v29, 16  ;;  %v818_v20 = vrot.slane %v816_v13, 1 }
 0x40e   : > { %v814_v31 = vor.u32 %v813_v33, %v809_v62  ;;  %v6818_v33 = vunpack.c.l.b16 %v9435_v29 }
 0x40f   : > { %v2856_v32 = vpop.f32.mrf.mxu2 }
 0x410   : > { %v819_v14 = vsel %vm522_vm0, %v814_v31, %v818_v20  ;;  %v11729_v31 = vld [vmem:[#allocation21_spill] sm:$0xff] }
 0x411   : > { %v3064_v36 = vpop.f32.mrf.mxu0  ;;  %v2608_v6 = vpack.c.b16 %v6818_v33, %v11729_v31  ;;  %v6760_v31 = vld [vmem:[%s11047_s3 + $0xc8] sm:$0xff] }
 0x412   : > { %v3065_v7 = vadd.f32 %v3064_v36, %v9124_v47  ;;  %v9450_v47 = vld [vmem:[%s11046_s2] ss:$0 sm:$0xff] }
 0x413   : > { %v9452_v36 = vpop.f32.mrf.mxu3 }
 0x414   : > { %v3199_v42 = vadd.f32 %v3065_v7, %v11726_v52  ;;  %3103 = vmatmul.bf16.gmra.mxu0 %v8850_v12  ;;  %v2552_v7 = vunpack.c.l.b16 %v819_v14 }
 0x416   : > { %v2609_v22 = vpack.c.b16 %v2552_v7, %v11728_v18  ;;  %v3257_v62 = vadd.f32 %v9450_v47, %v3199_v42 }
 0x417   : > { %v9456_v52 = vpop.f32.mrf.mxu2 }
 0x418   : > { %3044 = vmatmul.bf16.gmra.mxu3 %v2609_v22  ;;  %v3311_v18 = vmax.f32 %v3257_v62, 0.0  ;;  %v6761_v22 = vld [vmem:[%s11047_s3 + $0xd0] sm:$0xff]  ;;  %v11236_v62 = vmov 0  }
 0x419   : > { %v3066_v58 = vpop.f32.mrf.mxu0  ;;  %4364 = vmatpush.bf16.msra.mxu1 %v6761_v22  ;;  %v6759_v22 = vld [vmem:[%s11047_s3 + $0xc0] sm:$0xff] }
 0x41a   : > { %v3067_v12 = vadd.f32 %v3066_v58, %v9131_v0  ;;  %v9468_v58 = vadd.f32 %v3000_v41, %v2856_v32  ;;  %v11731_v41 = vld [vmem:[#allocation60_spill] sm:$0xff] }
 0x41b   : > { %v3005_v19 = vpop.f32.mrf.mxu3  ;;  %v6780_v32 = vld [vmem:[%s11047_s3 + $0x168] sm:$0xff] }
 0x41c   : > { %v3200_v13 = vadd.f32 %v3067_v12, %v8832_v37  ;;  %2900 = vmatmul.bf16.gmra.mxu2 %v2608_v6  ;;  %v6781_v37 = vld [vmem:[%s11047_s3 + $0x170] sm:$0xff]  ;;  %v11730_v6 = vld [vmem:[#allocation34_spill] sm:$0xff] }
 0x41d   : > { %4538 = vmatpush.bf16.msra.mxu3 %v6781_v37  ;;  %4365 = vmatpush.bf16.msra.mxu1 %v6760_v31  ;;  %v6819_v31 = vunpack.c.h.b16 %v9435_v29  ;;  %v11735_v29 = vunpack.c.l.b16 %v9430_v9 }
 0x41e   : > { %v3258_v0 = vadd.f32 %v9450_v47, %v3200_v13 }
 0x41f   : > { %v2861_v13 = vpop.f32.mrf.mxu2 }
 0x420   : > { %v3312_v7 = vmax.f32 %v3258_v0, 0.0 }
 0x421   : > { %v3069_v42 = vpop.f32.mrf.mxu0  ;;  %4539 = vmatpush.bf16.msra.mxu3 %v6780_v32  ;;  %4366 = vmatpush.bf16.msra.mxu1 %v6759_v22 }
 0x422   : > { %v6823_v12 = vpack.c.bf16 %v3312_v7, %v3311_v18  ;;  %v3070_v33 = vadd.f32 %v3069_v42, %v9144_v56  ;;  %v820_v56 = vshrl.u32 %v9440_v26, 16  ;;  %v6779_v7 = vld [vmem:[%s11047_s3 + $0x160] sm:$0xff] }
 0x423   : > { %v9487_v18 = vpop.f32.mrf.mxu3 }
 0x424   : > { %6824 = vst [vmem:[#allocation2] sm:$0xff] %v6823_v12   ;;  %v3201_v34 = vadd.f32 %v3070_v33, %v11730_v6  ;;  %3108 = vmatmul.bf16.gmra.mxu0 %v11731_v41  ;;  %v822_v0 = vor.u32 %v820_v56, %v818_v20  ;;  %v2554_v12 = vunpack.c.h.b16 %v819_v14  ;;  %v6778_v14 = vld [vmem:[%s11047_s3 + $0x158] sm:$0xff] }
 0x425   : > { %3591 = vst [vmem:[#allocation2 + $0x4] sm:$0xf] %v11236_v62  ;;  %4540 = vmatpush.bf16.msra.mxu3 %v6779_v7  ;;  %v2611_v7 = vpack.c.b16 %v11735_v29, %v6819_v31  ;;  %v6767_v29 = vld [vmem:[%s11047_s3 + $0x100] sm:$0xff] }
 0x426   : > { %v2556_v33 = vunpack.c.l.b16 %v822_v0  ;;  %v3259_v62 = vadd.f32 %v9450_v47, %v3201_v34  ;;  %v9514_v0 = vadd.f32 %v3005_v19, %v2861_v13 }
 0x427   : > { %v9501_v6 = vpop.f32.mrf.mxu2 }
 0x428   : > { %v2612_v32 = vpack.c.b16 %v2556_v33, %v2554_v12  ;;  %v6777_v33 = vld [vmem:[%s11047_s3 + $0x150] sm:$0xff] }
 0x429   : > { %v3071_v42 = vpop.f32.mrf.mxu0  ;;  %4541 = vmatpush.bf16.msra.mxu3 %v6778_v14 }
 0x42a   : > { %v3072_v20 = vadd.f32 %v3071_v42, %v9154_v45  ;;  %v6769_v45 = vld [vmem:[%s11047_s3 + $0x110] sm:$0xff]  ;;  %3049 = vmatmul.bf16.gmra.mxu3 %v2612_v32  ;;  %v11736_v42 = vmov 0  }
 0x42b   : > { %v3476_v41 = vld [vmem:[#allocation2] sm:$0x1]  ;;  %4453 = vmatpush.bf16.msra.mxu2 %v6769_v45  ;;  %v3010_v12 = vpop.f32.mrf.mxu3 }
 0x42c   : > { %v3477_v56 = vsel %vm9493_vm4, 0, %v3476_v41  ;;  %v3202_v57 = vadd.f32 %v3072_v20, %v11734_v8  ;;  %v3313_v8 = vmax.f32 %v3259_v62, 0.0  ;;  %2905 = vmatmul.bf16.gmra.mxu2 %v2611_v7  ;;  %v11737_v41 = vld [vmem:[#allocation42_spill] sm:$0xff]  ;;  %v6768_v62 = vld [vmem:[%s11047_s3 + $0x108] sm:$0xff] }
 0x42d   : > { %3478 = vst [vmem:[#allocation2] sm:$0x1] %v3477_v56  ;;  %4542 = vmatpush.bf16.msra.mxu3 %v6777_v33 }
 0x42e   : > { %3590 = vst [vmem:[#allocation2] sm:$0xf] %v11736_v42  ;;  %v3260_v34 = vadd.f32 %v9450_v47, %v3202_v57  ;;  %v6776_v57 = vld [vmem:[%s11047_s3 + $0x148] sm:$0xff] }
 0x42f   : > { %v2866_v9 = vpop.f32.mrf.mxu2  ;;  %4454 = vmatpush.bf16.msra.mxu2 %v6768_v62 }
 0x430   : > { %v3314_v22 = vmax.f32 %v3260_v34, 0.0 }
 0x431   : > { %v3074_v19 = vpop.f32.mrf.mxu0  ;;  %4543 = vmatpush.bf16.msra.mxu3 %v6776_v57 }
 0x432   : > { %v6828_v13 = vpack.c.bf16 %v3314_v22, %v3313_v8  ;;  %v3075_v20 = vadd.f32 %v3074_v19, %v9162_v28  ;;  %v6775_v28 = vld [vmem:[%s11047_s3 + $0x140] sm:$0xff]  ;;  %v11740_v19 = vld [vmem:[#allocation16_spill] sm:$0xff] }
 0x433   : > { %v9532_v31 = vpop.f32.mrf.mxu3  ;;  %4455 = vmatpush.bf16.msra.mxu2 %v6767_v29 }
 0x434   : > { %7038 = vst [vmem:[#allocation2 + $0x8] sm:$0xff] %v6828_v13   ;;  %v3203_v32 = vadd.f32 %v3075_v20, %v11737_v41  ;;  %3113 = vmatmul.bf16.gmra.mxu0 %v8920_v3 }
 0x435   : > { %4544 = vmatpush.bf16.msra.mxu3 %v6775_v28 }
 0x436   : > { %v3261_v33 = vadd.f32 %v9450_v47, %v3203_v32 }
 0x437   : > { %v9543_v45 = vpop.f32.mrf.mxu2 }
 0x438   : > { %v3315_v41 = vmax.f32 %v3261_v33, 0.0 }
 0x439   : > { %v3076_v56 = vpop.f32.mrf.mxu0 }
 0x43a   : > { %v3077_v14 = vadd.f32 %v3076_v56, %v9172_v43  ;;  %v9554_v43 = vadd.f32 %v3010_v12, %v2866_v9 }
 0x43b   : > { %v3479_v7 = vld [vmem:[#allocation2 + $0xc] sm:$0x1]  ;;  %v3532_v34 = vld [vmem:[#allocation2 + $0x8] sm:$0x1]  ;;  %v3015_v62 = vpop.f32.mrf.mxu3 }
 0x43c   : > { %v3480_v8 = vsel %vm9493_vm4, 0, %v3479_v7  ;;  %v3533_v22 = vsel %vm9538_vm6, 0, %v3532_v34  ;;  %v3204_v13 = vadd.f32 %v3077_v14, %v11740_v19  ;;  %v11741_v14 = vld [vmem:[#allocation121_spill] sm:$0xff] }
 0x43d   : > { %3481 = vst [vmem:[#allocation2 + $0xc] sm:$0x1] %v3480_v8 }
 0x43e   : > { %3534 = vst [vmem:[#allocation2 + $0x8] sm:$0x1] %v3533_v22  ;;  %v3262_v20 = vadd.f32 %v9450_v47, %v3204_v13  ;;  %v11743_v13 = vld [vmem:[#allocation117_spill] sm:$0xff] }
 0x43f   : > { %3592 = vst [vmem:[#allocation2 + $0x8] sm:$0xf] %v11736_v42  ;;  %v2871_v34 = vpop.f32.mrf.mxu2 }
 0x440   : > { %v3316_v57 = vmax.f32 %v3262_v20, 0.0 }
 0x441   : > { %v3079_v28 = vpop.f32.mrf.mxu0 }
 0x442   : > { %v6833_v56 = vpack.c.bf16 %v3316_v57, %v3315_v41  ;;  %v3080_v7 = vadd.f32 %v3079_v28, %v9189_v49  ;;  %v9571_v41 = vadd.f32 %v3015_v62, %v2871_v34 }
 0x443   : > { %v9561_v12 = vpop.f32.mrf.mxu3 }
 0x444   : > { %7039 = vst [vmem:[#allocation2 + $0x10] sm:$0xff] %v6833_v56   ;;  %v3205_v32 = vadd.f32 %v3080_v7, %v8916_v38  ;;  %3118 = vmatmul.bf16.gmra.mxu0 %v11741_v14 }
 0x445   : > { %11742 = vst [vmem:[#allocation38_spill] sm:$0xff] %v9561_v12 }
 0x446   : > { %v3263_v49 = vadd.f32 %v9450_v47, %v3205_v32 }
 0x447   : > { %v9564_v8 = vpop.f32.mrf.mxu2 }
 0x448   : > { %v3317_v57 = vmax.f32 %v3263_v49, 0.0 }
 0x449   : > { %v3081_v9 = vpop.f32.mrf.mxu0 }
 0x44a   : > { %v3082_v29 = vadd.f32 %v3081_v9, %v9202_v4 }
 0x44b   : > { %v3535_v22 = vld [vmem:[#allocation2 + $0x14] sm:$0x1]  ;;  %v6718_v33 = vld [vmem:[#allocation2 + $0xc] sm:$0xff]  ;;  %v3020_v4 = vpop.f32.mrf.mxu3 }
 0x44c   : > { %v3536_v19 = vsel %vm9538_vm6, 0, %v3535_v22  ;;  %v3206_v20 = vadd.f32 %v3082_v29, %v11743_v13  ;;  %4367 = vmatmul.bf16.vlgmr.msra.gmra.mxu1 %v6718_v33  ;;  %v3828_v42 = vshll.u32 %v6718_v33, 16  ;;  %v11744_v22 = vld [vmem:[#allocation49_spill] sm:$0xff]  ;;  %v4050_v49 = vrot.slane %v6718_v33, 1 }
 0x44d   : > { %3537 = vst [vmem:[#allocation2 + $0x14] sm:$0x1] %v3536_v19  ;;  %v3826_v12 = vshrl.u32 %v6718_v33, 16 }
 0x44e   : > { %v3264_v38 = vadd.f32 %v9450_v47, %v3206_v20  ;;  %v3830_v20 = vrot.slane %v3828_v42, 1 }
 0x44f   : > { %v2876_v9 = vpop.f32.mrf.mxu2 }
 0x450   : > { %v3318_v28 = vmax.f32 %v3264_v38, 0.0  ;;  %v9592_v33 = vadd.f32 %v3020_v4, %v2876_v9 }
 0x451   : > { %v3084_v56 = vpop.f32.mrf.mxu0 }
 0x452   : > { %v6838_v7 = vpack.c.bf16 %v3318_v28, %v3317_v57  ;;  %v3085_v14 = vadd.f32 %v3084_v56, %v9217_v5 }
 0x453   : > { %v9576_v62 = vpop.f32.mrf.mxu3 }
 0x454   : > { %7040 = vst [vmem:[#allocation2 + $0x18] sm:$0xff] %v6838_v7   ;;  %v3207_v32 = vadd.f32 %v3085_v14, %v11744_v22  ;;  %3123 = vmatmul.bf16.gmra.mxu0 %v11564_v23  ;;  %v3602_v29 = vld [vmem:[#allocation2 + $0x14] sm:$0xf]  ;;  %v3831_v23 = vor.u32 %v3830_v20, %v3826_v12 }
 0x455   : > { %v3778_v19 = vunpack.c.l.b16 %v3602_v29  ;;  %v11746_v29 = vld [vmem:[#allocation63_spill] sm:$0xff] }
 0x456   : > { %v3265_v22 = vadd.f32 %v9450_v47, %v3207_v32 }
 0x457   : > { %v3796_v13 = vpack.c.b16 %v3778_v19, %v3778_v19  ;;  %v9579_v28 = vpop.f32.mrf.mxu2 }
 0x458   : > { %v3319_v12 = vmax.f32 %v3265_v22, 0.0 }
 0x459   : > { %v3086_v34 = vpop.f32.mrf.mxu0  ;;  %v4051_v38 = vrot.slane %v3796_v13, 1  ;;  %v3833_v57 = vshll.u32 %v3796_v13, 16 }
 0x45a   : > { %v3087_v5 = vadd.f32 %v3086_v34, %v9229_v50 }
 0x45b   : > { %v3482_v56 = vld [vmem:[#allocation2 + $0x18] sm:$0x1]  ;;  %v9582_v7 = vsel %vm823_vm1, %v4050_v49, %v4051_v38  ;;  %v3835_v14 = vrot.slane %v3833_v57, 1  ;;  %v3025_v34 = vpop.f32.mrf.mxu3 }
 0x45c   : > { %11745 = vst [vmem:[#allocation115_spill] sm:$0xff] %v9582_v7  ;;  %v3483_v42 = vsel %vm9493_vm4, 0, %v3482_v56  ;;  %v3208_v19 = vadd.f32 %v3087_v5, %v11746_v29  ;;  %4545 = vmatmul.bf16.vlgmr.msra.gmra.mxu3 %v9582_v7  ;;  %v11748_v5 = vld [vmem:[#allocation142_spill] sm:$0xff] }
 0x45d   : > { %3484 = vst [vmem:[#allocation2 + $0x18] sm:$0x1] %v3483_v42  ;;  %v9590_v50 = vsel %vm522_vm0, %v3831_v23, %v3835_v14 }
 0x45e   : > { %11747 = vst [vmem:[#allocation97_spill] sm:$0xff] %v9590_v50  ;;  %v3266_v13 = vadd.f32 %v9450_v47, %v3208_v19  ;;  %4456 = vmatmul.bf16.vlgmr.msra.gmra.mxu2 %v9590_v50 }
 0x45f   : > { %v2881_v57 = vpop.f32.mrf.mxu2 }
 0x460   : > { %v3320_v20 = vmax.f32 %v3266_v13, 0.0  ;;  %v11749_v13 = vld [vmem:[#allocation10_spill] sm:$0xff] }
 0x461   : > { %v3089_v49 = vpop.f32.mrf.mxu0 }
 0x462   : > { %v6843_v38 = vpack.c.bf16 %v3320_v20, %v3319_v12  ;;  %v3090_v32 = vadd.f32 %v3089_v49, %v9237_v40  ;;  %v9613_v20 = vadd.f32 %v3025_v34, %v2881_v57 }
 0x463   : > { %v9602_v4 = vpop.f32.mrf.mxu3 }
 0x464   : > { %7041 = vst [vmem:[#allocation2 + $0x20] sm:$0xff] %v6843_v38   ;;  %v3209_v56 = vadd.f32 %v3090_v32, %v11748_v5  ;;  %3128 = vmatmul.bf16.gmra.mxu0 %v8998_v60  ;;  %v9599_v23 = vld [vmem:[#allocation2 + $0x18] sm:$0xff] }
 0x465   : > { %4372 = vmatmul.bf16.gmra.mxu1 %v9599_v23 }
 0x466   : > { %v3267_v60 = vadd.f32 %v9450_v47, %v3209_v56  ;;  %v11750_v56 = vld [vmem:[#allocation17_spill] sm:$0xff] }
 0x467   : > { %v9605_v42 = vpop.f32.mrf.mxu2 }
 0x468   : > { %v3321_v49 = vmax.f32 %v3267_v60, 0.0 }
 0x469   : > { %v3091_v9 = vpop.f32.mrf.mxu0 }
 0x46a   : > { %v3092_v14 = vadd.f32 %v3091_v9, %v9249_v2 }
 0x46b   : > { %v3485_v22 = vld [vmem:[#allocation2 + $0x24] sm:$0x1]  ;;  %v3538_v29 = vld [vmem:[#allocation2 + $0x20] sm:$0x1]  ;;  %v3030_v32 = vpop.f32.mrf.mxu3 }
 0x46c   : > { %v3486_v40 = vsel %vm9493_vm4, 0, %v3485_v22  ;;  %v3539_v19 = vsel %vm9538_vm6, 0, %v3538_v29  ;;  %v3210_v12 = vadd.f32 %v3092_v14, %v11749_v13  ;;  %v3840_v29 = vshll.u32 %v9599_v23, 16  ;;  %v11751_v14 = vld [vmem:[#allocation43_spill] sm:$0xff] }
 0x46d   : > { %3487 = vst [vmem:[#allocation2 + $0x24] sm:$0x1] %v3486_v40 }
 0x46e   : > { %3540 = vst [vmem:[#allocation2 + $0x20] sm:$0x1] %v3539_v19  ;;  %v3268_v2 = vadd.f32 %v9450_v47, %v3210_v12  ;;  %v3842_v40 = vrot.slane %v3840_v29, 1  ;;  %v3838_v12 = vshrl.u32 %v9599_v23, 16 }
 0x46f   : > { %v2886_v50 = vpop.f32.mrf.mxu2 }
 0x470   : > { %v3322_v38 = vmax.f32 %v3268_v2, 0.0  ;;  %v3843_v29 = vor.u32 %v3842_v40, %v3838_v12  ;;  %v9642_v40 = vadd.f32 %v3030_v32, %v2886_v50 }
 0x471   : > { %v3094_v5 = vpop.f32.mrf.mxu0 }
 0x472   : > { %v6848_v9 = vpack.c.bf16 %v3322_v38, %v3321_v49  ;;  %v3095_v22 = vadd.f32 %v3094_v5, %v9261_v61  ;;  %v4053_v61 = vrot.slane %v9599_v23, 1  ;;  %11757 = vst [vmem:[#allocation18_spill] sm:$0xff] %v9642_v40 }
 0x473   : > { %v9620_v13 = vpop.f32.mrf.mxu3 }
 0x474   : > { %7042 = vst [vmem:[#allocation2 + $0x28] sm:$0xff] %v6848_v9   ;;  %v3211_v7 = vadd.f32 %v3095_v22, %v11750_v56  ;;  %3133 = vmatmul.bf16.gmra.mxu0 %v11751_v14 }
 0x475   : > { %v3605_v34 = vld [vmem:[#allocation2 + $0x20] sm:$0xf]  ;;  %11752 = vst [vmem:[#allocation87_spill] sm:$0xff] %v9620_v13 }
 0x476   : > { %v3779_v57 = vunpack.c.l.b16 %v3605_v34  ;;  %v3269_v22 = vadd.f32 %v9450_v47, %v3211_v7  ;;  %v11754_v34 = vld [vmem:[#allocation19_spill] sm:$0xff] }
 0x477   : > { %v9625_v5 = vpop.f32.mrf.mxu2 }
 0x478   : > { %v3797_v19 = vpack.c.b16 %v3779_v57, %v3779_v57  ;;  %11753 = vst [vmem:[#allocation75_spill] sm:$0xff] %v9625_v5  ;;  %v11761_v5 = vld [vmem:[#allocation61_spill] sm:$0xff] }
 0x479   : > { %v3096_v60 = vpop.f32.mrf.mxu0 }
 0x47a   : > { %v3097_v2 = vadd.f32 %v3096_v60, %v9272_v63  ;;  %v4054_v49 = vrot.slane %v3797_v19, 1  ;;  %v3845_v38 = vshll.u32 %v3797_v19, 16  ;;  %v3323_v60 = vmax.f32 %v3269_v22, 0.0 }
 0x47b   : > { %v3541_v9 = vld [vmem:[#allocation2 + $0x2c] sm:$0x1]  ;;  %v9628_v56 = vld [vmem:[#allocation2 + $0x24] sm:$0xff] }
 0x47c   : > { %v3542_v14 = vsel %vm9538_vm6, 0, %v3541_v9  ;;  %v3212_v57 = vadd.f32 %v3097_v2, %v11754_v34  ;;  %v9634_v13 = vsel %vm823_vm1, %v4053_v61, %v4054_v49  ;;  %v3847_v63 = vrot.slane %v3845_v38, 1  ;;  %4377 = vmatmul.bf16.gmra.mxu1 %v9628_v56  ;;  %v3035_v2 = vpop.f32.mrf.mxu3  ;;  %v11758_v34 = vld [vmem:[#allocation123_spill] sm:$0xff] }
 0x47d   : > { %11755 = vst [vmem:[#allocation106_spill] sm:$0xff] %v9634_v13  ;;  %4550 = vmatmul.bf16.gmra.mxu3 %v9634_v13  ;;  %v11759_v13 = vld [vmem:[#allocation99_spill] sm:$0xff]  ;;  %v4056_v22 = vrot.slane %v9628_v56, 1 }
 0x47e   : > { %3543 = vst [vmem:[#allocation2 + $0x2c] sm:$0x1] %v3542_v14  ;;  %v3270_v19 = vadd.f32 %v9450_v47, %v3212_v57  ;;  %v9640_v7 = vsel %vm522_vm0, %v3843_v29, %v3847_v63  ;;  %v3852_v14 = vshll.u32 %v9628_v56, 16 }
 0x47f   : > { %11756 = vst [vmem:[#allocation109_spill] sm:$0xff] %v9640_v7  ;;  %4461 = vmatmul.bf16.gmra.mxu2 %v9640_v7  ;;  %v2891_v9 = vpop.f32.mrf.mxu2 }
 0x480   : > { %v3324_v12 = vmax.f32 %v3270_v19, 0.0  ;;  %v3854_v63 = vrot.slane %v3852_v14, 1 }
 0x481   : > { %v3099_v61 = vpop.f32.mrf.mxu0 }
 0x482   : > { %v6853_v49 = vpack.c.bf16 %v3324_v12, %v3323_v60  ;;  %v3100_v38 = vadd.f32 %v3099_v61, %v9287_v35  ;;  %v3850_v60 = vshrl.u32 %v9628_v56, 16 }
 0x484   : > { %7043 = vst [vmem:[#allocation2 + $0x30] sm:$0xff] %v6853_v49   ;;  %v3213_v57 = vadd.f32 %v3100_v38, %v11758_v34  ;;  %3138 = vmatmul.bf16.gmra.mxu0 %v11759_v13  ;;  %v9652_v61 = vpop.f32.mrf.mxu3  ;;  %v3855_v34 = vor.u32 %v3854_v63, %v3850_v60 }
 0x485   : > { %v3608_v29 = vld [vmem:[#allocation2 + $0x2c] sm:$0xf] }
 0x486   : > { %v3780_v50 = vunpack.c.l.b16 %v3608_v29 }
 0x487   : > { %v9654_v49 = vpop.f32.mrf.mxu2 }
 0x488   : > { %v3798_v32 = vpack.c.b16 %v3780_v50, %v3780_v50  ;;  %v3271_v50 = vadd.f32 %v9450_v47, %v3213_v57 }
 0x489   : > { %v3101_v7 = vpop.f32.mrf.mxu0 }
 0x48a   : > { %v4057_v19 = vrot.slane %v3798_v32, 1  ;;  %v3857_v12 = vshll.u32 %v3798_v32, 16  ;;  %v3102_v35 = vadd.f32 %v3101_v7, %v9295_v10  ;;  %v9667_v7 = vadd.f32 %v3035_v2, %v2891_v9 }
 0x48b   : > { %v3488_v38 = vld [vmem:[#allocation2 + $0x30] sm:$0x1]  ;;  %v3325_v63 = vmax.f32 %v3271_v50, 0.0 }
 0x48c   : > { %v9657_v13 = vsel %vm823_vm1, %v4056_v22, %v4057_v19  ;;  %v3859_v29 = vrot.slane %v3857_v12, 1  ;;  %v3489_v14 = vsel %vm9493_vm4, 0, %v3488_v38  ;;  %v3214_v40 = vadd.f32 %v3102_v35, %v11761_v5  ;;  %v11763_v5 = vld [vmem:[#allocation125_spill] sm:$0xff]  ;;  %v3040_v38 = vpop.f32.mrf.mxu3 }
 0x48d   : > { %11760 = vst [vmem:[#allocation80_spill] sm:$0xff] %v9657_v13  ;;  %4555 = vmatmul.bf16.gmra.mxu3 %v9657_v13 }
 0x48e   : > { %3490 = vst [vmem:[#allocation2 + $0x30] sm:$0x1] %v3489_v14  ;;  %v9665_v10 = vsel %vm522_vm0, %v3855_v34, %v3859_v29  ;;  %v3272_v32 = vadd.f32 %v9450_v47, %v3214_v40 }
 0x48f   : > { %11762 = vst [vmem:[#allocation112_spill] sm:$0xff] %v9665_v10  ;;  %4466 = vmatmul.bf16.gmra.mxu2 %v9665_v10  ;;  %v2896_v2 = vpop.f32.mrf.mxu2 }
 0x490   : > { %v3326_v22 = vmax.f32 %v3272_v32, 0.0 }
 0x491   : > { %v3104_v19 = vpop.f32.mrf.mxu0 }
 0x492   : > { %v6858_v60 = vpack.c.bf16 %v3326_v22, %v3325_v63  ;;  %v3105_v57 = vadd.f32 %v3104_v19, %v9302_v21  ;;  %v9684_v63 = vadd.f32 %v3040_v38, %v2896_v2  ;;  %v11767_v38 = vld [vmem:[#allocation8_spill] sm:$0xff] }
 0x494   : > { %7044 = vst [vmem:[#allocation2 + $0x38] sm:$0xff] %v6858_v60   ;;  %v3215_v12 = vadd.f32 %v3105_v57, %v11763_v5  ;;  %3143 = vmatmul.bf16.gmra.mxu0 %v9079_v27  ;;  %v11764_v27 = vld [vmem:[#allocation55_spill] sm:$0xff]  ;;  %v9687_v19 = vpop.f32.mrf.mxu3 }
 0x495   : > { %v9674_v35 = vld [vmem:[#allocation2 + $0x30] sm:$0xff]  ;;  %11765 = vst [vmem:[#allocation126_spill] sm:$0xff] %v9687_v19 }
 0x496   : > { %4382 = vmatmul.bf16.gmra.mxu1 %v9674_v35  ;;  %v3273_v50 = vadd.f32 %v9450_v47, %v3215_v12  ;;  %v3864_v12 = vshll.u32 %v9674_v35, 16 }
 0x498   : > { %v3327_v60 = vmax.f32 %v3273_v50, 0.0  ;;  %v3862_v50 = vshrl.u32 %v9674_v35, 16 }
 0x499   : > { %v3106_v40 = vpop.f32.mrf.mxu0 }
 0x49a   : > { %v3107_v9 = vadd.f32 %v3106_v40, %v9310_v48  ;;  %v9689_v48 = vpop.f32.mrf.mxu2 }
 0x49b   : > { %v3491_v34 = vld [vmem:[#allocation2 + $0x3c] sm:$0x1]  ;;  %v3544_v29 = vld [vmem:[#allocation2 + $0x38] sm:$0x1] }
 0x49c   : > { %v3492_v14 = vsel %vm9493_vm4, 0, %v3491_v34  ;;  %v3545_v21 = vsel %vm9538_vm6, 0, %v3544_v29  ;;  %v3216_v32 = vadd.f32 %v3107_v9, %v11764_v27  ;;  %v11766_v9 = vld [vmem:[#allocation47_spill] sm:$0xff] }
 0x49d   : > { %3493 = vst [vmem:[#allocation2 + $0x3c] sm:$0x1] %v3492_v14 }
 0x49e   : > { %3546 = vst [vmem:[#allocation2 + $0x38] sm:$0x1] %v3545_v21  ;;  %v3274_v22 = vadd.f32 %v9450_v47, %v3216_v32  ;;  %v3866_v21 = vrot.slane %v3864_v12, 1  ;;  %v3045_v32 = vpop.f32.mrf.mxu3 }
 0x4a0   : > { %v3328_v57 = vmax.f32 %v3274_v22, 0.0 }
 0x4a1   : > { %v3109_v5 = vpop.f32.mrf.mxu0 }
 0x4a2   : > { %v6863_v40 = vpack.c.bf16 %v3328_v57, %v3327_v60  ;;  %v3110_v34 = vadd.f32 %v3109_v5, %v9315_v16  ;;  %v2901_v10 = vpop.f32.mrf.mxu2  ;;  %v4059_v16 = vrot.slane %v9674_v35, 1 }
 0x4a4   : > { %7045 = vst [vmem:[#allocation2 + $0x40] sm:$0xff] %v6863_v40   ;;  %v3217_v29 = vadd.f32 %v3110_v34, %v11766_v9  ;;  %3148 = vmatmul.bf16.gmra.mxu0 %v11767_v38  ;;  %v3867_v9 = vor.u32 %v3866_v21, %v3862_v50  ;;  %v11768_v38 = vld [vmem:[#allocation127_spill] sm:$0xff] }
 0x4a5   : > { %v3611_v2 = vld [vmem:[#allocation2 + $0x38] sm:$0xf] }
 0x4a6   : > { %v3781_v14 = vunpack.c.l.b16 %v3611_v2  ;;  %v3275_v40 = vadd.f32 %v9450_v47, %v3217_v29  ;;  %v9713_v29 = vadd.f32 %v3045_v32, %v2901_v10 }
 0x4a8   : > { %v3799_v27 = vpack.c.b16 %v3781_v14, %v3781_v14  ;;  %v3329_v21 = vmax.f32 %v3275_v40, 0.0 }
 0x4a9   : > { %v3111_v13 = vpop.f32.mrf.mxu0 }
 0x4aa   : > { %v3112_v22 = vadd.f32 %v3111_v13, %v9325_v25  ;;  %v4060_v60 = vrot.slane %v3799_v27, 1  ;;  %v3869_v57 = vshll.u32 %v3799_v27, 16 }
 0x4ab   : > { %v3547_v5 = vld [vmem:[#allocation2 + $0x44] sm:$0x1]  ;;  %v9699_v34 = vld [vmem:[#allocation2 + $0x3c] sm:$0xff] }
 0x4ac   : > { %v3548_v12 = vsel %vm9538_vm6, 0, %v3547_v5  ;;  %v3218_v2 = vadd.f32 %v3112_v22, %v11768_v38  ;;  %v9705_v14 = vsel %vm823_vm1, %v4059_v16, %v4060_v60  ;;  %v3871_v19 = vrot.slane %v3869_v57, 1  ;;  %4387 = vmatmul.bf16.gmra.mxu1 %v9699_v34  ;;  %v9717_v60 = vpop.f32.mrf.mxu3  ;;  %v9719_v57 = vpop.f32.mrf.mxu2 }
 0x4ad   : > { %11769 = vst [vmem:[#allocation110_spill] sm:$0xff] %v9705_v14  ;;  %4560 = vmatmul.bf16.gmra.mxu3 %v9705_v14  ;;  %v3876_v5 = vshll.u32 %v9699_v34, 16 }
 0x4ae   : > { %3549 = vst [vmem:[#allocation2 + $0x44] sm:$0x1] %v3548_v12  ;;  %v3276_v25 = vadd.f32 %v9450_v47, %v3218_v2  ;;  %v9711_v13 = vsel %vm522_vm0, %v3867_v9, %v3871_v19  ;;  %v11772_v12 = vld [vmem:[#allocation128_spill] sm:$0xff]  ;;  %v11773_v9 = vld [vmem:[#allocation119_spill] sm:$0xff] }
 0x4af   : > { %11770 = vst [vmem:[#allocation98_spill] sm:$0xff] %v9711_v13  ;;  %4471 = vmatmul.bf16.gmra.mxu2 %v9711_v13  ;;  %v3878_v40 = vrot.slane %v3876_v5, 1 }
 0x4b0   : > { %v3330_v27 = vmax.f32 %v3276_v25, 0.0  ;;  %11771 = vst [vmem:[#allocation120_spill] sm:$0xff] %v9717_v60  ;;  %v4062_v25 = vrot.slane %v9699_v34, 1 }
 0x4b1   : > { %v3114_v50 = vpop.f32.mrf.mxu0 }
 0x4b2   : > { %v6868_v22 = vpack.c.bf16 %v3330_v27, %v3329_v21  ;;  %v3115_v16 = vadd.f32 %v3114_v50, %v9333_v24  ;;  %v3874_v24 = vshrl.u32 %v9699_v34, 16 }
 0x4b4   : > { %7046 = vst [vmem:[#allocation2 + $0x48] sm:$0xff] %v6868_v22   ;;  %v3219_v19 = vadd.f32 %v3115_v16, %v11772_v12  ;;  %3153 = vmatmul.bf16.gmra.mxu0 %v11773_v9  ;;  %v3879_v16 = vor.u32 %v3878_v40, %v3874_v24  ;;  %v3050_v14 = vpop.f32.mrf.mxu3  ;;  %v2906_v60 = vpop.f32.mrf.mxu2  ;;  %v11777_v24 = vld [vmem:[#allocation58_spill] sm:$0xff] }
 0x4b5   : > { %v3614_v10 = vld [vmem:[#allocation2 + $0x44] sm:$0xf] }
 0x4b6   : > { %v3782_v32 = vunpack.c.l.b16 %v3614_v10  ;;  %v3277_v5 = vadd.f32 %v9450_v47, %v3219_v19  ;;  %v11775_v10 = vld [vmem:[#allocation74_spill] sm:$0xff] }
 0x4b8   : > { %v3800_v38 = vpack.c.b16 %v3782_v32, %v3782_v32 }
 0x4b9   : > { %v3116_v2 = vpop.f32.mrf.mxu0 }
 0x4ba   : > { %v4063_v21 = vrot.slane %v3800_v38, 1  ;;  %v3881_v27 = vshll.u32 %v3800_v38, 16  ;;  %v3117_v50 = vadd.f32 %v3116_v2, %v9346_v44  ;;  %v9738_v38 = vadd.f32 %v3050_v14, %v2906_v60 }
 0x4bb   : > { %v3494_v13 = vld [vmem:[#allocation2 + $0x48] sm:$0x1]  ;;  %v3331_v2 = vmax.f32 %v3277_v5, 0.0 }
 0x4bc   : > { %v9728_v22 = vsel %vm823_vm1, %v4062_v25, %v4063_v21  ;;  %v3883_v12 = vrot.slane %v3881_v27, 1  ;;  %v3495_v9 = vsel %vm9493_vm4, 0, %v3494_v13  ;;  %v3220_v32 = vadd.f32 %v3117_v50, %v11775_v10  ;;  %v11778_v50 = vld [vmem:[#allocation133_spill] sm:$0xff] }
 0x4bd   : > { %11774 = vst [vmem:[#allocation113_spill] sm:$0xff] %v9728_v22  ;;  %4565 = vmatmul.bf16.gmra.mxu3 %v9728_v22 }
 0x4be   : > { %3496 = vst [vmem:[#allocation2 + $0x48] sm:$0x1] %v3495_v9  ;;  %v9736_v44 = vsel %vm522_vm0, %v3879_v16, %v3883_v12  ;;  %v3278_v40 = vadd.f32 %v9450_v47, %v3220_v32  ;;  %v11779_v32 = vld [vmem:[#allocation132_spill] sm:$0xff] }
 0x4bf   : > { %11776 = vst [vmem:[#allocation130_spill] sm:$0xff] %v9736_v44  ;;  %4476 = vmatmul.bf16.gmra.mxu2 %v9736_v44 }
 0x4c0   : > { %v3332_v13 = vmax.f32 %v3278_v40, 0.0 }
 0x4c1   : > { %v3119_v25 = vpop.f32.mrf.mxu0 }
 0x4c2   : > { %v6873_v19 = vpack.c.bf16 %v3332_v13, %v3331_v2  ;;  %v3120_v21 = vadd.f32 %v3119_v25, %v9351_v11  ;;  %v6750_v2 = vld [vmem:[%s11047_s3 + $0x78] sm:$0xff] }
 0x4c3   : > { %4859 = vmatpush.bf16.msrb.mxu2 %v6750_v2  ;;  %v9770_v2 = vpop.f32.mrf.mxu3 }
 0x4c4   : > { %7047 = vst [vmem:[#allocation2 + $0x50] sm:$0xff] %v6873_v19   ;;  %v3221_v27 = vadd.f32 %v3120_v21, %v11777_v24  ;;  %3158 = vmatmul.bf16.gmra.mxu0 %v11778_v50 }
 0x4c5   : > { %v9745_v9 = vld [vmem:[#allocation2 + $0x48] sm:$0xff] }
 0x4c6   : > { %4392 = vmatmul.bf16.gmra.mxu1 %v9745_v9  ;;  %v3279_v10 = vadd.f32 %v9450_v47, %v3221_v27  ;;  %v3888_v50 = vshll.u32 %v9745_v9, 16 }
 0x4c8   : > { %v3333_v25 = vmax.f32 %v3279_v10, 0.0 }
 0x4c9   : > { %v3121_v14 = vpop.f32.mrf.mxu0 }
 0x4ca   : > { %v3122_v60 = vadd.f32 %v3121_v14, %v9359_v59  ;;  %v6742_v59 = vld [vmem:[%s11047_s3 + $0x38] sm:$0xff]  ;;  %v11780_v14 = vld [vmem:[#allocation67_spill] sm:$0xff] }
 0x4cb   : > { %v3497_v16 = vld [vmem:[#allocation2 + $0x54] sm:$0x1]  ;;  %v3550_v12 = vld [vmem:[#allocation2 + $0x50] sm:$0x1]  ;;  %4770 = vmatpush.bf16.msrb.mxu1 %v6742_v59 }
 0x4cc   : > { %v3498_v5 = vsel %vm9493_vm4, 0, %v3497_v16  ;;  %v3551_v11 = vsel %vm9538_vm6, 0, %v3550_v12  ;;  %v3222_v40 = vadd.f32 %v3122_v60, %v11779_v32  ;;  %v11781_v16 = vld [vmem:[#allocation59_spill] sm:$0xff]  ;;  %v3890_v32 = vrot.slane %v3888_v50, 1 }
 0x4cd   : > { %3499 = vst [vmem:[#allocation2 + $0x54] sm:$0x1] %v3498_v5 }
 0x4ce   : > { %3552 = vst [vmem:[#allocation2 + $0x50] sm:$0x1] %v3551_v11  ;;  %v3280_v13 = vadd.f32 %v9450_v47, %v3222_v40  ;;  %v9766_v11 = vpop.f32.mrf.mxu2  ;;  %v9768_v40 = vpop.f32.mrf.mxu1 }
 0x4cf   : > { %11782 = vst [vmem:[#allocation103_spill] sm:$0xff] %v9768_v40 }
 0x4d0   : > { %v3334_v19 = vmax.f32 %v3280_v13, 0.0 }
 0x4d1   : > { %v3124_v21 = vpop.f32.mrf.mxu0 }
 0x4d2   : > { %v6878_v24 = vpack.c.bf16 %v3334_v19, %v3333_v25  ;;  %v3125_v27 = vadd.f32 %v3124_v21, %v9366_v55  ;;  %v3886_v55 = vshrl.u32 %v9745_v9, 16  ;;  %v4065_v25 = vrot.slane %v9745_v9, 1 }
 0x4d4   : > { %7048 = vst [vmem:[#allocation2 + $0x58] sm:$0xff] %v6878_v24   ;;  %v3223_v60 = vadd.f32 %v3125_v27, %v11780_v14  ;;  %3163 = vmatmul.bf16.gmra.mxu0 %v11781_v16  ;;  %v3891_v50 = vor.u32 %v3890_v32, %v3886_v55 }
 0x4d5   : > { %v3617_v12 = vld [vmem:[#allocation2 + $0x50] sm:$0xf] }
 0x4d6   : > { %v3783_v5 = vunpack.c.l.b16 %v3617_v12  ;;  %v3281_v27 = vadd.f32 %v9450_v47, %v3223_v60  ;;  %v11783_v12 = vld [vmem:[#allocation88_spill] sm:$0xff]  ;;  %v4368_v32 = vpop.f32.mrf.mxu1 }
 0x4d8   : > { %v3801_v10 = vpack.c.b16 %v3783_v5, %v3783_v5 }
 0x4d9   : > { %v3126_v59 = vpop.f32.mrf.mxu0 }
 0x4da   : > { %v3127_v13 = vadd.f32 %v3126_v59, %v9374_v53  ;;  %v4066_v19 = vrot.slane %v3801_v10, 1  ;;  %v3893_v21 = vshll.u32 %v3801_v10, 16  ;;  %v3335_v10 = vmax.f32 %v3281_v27, 0.0 }
 0x4db   : > { %v3553_v24 = vld [vmem:[#allocation2 + $0x5c] sm:$0x1]  ;;  %v9776_v14 = vld [vmem:[#allocation2 + $0x54] sm:$0xff] }
 0x4dc   : > { %v3554_v16 = vsel %vm9538_vm6, 0, %v3553_v24  ;;  %v3224_v5 = vadd.f32 %v3127_v13, %v11783_v12  ;;  %v9782_v44 = vsel %vm823_vm1, %v4065_v25, %v4066_v19  ;;  %v3895_v22 = vrot.slane %v3893_v21, 1  ;;  %4397 = vmatmul.bf16.gmra.mxu1 %v9776_v14  ;;  %v11786_v12 = vld [vmem:[#allocation134_spill] sm:$0xff] }
 0x4dd   : > { %11784 = vst [vmem:[#allocation52_spill] sm:$0xff] %v9782_v44  ;;  %4570 = vmatmul.bf16.gmra.mxu3 %v9782_v44  ;;  %v11787_v44 = vld [vmem:[#allocation35_spill] sm:$0xff] }
 0x4de   : > { %3555 = vst [vmem:[#allocation2 + $0x5c] sm:$0x1] %v3554_v16  ;;  %v3282_v53 = vadd.f32 %v9450_v47, %v3224_v5  ;;  %v9788_v60 = vsel %vm522_vm0, %v3891_v50, %v3895_v22  ;;  %v3900_v16 = vshll.u32 %v9776_v14, 16 }
 0x4df   : > { %11785 = vst [vmem:[#allocation131_spill] sm:$0xff] %v9788_v60  ;;  %4481 = vmatmul.bf16.gmra.mxu2 %v9788_v60  ;;  %v4546_v24 = vpop.f32.mrf.mxu3 }
 0x4e0   : > { %v3336_v59 = vmax.f32 %v3282_v53, 0.0  ;;  %v3902_v53 = vrot.slane %v3900_v16, 1 }
 0x4e1   : > { %v3129_v55 = vpop.f32.mrf.mxu0  ;;  %v4457_v13 = vpop.f32.mrf.mxu2 }
 0x4e2   : > { %v6883_v25 = vpack.c.bf16 %v3336_v59, %v3335_v10  ;;  %v3130_v19 = vadd.f32 %v3129_v55, %v9381_v54  ;;  %v4458_v21 = vadd.f32 %v4457_v13, %v4368_v32  ;;  %v4068_v10 = vrot.slane %v9776_v14, 1 }
 0x4e3   : > { %v3898_v54 = vshrl.u32 %v9776_v14, 16 }
 0x4e4   : > { %7049 = vst [vmem:[#allocation2 + $0x60] sm:$0xff] %v6883_v25   ;;  %v3225_v5 = vadd.f32 %v3130_v19, %v11786_v12  ;;  %3168 = vmatmul.bf16.gmra.mxu0 %v11787_v44  ;;  %v9795_v50 = vadd.f32 %v4546_v24, %v4458_v21  ;;  %v11789_v24 = vld [vmem:[#allocation79_spill] sm:$0xff] }
 0x4e5   : > { %v3620_v22 = vld [vmem:[#allocation2 + $0x5c] sm:$0xf]  ;;  %v3903_v44 = vor.u32 %v3902_v53, %v3898_v54  ;;  %v11791_v54 = vld [vmem:[#allocation73_spill] sm:$0xff] }
 0x4e6   : > { %v3784_v60 = vunpack.c.l.b16 %v3620_v22 }
 0x4e8   : > { %v3802_v27 = vpack.c.b16 %v3784_v60, %v3784_v60  ;;  %v3283_v60 = vadd.f32 %v9450_v47, %v3225_v5 }
 0x4e9   : > { %v3131_v40 = vpop.f32.mrf.mxu0 }
 0x4ea   : > { %v4069_v59 = vrot.slane %v3802_v27, 1  ;;  %v3905_v32 = vshll.u32 %v3802_v27, 16  ;;  %v3132_v55 = vadd.f32 %v3131_v40, %v9395_v51  ;;  %v6749_v51 = vld [vmem:[%s11047_s3 + $0x70] sm:$0xff]  ;;  %v3337_v5 = vmax.f32 %v3283_v60, 0.0  ;;  %v9829_v60 = vpop.f32.mrf.mxu2 }
 0x4eb   : > { %v3500_v13 = vld [vmem:[#allocation2 + $0x60] sm:$0x1]  ;;  %v6741_v40 = vld [vmem:[%s11047_s3 + $0x30] sm:$0xff]  ;;  %4860 = vmatpush.bf16.msrb.mxu2 %v6749_v51  ;;  %11795 = vst [vmem:[#allocation37_spill] sm:$0xff] %v9829_v60 }
 0x4ec   : > { %v9801_v25 = vsel %vm823_vm1, %v4068_v10, %v4069_v59  ;;  %v3907_v19 = vrot.slane %v3905_v32, 1  ;;  %v3501_v21 = vsel %vm9493_vm4, 0, %v3500_v13  ;;  %v3226_v16 = vadd.f32 %v3132_v55, %v11789_v24  ;;  %4771 = vmatpush.bf16.msrb.mxu1 %v6741_v40  ;;  %v11792_v55 = vld [vmem:[#allocation51_spill] sm:$0xff] }
 0x4ed   : > { %11788 = vst [vmem:[#allocation116_spill] sm:$0xff] %v9801_v25  ;;  %4575 = vmatmul.bf16.gmra.mxu3 %v9801_v25 }
 0x4ee   : > { %3502 = vst [vmem:[#allocation2 + $0x60] sm:$0x1] %v3501_v21  ;;  %v9809_v12 = vsel %vm522_vm0, %v3903_v44, %v3907_v19  ;;  %v3284_v22 = vadd.f32 %v9450_v47, %v3226_v16  ;;  %v9825_v44 = vpop.f32.mrf.mxu1  ;;  %v9827_v19 = vpop.f32.mrf.mxu3 }
 0x4ef   : > { %11790 = vst [vmem:[#allocation124_spill] sm:$0xff] %v9809_v12  ;;  %4486 = vmatmul.bf16.gmra.mxu2 %v9809_v12 }
 0x4f0   : > { %v3338_v27 = vmax.f32 %v3284_v22, 0.0  ;;  %11793 = vst [vmem:[#allocation136_spill] sm:$0xff] %v9825_v44 }
 0x4f1   : > { %v3134_v53 = vpop.f32.mrf.mxu0  ;;  %11794 = vst [vmem:[#allocation118_spill] sm:$0xff] %v9827_v19 }
 0x4f2   : > { %v6888_v10 = vpack.c.bf16 %v3338_v27, %v3337_v5  ;;  %v3135_v59 = vadd.f32 %v3134_v53, %v9400_v1  ;;  %v11796_v5 = vld [vmem:[#allocation94_spill] sm:$0xff] }
 0x4f4   : > { %7050 = vst [vmem:[#allocation2 + $0x68] sm:$0xff] %v6888_v10   ;;  %v3227_v32 = vadd.f32 %v3135_v59, %v11791_v54  ;;  %3173 = vmatmul.bf16.gmra.mxu0 %v11792_v55 }
 0x4f5   : > { %v9822_v13 = vld [vmem:[#allocation2 + $0x60] sm:$0xff] }
 0x4f6   : > { %4402 = vmatmul.bf16.gmra.mxu1 %v9822_v13  ;;  %v3285_v22 = vadd.f32 %v9450_v47, %v3227_v32  ;;  %v4373_v10 = vpop.f32.mrf.mxu1  ;;  %v11797_v32 = vld [vmem:[#allocation137_spill] sm:$0xff] }
 0x4f8   : > { %v3339_v59 = vmax.f32 %v3285_v22, 0.0 }
 0x4f9   : > { %v3136_v21 = vpop.f32.mrf.mxu0 }
 0x4fa   : > { %v3137_v24 = vadd.f32 %v3136_v21, %v9410_v46 }
 0x4fb   : > { %v3503_v16 = vld [vmem:[#allocation2 + $0x6c] sm:$0x1]  ;;  %v3556_v1 = vld [vmem:[#allocation2 + $0x68] sm:$0x1] }
 0x4fc   : > { %v3504_v51 = vsel %vm9493_vm4, 0, %v3503_v16  ;;  %v3557_v40 = vsel %vm9538_vm6, 0, %v3556_v1  ;;  %v3228_v27 = vadd.f32 %v3137_v24, %v11796_v5  ;;  %v3912_v1 = vshll.u32 %v9822_v13, 16  ;;  %v11798_v24 = vld [vmem:[#allocation54_spill] sm:$0xff] }
 0x4fd   : > { %3505 = vst [vmem:[#allocation2 + $0x6c] sm:$0x1] %v3504_v51 }
 0x4fe   : > { %3558 = vst [vmem:[#allocation2 + $0x68] sm:$0x1] %v3557_v40  ;;  %v3286_v53 = vadd.f32 %v9450_v47, %v3228_v27  ;;  %v6790_v47 = vld [vmem:[%s11047_s3 + $0x1b8] sm:$0xff]  ;;  %v3914_v5 = vrot.slane %v3912_v1, 1 }
 0x4ff   : > { %5229 = vmatpush.bf16.msrb.mxu0 %v6790_v47 }
 0x500   : > { %v3340_v54 = vmax.f32 %v3286_v53, 0.0  ;;  %v4551_v46 = vpop.f32.mrf.mxu3  ;;  %v11799_v53 = vld [vmem:[#allocation81_spill] sm:$0xff] }
 0x501   : > { %v3139_v55 = vpop.f32.mrf.mxu0 }
 0x502   : > { %v6893_v21 = vpack.c.bf16 %v3340_v54, %v3339_v59  ;;  %v3140_v19 = vadd.f32 %v3139_v55, %v9426_v39  ;;  %v4462_v16 = vpop.f32.mrf.mxu2  ;;  %v2998_v39 = vadd.f32 %v9418_v17, %v9423_v15  ;;  %v9855_v54 = vpop.f32.mrf.mxu1  ;;  %v4071_v17 = vrot.slane %v9822_v13, 1 }
 0x503   : > { %v4463_v60 = vadd.f32 %v4462_v16, %v4373_v10  ;;  %v11800_v10 = vld [vmem:[#allocation135_spill] sm:$0xff]  ;;  %11801 = vst [vmem:[#allocation129_spill] sm:$0xff] %v9855_v54  ;;  %v882_v54 = vrot.slane %v9440_v26, 1  ;;  %v6785_v26 = vld [vmem:[%s11047_s3 + $0x190] sm:$0xff] }
 0x504   : > { %7051 = vst [vmem:[#allocation2 + $0x70] sm:$0xff] %v6893_v21   ;;  %v3229_v44 = vadd.f32 %v3140_v19, %v11797_v32  ;;  %3178 = vmatmul.bf16.gmra.mxu0 %v11798_v24  ;;  %v6789_v19 = vld [vmem:[%s11047_s3 + $0x1b0] sm:$0xff]  ;;  %v2495_v59 = vadd.f32 %v11800_v10, %v11799_v53  ;;  %v9866_v24 = vld [vmem:[%s11046_s2] ss:$0 sm:$0xff] }
 0x505   : > { %v3623_v51 = vld [vmem:[#allocation2 + $0x68] sm:$0xf]  ;;  %v9846_v40 = vadd.f32 %v4551_v46, %v4463_v60  ;;  %v3910_v60 = vshrl.u32 %v9822_v13, 16  ;;  %5230 = vmatpush.bf16.msrb.mxu0 %v6789_v19 }
 0x506   : > { %v3785_v22 = vunpack.c.l.b16 %v3623_v51  ;;  %v3287_v47 = vadd.f32 %v9866_v24, %v3229_v44  ;;  %v6788_v19 = vld [vmem:[%s11047_s3 + $0x1a8] sm:$0xff] }
 0x508   : > { %v3803_v27 = vpack.c.b16 %v3785_v22, %v3785_v22  ;;  %v9858_v46 = vpop.f32.mrf.mxu3  ;;  %v3915_v22 = vor.u32 %v3914_v5, %v3910_v60  ;;  %v3341_v60 = vmax.f32 %v3287_v47, 0.0 }
 0x509   : > { %v3141_v55 = vpop.f32.mrf.mxu0  ;;  %11802 = vst [vmem:[#allocation139_spill] sm:$0xff] %v9858_v46  ;;  %5231 = vmatpush.bf16.msrb.mxu0 %v6788_v19  ;;  %v11806_v19 = vld [vmem:[#allocation138_spill] sm:$0xff]  ;;  %v7160_v46 = vld [vmem:[%s7422_s12 + $0x130] sm:$0xff]  }
 0x50a   : > { %v3142_v21 = vadd.f32 %v3141_v55, %v2998_v39  ;;  %v9860_v16 = vpop.f32.mrf.mxu2  ;;  %v4072_v15 = vrot.slane %v3803_v27, 1  ;;  %v3917_v1 = vshll.u32 %v3803_v27, 16  ;;  %v6740_v55 = vld [vmem:[%s11047_s3 + $0x28] sm:$0xff] }
 0x50b   : > { %11803 = vst [vmem:[#allocation122_spill] sm:$0xff] %v9860_v16  ;;  %v3559_v32 = vld [vmem:[#allocation2 + $0x74] sm:$0x1]  ;;  %v9869_v51 = vld [vmem:[#allocation2 + $0x6c] sm:$0xff]  ;;  %4772 = vmatpush.bf16.msrb.mxu1 %v6740_v55  ;;  %v881_v16 = vrot.slane %v7160_v46, 1 }
 0x50c   : > { %v3560_v39 = vsel %vm9538_vm6, 0, %v3559_v32  ;;  %v3230_v53 = vadd.f32 %v3142_v21, %v2495_v59  ;;  %v9874_v10 = vsel %vm823_vm1, %v4071_v17, %v4072_v15  ;;  %v3919_v27 = vrot.slane %v3917_v1, 1  ;;  %4407 = vmatmul.bf16.gmra.mxu1 %v9869_v51  ;;  %v6748_v59 = vld [vmem:[%s11047_s3 + $0x68] sm:$0xff]  ;;  %v6787_v17 = vld [vmem:[%s11047_s3 + $0x1a0] sm:$0xff]  ;;  %v4378_v1 = vpop.f32.mrf.mxu1 }
 0x50d   : > { %11804 = vst [vmem:[#allocation13_spill] sm:$0xff] %v9874_v10  ;;  %4580 = vmatmul.bf16.gmra.mxu3 %v9874_v10  ;;  %4861 = vmatpush.bf16.msrb.mxu2 %v6748_v59  ;;  %v11807_v59 = vld [vmem:[#allocation48_spill] sm:$0xff] }
 0x50e   : > { %3561 = vst [vmem:[#allocation2 + $0x74] sm:$0x1] %v3560_v39  ;;  %v3288_v44 = vadd.f32 %v9866_v24, %v3230_v53  ;;  %v9883_v5 = vsel %vm522_vm0, %v3915_v22, %v3919_v27  ;;  %5232 = vmatpush.bf16.msrb.mxu0 %v6787_v17  ;;  %v3924_v27 = vshll.u32 %v9869_v51, 16 }
 0x50f   : > { %11805 = vst [vmem:[#allocation70_spill] sm:$0xff] %v9883_v5  ;;  %4491 = vmatmul.bf16.gmra.mxu2 %v9883_v5 }
 0x510   : > { %v3342_v21 = vmax.f32 %v3288_v44, 0.0  ;;  %v4556_v47 = vpop.f32.mrf.mxu3 }
 0x511   : > { %v3144_v15 = vpop.f32.mrf.mxu0 }
 0x512   : > { %v6898_v32 = vpack.c.bf16 %v3342_v21, %v3341_v60  ;;  %v3145_v22 = vadd.f32 %v3144_v15, %v9468_v58  ;;  %v4467_v39 = vpop.f32.mrf.mxu2  ;;  %v6786_v58 = vld [vmem:[%s11047_s3 + $0x198] sm:$0xff]  ;;  %v3926_v15 = vrot.slane %v3924_v27, 1 }
 0x513   : > { %v4468_v53 = vadd.f32 %v4467_v39, %v4378_v1  ;;  %5233 = vmatpush.bf16.msrb.mxu0 %v6786_v58  ;;  %v3003_v1 = vadd.f32 %v9452_v36, %v9456_v52 }
 0x514   : > { %7052 = vst [vmem:[#allocation2 + $0x78] sm:$0xff] %v6898_v32   ;;  %v3231_v44 = vadd.f32 %v3145_v22, %v11806_v19  ;;  %3183 = vmatmul.bf16.gmra.mxu0 %v11807_v59  ;;  %v9909_v32 = vsel %vm823_vm1, %v881_v16, %v882_v54  ;;  %v4074_v22 = vrot.slane %v9869_v51, 1  ;;  %v11809_v19 = vld [vmem:[#allocation86_spill] sm:$0xff]  ;;  %v11810_v59 = vld [vmem:[#allocation65_spill] sm:$0xff] }
 0x515   : > { %v3626_v55 = vld [vmem:[#allocation2 + $0x74] sm:$0xf]  ;;  %v9904_v21 = vadd.f32 %v4556_v47, %v4468_v53  ;;  %v3922_v53 = vshrl.u32 %v9869_v51, 16  ;;  %v2500_v27 = vadd.f32 %v11810_v59, %v11809_v19  ;;  %v2553_v10 = vunpack.c.l.b16 %v9909_v32 }
 0x516   : > { %v3786_v60 = vunpack.c.l.b16 %v3626_v55 }
 0x517   : > { %11808 = vst [vmem:[#allocation46_spill] sm:$0xff] %v9904_v21  ;;  %5234 = vmatpush.bf16.msrb.mxu0 %v6785_v26  ;;  %v3927_v16 = vor.u32 %v3926_v15, %v3922_v53  ;;  %v3289_v21 = vadd.f32 %v9866_v24, %v3231_v44 }
 0x518   : > { %v3804_v17 = vpack.c.b16 %v3786_v60, %v3786_v60 }
 0x519   : > { %v3146_v46 = vpop.f32.mrf.mxu0  ;;  %v3343_v26 = vmax.f32 %v3289_v21, 0.0  ;;  %v9943_v21 = vpop.f32.mrf.mxu1 }
 0x51a   : > { %v4075_v39 = vrot.slane %v3804_v17, 1  ;;  %v3929_v47 = vshll.u32 %v3804_v17, 16  ;;  %v3147_v55 = vadd.f32 %v3146_v46, %v3003_v1  ;;  %v6784_v17 = vld [vmem:[%s11047_s3 + $0x188] sm:$0xff]  ;;  %v11811_v46 = vld [vmem:[#allocation53_spill] sm:$0xff] }
 0x51b   : > { %v3506_v36 = vld [vmem:[#allocation2 + $0x78] sm:$0x1]  ;;  %5235 = vmatpush.bf16.msrb.mxu0 %v6784_v17 }
 0x51c   : > { %v9919_v52 = vsel %vm823_vm1, %v4074_v22, %v4075_v39  ;;  %v3931_v58 = vrot.slane %v3929_v47, 1  ;;  %v3507_v60 = vsel %vm9493_vm4, 0, %v3506_v36  ;;  %v3232_v5 = vadd.f32 %v3147_v55, %v2500_v27  ;;  %v6783_v39 = vld [vmem:[%s11047_s3 + $0x180] sm:$0xff]  ;;  %v9947_v27 = vpop.f32.mrf.mxu3 }
 0x51d   : > { %3508 = vst [vmem:[#allocation2 + $0x78] sm:$0x1] %v3507_v60  ;;  %4585 = vmatmul.bf16.gmra.mxu3 %v9919_v52  ;;  %v2610_v22 = vpack.c.b16 %v2553_v10, %v11811_v46  ;;  %v3008_v10 = vadd.f32 %v9487_v18, %v9501_v6  ;;  %v11812_v36 = vld [vmem:[#allocation95_spill] sm:$0xff] }
 0x51e   : > { %v9930_v1 = vsel %vm522_vm0, %v3927_v16, %v3931_v58  ;;  %v3290_v15 = vadd.f32 %v9866_v24, %v3232_v5  ;;  %v11813_v16 = vld [vmem:[#allocation78_spill] sm:$0xff]  ;;  %v9951_v58 = vpop.f32.mrf.mxu2 }
 0x51f   : > { %4496 = vmatmul.bf16.gmra.mxu2 %v9930_v1  ;;  %5236 = vmatpush.bf16.msrb.mxu0 %v6783_v39  ;;  %v6739_v39 = vld [vmem:[%s11047_s3 + $0x20] sm:$0xff] }
 0x520   : > { %v3344_v44 = vmax.f32 %v3290_v15, 0.0  ;;  %v2555_v15 = vunpack.c.h.b16 %v9909_v32  ;;  %4773 = vmatpush.bf16.msrb.mxu1 %v6739_v39  ;;  %v11816_v39 = vld [vmem:[#allocation25_spill] sm:$0xff] }
 0x521   : > { %v3149_v53 = vpop.f32.mrf.mxu0  ;;  %v4383_v32 = vpop.f32.mrf.mxu1 }
 0x522   : > { %v6903_v47 = vpack.c.bf16 %v3344_v44, %v3343_v26  ;;  %v3150_v19 = vadd.f32 %v3149_v53, %v9514_v0  ;;  %v2505_v0 = vadd.f32 %v11813_v16, %v11812_v36  ;;  %v2557_v26 = vunpack.c.l.b16 %v882_v54 }
 0x524   : > { %7053 = vst [vmem:[#allocation2 + $0x80] sm:$0xff] %v6903_v47   ;;  %v3233_v59 = vadd.f32 %v3150_v19, %v9263_v30  ;;  %3188 = vmatmul.bf16.gmra.mxu0 %v2610_v22  ;;  %v9940_v5 = vld [vmem:[#allocation2 + $0x78] sm:$0xff]  ;;  %v6747_v22 = vld [vmem:[%s11047_s3 + $0x60] sm:$0xff] }
 0x525   : > { %4412 = vmatmul.bf16.gmra.mxu1 %v9940_v5  ;;  %4862 = vmatpush.bf16.msrb.mxu2 %v6747_v22  ;;  %v11815_v22 = vld [vmem:[#allocation57_spill] sm:$0xff] }
 0x526   : > { %v3291_v6 = vadd.f32 %v9866_v24, %v3233_v59  ;;  %v2613_v59 = vpack.c.b16 %v2557_v26, %v2555_v15  ;;  %v3013_v15 = vadd.f32 %v9532_v31, %v9543_v45 }
 0x528   : > { %v3345_v53 = vmax.f32 %v3291_v6, 0.0 }
 0x529   : > { %v3151_v55 = vpop.f32.mrf.mxu0 }
 0x52a   : > { %v3152_v60 = vadd.f32 %v3151_v55, %v3008_v10 }
 0x52b   : > { %v3509_v30 = vld [vmem:[#allocation2 + $0x84] sm:$0x1]  ;;  %v3562_v17 = vld [vmem:[#allocation2 + $0x80] sm:$0x1] }
 0x52c   : > { %v3510_v44 = vsel %vm9493_vm4, 0, %v3509_v30  ;;  %v3563_v18 = vsel %vm9538_vm6, 0, %v3562_v17  ;;  %v3234_v46 = vadd.f32 %v3152_v60, %v2505_v0  ;;  %v3936_v60 = vshll.u32 %v9940_v5, 16  ;;  %v11814_v30 = vld [vmem:[#allocation140_spill] sm:$0xff] }
 0x52d   : > { %3511 = vst [vmem:[#allocation2 + $0x84] sm:$0x1] %v3510_v44 }
 0x52e   : > { %3564 = vst [vmem:[#allocation2 + $0x80] sm:$0x1] %v3563_v18  ;;  %v3292_v54 = vadd.f32 %v9866_v24, %v3234_v46  ;;  %v3938_v6 = vrot.slane %v3936_v60, 1 }
 0x530   : > { %v3346_v47 = vmax.f32 %v3292_v54, 0.0  ;;  %v4561_v19 = vpop.f32.mrf.mxu3  ;;  %v9975_v54 = vpop.f32.mrf.mxu1 }
 0x531   : > { %v3154_v10 = vpop.f32.mrf.mxu0 }
 0x532   : > { %v6908_v55 = vpack.c.bf16 %v3346_v47, %v3345_v53  ;;  %v3155_v36 = vadd.f32 %v3154_v10, %v9554_v43  ;;  %v4472_v16 = vpop.f32.mrf.mxu2  ;;  %v2510_v43 = vadd.f32 %v11816_v39, %v11815_v22  ;;  %v3934_v53 = vshrl.u32 %v9940_v5, 16 }
 0x533   : > { %v4473_v0 = vadd.f32 %v4472_v16, %v4383_v32 }
 0x534   : > { %7054 = vst [vmem:[#allocation2 + $0x88] sm:$0xff] %v6908_v55   ;;  %v3235_v17 = vadd.f32 %v3155_v36, %v11814_v30  ;;  %3193 = vmatmul.bf16.gmra.mxu0 %v2613_v59 }
 0x535   : > { %v3629_v44 = vld [vmem:[#allocation2 + $0x80] sm:$0xf]  ;;  %v9969_v18 = vadd.f32 %v4561_v19, %v4473_v0  ;;  %v4077_v19 = vrot.slane %v9940_v5, 1  ;;  %v3939_v0 = vor.u32 %v3938_v6, %v3934_v53 }
 0x536   : > { %v3787_v46 = vunpack.c.l.b16 %v3629_v44  ;;  %v3293_v31 = vadd.f32 %v9866_v24, %v3235_v17 }
 0x538   : > { %v3805_v26 = vpack.c.b16 %v3787_v46, %v3787_v46  ;;  %v9978_v47 = vpop.f32.mrf.mxu3  ;;  %v3347_v6 = vmax.f32 %v3293_v31, 0.0  ;;  %v4388_v39 = vpop.f32.mrf.mxu1 }
 0x539   : > { %v3156_v32 = vpop.f32.mrf.mxu0  ;;  %11817 = vst [vmem:[#allocation7_spill] sm:$0xff] %v9978_v47 }
 0x53a   : > { %v3157_v59 = vadd.f32 %v3156_v32, %v3013_v15  ;;  %v9980_v10 = vpop.f32.mrf.mxu2  ;;  %v4078_v55 = vrot.slane %v3805_v26, 1  ;;  %v3941_v36 = vshll.u32 %v3805_v26, 16 }
 0x53b   : > { %v3565_v16 = vld [vmem:[#allocation2 + $0x8c] sm:$0x1]  ;;  %v9984_v45 = vld [vmem:[#allocation2 + $0x84] sm:$0xff] }
 0x53c   : > { %v3566_v60 = vsel %vm9538_vm6, 0, %v3565_v16  ;;  %v3236_v30 = vadd.f32 %v3157_v59, %v2510_v43  ;;  %v9989_v44 = vsel %vm823_vm1, %v4077_v19, %v4078_v55  ;;  %v3943_v46 = vrot.slane %v3941_v36, 1  ;;  %4417 = vmatmul.bf16.gmra.mxu1 %v9984_v45  ;;  %v11818_v36 = vld [vmem:[#allocation89_spill] sm:$0xff] }
 0x53d   : > { %3567 = vst [vmem:[#allocation2 + $0x8c] sm:$0x1] %v3566_v60  ;;  %4590 = vmatmul.bf16.gmra.mxu3 %v9989_v44  ;;  %v3948_v19 = vshll.u32 %v9984_v45, 16 }
 0x53e   : > { %v3294_v15 = vadd.f32 %v9866_v24, %v3236_v30  ;;  %v9995_v17 = vsel %vm522_vm0, %v3939_v0, %v3943_v46 }
 0x53f   : > { %4501 = vmatmul.bf16.gmra.mxu2 %v9995_v17  ;;  %v3950_v46 = vrot.slane %v3948_v19, 1 }
 0x540   : > { %v3348_v26 = vmax.f32 %v3294_v15, 0.0  ;;  %v4566_v55 = vpop.f32.mrf.mxu3  ;;  %v11819_v15 = vld [vmem:[#allocation38_spill] sm:$0xff] }
 0x541   : > { %v3159_v22 = vpop.f32.mrf.mxu0 }
 0x542   : > { %v6913_v43 = vpack.c.bf16 %v3348_v26, %v3347_v6  ;;  %v3160_v32 = vadd.f32 %v3159_v22, %v9571_v41  ;;  %v4477_v53 = vpop.f32.mrf.mxu2  ;;  %v3018_v6 = vadd.f32 %v11819_v15, %v9564_v8  ;;  %v4080_v26 = vrot.slane %v9984_v45, 1  ;;  %v6746_v15 = vld [vmem:[%s11047_s3 + $0x58] sm:$0xff] }
 0x543   : > { %v4478_v59 = vadd.f32 %v4477_v53, %v4388_v39  ;;  %v3946_v39 = vshrl.u32 %v9984_v45, 16  ;;  %v11820_v53 = vld [vmem:[#allocation141_spill] sm:$0xff]  ;;  %4863 = vmatpush.bf16.msrb.mxu2 %v6746_v15 }
 0x544   : > { %7055 = vst [vmem:[#allocation2 + $0x90] sm:$0xff] %v6913_v43   ;;  %v3237_v16 = vadd.f32 %v3160_v32, %v11818_v36  ;;  %5237 = vmatmul.bf16.vlgmr.msrb.gmra.mxu0 %v9599_v23  ;;  %v3632_v0 = vld [vmem:[#allocation2 + $0x8c] sm:$0xf] }
 0x545   : > { %v3788_v60 = vunpack.c.l.b16 %v3632_v0  ;;  %v10002_v30 = vadd.f32 %v4566_v55, %v4478_v59  ;;  %v11821_v32 = vld [vmem:[#allocation76_spill] sm:$0xff]  ;;  %v3951_v55 = vor.u32 %v3950_v46, %v3946_v39  ;;  %v6738_v46 = vld [vmem:[%s11047_s3 + $0x18] sm:$0xff] }
 0x546   : > { %v2515_v36 = vadd.f32 %v11821_v32, %v11820_v53  ;;  %v3295_v0 = vadd.f32 %v9866_v24, %v3237_v16  ;;  %4774 = vmatpush.bf16.msrb.mxu1 %v6738_v46  ;;  %v11822_v39 = vld [vmem:[#allocation62_spill] sm:$0xff]  ;;  %v10034_v32 = vpop.f32.mrf.mxu1 }
 0x547   : > { %v3806_v31 = vpack.c.b16 %v3788_v60, %v3788_v60 }
 0x549   : > { %v3161_v41 = vpop.f32.mrf.mxu0  ;;  %v4081_v22 = vrot.slane %v3806_v31, 1  ;;  %v3953_v43 = vshll.u32 %v3806_v31, 16 }
 0x54a   : > { %v3162_v23 = vadd.f32 %v3161_v41, %v3018_v6 }
 0x54b   : > { %v3512_v47 = vld [vmem:[#allocation2 + $0x90] sm:$0x1]  ;;  %v10011_v59 = vsel %vm823_vm1, %v4080_v26, %v4081_v22  ;;  %v3955_v19 = vrot.slane %v3953_v43, 1 }
 0x54c   : > { %v3513_v8 = vsel %vm9493_vm4, 0, %v3512_v47  ;;  %v3238_v60 = vadd.f32 %v3162_v23, %v2515_v36  ;;  %v3349_v47 = vmax.f32 %v3295_v0, 0.0  ;;  %v3023_v36 = vadd.f32 %v9576_v62, %v9579_v28  ;;  %v10038_v23 = vpop.f32.mrf.mxu3  ;;  %v10042_v0 = vpop.f32.mrf.mxu2 }
 0x54d   : > { %3514 = vst [vmem:[#allocation2 + $0x90] sm:$0x1] %v3513_v8  ;;  %4595 = vmatmul.bf16.gmra.mxu3 %v10011_v59  ;;  %v10018_v31 = vsel %vm522_vm0, %v3951_v55, %v3955_v19  ;;  %v11824_v19 = vld [vmem:[#allocation108_spill] sm:$0xff]  ;;  %v11825_v8 = vld [vmem:[#allocation85_spill] sm:$0xff] }
 0x54e   : > { %v3296_v6 = vadd.f32 %v9866_v24, %v3238_v60  ;;  %11823 = vst [vmem:[#allocation20_spill] sm:$0xff] %v10038_v23  ;;  %v11837_v23 = vld [vmem:[#allocation96_spill] sm:$0xff] }
 0x54f   : > { %4506 = vmatmul.bf16.gmra.mxu2 %v10018_v31  ;;  %11826 = vst [vmem:[#allocation39_spill] sm:$0xff] %v10042_v0 }
 0x550   : > { %v3350_v16 = vmax.f32 %v3296_v6, 0.0 }
 0x551   : > { %v3164_v41 = vpop.f32.mrf.mxu0 }
 0x552   : > { %v6918_v26 = vpack.c.bf16 %v3350_v16, %v3349_v47  ;;  %v3165_v22 = vadd.f32 %v3164_v41, %v9592_v33  ;;  %v2520_v33 = vadd.f32 %v11825_v8, %v11824_v19  ;;  %v4393_v16 = vpop.f32.mrf.mxu1 }
 0x554   : > { %7056 = vst [vmem:[#allocation2 + $0x98] sm:$0xff] %v6918_v26   ;;  %v3239_v43 = vadd.f32 %v3165_v22, %v11822_v39  ;;  %5242 = vmatmul.bf16.gmra.mxu0 %v9628_v56  ;;  %v10031_v53 = vld [vmem:[#allocation2 + $0x90] sm:$0xff] }
 0x555   : > { %4422 = vmatmul.bf16.gmra.mxu1 %v10031_v53 }
 0x556   : > { %v3297_v47 = vadd.f32 %v9866_v24, %v3239_v43 }
 0x558   : > { %v3351_v41 = vmax.f32 %v3297_v47, 0.0  ;;  %v3028_v47 = vadd.f32 %v9602_v4, %v9605_v42 }
 0x559   : > { %v3166_v55 = vpop.f32.mrf.mxu0 }
 0x55a   : > { %v3167_v60 = vadd.f32 %v3166_v55, %v3023_v36 }
 0x55b   : > { %v3515_v15 = vld [vmem:[#allocation2 + $0x9c] sm:$0x1]  ;;  %v3568_v56 = vld [vmem:[#allocation2 + $0x98] sm:$0x1] }
 0x55c   : > { %v3516_v46 = vsel %vm9493_vm4, 0, %v3515_v15  ;;  %v3569_v6 = vsel %vm9538_vm6, 0, %v3568_v56  ;;  %v3240_v62 = vadd.f32 %v3167_v60, %v2520_v33  ;;  %v3960_v15 = vshll.u32 %v10031_v53, 16  ;;  %v11827_v56 = vld [vmem:[#allocation66_spill] sm:$0xff] }
 0x55d   : > { %3517 = vst [vmem:[#allocation2 + $0x9c] sm:$0x1] %v3516_v46 }
 0x55e   : > { %3570 = vst [vmem:[#allocation2 + $0x98] sm:$0x1] %v3569_v6  ;;  %v3298_v28 = vadd.f32 %v9866_v24, %v3240_v62  ;;  %v3962_v6 = vrot.slane %v3960_v15, 1 }
 0x560   : > { %v3352_v26 = vmax.f32 %v3298_v28, 0.0  ;;  %v4571_v22 = vpop.f32.mrf.mxu3  ;;  %v11828_v28 = vld [vmem:[#allocation64_spill] sm:$0xff] }
 0x561   : > { %v3169_v39 = vpop.f32.mrf.mxu0 }
 0x562   : > { %v6923_v36 = vpack.c.bf16 %v3352_v26, %v3351_v41  ;;  %v3170_v55 = vadd.f32 %v3169_v39, %v9613_v20  ;;  %v4482_v19 = vpop.f32.mrf.mxu2  ;;  %v11829_v20 = vld [vmem:[#allocation92_spill] sm:$0xff]  ;;  %v3958_v39 = vshrl.u32 %v10031_v53, 16 }
 0x563   : > { %v4483_v8 = vadd.f32 %v4482_v19, %v4393_v16  ;;  %v2525_v41 = vadd.f32 %v11829_v20, %v11828_v28  ;;  %v10060_v16 = vpop.f32.mrf.mxu1  ;;  %v6737_v20 = vld [vmem:[%s11047_s3 + $0x10] sm:$0xff] }
 0x564   : > { %7057 = vst [vmem:[#allocation2 + $0xa0] sm:$0xff] %v6923_v36   ;;  %v3241_v43 = vadd.f32 %v3170_v55, %v11827_v56  ;;  %5247 = vmatmul.bf16.gmra.mxu0 %v9674_v35  ;;  %v3963_v56 = vor.u32 %v3962_v6, %v3958_v39  ;;  %v6745_v6 = vld [vmem:[%s11047_s3 + $0x50] sm:$0xff]  ;;  %4775 = vmatpush.bf16.msrb.mxu1 %v6737_v20 }
 0x565   : > { %v3635_v33 = vld [vmem:[#allocation2 + $0x98] sm:$0xf]  ;;  %v10054_v60 = vadd.f32 %v4571_v22, %v4483_v8  ;;  %11830 = vst [vmem:[#allocation29_spill] sm:$0xff] %v10060_v16  ;;  %v4083_v22 = vrot.slane %v10031_v53, 1  ;;  %4864 = vmatpush.bf16.msrb.mxu2 %v6745_v6  ;;  %v11835_v16 = vld [vmem:[#allocation75_spill] sm:$0xff] }
 0x566   : > { %v3789_v46 = vunpack.c.l.b16 %v3635_v33  ;;  %v3299_v4 = vadd.f32 %v9866_v24, %v3241_v43 }
 0x568   : > { %v3807_v62 = vpack.c.b16 %v3789_v46, %v3789_v46  ;;  %v10063_v36 = vpop.f32.mrf.mxu3 }
 0x569   : > { %v3171_v26 = vpop.f32.mrf.mxu0  ;;  %11831 = vst [vmem:[#allocation71_spill] sm:$0xff] %v10063_v36 }
 0x56a   : > { %v3172_v35 = vadd.f32 %v3171_v26, %v3028_v47  ;;  %v10065_v55 = vpop.f32.mrf.mxu2  ;;  %v4084_v19 = vrot.slane %v3807_v62, 1  ;;  %v3965_v8 = vshll.u32 %v3807_v62, 16 }
 0x56b   : > { %11832 = vst [vmem:[#allocation41_spill] sm:$0xff] %v10065_v55  ;;  %v3571_v15 = vld [vmem:[#allocation2 + $0xa4] sm:$0x1]  ;;  %v10069_v42 = vld [vmem:[#allocation2 + $0x9c] sm:$0xff] }
 0x56c   : > { %v3572_v33 = vsel %vm9538_vm6, 0, %v3571_v15  ;;  %v3242_v46 = vadd.f32 %v3172_v35, %v2525_v41  ;;  %v10074_v28 = vsel %vm823_vm1, %v4083_v22, %v4084_v19  ;;  %v3967_v47 = vrot.slane %v3965_v8, 1  ;;  %4427 = vmatmul.bf16.gmra.mxu1 %v10069_v42  ;;  %v4398_v35 = vpop.f32.mrf.mxu1  ;;  %v11833_v19 = vld [vmem:[#allocation18_spill] sm:$0xff] }
 0x56d   : > { %3573 = vst [vmem:[#allocation2 + $0xa4] sm:$0x1] %v3572_v33  ;;  %4600 = vmatmul.bf16.gmra.mxu3 %v10074_v28  ;;  %v3353_v41 = vmax.f32 %v3299_v4, 0.0  ;;  %v3972_v33 = vshll.u32 %v10069_v42, 16 }
 0x56e   : > { %v3300_v62 = vadd.f32 %v9866_v24, %v3242_v46  ;;  %v10080_v43 = vsel %vm522_vm0, %v3963_v56, %v3967_v47  ;;  %v11834_v47 = vld [vmem:[#allocation100_spill] sm:$0xff] }
 0x56f   : > { %4511 = vmatmul.bf16.gmra.mxu2 %v10080_v43  ;;  %v3974_v20 = vrot.slane %v3972_v33, 1 }
 0x570   : > { %v3354_v26 = vmax.f32 %v3300_v62, 0.0  ;;  %v4576_v46 = vpop.f32.mrf.mxu3 }
 0x571   : > { %v3174_v39 = vpop.f32.mrf.mxu0 }
 0x572   : > { %v6928_v22 = vpack.c.bf16 %v3354_v26, %v3353_v41  ;;  %v3175_v8 = vadd.f32 %v3174_v39, %v11833_v19  ;;  %v4487_v15 = vpop.f32.mrf.mxu2  ;;  %v11836_v41 = vld [vmem:[#allocation87_spill] sm:$0xff] }
 0x573   : > { %v4488_v56 = vadd.f32 %v4487_v15, %v4398_v35  ;;  %v3033_v26 = vadd.f32 %v11836_v41, %v11835_v16  ;;  %v4086_v35 = vrot.slane %v10069_v42, 1 }
 0x574   : > { %7058 = vst [vmem:[#allocation2 + $0xa8] sm:$0xff] %v6928_v22   ;;  %v3243_v36 = vadd.f32 %v3175_v8, %v11834_v47  ;;  %5252 = vmatmul.bf16.gmra.mxu0 %v9699_v34  ;;  %v3638_v55 = vld [vmem:[#allocation2 + $0xa4] sm:$0xf]  ;;  %v3970_v22 = vshrl.u32 %v10069_v42, 16  ;;  %v11838_v8 = vld [vmem:[#allocation77_spill] sm:$0xff] }
 0x575   : > { %v3790_v4 = vunpack.c.l.b16 %v3638_v55  ;;  %v10093_v62 = vadd.f32 %v4576_v46, %v4488_v56  ;;  %v2530_v47 = vadd.f32 %v11838_v8, %v11837_v23 }
 0x576   : > { %v3975_v56 = vor.u32 %v3974_v20, %v3970_v22  ;;  %v3301_v46 = vadd.f32 %v9866_v24, %v3243_v36  ;;  %v10119_v22 = vpop.f32.mrf.mxu1 }
 0x577   : > { %v3808_v6 = vpack.c.b16 %v3790_v4, %v3790_v4 }
 0x578   : > { %v3355_v41 = vmax.f32 %v3301_v46, 0.0  ;;  %v10123_v8 = vpop.f32.mrf.mxu3 }
 0x579   : > { %v3176_v39 = vpop.f32.mrf.mxu0  ;;  %v4087_v19 = vrot.slane %v3808_v6, 1  ;;  %v3977_v15 = vshll.u32 %v3808_v6, 16  ;;  %11840 = vst [vmem:[#allocation9_spill] sm:$0xff] %v10123_v8 }
 0x57a   : > { %v3177_v34 = vadd.f32 %v3176_v39, %v3033_v26 }
 0x57b   : > { %v3518_v0 = vld [vmem:[#allocation2 + $0xa8] sm:$0x1]  ;;  %v10102_v55 = vsel %vm823_vm1, %v4086_v35, %v4087_v19  ;;  %v3979_v33 = vrot.slane %v3977_v15, 1  ;;  %v3038_v15 = vadd.f32 %v9652_v61, %v9654_v49 }
 0x57c   : > { %v3519_v16 = vsel %vm9493_vm4, 0, %v3518_v0  ;;  %v3244_v4 = vadd.f32 %v3177_v34, %v2530_v47  ;;  %v11839_v0 = vld [vmem:[#allocation68_spill] sm:$0xff]  ;;  %v11841_v34 = vld [vmem:[#allocation93_spill] sm:$0xff] }
 0x57d   : > { %3520 = vst [vmem:[#allocation2 + $0xa8] sm:$0x1] %v3519_v16  ;;  %4605 = vmatmul.bf16.gmra.mxu3 %v10102_v55  ;;  %v10109_v6 = vsel %vm522_vm0, %v3975_v56, %v3979_v33  ;;  %v11842_v56 = vld [vmem:[#allocation11_spill] sm:$0xff]  ;;  %v10127_v33 = vpop.f32.mrf.mxu2  ;;  %v6744_v49 = vld [vmem:[%s11047_s3 + $0x48] sm:$0xff] }
 0x57e   : > { %v3302_v23 = vadd.f32 %v9866_v24, %v3244_v4  ;;  %4865 = vmatpush.bf16.msrb.mxu2 %v6744_v49  ;;  %v11844_v49 = vld [vmem:[#allocation126_spill] sm:$0xff] }
 0x57f   : > { %4516 = vmatmul.bf16.gmra.mxu2 %v10109_v6 }
 0x580   : > { %v3356_v26 = vmax.f32 %v3302_v23, 0.0 }
 0x581   : > { %v3179_v20 = vpop.f32.mrf.mxu0 }
 0x582   : > { %v6933_v39 = vpack.c.bf16 %v3356_v26, %v3355_v41  ;;  %v3180_v35 = vadd.f32 %v3179_v20, %v9667_v7  ;;  %v2535_v7 = vadd.f32 %v11842_v56, %v11841_v34  ;;  %v6736_v26 = vld [vmem:[%s11047_s3 + $0x8] sm:$0xff] }
 0x583   : > { %4776 = vmatpush.bf16.msrb.mxu1 %v6736_v26  ;;  %v3043_v26 = vadd.f32 %v11844_v49, %v9689_v48 }
 0x584   : > { %7059 = vst [vmem:[#allocation2 + $0xb0] sm:$0xff] %v6933_v39   ;;  %v3245_v36 = vadd.f32 %v3180_v35, %v11839_v0  ;;  %5257 = vmatmul.bf16.gmra.mxu0 %v9745_v9  ;;  %v10116_v19 = vld [vmem:[#allocation2 + $0xa8] sm:$0xff]  ;;  %v4403_v39 = vpop.f32.mrf.mxu1 }
 0x585   : > { %4432 = vmatmul.bf16.gmra.mxu1 %v10116_v19 }
 0x586   : > { %v3303_v41 = vadd.f32 %v9866_v24, %v3245_v36 }
 0x588   : > { %v3357_v35 = vmax.f32 %v3303_v41, 0.0 }
 0x589   : > { %v3181_v47 = vpop.f32.mrf.mxu0 }
 0x58a   : > { %v3182_v16 = vadd.f32 %v3181_v47, %v3038_v15 }
 0x58b   : > { %v3521_v46 = vld [vmem:[#allocation2 + $0xb4] sm:$0x1]  ;;  %v3574_v9 = vld [vmem:[#allocation2 + $0xb0] sm:$0x1] }
 0x58c   : > { %v3522_v4 = vsel %vm9493_vm4, 0, %v3521_v46  ;;  %v3575_v23 = vsel %vm9538_vm6, 0, %v3574_v9  ;;  %v3246_v61 = vadd.f32 %v3182_v16, %v2535_v7  ;;  %v3984_v16 = vshll.u32 %v10116_v19, 16  ;;  %v11843_v46 = vld [vmem:[#allocation114_spill] sm:$0xff] }
 0x58d   : > { %3523 = vst [vmem:[#allocation2 + $0xb4] sm:$0x1] %v3522_v4 }
 0x58e   : > { %3576 = vst [vmem:[#allocation2 + $0xb0] sm:$0x1] %v3575_v23  ;;  %v3304_v20 = vadd.f32 %v9866_v24, %v3246_v61  ;;  %v3986_v41 = vrot.slane %v3984_v16, 1 }
 0x590   : > { %v3358_v0 = vmax.f32 %v3304_v20, 0.0  ;;  %v4581_v15 = vpop.f32.mrf.mxu3 }
 0x591   : > { %v3184_v36 = vpop.f32.mrf.mxu0 }
 0x592   : > { %v6938_v47 = vpack.c.bf16 %v3358_v0, %v3357_v35  ;;  %v3185_v34 = vadd.f32 %v3184_v36, %v9684_v63  ;;  %v4492_v56 = vpop.f32.mrf.mxu2  ;;  %v11845_v35 = vld [vmem:[#allocation82_spill] sm:$0xff]  ;;  %v11846_v63 = vld [vmem:[#allocation101_spill] sm:$0xff] }
 0x593   : > { %v4493_v7 = vadd.f32 %v4492_v56, %v4403_v39  ;;  %v2540_v0 = vadd.f32 %v11846_v63, %v11845_v35  ;;  %v10151_v39 = vpop.f32.mrf.mxu1 }
 0x594   : > { %7060 = vst [vmem:[#allocation2 + $0xb8] sm:$0xff] %v6938_v47   ;;  %v3247_v9 = vadd.f32 %v3185_v34, %v11843_v46  ;;  %5262 = vmatmul.bf16.gmra.mxu0 %v9776_v14  ;;  %v3982_v47 = vshrl.u32 %v10116_v19, 16 }
 0x595   : > { %v3641_v4 = vld [vmem:[#allocation2 + $0xb0] sm:$0xf]  ;;  %v10145_v23 = vadd.f32 %v4581_v15, %v4493_v7  ;;  %11847 = vst [vmem:[#allocation50_spill] sm:$0xff] %v10151_v39  ;;  %v4089_v15 = vrot.slane %v10116_v19, 1 }
 0x596   : > { %v3791_v61 = vunpack.c.l.b16 %v3641_v4  ;;  %v3305_v48 = vadd.f32 %v9866_v24, %v3247_v9 }
 0x598   : > { %v3809_v20 = vpack.c.b16 %v3791_v61, %v3791_v61  ;;  %v10154_v34 = vpop.f32.mrf.mxu3  ;;  %v3987_v61 = vor.u32 %v3986_v41, %v3982_v47  ;;  %v6757_v47 = vld [vmem:[%s11047_s3 + $0xb0] sm:$0xff] }
 0x599   : > { %v3186_v36 = vpop.f32.mrf.mxu0  ;;  %11848 = vst [vmem:[#allocation23_spill] sm:$0xff] %v10154_v34 }
 0x59a   : > { %v3187_v14 = vadd.f32 %v3186_v36, %v3043_v26  ;;  %v10156_v56 = vpop.f32.mrf.mxu2  ;;  %v4090_v7 = vrot.slane %v3809_v20, 1  ;;  %v3989_v16 = vshll.u32 %v3809_v20, 16  ;;  %v6758_v36 = vld [vmem:[%s11047_s3 + $0xb8] sm:$0xff]  ;;  %v3359_v20 = vmax.f32 %v3305_v48, 0.0 }
 0x59b   : > { %11849 = vst [vmem:[#allocation84_spill] sm:$0xff] %v10156_v56  ;;  %v3577_v46 = vld [vmem:[#allocation2 + $0xbc] sm:$0x1]  ;;  %v10160_v4 = vld [vmem:[#allocation2 + $0xb4] sm:$0xff]  ;;  %4948 = vmatpush.bf16.msrb.mxu3 %v6758_v36 }
 0x59c   : > { %v3578_v49 = vsel %vm9538_vm6, 0, %v3577_v46  ;;  %v3248_v35 = vadd.f32 %v3187_v14, %v2540_v0  ;;  %v10165_v63 = vsel %vm823_vm1, %v4089_v15, %v4090_v7  ;;  %v3991_v26 = vrot.slane %v3989_v16, 1  ;;  %4437 = vmatmul.bf16.gmra.mxu1 %v10160_v4  ;;  %v4408_v15 = vpop.f32.mrf.mxu1 }
 0x59d   : > { %3579 = vst [vmem:[#allocation2 + $0xbc] sm:$0x1] %v3578_v49  ;;  %4610 = vmatmul.bf16.gmra.mxu3 %v10165_v63 }
 0x59e   : > { %v3306_v9 = vadd.f32 %v9866_v24, %v3248_v35  ;;  %v10174_v41 = vsel %vm522_vm0, %v3987_v61, %v3991_v26  ;;  %v6735_v61 = vld [vmem:[%s11047_s3] sm:$0xff]  ;;  %v3996_v35 = vshll.u32 %v10160_v4, 16  ;;  %v11850_v26 = vld [vmem:[#allocation69_spill] sm:$0xff] }
 0x59f   : > { %4521 = vmatmul.bf16.gmra.mxu2 %v10174_v41  ;;  %4949 = vmatpush.bf16.msrb.mxu3 %v6757_v47 }
 0x5a0   : > { %v3360_v0 = vmax.f32 %v3306_v9, 0.0  ;;  %v4586_v48 = vpop.f32.mrf.mxu3  ;;  %4777 = vmatpush.bf16.msrb.mxu1 %v6735_v61 }
 0x5a1   : > { %v3189_v14 = vpop.f32.mrf.mxu0 }
 0x5a2   : > { %v6943_v7 = vpack.c.bf16 %v3360_v0, %v3359_v20  ;;  %v3190_v16 = vadd.f32 %v3189_v14, %v9713_v29  ;;  %v4497_v46 = vpop.f32.mrf.mxu2  ;;  %v6756_v29 = vld [vmem:[%s11047_s3 + $0xa8] sm:$0xff]  ;;  %v3998_v14 = vrot.slane %v3996_v35, 1 }
 0x5a3   : > { %v4498_v49 = vadd.f32 %v4497_v46, %v4408_v15  ;;  %4950 = vmatpush.bf16.msrb.mxu3 %v6756_v29  ;;  %v11851_v15 = vld [vmem:[#allocation120_spill] sm:$0xff]  ;;  %v4092_v46 = vrot.slane %v10160_v4, 1 }
 0x5a4   : > { %7061 = vst [vmem:[#allocation2 + $0xc0] sm:$0xff] %v6943_v7   ;;  %v3249_v36 = vadd.f32 %v3190_v16, %v11850_v26  ;;  %5267 = vmatmul.bf16.gmra.mxu0 %v9822_v13  ;;  %v3644_v9 = vld [vmem:[#allocation2 + $0xbc] sm:$0xf]  ;;  %v3048_v7 = vadd.f32 %v11851_v15, %v9719_v57  ;;  %v6755_v16 = vld [vmem:[%s11047_s3 + $0xa0] sm:$0xff]  ;;  %v3994_v26 = vshrl.u32 %v10160_v4, 16 }
 0x5a5   : > { %v3792_v20 = vunpack.c.l.b16 %v3644_v9  ;;  %v10190_v0 = vadd.f32 %v4586_v48, %v4498_v49  ;;  %v11852_v9 = vld [vmem:[#allocation83_spill] sm:$0xff]  ;;  %v11853_v49 = vld [vmem:[#allocation102_spill] sm:$0xff] }
 0x5a6   : > { %v2545_v48 = vadd.f32 %v11853_v49, %v11852_v9  ;;  %v3999_v57 = vor.u32 %v3998_v14, %v3994_v26  ;;  %v3307_v39 = vadd.f32 %v9866_v24, %v3249_v36  ;;  %v10231_v49 = vpop.f32.mrf.mxu1 }
 0x5a7   : > { %v3810_v47 = vpack.c.b16 %v3792_v20, %v3792_v20  ;;  %4951 = vmatpush.bf16.msrb.mxu3 %v6755_v16 }
 0x5a8   : > { %v3361_v36 = vmax.f32 %v3307_v39, 0.0  ;;  %v6752_v39 = vld [vmem:[%s11047_s3 + $0x88] sm:$0xff] }
 0x5a9   : > { %v3191_v13 = vpop.f32.mrf.mxu0  ;;  %v4093_v61 = vrot.slane %v3810_v47, 1  ;;  %v4001_v34 = vshll.u32 %v3810_v47, 16  ;;  %v6754_v47 = vld [vmem:[%s11047_s3 + $0x98] sm:$0xff] }
 0x5aa   : > { %v3192_v29 = vadd.f32 %v3191_v13, %v3048_v7 }
 0x5ab   : > { %v3524_v35 = vld [vmem:[#allocation2 + $0xc0] sm:$0x1]  ;;  %v10202_v20 = vsel %vm823_vm1, %v4092_v46, %v4093_v61  ;;  %v4003_v15 = vrot.slane %v4001_v34, 1  ;;  %4952 = vmatpush.bf16.msrb.mxu3 %v6754_v47  ;;  %v10242_v47 = vpop.f32.mrf.mxu2 }
 0x5ac   : > { %v3525_v56 = vsel %vm9493_vm4, 0, %v3524_v35  ;;  %v3250_v8 = vadd.f32 %v3192_v29, %v2545_v48  ;;  %v6743_v34 = vld [vmem:[%s11047_s3 + $0x40] sm:$0xff]  ;;  %v10235_v48 = vpop.f32.mrf.mxu3 }
 0x5ad   : > { %3526 = vst [vmem:[#allocation2 + $0xc0] sm:$0x1] %v3525_v56  ;;  %4615 = vmatmul.bf16.gmra.mxu3 %v10202_v20  ;;  %v10212_v7 = vsel %vm522_vm0, %v3999_v57, %v4003_v15  ;;  %4866 = vmatpush.bf16.msrb.mxu2 %v6743_v34  ;;  %v6753_v56 = vld [vmem:[%s11047_s3 + $0x90] sm:$0xff]  ;;  %v11856_v35 = vld [vmem:[#allocation107_spill] sm:$0xff] }
 0x5ae   : > { %v3308_v16 = vadd.f32 %v9866_v24, %v3250_v8  ;;  %v11854_v8 = vld [vmem:[#allocation72_spill] sm:$0xff]  ;;  %11855 = vst [vmem:[#allocation14_spill] sm:$0xff] %v10235_v48  ;;  %v11857_v57 = vld [vmem:[#allocation103_spill] sm:$0xff] }
 0x5af   : > { %4526 = vmatmul.bf16.gmra.mxu2 %v10212_v7  ;;  %4953 = vmatpush.bf16.msrb.mxu3 %v6753_v56  ;;  %v2550_v15 = vadd.f32 %v11857_v57, %v11856_v35  ;;  %v6717_v35 = vld [vmem:[#allocation2] sm:$0xff]  ;;  %v11894_v48 = vld [vmem:[#allocation52_spill] sm:$0xff] }
 0x5b0   : > { %v3362_v14 = vmax.f32 %v3308_v16, 0.0 }
 0x5b1   : > { %v3194_v13 = vpop.f32.mrf.mxu0 }
 0x5b2   : > { %v6948_v46 = vpack.c.bf16 %v3362_v14, %v3361_v36  ;;  %v3195_v61 = vadd.f32 %v3194_v13, %v9738_v38  ;;  %v3053_v38 = vadd.f32 %v9770_v2, %v9766_v11 }
 0x5b3   : > { %4954 = vmatpush.bf16.msrb.mxu3 %v6752_v39 }
 0x5b4   : > { %7062 = vst [vmem:[#allocation2 + $0xc8] sm:$0xff] %v6948_v46   ;;  %v3251_v26 = vadd.f32 %v3195_v61, %v11854_v8  ;;  %5272 = vmatmul.bf16.gmra.mxu0 %v9869_v51  ;;  %v10225_v9 = vld [vmem:[#allocation2 + $0xc0] sm:$0xff]  ;;  %v4413_v46 = vpop.f32.mrf.mxu1  ;;  %v11858_v61 = vmov 0   ;;  %v6806_v8 = vld [vmem:[%s11047_s3 + $0x238] sm:$0xff] }
 0x5b5   : > { %4442 = vmatmul.bf16.gmra.mxu1 %v10225_v9  ;;  %v6751_v51 = vld [vmem:[%s11047_s3 + $0x80] sm:$0xff]  ;;  %5407 = vmatpush.bf16.msra.mxu2 %v6806_v8  ;;  %v4006_v8 = vshrl.u32 %v10225_v9, 16 }
 0x5b6   : > { %v3309_v2 = vadd.f32 %v9866_v24, %v3251_v26  ;;  %v6798_v26 = vld [vmem:[%s11047_s3 + $0x1f8] sm:$0xff] }
 0x5b7   : > { %4955 = vmatpush.bf16.msrb.mxu3 %v6751_v51  ;;  %5318 = vmatpush.bf16.msra.mxu1 %v6798_v26 }
 0x5b8   : > { %v3363_v39 = vmax.f32 %v3309_v2, 0.0 }
 0x5b9   : > { %v3196_v29 = vpop.f32.mrf.mxu0 }
 0x5ba   : > { %v3197_v16 = vadd.f32 %v3196_v29, %v3053_v38 }
 0x5bb   : > { %v3527_v34 = vld [vmem:[#allocation2 + $0xcc] sm:$0x1]  ;;  %v3580_v36 = vld [vmem:[#allocation2 + $0xc8] sm:$0x1] }
 0x5bc   : > { %v3528_v14 = vsel %vm9493_vm4, 0, %v3527_v34  ;;  %v3581_v11 = vsel %vm9538_vm6, 0, %v3580_v36  ;;  %v3252_v56 = vadd.f32 %v3197_v16, %v2550_v15  ;;  %v10262_v2 = vpop.f32.mrf.mxu1 }
 0x5bd   : > { %3529 = vst [vmem:[#allocation2 + $0xcc] sm:$0x1] %v3528_v14 }
 0x5be   : > { %3582 = vst [vmem:[#allocation2 + $0xc8] sm:$0x1] %v3581_v11  ;;  %v3310_v13 = vadd.f32 %v9866_v24, %v3252_v56  ;;  %v4008_v24 = vshll.u32 %v10225_v9, 16  ;;  %v3599_v11 = vld [vmem:[#allocation2 + $0x8] sm:$0xf] }
 0x5bf   : > { %3594 = vst [vmem:[#allocation2 + $0xcc] sm:$0xf] %v11858_v61 }
 0x5c0   : > { %v3364_v37 = vmax.f32 %v3310_v13, 0.0  ;;  %v4591_v38 = vpop.f32.mrf.mxu3  ;;  %v4010_v14 = vrot.slane %v4008_v24, 1  ;;  %11859 = vst [vmem:[#allocation40_spill] sm:$0xff] %v10262_v2  ;;  %v11892_v2 = vld [vmem:[#allocation130_spill] sm:$0xff] }
 0x5c2   : > { %v6953_v51 = vpack.c.bf16 %v3364_v37, %v3363_v39  ;;  %v4502_v29 = vpop.f32.mrf.mxu2 }
 0x5c3   : > { %v4503_v57 = vadd.f32 %v4502_v29, %v4413_v46  ;;  %v4011_v29 = vor.u32 %v4010_v14, %v4006_v8  ;;  %v3814_v14 = vshrl.u32 %v6717_v35, 16 }
 0x5c4   : > { %7063 = vst [vmem:[#allocation2 + $0xd0] sm:$0xff] %v6953_v51   ;;  %5277 = vmatmul.bf16.gmra.mxu0 %v9940_v5  ;;  %v4095_v5 = vrot.slane %v10225_v9, 1 }
 0x5c5   : > { %3595 = vst [vmem:[#allocation2 + $0xd0] sm:$0xf] %v11858_v61  ;;  %v3647_v15 = vld [vmem:[#allocation2 + $0xc8] sm:$0xf]  ;;  %v10260_v16 = vadd.f32 %v4591_v38, %v4503_v57  ;;  %4778 = vmatmul.bf16.vlgmr.msrb.gmra.mxu1 %v6717_v35  ;;  %v3777_v38 = vunpack.c.l.b16 %v3599_v11 }
 0x5c6   : > { %v3793_v34 = vunpack.c.l.b16 %v3647_v15 }
 0x5c7   : > { %v3795_v15 = vpack.c.b16 %v3777_v38, %v3777_v38 }
 0x5c8   : > { %v3811_v36 = vpack.c.b16 %v3793_v34, %v3793_v34  ;;  %v10264_v56 = vpop.f32.mrf.mxu3  ;;  %v3816_v34 = vshll.u32 %v6717_v35, 16 }
 0x5c9   : > { %11860 = vst [vmem:[#allocation90_spill] sm:$0xff] %v10264_v56 }
 0x5ca   : > { %v10266_v13 = vpop.f32.mrf.mxu2  ;;  %v4096_v46 = vrot.slane %v3811_v36, 1  ;;  %v4013_v39 = vshll.u32 %v3811_v36, 16  ;;  %v4418_v36 = vpop.f32.mrf.mxu1 }
 0x5cb   : > { %11861 = vst [vmem:[#allocation24_spill] sm:$0xff] %v10266_v13  ;;  %v3583_v37 = vld [vmem:[#allocation2 + $0xd4] sm:$0x1] }
 0x5cc   : > { %v3584_v26 = vsel %vm9538_vm6, 0, %v3583_v37  ;;  %v10273_v51 = vsel %vm823_vm1, %v4095_v5, %v4096_v46  ;;  %v4015_v57 = vrot.slane %v4013_v39, 1  ;;  %v3818_v5 = vrot.slane %v3816_v34, 1  ;;  %v7161_v39 = vld [vmem:[#allocation2 + $0xc] sm:$0xff] }
 0x5cd   : > { %11862 = vst [vmem:[#allocation12_spill] sm:$0xff] %v10273_v51  ;;  %4620 = vmatmul.bf16.gmra.mxu3 %v10273_v51  ;;  %v3821_v46 = vshll.u32 %v3795_v15, 16 }
 0x5ce   : > { %3585 = vst [vmem:[#allocation2 + $0xd4] sm:$0x1] %v3584_v26  ;;  %v10278_v24 = vsel %vm522_vm0, %v4011_v29, %v4015_v57  ;;  %v4048_v26 = vrot.slane %v3795_v15, 1  ;;  %v3819_v29 = vor.u32 %v3818_v5, %v3814_v14  ;;  %v7162_v15 = vld [vmem:[#allocation2 + $0x18] sm:$0xff]  ;;  %v10301_v5 = vpop.f32.mrf.mxu0 }
 0x5cf   : > { %3596 = vst [vmem:[#allocation2 + $0xd4] sm:$0xf] %v11858_v61  ;;  %4531 = vmatmul.bf16.gmra.mxu2 %v10278_v24  ;;  %v4047_v61 = vrot.slane %v6717_v35, 1  ;;  %v3823_v57 = vrot.slane %v3821_v46, 1  ;;  %v6797_v35 = vld [vmem:[%s11047_s3 + $0x1f0] sm:$0xff] }
 0x5d0   : > { %11863 = vst [vmem:[#allocation15_spill] sm:$0xff] %v10278_v24  ;;  %v4596_v37 = vpop.f32.mrf.mxu3  ;;  %5319 = vmatpush.bf16.msra.mxu1 %v6797_v35 }
 0x5d1   : > { %v4049_v38 = vsel %vm823_vm1, %v4047_v61, %v4048_v26  ;;  %v3824_v51 = vsel %vm522_vm0, %v3819_v29, %v3823_v57  ;;  %11869 = vst [vmem:[#allocation104_spill] sm:$0xff] %v10301_v5  ;;  %v7163_v29 = vld [vmem:[#allocation2 + $0x24] sm:$0xff] }
 0x5d2   : > { %v4507_v3 = vpop.f32.mrf.mxu2  ;;  %v10289_v34 = vpop.f32.mrf.mxu1 }
 0x5d3   : > { %v4508_v11 = vadd.f32 %v4507_v3, %v4418_v36  ;;  %11864 = vst [vmem:[#allocation91_spill] sm:$0xff] %v10289_v34 }
 0x5d4   : > { %5282 = vmatmul.bf16.gmra.mxu0 %v9984_v45  ;;  %v6805_v45 = vld [vmem:[%s11047_s3 + $0x230] sm:$0xff] }
 0x5d5   : > { %v10282_v8 = vadd.f32 %v4596_v37, %v4508_v11  ;;  %4783 = vmatmul.bf16.gmra.mxu1 %v7161_v39  ;;  %5408 = vmatpush.bf16.msra.mxu2 %v6805_v45  ;;  %v11867_v11 = vld [vmem:[#allocation115_spill] sm:$0xff]  ;;  %v11868_v37 = vld [vmem:[#allocation97_spill] sm:$0xff] }
 0x5d6   : > { %v10312_v45 = vpop.f32.mrf.mxu0 }
 0x5d7   : > { %11874 = vst [vmem:[#allocation6_spill] sm:$0xff] %v10312_v45  ;;  %v7164_v45 = vld [vmem:[#allocation2 + $0x30] sm:$0xff] }
 0x5d8   : > { %v10295_v36 = vpop.f32.mrf.mxu3 }
 0x5d9   : > { %11865 = vst [vmem:[#allocation28_spill] sm:$0xff] %v10295_v36 }
 0x5da   : > { %v10297_v3 = vpop.f32.mrf.mxu2 }
 0x5db   : > { %11866 = vst [vmem:[#allocation111_spill] sm:$0xff] %v10297_v3  ;;  %v7166_v3 = vld [vmem:[#allocation2 + $0x48] sm:$0xff] }
 0x5dd   : > { %4956 = vmatmul.bf16.vlgmr.msrb.gmra.mxu3 %v4049_v38 }
 0x5de   : > { %v10325_v24 = vpop.f32.mrf.mxu0 }
 0x5df   : > { %4867 = vmatmul.bf16.vlgmr.msrb.gmra.mxu2 %v3824_v51  ;;  %v4423_v51 = vpop.f32.mrf.mxu1  ;;  %11878 = vst [vmem:[#allocation36_spill] sm:$0xff] %v10325_v24 }
 0x5e4   : > { %5287 = vmatmul.bf16.gmra.mxu0 %v10031_v53 }
 0x5e5   : > { %4788 = vmatmul.bf16.gmra.mxu1 %v7162_v15  ;;  %v11875_v15 = vld [vmem:[#allocation106_spill] sm:$0xff] }
 0x5e7   : > { %v10304_v61 = vpop.f32.mrf.mxu1 }
 0x5e8   : > { %11870 = vst [vmem:[#allocation22_spill] sm:$0xff] %v10304_v61  ;;  %v6803_v61 = vld [vmem:[%s11047_s3 + $0x220] sm:$0xff] }
 0x5ed   : > { %4961 = vmatmul.bf16.gmra.mxu3 %v11867_v11  ;;  %v11876_v11 = vld [vmem:[#allocation109_spill] sm:$0xff] }
 0x5ef   : > { %4872 = vmatmul.bf16.gmra.mxu2 %v11868_v37  ;;  %v4428_v35 = vpop.f32.mrf.mxu1 }
 0x5f0   : > { %v4601_v14 = vpop.f32.mrf.mxu3 }
 0x5f2   : > { %v4512_v46 = vpop.f32.mrf.mxu2 }
 0x5f3   : > { %v4513_v39 = vadd.f32 %v4512_v46, %v4423_v51  ;;  %v6804_v51 = vld [vmem:[%s11047_s3 + $0x228] sm:$0xff] }
 0x5f4   : > { %5292 = vmatmul.bf16.gmra.mxu0 %v10069_v42  ;;  %5409 = vmatpush.bf16.msra.mxu2 %v6804_v51  ;;  %v6796_v46 = vld [vmem:[%s11047_s3 + $0x1e8] sm:$0xff] }
 0x5f5   : > { %v10306_v26 = vadd.f32 %v4601_v14, %v4513_v39  ;;  %4793 = vmatmul.bf16.gmra.mxu1 %v7163_v29 }
 0x5f6   : > { %5320 = vmatpush.bf16.msra.mxu1 %v6796_v46 }
 0x5f7   : > { %11871 = vst [vmem:[#allocation32_spill] sm:$0xff] %v10306_v26  ;;  %v10327_v5 = vpop.f32.mrf.mxu1 }
 0x5f8   : > { %v10308_v57 = vpop.f32.mrf.mxu3  ;;  %11879 = vst [vmem:[#allocation44_spill] sm:$0xff] %v10327_v5  ;;  %v11887_v5 = vld [vmem:[#allocation98_spill] sm:$0xff]  ;;  %5410 = vmatpush.bf16.msra.mxu2 %v6803_v61  ;;  %v11890_v61 = vld [vmem:[#allocation113_spill] sm:$0xff] }
 0x5f9   : > { %11872 = vst [vmem:[#allocation33_spill] sm:$0xff] %v10308_v57  ;;  %v11880_v57 = vld [vmem:[#allocation80_spill] sm:$0xff] }
 0x5fa   : > { %v10310_v38 = vpop.f32.mrf.mxu2 }
 0x5fb   : > { %11873 = vst [vmem:[#allocation105_spill] sm:$0xff] %v10310_v38  ;;  %v7165_v38 = vld [vmem:[#allocation2 + $0x3c] sm:$0xff] }
 0x5fd   : > { %4966 = vmatmul.bf16.gmra.mxu3 %v11875_v15 }
 0x5ff   : > { %4877 = vmatmul.bf16.gmra.mxu2 %v11876_v11 }
 0x600   : > { %v4606_v39 = vpop.f32.mrf.mxu3 }
 0x602   : > { %v4517_v37 = vpop.f32.mrf.mxu2  ;;  %v4433_v51 = vpop.f32.mrf.mxu1 }
 0x603   : > { %v4518_v14 = vadd.f32 %v4517_v37, %v4428_v35  ;;  %v11881_v35 = vld [vmem:[#allocation112_spill] sm:$0xff]  ;;  %v10331_v37 = vpop.f32.mrf.mxu0 }
 0x604   : > { %5297 = vmatmul.bf16.gmra.mxu0 %v10116_v19  ;;  %11882 = vst [vmem:[#allocation45_spill] sm:$0xff] %v10331_v37 }
 0x605   : > { %v10323_v29 = vadd.f32 %v4606_v39, %v4518_v14  ;;  %4798 = vmatmul.bf16.gmra.mxu1 %v7164_v45  ;;  %v11886_v45 = vld [vmem:[#allocation110_spill] sm:$0xff] }
 0x607   : > { %11877 = vst [vmem:[#allocation27_spill] sm:$0xff] %v10323_v29 }
 0x608   : > { %v10334_v46 = vpop.f32.mrf.mxu3 }
 0x609   : > { %11883 = vst [vmem:[#allocation26_spill] sm:$0xff] %v10334_v46 }
 0x60a   : > { %v4435_v14 = vpop.f32.mrf.mxu1  ;;  %v10338_v24 = vpop.f32.mrf.mxu2 }
 0x60b   : > { %v10336_v39 = vpop.f32.mrf.mxu0  ;;  %11885 = vst [vmem:[#allocation31_spill] sm:$0xff] %v10338_v24 }
 0x60c   : > { %11884 = vst [vmem:[#allocation30_spill] sm:$0xff] %v10336_v39 }
 0x60d   : > { %4971 = vmatmul.bf16.gmra.mxu3 %v11880_v57 }
 0x60f   : > { %4882 = vmatmul.bf16.gmra.mxu2 %v11881_v35 }
 0x613   : > { %v10348_v39 = vpop.f32.mrf.mxu0 }
 0x614   : > { %5302 = vmatmul.bf16.gmra.mxu0 %v10160_v4  ;;  %11888 = vst [vmem:[#allocation21_spill] sm:$0xff] %v10348_v39 }
 0x615   : > { %4803 = vmatmul.bf16.gmra.mxu1 %v7165_v38  ;;  %v6795_v38 = vld [vmem:[%s11047_s3 + $0x1e0] sm:$0xff] }
 0x616   : > { %5321 = vmatpush.bf16.msra.mxu1 %v6795_v38 }
 0x619   : > { %v4438_v36 = vpop.f32.mrf.mxu1 }
 0x61d   : > { %4976 = vmatmul.bf16.gmra.mxu3 %v11886_v45 }
 0x61f   : > { %4887 = vmatmul.bf16.gmra.mxu2 %v11887_v5 }
 0x620   : > { %v4611_v37 = vpop.f32.mrf.mxu3 }
 0x621   : > { %v4440_v56 = vpop.f32.mrf.mxu1 }
 0x622   : > { %v4522_v46 = vpop.f32.mrf.mxu2 }
 0x623   : > { %v4523_v29 = vadd.f32 %v4522_v46, %v4433_v51 }
 0x624   : > { %5307 = vmatmul.bf16.gmra.mxu0 %v10225_v9  ;;  %v7167_v9 = vld [vmem:[#allocation2 + $0x54] sm:$0xff] }
 0x625   : > { %v10351_v24 = vadd.f32 %v4611_v37, %v4523_v29  ;;  %4808 = vmatmul.bf16.gmra.mxu1 %v7166_v3 }
 0x627   : > { %11889 = vst [vmem:[#allocation34_spill] sm:$0xff] %v10351_v24 }
 0x628   : > { %v4613_v34 = vpop.f32.mrf.mxu3 }
 0x62a   : > { %v4524_v45 = vpop.f32.mrf.mxu2 }
 0x62b   : > { %v4525_v26 = vadd.f32 %v4524_v45, %v4435_v14 }
 0x62d   : > { %4981 = vmatmul.bf16.gmra.mxu3 %v11890_v61  ;;  %v10354_v13 = vadd.f32 %v4613_v34, %v4525_v26  ;;  %v11896_v34 = vld [vmem:[#allocation131_spill] sm:$0xff]  ;;  %v6802_v26 = vld [vmem:[%s11047_s3 + $0x218] sm:$0xff] }
 0x62e   : > { %5411 = vmatpush.bf16.msra.mxu2 %v6802_v26 }
 0x62f   : > { %11891 = vst [vmem:[#allocation60_spill] sm:$0xff] %v10354_v13  ;;  %4892 = vmatmul.bf16.gmra.mxu2 %v11892_v2 }
 0x630   : > { %v4616_v51 = vpop.f32.mrf.mxu3 }
 0x632   : > { %v4527_v46 = vpop.f32.mrf.mxu2  ;;  %v4443_v39 = vpop.f32.mrf.mxu1 }
 0x633   : > { %v4528_v38 = vadd.f32 %v4527_v46, %v4438_v36 }
 0x635   : > { %v10357_v57 = vadd.f32 %v4616_v51, %v4528_v38  ;;  %4813 = vmatmul.bf16.gmra.mxu1 %v7167_v9  ;;  %v7168_v51 = vld [vmem:[#allocation2 + $0x60] sm:$0xff] }
 0x637   : > { %11893 = vst [vmem:[#allocation56_spill] sm:$0xff] %v10357_v57 }
 0x638   : > { %v4618_v24 = vpop.f32.mrf.mxu3 }
 0x63a   : > { %v4529_v29 = vpop.f32.mrf.mxu2  ;;  %v4445_v37 = vpop.f32.mrf.mxu1 }
 0x63b   : > { %v4530_v3 = vadd.f32 %v4529_v29, %v4440_v56  ;;  %v6794_v56 = vld [vmem:[%s11047_s3 + $0x1d8] sm:$0xff] }
 0x63c   : > { %5322 = vmatpush.bf16.msra.mxu1 %v6794_v56  ;;  %v11898_v56 = vld [vmem:[#allocation13_spill] sm:$0xff] }
 0x63d   : > { %4986 = vmatmul.bf16.gmra.mxu3 %v11894_v48  ;;  %v10360_v14 = vadd.f32 %v4618_v24, %v4530_v3 }
 0x63f   : > { %11895 = vst [vmem:[#allocation42_spill] sm:$0xff] %v10360_v14  ;;  %4897 = vmatmul.bf16.gmra.mxu2 %v11896_v34 }
 0x642   : > { %v4779_v36 = vpop.f32.mrf.mxu1 }
 0x643   : > { %v4780_v45 = vadd.f32 %v4779_v36, %v9795_v50  ;;  %v7169_v50 = vld [vmem:[#allocation2 + $0x6c] sm:$0xff] }
 0x645   : > { %4818 = vmatmul.bf16.gmra.mxu1 %v7168_v51 }
 0x64a   : > { %v4781_v46 = vpop.f32.mrf.mxu1 }
 0x64d   : > { %4991 = vmatmul.bf16.gmra.mxu3 %v9801_v25  ;;  %v11900_v25 = vld [vmem:[#allocation70_spill] sm:$0xff] }
 0x64f   : > { %4902 = vmatmul.bf16.gmra.mxu2 %v9809_v12 }
 0x650   : > { %v4621_v24 = vpop.f32.mrf.mxu3 }
 0x652   : > { %v4532_v38 = vpop.f32.mrf.mxu2  ;;  %v4784_v29 = vpop.f32.mrf.mxu1 }
 0x653   : > { %v4533_v9 = vadd.f32 %v4532_v38, %v4443_v39  ;;  %v4785_v3 = vadd.f32 %v4784_v29, %v9846_v40  ;;  %v6801_v39 = vld [vmem:[%s11047_s3 + $0x210] sm:$0xff] }
 0x654   : > { %5412 = vmatpush.bf16.msra.mxu2 %v6801_v39 }
 0x655   : > { %v10373_v26 = vadd.f32 %v4621_v24, %v4533_v9  ;;  %4823 = vmatmul.bf16.gmra.mxu1 %v7169_v50  ;;  %v11901_v24 = vld [vmem:[#allocation136_spill] sm:$0xff]  ;;  %v11902_v9 = vld [vmem:[#allocation37_spill] sm:$0xff] }
 0x656   : > { %v4460_v29 = vadd.f32 %v11902_v9, %v11901_v24  ;;  %v11908_v9 = vld [vmem:[#allocation122_spill] sm:$0xff] }
 0x657   : > { %11897 = vst [vmem:[#allocation16_spill] sm:$0xff] %v10373_v26 }
 0x658   : > { %v4623_v36 = vpop.f32.mrf.mxu3 }
 0x65a   : > { %v4534_v14 = vpop.f32.mrf.mxu2  ;;  %v4786_v51 = vpop.f32.mrf.mxu1 }
 0x65b   : > { %v4535_v57 = vadd.f32 %v4534_v14, %v4445_v37  ;;  %v11903_v37 = vld [vmem:[#allocation46_spill] sm:$0xff] }
 0x65d   : > { %4996 = vmatmul.bf16.gmra.mxu3 %v11898_v56  ;;  %v10376_v48 = vadd.f32 %v4623_v36, %v4535_v57  ;;  %v6793_v57 = vld [vmem:[%s11047_s3 + $0x1d0] sm:$0xff]  ;;  %v7170_v36 = vld [vmem:[#allocation2 + $0x78] sm:$0xff] }
 0x65e   : > { %v11905_v56 = vld [vmem:[#allocation118_spill] sm:$0xff]  ;;  %5323 = vmatpush.bf16.msra.mxu1 %v6793_v57 }
 0x65f   : > { %11899 = vst [vmem:[#allocation121_spill] sm:$0xff] %v10376_v48  ;;  %4907 = vmatmul.bf16.gmra.mxu2 %v11900_v25  ;;  %v4549_v48 = vadd.f32 %v11905_v56, %v4460_v29 }
 0x660   : > { %v4957_v38 = vpop.f32.mrf.mxu3 }
 0x661   : > { %v4782_v25 = vadd.f32 %v4781_v46, %v4549_v48  ;;  %v7171_v48 = vld [vmem:[#allocation2 + $0x84] sm:$0xff] }
 0x662   : > { %v4868_v40 = vpop.f32.mrf.mxu2  ;;  %v4789_v26 = vpop.f32.mrf.mxu1 }
 0x663   : > { %v4869_v50 = vadd.f32 %v4868_v40, %v4780_v45  ;;  %v4790_v14 = vadd.f32 %v4789_v26, %v11903_v37  ;;  %v11907_v40 = vld [vmem:[#allocation129_spill] sm:$0xff] }
 0x665   : > { %v10385_v13 = vadd.f32 %v4957_v38, %v4869_v50  ;;  %4828 = vmatmul.bf16.gmra.mxu1 %v7170_v36  ;;  %v4465_v50 = vadd.f32 %v11908_v9, %v11907_v40 }
 0x667   : > { %11904 = vst [vmem:[#allocation117_spill] sm:$0xff] %v10385_v13 }
 0x668   : > { %v4959_v39 = vpop.f32.mrf.mxu3 }
 0x66a   : > { %v4870_v12 = vpop.f32.mrf.mxu2  ;;  %v4791_v24 = vpop.f32.mrf.mxu1 }
 0x66b   : > { %v4871_v61 = vadd.f32 %v4870_v12, %v4782_v25  ;;  %v11909_v25 = vld [vmem:[#allocation139_spill] sm:$0xff] }
 0x66c   : > { %v4554_v12 = vadd.f32 %v11909_v25, %v4465_v50 }
 0x66d   : > { %v10391_v45 = vadd.f32 %v4959_v39, %v4871_v61  ;;  %5001 = vmatmul.bf16.gmra.mxu3 %v9919_v52 }
 0x66e   : > { %v4787_v46 = vadd.f32 %v4786_v51, %v4554_v12 }
 0x66f   : > { %11906 = vst [vmem:[#allocation49_spill] sm:$0xff] %v10391_v45  ;;  %4912 = vmatmul.bf16.gmra.mxu2 %v9930_v1 }
 0x670   : > { %v4962_v26 = vpop.f32.mrf.mxu3 }
 0x672   : > { %v4873_v38 = vpop.f32.mrf.mxu2  ;;  %v4794_v36 = vpop.f32.mrf.mxu1 }
 0x673   : > { %v4874_v37 = vadd.f32 %v4873_v38, %v4785_v3  ;;  %v4795_v56 = vadd.f32 %v4794_v36, %v9969_v18  ;;  %v6800_v18 = vld [vmem:[%s11047_s3 + $0x208] sm:$0xff]  ;;  %v4470_v38 = vadd.f32 %v9951_v58, %v9943_v21 }
 0x674   : > { %5413 = vmatpush.bf16.msra.mxu2 %v6800_v18 }
 0x675   : > { %v10398_v29 = vadd.f32 %v4962_v26, %v4874_v37  ;;  %4833 = vmatmul.bf16.gmra.mxu1 %v7171_v48  ;;  %v6792_v37 = vld [vmem:[%s11047_s3 + $0x1c8] sm:$0xff]  ;;  %v4559_v36 = vadd.f32 %v9947_v27, %v4470_v38 }
 0x676   : > { %5324 = vmatpush.bf16.msra.mxu1 %v6792_v37 }
 0x677   : > { %v4792_v25 = vadd.f32 %v4791_v24, %v4559_v36  ;;  %v11910_v24 = vld [vmem:[#allocation7_spill] sm:$0xff] }
 0x678   : > { %v4964_v61 = vpop.f32.mrf.mxu3 }
 0x67a   : > { %v4875_v57 = vpop.f32.mrf.mxu2  ;;  %v4796_v45 = vpop.f32.mrf.mxu1 }
 0x67b   : > { %v4876_v39 = vadd.f32 %v4875_v57, %v4787_v46  ;;  %v4475_v46 = vadd.f32 %v9980_v10, %v9975_v54  ;;  %v6799_v54 = vld [vmem:[%s11047_s3 + $0x200] sm:$0xff] }
 0x67c   : > { %5414 = vmatpush.bf16.msra.mxu2 %v6799_v54 }
 0x67d   : > { %v10401_v13 = vadd.f32 %v4964_v61, %v4876_v39  ;;  %5006 = vmatmul.bf16.gmra.mxu3 %v9989_v44  ;;  %v4564_v18 = vadd.f32 %v11910_v24, %v4475_v46 }
 0x67f   : > { %4917 = vmatmul.bf16.gmra.mxu2 %v9995_v17 }
 0x680   : > { %v4967_v3 = vpop.f32.mrf.mxu3 }
 0x682   : > { %v4878_v26 = vpop.f32.mrf.mxu2  ;;  %v4799_v40 = vpop.f32.mrf.mxu1 }
 0x683   : > { %v4879_v51 = vadd.f32 %v4878_v26, %v4790_v14  ;;  %v4800_v9 = vadd.f32 %v4799_v40, %v10002_v30 }
 0x685   : > { %v10411_v50 = vadd.f32 %v4967_v3, %v4879_v51  ;;  %4838 = vmatmul.bf16.gmra.mxu1 %v10031_v53  ;;  %v4797_v3 = vadd.f32 %v4796_v45, %v4564_v18 }
 0x688   : > { %v4969_v48 = vpop.f32.mrf.mxu3 }
 0x68a   : > { %v4880_v12 = vpop.f32.mrf.mxu2  ;;  %v4801_v21 = vpop.f32.mrf.mxu1 }
 0x68b   : > { %v4881_v61 = vadd.f32 %v4880_v12, %v4792_v25  ;;  %v11912_v25 = vld [vmem:[#allocation20_spill] sm:$0xff] }
 0x68d   : > { %v10418_v58 = vadd.f32 %v4969_v48, %v4881_v61  ;;  %5011 = vmatmul.bf16.gmra.mxu3 %v10011_v59 }
 0x68f   : > { %4922 = vmatmul.bf16.gmra.mxu2 %v10018_v31 }
 0x690   : > { %v4972_v30 = vpop.f32.mrf.mxu3 }
 0x692   : > { %v4883_v14 = vpop.f32.mrf.mxu2  ;;  %v4804_v57 = vpop.f32.mrf.mxu1 }
 0x693   : > { %v4884_v53 = vadd.f32 %v4883_v14, %v4795_v56  ;;  %v4805_v27 = vadd.f32 %v4804_v57, %v10054_v60  ;;  %v6791_v60 = vld [vmem:[%s11047_s3 + $0x1c0] sm:$0xff] }
 0x694   : > { %5325 = vmatpush.bf16.msra.mxu1 %v6791_v60 }
 0x695   : > { %v10425_v39 = vadd.f32 %v4972_v30, %v4884_v53  ;;  %4843 = vmatmul.bf16.gmra.mxu1 %v10069_v42  ;;  %v11911_v42 = vld [vmem:[#allocation39_spill] sm:$0xff]  ;;  %v11914_v53 = vld [vmem:[#allocation41_spill] sm:$0xff] }
 0x696   : > { %v4480_v45 = vadd.f32 %v11911_v42, %v10034_v32 }
 0x698   : > { %v4974_v40 = vpop.f32.mrf.mxu3  ;;  %v4569_v12 = vadd.f32 %v11912_v25, %v4480_v45 }
 0x69a   : > { %v4885_v26 = vpop.f32.mrf.mxu2  ;;  %v4806_v51 = vpop.f32.mrf.mxu1  ;;  %v4802_v61 = vadd.f32 %v4801_v21, %v4569_v12  ;;  %v11915_v21 = vld [vmem:[#allocation71_spill] sm:$0xff] }
 0x69b   : > { %v4886_v38 = vadd.f32 %v4885_v26, %v4797_v3 }
 0x69d   : > { %v10429_v37 = vadd.f32 %v4974_v40, %v4886_v38  ;;  %5016 = vmatmul.bf16.gmra.mxu3 %v10074_v28 }
 0x69f   : > { %4927 = vmatmul.bf16.gmra.mxu2 %v10080_v43 }
 0x6a2   : > { %v4888_v10 = vpop.f32.mrf.mxu2  ;;  %v4809_v36 = vpop.f32.mrf.mxu1 }
 0x6a3   : > { %v10441_v56 = vadd.f32 %v4888_v10, %v4800_v9  ;;  %v4810_v48 = vadd.f32 %v4809_v36, %v10093_v62  ;;  %v11913_v9 = vld [vmem:[#allocation29_spill] sm:$0xff] }
 0x6a4   : > { %v4485_v57 = vadd.f32 %v11914_v53, %v11913_v9 }
 0x6a5   : > { %4848 = vmatmul.bf16.gmra.mxu1 %v10116_v19 }
 0x6a6   : > { %v4574_v18 = vadd.f32 %v11915_v21, %v4485_v57  ;;  %v4500_v21 = vadd.f32 %v10242_v47, %v10231_v49 }
 0x6a8   : > { %v4807_v3 = vadd.f32 %v4806_v51, %v4574_v18  ;;  %v11916_v51 = vld [vmem:[#allocation9_spill] sm:$0xff] }
 0x6aa   : > { %v4890_v30 = vpop.f32.mrf.mxu2  ;;  %v4811_v46 = vpop.f32.mrf.mxu1 }
 0x6ab   : > { %v10446_v14 = vadd.f32 %v4890_v30, %v4802_v61  ;;  %v11919_v30 = vld [vmem:[#allocation23_spill] sm:$0xff] }
 0x6ad   : > { %5021 = vmatmul.bf16.gmra.mxu3 %v10102_v55 }
 0x6af   : > { %4932 = vmatmul.bf16.gmra.mxu2 %v10109_v6 }
 0x6b2   : > { %v4893_v32 = vpop.f32.mrf.mxu2  ;;  %v4814_v62 = vpop.f32.mrf.mxu1 }
 0x6b3   : > { %v10452_v24 = vadd.f32 %v4893_v32, %v4805_v27  ;;  %v4815_v19 = vadd.f32 %v4814_v62, %v10145_v23  ;;  %v4490_v27 = vadd.f32 %v10127_v33, %v10119_v22  ;;  %v11917_v22 = vld [vmem:[#allocation50_spill] sm:$0xff]  ;;  %v11918_v33 = vld [vmem:[#allocation84_spill] sm:$0xff] }
 0x6b5   : > { %4853 = vmatmul.bf16.gmra.mxu1 %v10160_v4  ;;  %v4579_v60 = vadd.f32 %v11916_v51, %v4490_v27  ;;  %v11922_v51 = vld [vmem:[#allocation40_spill] sm:$0xff] }
 0x6b7   : > { %v4812_v42 = vadd.f32 %v4811_v46, %v4579_v60  ;;  %v11923_v60 = vld [vmem:[#allocation24_spill] sm:$0xff] }
 0x6b8   : > { %v4505_v49 = vadd.f32 %v11923_v60, %v11922_v51  ;;  %v11933_v51 = vld [vmem:[#allocation105_spill] sm:$0xff] }
 0x6ba   : > { %v4895_v26 = vpop.f32.mrf.mxu2  ;;  %v4816_v40 = vpop.f32.mrf.mxu1 }
 0x6bb   : > { %v10457_v38 = vadd.f32 %v4895_v26, %v4807_v3 }
 0x6bd   : > { %5026 = vmatmul.bf16.gmra.mxu3 %v10165_v63 }
 0x6bf   : > { %4937 = vmatmul.bf16.gmra.mxu2 %v10174_v41 }
 0x6c2   : > { %v4898_v54 = vpop.f32.mrf.mxu2  ;;  %v4819_v23 = vpop.f32.mrf.mxu1 }
 0x6c3   : > { %v10463_v10 = vadd.f32 %v4898_v54, %v4810_v48  ;;  %v4820_v4 = vadd.f32 %v4819_v23, %v10190_v0  ;;  %v4495_v48 = vadd.f32 %v11918_v33, %v11917_v22  ;;  %v11921_v23 = vld [vmem:[#allocation80_spill] sm:$0xff] }
 0x6c5   : > { %5326 = vmatmul.bf16.vlgmr.msra.gmra.mxu1 %v11876_v11  ;;  %v4584_v46 = vadd.f32 %v11919_v30, %v4495_v48  ;;  %v11926_v48 = vld [vmem:[#allocation110_spill] sm:$0xff]  ;;  %v11927_v30 = vld [vmem:[#allocation91_spill] sm:$0xff] }
 0x6c7   : > { %v4817_v32 = vadd.f32 %v4816_v40, %v4584_v46  ;;  %v11928_v46 = vld [vmem:[#allocation111_spill] sm:$0xff] }
 0x6ca   : > { %v4900_v45 = vpop.f32.mrf.mxu2  ;;  %v4821_v25 = vpop.f32.mrf.mxu1 }
 0x6cb   : > { %v10468_v36 = vadd.f32 %v4900_v45, %v4812_v42  ;;  %v11924_v42 = vld [vmem:[#allocation32_spill] sm:$0xff] }
 0x6cd   : > { %5031 = vmatmul.bf16.gmra.mxu3 %v10202_v20 }
 0x6cf   : > { %4942 = vmatmul.bf16.gmra.mxu2 %v10212_v7 }
 0x6d2   : > { %v4903_v12 = vpop.f32.mrf.mxu2  ;;  %v4824_v0 = vpop.f32.mrf.mxu1 }
 0x6d3   : > { %v10474_v61 = vadd.f32 %v4903_v12, %v4815_v19  ;;  %v4825_v11 = vadd.f32 %v4824_v0, %v10260_v16 }
 0x6d5   : > { %5331 = vmatmul.bf16.gmra.mxu1 %v11881_v35  ;;  %v11920_v35 = vld [vmem:[#allocation14_spill] sm:$0xff] }
 0x6d6   : > { %v4589_v3 = vadd.f32 %v11920_v35, %v4500_v21 }
 0x6d8   : > { %v4822_v26 = vadd.f32 %v4821_v25, %v4589_v3 }
 0x6da   : > { %v4905_v9 = vpop.f32.mrf.mxu2  ;;  %v4826_v57 = vpop.f32.mrf.mxu1 }
 0x6db   : > { %v10479_v53 = vadd.f32 %v4905_v9, %v4817_v32  ;;  %v4510_v32 = vadd.f32 %v11928_v46, %v11927_v30  ;;  %v11938_v46 = vld [vmem:[#allocation52_spill] sm:$0xff] }
 0x6df   : > { %5415 = vmatmul.bf16.vlgmr.msra.gmra.mxu2 %v11875_v15 }
 0x6e2   : > { %v4908_v62 = vpop.f32.mrf.mxu2  ;;  %v4829_v18 = vpop.f32.mrf.mxu1 }
 0x6e3   : > { %v10484_v19 = vadd.f32 %v4908_v62, %v4820_v4  ;;  %v4830_v16 = vadd.f32 %v4829_v18, %v10282_v8  ;;  %v11929_v62 = vld [vmem:[#allocation27_spill] sm:$0xff] }
 0x6e5   : > { %5336 = vmatmul.bf16.gmra.mxu1 %v11887_v5  ;;  %v11925_v5 = vld [vmem:[#allocation90_spill] sm:$0xff] }
 0x6e6   : > { %v4594_v45 = vadd.f32 %v11925_v5, %v4505_v49  ;;  %v11935_v5 = vld [vmem:[#allocation124_spill] sm:$0xff] }
 0x6e8   : > { %v4827_v25 = vadd.f32 %v4826_v57, %v4594_v45 }
 0x6ea   : > { %v4910_v40 = vpop.f32.mrf.mxu2  ;;  %v4831_v27 = vpop.f32.mrf.mxu1 }
 0x6eb   : > { %v10489_v54 = vadd.f32 %v4910_v40, %v4822_v26  ;;  %v11931_v40 = vld [vmem:[#allocation113_spill] sm:$0xff] }
 0x6ef   : > { %5420 = vmatmul.bf16.gmra.mxu2 %v11921_v23 }
 0x6f2   : > { %v4913_v15 = vpop.f32.mrf.mxu2  ;;  %v4834_v4 = vpop.f32.mrf.mxu1 }
 0x6f3   : > { %v10494_v47 = vadd.f32 %v4913_v15, %v4825_v11  ;;  %v4835_v8 = vadd.f32 %v4834_v4, %v11924_v42  ;;  %v11932_v15 = vld [vmem:[#allocation22_spill] sm:$0xff] }
 0x6f4   : > { %v4515_v60 = vadd.f32 %v11933_v51, %v11932_v15  ;;  %v11934_v4 = vld [vmem:[#allocation34_spill] sm:$0xff] }
 0x6f5   : > { %5341 = vmatmul.bf16.gmra.mxu1 %v11892_v2  ;;  %v11930_v2 = vld [vmem:[#allocation28_spill] sm:$0xff] }
 0x6f6   : > { %v4599_v18 = vadd.f32 %v11930_v2, %v4510_v32 }
 0x6f8   : > { %v4832_v57 = vadd.f32 %v4831_v27, %v4599_v18 }
 0x6fa   : > { %v4915_v12 = vpop.f32.mrf.mxu2  ;;  %v4836_v33 = vpop.f32.mrf.mxu1 }
 0x6fb   : > { %v10499_v22 = vadd.f32 %v4915_v12, %v4827_v25 }
 0x6ff   : > { %5425 = vmatmul.bf16.gmra.mxu2 %v11926_v48 }
 0x702   : > { %v4918_v0 = vpop.f32.mrf.mxu2  ;;  %v4839_v9 = vpop.f32.mrf.mxu1 }
 0x703   : > { %v10504_v11 = vadd.f32 %v4918_v0, %v4830_v16  ;;  %v4840_v21 = vadd.f32 %v4839_v9, %v11929_v62  ;;  %v11937_v0 = vld [vmem:[#allocation60_spill] sm:$0xff] }
 0x704   : > { %v11939_v9 = vld [vmem:[#allocation44_spill] sm:$0xff] }
 0x705   : > { %5346 = vmatmul.bf16.gmra.mxu1 %v11896_v34  ;;  %v11936_v34 = vld [vmem:[#allocation33_spill] sm:$0xff] }
 0x706   : > { %v4604_v45 = vadd.f32 %v11936_v34, %v4515_v60  ;;  %v11945_v34 = vld [vmem:[#allocation116_spill] sm:$0xff] }
 0x708   : > { %v4837_v27 = vadd.f32 %v4836_v33, %v4604_v45  ;;  %v11943_v33 = vld [vmem:[#allocation26_spill] sm:$0xff] }
 0x70a   : > { %v4920_v35 = vpop.f32.mrf.mxu2  ;;  %v4841_v26 = vpop.f32.mrf.mxu1 }
 0x70b   : > { %v10509_v3 = vadd.f32 %v4920_v35, %v4832_v57  ;;  %v11941_v57 = vld [vmem:[#allocation56_spill] sm:$0xff] }
 0x70f   : > { %5430 = vmatmul.bf16.gmra.mxu2 %v11931_v40  ;;  %v11942_v40 = vld [vmem:[#allocation70_spill] sm:$0xff] }
 0x712   : > { %v4923_v23 = vpop.f32.mrf.mxu2  ;;  %v4844_v49 = vpop.f32.mrf.mxu1 }
 0x713   : > { %v10514_v16 = vadd.f32 %v4923_v23, %v4835_v8  ;;  %v4845_v42 = vadd.f32 %v4844_v49, %v11934_v4  ;;  %v11940_v8 = vld [vmem:[#allocation31_spill] sm:$0xff]  ;;  %v11944_v4 = vld [vmem:[#allocation42_spill] sm:$0xff] }
 0x714   : > { %v4520_v62 = vadd.f32 %v11940_v8, %v11939_v9  ;;  %v11948_v8 = vld [vmem:[#allocation13_spill] sm:$0xff] }
 0x715   : > { %5351 = vmatmul.bf16.gmra.mxu1 %v11935_v5 }
 0x716   : > { %v4609_v23 = vadd.f32 %v11943_v33, %v4520_v62  ;;  %v7172_v62 = vld [vmem:[%s7422_s12 + $0x20] sm:$0xf] }
 0x718   : > { %v4842_v15 = vadd.f32 %v4841_v26, %v4609_v23 }
 0x71a   : > { %v4925_v25 = vpop.f32.mrf.mxu2  ;;  %v4846_v48 = vpop.f32.mrf.mxu1 }
 0x71b   : > { %v10519_v12 = vadd.f32 %v4925_v25, %v4837_v27  ;;  %v4847_v30 = vadd.f32 %v4846_v48, %v11937_v0  ;;  %v11946_v25 = vld [vmem:[#allocation16_spill] sm:$0xff] }
 0x71f   : > { %5435 = vmatmul.bf16.gmra.mxu2 %v11938_v46 }
 0x722   : > { %v4928_v32 = vpop.f32.mrf.mxu2  ;;  %v4849_v18 = vpop.f32.mrf.mxu1 }
 0x723   : > { %v10525_v2 = vadd.f32 %v4928_v32, %v4840_v21  ;;  %v4850_v35 = vadd.f32 %v4849_v18, %v11941_v57  ;;  %v11947_v32 = vld [vmem:[#allocation121_spill] sm:$0xff]  ;;  %v6623_v18 = vrot.slane %v7172_v62, 9  ;;  %v7173_v57 = vld [vmem:[%s7422_s12 + $0x24] sm:$0xf] }
 0x725   : > { %5356 = vmatmul.bf16.gmra.mxu1 %v11942_v40 }
 0x72a   : > { %v4930_v51 = vpop.f32.mrf.mxu2  ;;  %v4851_v49 = vpop.f32.mrf.mxu1 }
 0x72b   : > { %v10530_v60 = vadd.f32 %v4930_v51, %v4842_v15  ;;  %v4852_v5 = vadd.f32 %v4851_v49, %v11944_v4 }
 0x72f   : > { %5440 = vmatmul.bf16.gmra.mxu2 %v11945_v34  ;;  %v7175_v34 = vld [vmem:[%s7422_s12 + $0x34] sm:$0xf] }
 0x732   : > { %v4933_v21 = vpop.f32.mrf.mxu2  ;;  %v4854_v27 = vpop.f32.mrf.mxu1 }
 0x733   : > { %v10534_v45 = vadd.f32 %v4933_v21, %v4845_v42  ;;  %v4855_v48 = vadd.f32 %v4854_v27, %v11946_v25  ;;  %v5569_v42 = vrot.slane %v7173_v57, 5  ;;  %v5576_v21 = vrot.slane %v7175_v34, 5  ;;  %v10571_v57 = vld [vmem:[%s7422_s12 + $0x44] sm:$0xf] }
 0x735   : > { %5361 = vmatmul.bf16.gmra.mxu1 %v9930_v1 }
 0x73a   : > { %v4935_v0 = vpop.f32.mrf.mxu2  ;;  %v4856_v46 = vpop.f32.mrf.mxu1 }
 0x73b   : > { %v10538_v26 = vadd.f32 %v4935_v0, %v4847_v30  ;;  %v4857_v9 = vadd.f32 %v4856_v46, %v11947_v32  ;;  %v5570_v30 = vsel %vm10546_vm9, %v6623_v18, %v5569_v42  ;;  %v7176_v18 = vld [vmem:[%s7422_s12 + $0x40] sm:$0xf] }
 0x73f   : > { %5445 = vmatmul.bf16.gmra.mxu2 %v11948_v8  ;;  %v11955_v8 = vld [vmem:[#allocation104_spill] sm:$0xff] }
 0x742   : > { %v4938_v40 = vpop.f32.mrf.mxu2  ;;  %v5327_v23 = vpop.f32.mrf.mxu1 }
 0x743   : > { %v10544_v33 = vadd.f32 %v4938_v40, %v4850_v35  ;;  %v7174_v35 = vld [vmem:[%s7422_s12 + $0x30] sm:$0xf]  ;;  %v5328_v62 = vadd.f32 %v5327_v23, %v11955_v8  ;;  %v7178_v23 = vld [vmem:[%s7422_s12 + $0x28] sm:$0xf] }
 0x744   : > { %v6624_v4 = vrot.slane %v7174_v35, 9 }
 0x745   : > { %11949 = vst [vmem:[#allocation63_spill] sm:$0xff] %v10544_v33  ;;  %5366 = vmatmul.bf16.gmra.mxu1 %v9995_v17  ;;  %v5578_v33 = vrot.slane %v5576_v21, 4 }
 0x746   : > { %v5577_v17 = vsel %vm10546_vm9, %v6624_v4, %v5576_v21  ;;  %v11956_v4 = vld [vmem:[#allocation117_spill] sm:$0xff] }
 0x74a   : > { %v4940_v15 = vpop.f32.mrf.mxu2  ;;  %v5329_v49 = vpop.f32.mrf.mxu1 }
 0x74b   : > { %v10553_v51 = vadd.f32 %v4940_v15, %v4852_v5 }
 0x74d   : > { %11952 = vst [vmem:[#allocation142_spill] sm:$0xff] %v10553_v51 }
 0x74f   : > { %5450 = vmatmul.bf16.gmra.mxu2 %v9919_v52  ;;  %v10565_v52 = vpop.f32.mrf.mxu0 }
 0x752   : > { %v4943_v27 = vpop.f32.mrf.mxu2  ;;  %v5332_v0 = vpop.f32.mrf.mxu1 }
 0x753   : > { %v10558_v25 = vadd.f32 %v4943_v27, %v4855_v48  ;;  %v6625_v48 = vrot.slane %v7176_v18, 9  ;;  %v5711_v27 = vunpack.c.l.bf16 %v5570_v30 }
 0x755   : > { %11953 = vst [vmem:[#allocation10_spill] sm:$0xff] %v10558_v25  ;;  %5371 = vmatmul.bf16.gmra.mxu1 %v10018_v31  ;;  %v11269_v31 = vrot.slane %v10571_v57, 5 }
 0x757   : > { %v10586_v8 = vsel %vm10546_vm9, %v6625_v48, %v11269_v31 }
 0x75a   : > { %v4945_v5 = vpop.f32.mrf.mxu2  ;;  %v5334_v32 = vpop.f32.mrf.mxu1 }
 0x75b   : > { %v10563_v46 = vadd.f32 %v4945_v5, %v4857_v9  ;;  %v10577_v9 = vld [vmem:[%s11048_s4] ss:$0 sm:$0xff]  ;;  %v5572_v5 = vrot.slane %v7178_v23, 5 }
 0x75d   : > { %11954 = vst [vmem:[#allocation17_spill] sm:$0xff] %v10563_v46  ;;  %v11958_v46 = vld [vmem:[#allocation49_spill] sm:$0xff] }
 0x75f   : > { %5455 = vmatmul.bf16.gmra.mxu2 %v9989_v44  ;;  %v5571_v44 = vrot.slane %v5569_v42, 4 }
 0x762   : > { %v5416_v40 = vpop.f32.mrf.mxu2  ;;  %v5337_v35 = vpop.f32.mrf.mxu1 }
 0x763   : > { %v5417_v15 = vadd.f32 %v5416_v40, %v5328_v62  ;;  %v10588_v62 = vpop.f32.mrf.mxu0  ;;  %v11957_v40 = vld [vmem:[#allocation6_spill] sm:$0xff] }
 0x764   : > { %v5330_v30 = vadd.f32 %v5329_v49, %v11957_v40  ;;  %v11959_v49 = vld [vmem:[#allocation36_spill] sm:$0xff]  ;;  %v10607_v40 = vld [vmem:[%s7422_s12 + $0x54] sm:$0xf] }
 0x765   : > { %v5496_v34 = vadd.f32 %v5417_v15, %v11956_v4  ;;  %5376 = vmatmul.bf16.gmra.mxu1 %v10080_v43  ;;  %v5573_v43 = vsel %vm10546_vm9, %v5571_v44, %v5572_v5  ;;  %v7179_v44 = vld [vmem:[%s7422_s12 + $0x50] sm:$0xf] }
 0x766   : > { %v5712_v31 = vunpack.c.l.bf16 %v5573_v43  ;;  %v6626_v5 = vrot.slane %v7179_v44, 9 }
 0x767   : > { %v5532_v18 = vadd.f32 %v10577_v9, %v5496_v34 }
 0x769   : > { %v5743_v15 = vadd.f32 %v5711_v27, %v5532_v18  ;;  %v5333_v27 = vadd.f32 %v5332_v0, %v11959_v49  ;;  %v5713_v49 = vunpack.c.l.bf16 %v5577_v17 }
 0x76a   : > { %v5418_v42 = vpop.f32.mrf.mxu2  ;;  %v10594_v23 = vpop.f32.mrf.mxu1 }
 0x76b   : > { %v5419_v4 = vadd.f32 %v5418_v42, %v5330_v30  ;;  %v10600_v34 = vpop.f32.mrf.mxu0  ;;  %v5775_v42 = vmax.f32 %v5743_v15, 0.0 }
 0x76d   : > { %v5497_v48 = vadd.f32 %v5419_v4, %v11958_v46  ;;  %v5590_v46 = vrot.slane %v10607_v40, 5 }
 0x76f   : > { %v5533_v25 = vadd.f32 %v10577_v9, %v5497_v48  ;;  %5460 = vmatmul.bf16.gmra.mxu2 %v10011_v59  ;;  %v10610_v59 = vpop.f32.mrf.mxu3  ;;  %v10619_v44 = vsel %vm10546_vm9, %v6626_v5, %v5590_v46 }
 0x771   : > { %v5744_v18 = vadd.f32 %v5712_v31, %v5533_v25  ;;  %v7181_v25 = vld [vmem:[%s7422_s12 + $0x38] sm:$0xf] }
 0x772   : > { %v5421_v30 = vpop.f32.mrf.mxu2  ;;  %v5342_v48 = vpop.f32.mrf.mxu1  ;;  %v5579_v31 = vrot.slane %v7181_v25, 5  ;;  %v7182_v25 = vld [vmem:[%s7422_s12 + $0x60] sm:$0xf] }
 0x773   : > { %v5776_v43 = vmax.f32 %v5744_v18, 0.0  ;;  %v5422_v4 = vadd.f32 %v5421_v30, %v5333_v27  ;;  %v10628_v18 = vpop.f32.mrf.mxu0 }
 0x774   : > { %v5580_v27 = vsel %vm10546_vm9, %v5578_v33, %v5579_v31  ;;  %v6627_v33 = vrot.slane %v7182_v25, 9  ;;  %v10640_v31 = vld [vmem:[%s7422_s12 + $0x64] sm:$0xf] }
 0x775   : > { %v6958_v51 = vpack.c.bf16 %v5776_v43, %v5775_v42  ;;  %v5498_v0 = vadd.f32 %v5422_v4, %v10398_v29  ;;  %5381 = vmatmul.bf16.gmra.mxu1 %v10109_v6  ;;  %v11960_v29 = vld [vmem:[#allocation45_spill] sm:$0xff]  ;;  %v5714_v43 = vunpack.c.l.bf16 %v5580_v27 }
 0x776   : > { %v5335_v17 = vadd.f32 %v5334_v32, %v11960_v29  ;;  %v11961_v32 = vld [vmem:[#allocation30_spill] sm:$0xff] }
 0x777   : > { %6959 = vst [vmem:[%s10621_s13] sm:$0xff] %v6958_v51   ;;  %v5534_v15 = vadd.f32 %v10577_v9, %v5498_v0  ;;  %v10633_v51 = vpop.f32.mrf.mxu3  ;;  %v5338_v0 = vadd.f32 %v5337_v35, %v11961_v32  ;;  %v5715_v35 = vunpack.c.l.bf16 %v10586_v8  ;;  %v7184_v32 = vld [vmem:[%s7422_s12 + $0x48] sm:$0xf]  ;;  %v11963_v8 = vld [vmem:[#allocation21_spill] sm:$0xff] }
 0x778   : > { %v5586_v25 = vrot.slane %v7184_v32, 5 }
 0x779   : > { %v5745_v21 = vadd.f32 %v5713_v49, %v5534_v15  ;;  %v5597_v15 = vrot.slane %v10640_v31, 5 }
 0x77a   : > { %v5423_v6 = vpop.f32.mrf.mxu2  ;;  %v10630_v5 = vpop.f32.mrf.mxu1 }
 0x77b   : > { %v5424_v30 = vadd.f32 %v5423_v6, %v5335_v17  ;;  %v5345_v40 = vadd.f32 %v10630_v5, %v10588_v62 }
 0x77d   : > { %v5499_v42 = vadd.f32 %v5424_v30, %v10401_v13  ;;  %v5777_v13 = vmax.f32 %v5745_v21, 0.0  ;;  %v10643_v30 = vpop.f32.mrf.mxu0  ;;  %v10655_v21 = vsel %vm10546_vm9, %v6627_v33, %v5597_v15 }
 0x77f   : > { %v5535_v4 = vadd.f32 %v10577_v9, %v5499_v42  ;;  %5465 = vmatmul.bf16.gmra.mxu2 %v10074_v28 }
 0x781   : > { %v5746_v49 = vadd.f32 %v5714_v43, %v5535_v4  ;;  %v11962_v43 = vrot.slane %v10571_v57, 5  ;;  %v5340_v57 = vadd.f32 %v10594_v23, %v11963_v8 }
 0x782   : > { %v5426_v29 = vpop.f32.mrf.mxu2  ;;  %v5347_v27 = vpop.f32.mrf.mxu1 }
 0x783   : > { %v5778_v17 = vmax.f32 %v5746_v49, 0.0  ;;  %v5427_v6 = vadd.f32 %v5426_v29, %v5338_v0  ;;  %v5585_v4 = vrot.slane %v11962_v43, 4  ;;  %v5343_v43 = vadd.f32 %v5342_v48, %v10565_v52 }
 0x784   : > { %v5717_v48 = vunpack.c.l.bf16 %v10619_v44  ;;  %v5348_v62 = vadd.f32 %v5347_v27, %v10600_v34 }
 0x785   : > { %v6963_v42 = vpack.c.bf16 %v5778_v17, %v5777_v13  ;;  %v5500_v28 = vadd.f32 %v5427_v6, %v10411_v50  ;;  %5386 = vmatmul.bf16.gmra.mxu1 %v10174_v41  ;;  %v10659_v50 = vpop.f32.mrf.mxu3  ;;  %v5587_v29 = vsel %vm10546_vm9, %v5585_v4, %v5586_v25 }
 0x786   : > { %v5716_v6 = vunpack.c.l.bf16 %v5587_v29 }
 0x787   : > { %7064 = vst [vmem:[%s10621_s13 + $0x8] sm:$0xff] %v6963_v42   ;;  %v5536_v0 = vadd.f32 %v10577_v9, %v5500_v28  ;;  %v10668_v42 = vpop.f32.mrf.mxu0 }
 0x789   : > { %v5747_v49 = vadd.f32 %v5715_v35, %v5536_v0  ;;  %v7185_v35 = vld [vmem:[%s7422_s12 + $0x70] sm:$0xf]  ;;  %v10675_v0 = vld [vmem:[%s7422_s12 + $0x74] sm:$0xf] }
 0x78a   : > { %v5428_v41 = vpop.f32.mrf.mxu2  ;;  %v10665_v17 = vpop.f32.mrf.mxu1  ;;  %v6628_v32 = vrot.slane %v7185_v35, 9  ;;  %v5604_v4 = vrot.slane %v10675_v0, 5 }
 0x78b   : > { %v5429_v13 = vadd.f32 %v5428_v41, %v5340_v57  ;;  %v5779_v8 = vmax.f32 %v5747_v49, 0.0 }
 0x78c   : > { %v10692_v49 = vsel %vm10546_vm9, %v6628_v32, %v5604_v4 }
 0x78d   : > { %v5501_v33 = vadd.f32 %v5429_v13, %v10418_v58  ;;  %v10678_v25 = vpop.f32.mrf.mxu3  ;;  %v5592_v13 = vrot.slane %v5590_v46, 4 }
 0x78f   : > { %v5537_v28 = vadd.f32 %v10577_v9, %v5501_v33  ;;  %5470 = vmatmul.bf16.gmra.mxu2 %v10102_v55  ;;  %v7187_v33 = vld [vmem:[%s7422_s12 + $0x58] sm:$0xf] }
 0x791   : > { %v5748_v23 = vadd.f32 %v5716_v6, %v5537_v28  ;;  %v5593_v6 = vrot.slane %v7187_v33, 5  ;;  %v10717_v33 = vld [vmem:[#allocation2 + $0xcc] sm:$0xff] }
 0x792   : > { %v5431_v58 = vpop.f32.mrf.mxu2  ;;  %v10680_v29 = vpop.f32.mrf.mxu1  ;;  %5312 = vmatmul.bf16.gmra.mxu0 %v10717_v33  ;;  %v4020_v31 = vshll.u32 %v10717_v33, 16 }
 0x793   : > { %v5780_v57 = vmax.f32 %v5748_v23, 0.0  ;;  %v5432_v41 = vadd.f32 %v5431_v58, %v5343_v43  ;;  %v5594_v44 = vsel %vm10546_vm9, %v5592_v13, %v5593_v6  ;;  %v4978_v13 = vadd.f32 %v10610_v59, %v10441_v56 }
 0x794   : > { %v5718_v58 = vunpack.c.l.bf16 %v5594_v44  ;;  %v5599_v56 = vrot.slane %v5597_v15, 4  ;;  %v5350_v15 = vadd.f32 %v10665_v17, %v10628_v18 }
 0x795   : > { %v6968_v55 = vpack.c.bf16 %v5780_v57, %v5779_v8  ;;  %v5502_v52 = vadd.f32 %v5432_v41, %v10425_v39  ;;  %5391 = vmatmul.bf16.gmra.mxu1 %v10212_v7  ;;  %v10696_v39 = vpop.f32.mrf.mxu0  ;;  %v10704_v35 = vpop.f32.mrf.mxu3  ;;  %v3650_v57 = vld [vmem:[#allocation2 + $0xd4] sm:$0xf]  ;;  %v7188_v41 = vld [vmem:[%s7422_s12 + $0x80] sm:$0xf] }
 0x797   : > { %7065 = vst [vmem:[%s10621_s13 + $0x10] sm:$0xff] %v6968_v55   ;;  %v5538_v28 = vadd.f32 %v10577_v9, %v5502_v52  ;;  %v6629_v55 = vrot.slane %v7188_v41, 9  ;;  %v10712_v52 = vld [vmem:[%s7422_s12 + $0x84] sm:$0xf] }
 0x799   : > { %v5749_v46 = vadd.f32 %v5717_v48, %v5538_v28  ;;  %v5611_v48 = vrot.slane %v10712_v52, 5 }
 0x79a   : > { %v5433_v7 = vpop.f32.mrf.mxu2  ;;  %v10702_v23 = vpop.f32.mrf.mxu1 }
 0x79b   : > { %v5434_v43 = vadd.f32 %v5433_v7, %v5345_v40  ;;  %v3794_v40 = vunpack.c.l.b16 %v3650_v57  ;;  %v4980_v57 = vadd.f32 %v10633_v51, %v10446_v14 }
 0x79d   : > { %v5503_v32 = vadd.f32 %v5434_v43, %v10429_v37  ;;  %v10719_v6 = vpop.f32.mrf.mxu0  ;;  %v5719_v43 = vunpack.c.l.bf16 %v10655_v21  ;;  %v10727_v59 = vpop.f32.mrf.mxu3 }
 0x79f   : > { %v5539_v8 = vadd.f32 %v10577_v9, %v5503_v32  ;;  %5475 = vmatmul.bf16.gmra.mxu2 %v10165_v63  ;;  %v5781_v63 = vmax.f32 %v5749_v46, 0.0  ;;  %v11964_v32 = vld [vmem:[#allocation15_spill] sm:$0xff] }
 0x7a1   : > { %v5750_v5 = vadd.f32 %v5718_v58, %v5539_v8  ;;  %v7190_v58 = vld [vmem:[%s7422_s12 + $0x68] sm:$0xf]  ;;  %v10735_v8 = vsel %vm10546_vm9, %v6629_v55, %v5611_v48 }
 0x7a2   : > { %v5436_v37 = vpop.f32.mrf.mxu2  ;;  %v10721_v28 = vpop.f32.mrf.mxu1  ;;  %v5600_v46 = vrot.slane %v7190_v58, 5 }
 0x7a3   : > { %v5782_v34 = vmax.f32 %v5750_v5, 0.0  ;;  %v5437_v27 = vadd.f32 %v5436_v37, %v5348_v62  ;;  %v10739_v5 = vpack.c.b16 %v3794_v40, %v3794_v40 }
 0x7a5   : > { %v6973_v7 = vpack.c.bf16 %v5782_v34, %v5781_v63  ;;  %v5504_v44 = vadd.f32 %v5437_v27, %v4978_v13  ;;  %5396 = vmatmul.bf16.gmra.mxu1 %v11964_v32  ;;  %v5601_v13 = vsel %vm10546_vm9, %v5599_v56, %v5600_v46  ;;  %v4018_v63 = vshrl.u32 %v10717_v33, 16  ;;  %v10752_v40 = vpop.f32.mrf.mxu0  ;;  %v7191_v32 = vld [vmem:[%s7422_s12 + $0x90] sm:$0xf]  ;;  %v10762_v46 = vld [vmem:[%s7422_s12 + $0x94] sm:$0xf] }
 0x7a6   : > { %v4022_v34 = vrot.slane %v4020_v31, 1  ;;  %v4025_v27 = vshll.u32 %v10739_v5, 16  ;;  %v5720_v17 = vunpack.c.l.bf16 %v5601_v13  ;;  %v6630_v58 = vrot.slane %v7191_v32, 9 }
 0x7a7   : > { %7066 = vst [vmem:[%s10621_s13 + $0x18] sm:$0xff] %v6973_v7   ;;  %v5540_v62 = vadd.f32 %v10577_v9, %v5504_v44  ;;  %v10756_v44 = vpop.f32.mrf.mxu3  ;;  %v4983_v31 = vadd.f32 %v10659_v50, %v10452_v24 }
 0x7a8   : > { %v4023_v51 = vor.u32 %v4022_v34, %v4018_v63  ;;  %v4027_v7 = vrot.slane %v4025_v27, 1  ;;  %v5721_v63 = vunpack.c.l.bf16 %v10692_v49  ;;  %v5606_v34 = vrot.slane %v5604_v4, 4  ;;  %v7193_v27 = vld [vmem:[%s7422_s12 + $0x78] sm:$0xf] }
 0x7a9   : > { %v5751_v21 = vadd.f32 %v5719_v43, %v5540_v62  ;;  %v5353_v43 = vadd.f32 %v10680_v29, %v10643_v30  ;;  %v5618_v62 = vrot.slane %v10762_v46, 5  ;;  %v5355_v49 = vadd.f32 %v10702_v23, %v10668_v42 }
 0x7aa   : > { %v5438_v41 = vpop.f32.mrf.mxu2  ;;  %v10748_v37 = vpop.f32.mrf.mxu1  ;;  %v4028_v30 = vsel %vm522_vm0, %v4023_v51, %v4027_v7  ;;  %v4985_v51 = vadd.f32 %v10678_v25, %v10457_v38  ;;  %v5358_v23 = vadd.f32 %v10721_v28, %v10696_v39 }
 0x7ab   : > { %v5439_v55 = vadd.f32 %v5438_v41, %v5350_v15  ;;  %v5783_v15 = vmax.f32 %v5751_v21, 0.0  ;;  %v10778_v24 = vsel %vm10546_vm9, %v6630_v58, %v5618_v62 }
 0x7ad   : > { %v5505_v18 = vadd.f32 %v5439_v55, %v4980_v57  ;;  %v10780_v50 = vpop.f32.mrf.mxu0 }
 0x7af   : > { %v5541_v14 = vadd.f32 %v10577_v9, %v5505_v18  ;;  %5480 = vmatmul.bf16.gmra.mxu2 %v10202_v20  ;;  %v5607_v18 = vrot.slane %v7193_v27, 5  ;;  %v10786_v4 = vpop.f32.mrf.mxu3 }
 0x7b1   : > { %v5752_v56 = vadd.f32 %v5720_v17, %v5541_v14  ;;  %v5608_v14 = vsel %vm10546_vm9, %v5606_v34, %v5607_v18  ;;  %v5723_v18 = vunpack.c.l.bf16 %v10735_v8  ;;  %v5360_v8 = vadd.f32 %v10748_v37, %v10719_v6 }
 0x7b2   : > { %v5441_v20 = vpop.f32.mrf.mxu2  ;;  %v10767_v13 = vpop.f32.mrf.mxu1  ;;  %v5722_v32 = vunpack.c.l.bf16 %v5608_v14  ;;  %v4099_v14 = vrot.slane %v10739_v5, 1 }
 0x7b3   : > { %v5784_v57 = vmax.f32 %v5752_v56, 0.0  ;;  %v5442_v41 = vadd.f32 %v5441_v20, %v5353_v43 }
 0x7b5   : > { %v6978_v29 = vpack.c.bf16 %v5784_v57, %v5783_v15  ;;  %v5506_v55 = vadd.f32 %v5442_v41, %v4983_v31  ;;  %5401 = vmatmul.bf16.gmra.mxu1 %v4028_v30  ;;  %v11965_v31 = vld [vmem:[#allocation12_spill] sm:$0xff]  ;;  %v10796_v42 = vpop.f32.mrf.mxu0  ;;  %v7194_v15 = vld [vmem:[%s7422_s12 + $0xa0] sm:$0xf]  ;;  %v10802_v41 = vld [vmem:[%s7422_s12 + $0xa4] sm:$0xf]  ;;  %v4988_v30 = vadd.f32 %v10704_v35, %v10463_v10 }
 0x7b6   : > { %v6631_v57 = vrot.slane %v7194_v15, 9  ;;  %v5625_v38 = vrot.slane %v10802_v41, 5  ;;  %v7197_v15 = vld [vmem:[%s7422_s12 + $0xb0] sm:$0xf] }
 0x7b7   : > { %7067 = vst [vmem:[%s10621_s13 + $0x20] sm:$0xff] %v6978_v29   ;;  %v5542_v21 = vadd.f32 %v10577_v9, %v5506_v55  ;;  %v10807_v27 = vpop.f32.mrf.mxu3 }
 0x7b8   : > { %v10817_v10 = vsel %vm10546_vm9, %v6631_v57, %v5625_v38  ;;  %v6632_v57 = vrot.slane %v7197_v15, 9 }
 0x7b9   : > { %v5753_v0 = vadd.f32 %v5721_v63, %v5542_v21  ;;  %v5613_v21 = vrot.slane %v5611_v48, 4 }
 0x7ba   : > { %v5443_v17 = vpop.f32.mrf.mxu2  ;;  %v10792_v43 = vpop.f32.mrf.mxu1 }
 0x7bb   : > { %v5444_v7 = vadd.f32 %v5443_v17, %v5355_v49  ;;  %v5785_v29 = vmax.f32 %v5753_v0, 0.0  ;;  %v7196_v49 = vld [vmem:[%s7422_s12 + $0x88] sm:$0xf]  ;;  %v4098_v0 = vrot.slane %v10717_v33, 1 }
 0x7bc   : > { %v5614_v17 = vrot.slane %v7196_v49, 5  ;;  %v7199_v49 = vld [vmem:[%s7422_s12 + $0x98] sm:$0xf] }
 0x7bd   : > { %v5507_v56 = vadd.f32 %v5444_v7, %v4985_v51  ;;  %v10827_v7 = vpop.f32.mrf.mxu0  ;;  %v4100_v33 = vsel %vm823_vm1, %v4098_v0, %v4099_v14  ;;  %v4995_v14 = vadd.f32 %v10786_v4, %v10479_v53  ;;  %v4998_v4 = vadd.f32 %v10807_v27, %v10484_v19 }
 0x7be   : > { %v5615_v51 = vsel %vm10546_vm9, %v5613_v21, %v5614_v17  ;;  %v5620_v21 = vrot.slane %v5618_v62, 4  ;;  %v5621_v17 = vrot.slane %v7199_v49, 5 }
 0x7bf   : > { %v5543_v58 = vadd.f32 %v10577_v9, %v5507_v56  ;;  %5485 = vmatmul.bf16.gmra.mxu2 %v11965_v31  ;;  %v4990_v56 = vadd.f32 %v10727_v59, %v10468_v36  ;;  %v5724_v31 = vunpack.c.l.bf16 %v5615_v51  ;;  %v10834_v6 = vpop.f32.mrf.mxu3  ;;  %v10841_v36 = vld [vmem:[%s7422_s12 + $0xb4] sm:$0xf] }
 0x7c0   : > { %v5632_v59 = vrot.slane %v10841_v36, 5  ;;  %v5622_v62 = vsel %vm10546_vm9, %v5620_v21, %v5621_v17 }
 0x7c1   : > { %v5754_v20 = vadd.f32 %v5722_v32, %v5543_v58 }
 0x7c2   : > { %v5446_v25 = vpop.f32.mrf.mxu2  ;;  %v5367_v34 = vpop.f32.mrf.mxu1 }
 0x7c3   : > { %v5786_v55 = vmax.f32 %v5754_v20, 0.0  ;;  %v5447_v63 = vadd.f32 %v5446_v25, %v5358_v23  ;;  %v5363_v23 = vadd.f32 %v10767_v13, %v10752_v40  ;;  %v5725_v40 = vunpack.c.l.bf16 %v10778_v24 }
 0x7c4   : > { %v5365_v24 = vadd.f32 %v10792_v43, %v10780_v50  ;;  %v7200_v50 = vld [vmem:[%s7422_s12 + $0xc0] sm:$0xf] }
 0x7c5   : > { %v6983_v39 = vpack.c.bf16 %v5786_v55, %v5785_v29  ;;  %v5508_v28 = vadd.f32 %v5447_v63, %v4988_v30  ;;  %v4993_v30 = vadd.f32 %v10756_v44, %v10474_v61  ;;  %v6633_v43 = vrot.slane %v7200_v50, 9 }
 0x7c7   : > { %7068 = vst [vmem:[%s10621_s13 + $0x28] sm:$0xff] %v6983_v39   ;;  %v5544_v35 = vadd.f32 %v10577_v9, %v5508_v28  ;;  %v5283_v39 = vpop.f32.mrf.mxu0  ;;  %v5002_v44 = vpop.f32.mrf.mxu3 }
 0x7c9   : > { %v5755_v52 = vadd.f32 %v5723_v18, %v5544_v35  ;;  %v10854_v35 = vsel %vm10546_vm9, %v6632_v57, %v5632_v59 }
 0x7ca   : > { %v5448_v48 = vpop.f32.mrf.mxu2  ;;  %v10831_v58 = vpop.f32.mrf.mxu1 }
 0x7cb   : > { %v5449_v32 = vadd.f32 %v5448_v48, %v5360_v8  ;;  %v5787_v29 = vmax.f32 %v5755_v52, 0.0  ;;  %v5726_v48 = vunpack.c.l.bf16 %v5622_v62  ;;  %v7203_v62 = vld [vmem:[%s7422_s12 + $0xd0] sm:$0xf] }
 0x7cd   : > { %v5509_v5 = vadd.f32 %v5449_v32, %v4990_v56 }
 0x7cf   : > { %v5545_v37 = vadd.f32 %v10577_v9, %v5509_v5  ;;  %5490 = vmatmul.bf16.gmra.mxu2 %v4100_v33  ;;  %v5285_v51 = vpop.f32.mrf.mxu0  ;;  %v5368_v33 = vadd.f32 %v5367_v34, %v10796_v42  ;;  %v5727_v42 = vunpack.c.l.bf16 %v10817_v10  ;;  %v5627_v34 = vrot.slane %v5625_v38, 4 }
 0x7d0   : > { %v5370_v10 = vadd.f32 %v10831_v58, %v10827_v7  ;;  %v6634_v7 = vrot.slane %v7203_v62, 9  ;;  %v10894_v58 = vld [vmem:[%s7422_s12 + $0xd4] sm:$0xf] }
 0x7d1   : > { %v5756_v20 = vadd.f32 %v5724_v31, %v5545_v37  ;;  %v10868_v31 = vld [vmem:[%s7422_s12 + $0xc4] sm:$0xf] }
 0x7d2   : > { %v5451_v25 = vpop.f32.mrf.mxu2  ;;  %v5372_v13 = vpop.f32.mrf.mxu1  ;;  %v5639_v37 = vrot.slane %v10868_v31, 5 }
 0x7d3   : > { %v5788_v55 = vmax.f32 %v5756_v20, 0.0  ;;  %v5452_v63 = vadd.f32 %v5451_v25, %v5363_v23  ;;  %v5004_v23 = vpop.f32.mrf.mxu3 }
 0x7d5   : > { %v6988_v28 = vpack.c.bf16 %v5788_v55, %v5787_v29  ;;  %v5510_v18 = vadd.f32 %v5452_v63, %v4993_v30  ;;  %v7202_v29 = vld [vmem:[%s7422_s12 + $0xa8] sm:$0xf]  ;;  %v10881_v63 = vsel %vm10546_vm9, %v6633_v43, %v5639_v37  ;;  %v5634_v43 = vrot.slane %v5632_v59, 4 }
 0x7d6   : > { %v5628_v55 = vrot.slane %v7202_v29, 5  ;;  %v5005_v59 = vadd.f32 %v5004_v23, %v10499_v22 }
 0x7d7   : > { %7069 = vst [vmem:[%s10621_s13 + $0x30] sm:$0xff] %v6988_v28   ;;  %v5546_v61 = vadd.f32 %v10577_v9, %v5510_v18  ;;  %v5288_v27 = vpop.f32.mrf.mxu0 }
 0x7d8   : > { %v5629_v18 = vsel %vm10546_vm9, %v5627_v34, %v5628_v55 }
 0x7d9   : > { %v5757_v0 = vadd.f32 %v5725_v40, %v5546_v61  ;;  %v5000_v40 = vadd.f32 %v10834_v6, %v10489_v54  ;;  %v5728_v61 = vunpack.c.l.bf16 %v5629_v18  ;;  %v5003_v54 = vadd.f32 %v5002_v44, %v10494_v47 }
 0x7da   : > { %v5453_v46 = vpop.f32.mrf.mxu2  ;;  %v5374_v32 = vpop.f32.mrf.mxu1 }
 0x7db   : > { %v5454_v8 = vadd.f32 %v5453_v46, %v5365_v24  ;;  %v5789_v20 = vmax.f32 %v5757_v0, 0.0  ;;  %v5007_v49 = vpop.f32.mrf.mxu3  ;;  %v5373_v0 = vadd.f32 %v5372_v13, %v5283_v39  ;;  %v5729_v39 = vunpack.c.l.bf16 %v10854_v35 }
 0x7dc   : > { %v5375_v44 = vadd.f32 %v5374_v32, %v5285_v51  ;;  %v7206_v51 = vld [vmem:[%s7422_s12 + $0xe0] sm:$0xf]  ;;  %v5008_v22 = vadd.f32 %v5007_v49, %v10504_v11 }
 0x7dd   : > { %v5511_v52 = vadd.f32 %v5454_v8, %v4995_v14  ;;  %v5646_v14 = vrot.slane %v10894_v58, 5  ;;  %v6635_v32 = vrot.slane %v7206_v51, 9 }
 0x7df   : > { %v5547_v56 = vadd.f32 %v10577_v9, %v5511_v52  ;;  %v5290_v52 = vpop.f32.mrf.mxu0 }
 0x7e1   : > { %v5758_v5 = vadd.f32 %v5726_v48, %v5547_v56 }
 0x7e2   : > { %v5456_v53 = vpop.f32.mrf.mxu2  ;;  %v5377_v41 = vpop.f32.mrf.mxu1 }
 0x7e3   : > { %v5790_v15 = vmax.f32 %v5758_v5, 0.0  ;;  %v5457_v57 = vadd.f32 %v5456_v53, %v5368_v33  ;;  %v5009_v13 = vpop.f32.mrf.mxu3  ;;  %v7205_v53 = vld [vmem:[%s7422_s12 + $0xb8] sm:$0xf] }
 0x7e5   : > { %v6993_v25 = vpack.c.bf16 %v5790_v15, %v5789_v20  ;;  %v5512_v30 = vadd.f32 %v5457_v57, %v4998_v4  ;;  %v5635_v4 = vrot.slane %v7205_v53, 5  ;;  %v10906_v20 = vsel %vm10546_vm9, %v6634_v7, %v5646_v14  ;;  %v7209_v53 = vld [vmem:[%s7422_s12 + $0xf0] sm:$0xf] }
 0x7e7   : > { %7070 = vst [vmem:[%s10621_s13 + $0x38] sm:$0xff] %v6993_v25   ;;  %v5548_v19 = vadd.f32 %v10577_v9, %v5512_v30  ;;  %v5636_v36 = vsel %vm10546_vm9, %v5634_v43, %v5635_v4  ;;  %v5293_v25 = vpop.f32.mrf.mxu0  ;;  %v6636_v4 = vrot.slane %v7209_v53, 9 }
 0x7e9   : > { %v5759_v28 = vadd.f32 %v5727_v42, %v5548_v19  ;;  %v5730_v42 = vunpack.c.l.bf16 %v5636_v36  ;;  %v5378_v19 = vadd.f32 %v5377_v41, %v5288_v27  ;;  %v5641_v27 = vrot.slane %v5639_v37, 4  ;;  %v7208_v41 = vld [vmem:[%s7422_s12 + $0xc8] sm:$0xf] }
 0x7ea   : > { %v5458_v38 = vpop.f32.mrf.mxu2  ;;  %v5379_v33 = vpop.f32.mrf.mxu1 }
 0x7eb   : > { %v5459_v21 = vadd.f32 %v5458_v38, %v5370_v10  ;;  %v5791_v6 = vmax.f32 %v5759_v28, 0.0  ;;  %v5012_v55 = vpop.f32.mrf.mxu3  ;;  %v10916_v28 = vld [vmem:[%s7422_s12 + $0xe4] sm:$0xf]  ;;  %v5380_v7 = vadd.f32 %v5379_v33, %v5290_v52  ;;  %v10938_v52 = vld [vmem:[%s7422_s12 + $0xf4] sm:$0xf] }
 0x7ec   : > { %v5653_v38 = vrot.slane %v10916_v28, 5  ;;  %v5660_v33 = vrot.slane %v10938_v52, 5 }
 0x7ed   : > { %v5513_v17 = vadd.f32 %v5459_v21, %v5000_v40 }
 0x7ef   : > { %v5549_v24 = vadd.f32 %v10577_v9, %v5513_v17  ;;  %v5295_v62 = vpop.f32.mrf.mxu0 }
 0x7f1   : > { %v5760_v46 = vadd.f32 %v5728_v61, %v5549_v24  ;;  %v5731_v24 = vunpack.c.l.bf16 %v10881_v63 }
 0x7f2   : > { %v5461_v8 = vpop.f32.mrf.mxu2  ;;  %v5382_v34 = vpop.f32.mrf.mxu1 }
 0x7f3   : > { %v5792_v48 = vmax.f32 %v5760_v46, 0.0  ;;  %v5462_v56 = vadd.f32 %v5461_v8, %v5373_v0  ;;  %v5642_v0 = vrot.slane %v7208_v41, 5  ;;  %v10928_v46 = vsel %vm10546_vm9, %v6635_v32, %v5653_v38  ;;  %v5014_v8 = vpop.f32.mrf.mxu3 }
 0x7f4   : > { %v5015_v58 = vadd.f32 %v5014_v8, %v10519_v12  ;;  %v7212_v8 = vld [vmem:[%s7422_s12 + $0xe8] sm:$0xf] }
 0x7f5   : > { %v6998_v5 = vpack.c.bf16 %v5792_v48, %v5791_v6  ;;  %v5514_v50 = vadd.f32 %v5462_v56, %v5003_v54  ;;  %v5643_v37 = vsel %vm10546_vm9, %v5641_v27, %v5642_v0  ;;  %v5010_v54 = vadd.f32 %v5009_v13, %v10509_v3 }
 0x7f6   : > { %v5732_v56 = vunpack.c.l.bf16 %v5643_v37  ;;  %v5013_v3 = vadd.f32 %v5012_v55, %v10514_v16 }
 0x7f7   : > { %7071 = vst [vmem:[%s10621_s13 + $0x40] sm:$0xff] %v6998_v5   ;;  %v5550_v47 = vadd.f32 %v10577_v9, %v5514_v50  ;;  %v5298_v50 = vpop.f32.mrf.mxu0 }
 0x7f9   : > { %v5761_v15 = vadd.f32 %v5729_v39, %v5550_v47  ;;  %v5383_v39 = vadd.f32 %v5382_v34, %v5293_v25  ;;  %v5733_v25 = vunpack.c.l.bf16 %v10906_v20 }
 0x7fa   : > { %v5463_v35 = vpop.f32.mrf.mxu2  ;;  %v5384_v49 = vpop.f32.mrf.mxu1 }
 0x7fb   : > { %v5464_v57 = vadd.f32 %v5463_v35, %v5375_v44  ;;  %v5793_v23 = vmax.f32 %v5761_v15, 0.0  ;;  %v5017_v36 = vpop.f32.mrf.mxu3  ;;  %v5385_v55 = vadd.f32 %v5384_v49, %v5295_v62  ;;  %v5735_v49 = vunpack.c.l.bf16 %v10928_v46 }
 0x7fd   : > { %v5515_v30 = vadd.f32 %v5464_v57, %v5005_v59 }
 0x7ff   : > { %v5551_v29 = vadd.f32 %v10577_v9, %v5515_v30  ;;  %v5648_v30 = vrot.slane %v5646_v14, 4  ;;  %v5300_v51 = vpop.f32.mrf.mxu0 }
 0x801   : > { %v5762_v10 = vadd.f32 %v5730_v42, %v5551_v29  ;;  %v7211_v42 = vld [vmem:[%s7422_s12 + $0xd8] sm:$0xf]  ;;  %v10950_v29 = vsel %vm10546_vm9, %v6636_v4, %v5660_v33 }
 0x802   : > { %v5466_v18 = vpop.f32.mrf.mxu2  ;;  %v5387_v47 = vpop.f32.mrf.mxu1  ;;  %v5649_v34 = vrot.slane %v7211_v42, 5 }
 0x803   : > { %v5794_v40 = vmax.f32 %v5762_v10, 0.0  ;;  %v5467_v21 = vadd.f32 %v5466_v18, %v5378_v19 }
 0x804   : > { %v5650_v20 = vsel %vm10546_vm9, %v5648_v30, %v5649_v34 }
 0x805   : > { %v7003_v17 = vpack.c.bf16 %v5794_v40, %v5793_v23  ;;  %v5516_v61 = vadd.f32 %v5467_v21, %v5008_v22  ;;  %v5734_v22 = vunpack.c.l.bf16 %v5650_v20  ;;  %v5019_v23 = vpop.f32.mrf.mxu3  ;;  %v5388_v21 = vadd.f32 %v5387_v47, %v5298_v50 }
 0x807   : > { %7072 = vst [vmem:[%s10621_s13 + $0x48] sm:$0xff] %v7003_v17   ;;  %v5552_v11 = vadd.f32 %v10577_v9, %v5516_v61  ;;  %v5303_v62 = vpop.f32.mrf.mxu0 }
 0x809   : > { %v5763_v63 = vadd.f32 %v5731_v24, %v5552_v11  ;;  %v5018_v24 = vadd.f32 %v5017_v36, %v10525_v2 }
 0x80a   : > { %v5468_v31 = vpop.f32.mrf.mxu2  ;;  %v5389_v32 = vpop.f32.mrf.mxu1 }
 0x80b   : > { %v5469_v6 = vadd.f32 %v5468_v31, %v5380_v7  ;;  %v5795_v13 = vmax.f32 %v5763_v63, 0.0  ;;  %v5655_v63 = vrot.slane %v5653_v38, 4  ;;  %v5656_v31 = vrot.slane %v7212_v8, 5 }
 0x80d   : > { %v5517_v48 = vadd.f32 %v5469_v6, %v5010_v54  ;;  %v5022_v54 = vpop.f32.mrf.mxu3  ;;  %v5390_v6 = vadd.f32 %v5389_v32, %v5300_v51 }
 0x80f   : > { %v5553_v5 = vadd.f32 %v10577_v9, %v5517_v48  ;;  %v5305_v28 = vpop.f32.mrf.mxu0 }
 0x811   : > { %v5764_v43 = vadd.f32 %v5732_v56, %v5553_v5  ;;  %v5657_v56 = vsel %vm10546_vm9, %v5655_v63, %v5656_v31  ;;  %v5020_v5 = vadd.f32 %v5019_v23, %v10530_v60 }
 0x812   : > { %v5471_v44 = vpop.f32.mrf.mxu2  ;;  %v5392_v7 = vpop.f32.mrf.mxu1 }
 0x813   : > { %v5796_v15 = vmax.f32 %v5764_v43, 0.0  ;;  %v5472_v35 = vadd.f32 %v5471_v44, %v5383_v39  ;;  %v5736_v39 = vunpack.c.l.bf16 %v5657_v56  ;;  %v5393_v53 = vadd.f32 %v5392_v7, %v5303_v62 }
 0x815   : > { %v7008_v59 = vpack.c.bf16 %v5796_v15, %v5795_v13  ;;  %v5518_v57 = vadd.f32 %v5472_v35, %v5013_v3  ;;  %v5024_v47 = vpop.f32.mrf.mxu3  ;;  %v5023_v3 = vadd.f32 %v5022_v54, %v10534_v45 }
 0x816   : > { %v5025_v20 = vadd.f32 %v5024_v47, %v10538_v26  ;;  %v7215_v26 = vld [vmem:[%s7422_s12 + $0x104] sm:$0xf] }
 0x817   : > { %7073 = vst [vmem:[%s10621_s13 + $0x50] sm:$0xff] %v7008_v59   ;;  %v5554_v16 = vadd.f32 %v10577_v9, %v5518_v57  ;;  %v5737_v59 = vunpack.c.l.bf16 %v10950_v29  ;;  %v5662_v57 = vrot.slane %v5660_v33, 4  ;;  %v5308_v34 = vpop.f32.mrf.mxu0 }
 0x819   : > { %v5765_v19 = vadd.f32 %v5733_v25, %v5554_v16  ;;  %v7213_v25 = vld [vmem:[%s7422_s12 + $0xf8] sm:$0xf] }
 0x81a   : > { %v5473_v10 = vpop.f32.mrf.mxu2  ;;  %v5394_v43 = vpop.f32.mrf.mxu1  ;;  %v5663_v30 = vrot.slane %v7213_v25, 5 }
 0x81b   : > { %v5474_v14 = vadd.f32 %v5473_v10, %v5385_v55  ;;  %v5797_v27 = vmax.f32 %v5765_v19, 0.0  ;;  %v5395_v16 = vadd.f32 %v5394_v43, %v5305_v28 }
 0x81c   : > { %v5664_v10 = vsel %vm10546_vm9, %v5662_v57, %v5663_v30  ;;  %v11968_v57 = vld [vmem:[#allocation10_spill] sm:$0xff] }
 0x81d   : > { %v5519_v18 = vadd.f32 %v5474_v14, %v5015_v58  ;;  %v5027_v52 = vpop.f32.mrf.mxu3  ;;  %v5738_v51 = vunpack.c.l.bf16 %v5664_v10 }
 0x81f   : > { %v5555_v40 = vadd.f32 %v10577_v9, %v5519_v18 }
 0x821   : > { %v5766_v17 = vadd.f32 %v5734_v22, %v5555_v40 }
 0x822   : > { %v5476_v61 = vpop.f32.mrf.mxu2  ;;  %v5397_v19 = vpop.f32.mrf.mxu1 }
 0x823   : > { %v5798_v41 = vmax.f32 %v5766_v17, 0.0  ;;  %v5477_v0 = vadd.f32 %v5476_v61, %v5388_v21  ;;  %v5398_v14 = vadd.f32 %v5397_v19, %v5308_v34  ;;  %v5310_v21 = vpop.f32.mrf.mxu0  ;;  %v7214_v61 = vld [vmem:[%s7422_s12 + $0x100] sm:$0xf] }
 0x825   : > { %v7013_v11 = vpack.c.bf16 %v5798_v41, %v5797_v27  ;;  %v5520_v12 = vadd.f32 %v5477_v0, %v5018_v24  ;;  %v6637_v24 = vrot.slane %v7214_v61, 9  ;;  %v5667_v27 = vrot.slane %v7215_v26, 5  ;;  %v11966_v41 = vld [vmem:[#allocation63_spill] sm:$0xff] }
 0x826   : > { %v5028_v0 = vadd.f32 %v5027_v52, %v11966_v41 }
 0x827   : > { %7074 = vst [vmem:[%s10621_s13 + $0x58] sm:$0xff] %v7013_v11   ;;  %v5556_v37 = vadd.f32 %v10577_v9, %v5520_v12  ;;  %v5029_v11 = vpop.f32.mrf.mxu3  ;;  %v5669_v12 = vrot.slane %v5667_v27, 4  ;;  %v5668_v8 = vsel %vm10546_vm9, %v6637_v24, %v5667_v27 }
 0x828   : > { %v5739_v56 = vunpack.c.l.bf16 %v5668_v8 }
 0x829   : > { %v5767_v2 = vadd.f32 %v5735_v49, %v5556_v37  ;;  %v7216_v49 = vld [vmem:[%s7422_s12 + $0x108] sm:$0xf] }
 0x82a   : > { %v5478_v48 = vpop.f32.mrf.mxu2  ;;  %v5399_v17 = vpop.f32.mrf.mxu1  ;;  %v5670_v7 = vrot.slane %v7216_v49, 5 }
 0x82b   : > { %v5479_v50 = vadd.f32 %v5478_v48, %v5390_v6  ;;  %v5799_v13 = vmax.f32 %v5767_v2, 0.0  ;;  %v5400_v31 = vadd.f32 %v5399_v17, %v5310_v21  ;;  %v11967_v6 = vld [vmem:[#allocation142_spill] sm:$0xff] }
 0x82c   : > { %v5671_v54 = vsel %vm10546_vm9, %v5669_v12, %v5670_v7  ;;  %v5030_v2 = vadd.f32 %v5029_v11, %v11967_v6 }
 0x82d   : > { %v5521_v46 = vadd.f32 %v5479_v50, %v5020_v5  ;;  %v5313_v50 = vpop.f32.mrf.mxu0  ;;  %v5740_v28 = vunpack.c.l.bf16 %v5671_v54 }
 0x82f   : > { %v5557_v38 = vadd.f32 %v10577_v9, %v5521_v46 }
 0x831   : > { %v5768_v4 = vadd.f32 %v5736_v39, %v5557_v38 }
 0x832   : > { %v5481_v44 = vpop.f32.mrf.mxu2  ;;  %v5402_v46 = vpop.f32.mrf.mxu1 }
 0x833   : > { %v5800_v15 = vmax.f32 %v5768_v4, 0.0  ;;  %v5482_v35 = vadd.f32 %v5481_v44, %v5393_v53  ;;  %v5403_v43 = vadd.f32 %v5402_v46, %v5313_v50  ;;  %v5032_v4 = vpop.f32.mrf.mxu3 }
 0x834   : > { %v5033_v25 = vadd.f32 %v5032_v4, %v11968_v57 }
 0x835   : > { %v7018_v36 = vpack.c.bf16 %v5800_v15, %v5799_v13  ;;  %v5522_v60 = vadd.f32 %v5482_v35, %v5023_v3  ;;  %v7217_v35 = vld [vmem:[%s7422_s12 + $0x110] sm:$0xf] }
 0x837   : > { %7075 = vst [vmem:[%s10621_s13 + $0x60] sm:$0xff] %v7018_v36   ;;  %v5558_v42 = vadd.f32 %v10577_v9, %v5522_v60  ;;  %v6638_v36 = vrot.slane %v7217_v35, 9  ;;  %v7218_v60 = vld [vmem:[%s7422_s12 + $0x114] sm:$0xf] }
 0x839   : > { %v5769_v55 = vadd.f32 %v5737_v59, %v5558_v42  ;;  %v5674_v59 = vrot.slane %v7218_v60, 5  ;;  %v5315_v42 = vpop.f32.mrf.mxu0 }
 0x83a   : > { %v5483_v45 = vpop.f32.mrf.mxu2  ;;  %v5404_v34 = vpop.f32.mrf.mxu1 }
 0x83b   : > { %v5484_v29 = vadd.f32 %v5483_v45, %v5395_v16  ;;  %v5801_v22 = vmax.f32 %v5769_v55, 0.0  ;;  %v5676_v16 = vrot.slane %v5674_v59, 4  ;;  %v7219_v55 = vld [vmem:[%s7422_s12 + $0x118] sm:$0xf]  ;;  %v5675_v10 = vsel %vm10546_vm9, %v6638_v36, %v5674_v59  ;;  %s6807_s12 = sshll.u32 %s7290_s21, 7  ;;  %s5872_s21 = scalar_lea.sflag [#allocation4], %s229_s10 }
 0x83c   : > { %v5677_v19 = vrot.slane %v7219_v55, 5  ;;  %s5885_s16 = scalar_lea.hbm %s11049_s5, %s6807_s12 }
 0x83d   : > { %v5523_v33 = vadd.f32 %v5484_v29, %v5025_v20  ;;  %v5405_v20 = vadd.f32 %v5404_v34, %v5315_v42  ;;  %v5034_v29 = vpop.f32.mrf.mxu3  ;;  %s5888_s24 = sshll.u32 %s5885_s16, 4  ;;  %s5889_s24 = int_to_ptr.hbm [resolvable:$true] %s5888_s24 }
 0x83e   : > { %s7234_s25 = sshra.s32 %s5889_s24, 4  ;;  %s7235_s25 = int_to_ptr.hbm [resolvable:$true] %s7234_s25 }
 0x83f   : > { %v5559_v58 = vadd.f32 %v10577_v9, %v5523_v33  ;;  %v5678_v33 = vsel %vm10546_vm9, %v5676_v16, %v5677_v19  ;;  %s7236_s27 = scalar_lea.hbm %s7235_s25, 128  ;;  %p7241_p1 = scmp.lt.s32.totalorder %s7235_s25, %s11049_s5 }
 0x840   : > { %p7237_p12 = scmp.ne.s32.totalorder %s7235_s25, %s7236_s27  ;;  %p7242_p2 = scmp.lt.s32.totalorder %s7240_s8, %s7236_s27 }
 0x841   : > { %v5770_v32 = vadd.f32 %v5738_v51, %v5559_v58  ;;  %v11969_v51 = vld [vmem:[#allocation17_spill] sm:$0xff] }
 0x842   : > { %v5486_v18 = vpop.f32.mrf.mxu2  ;;  %v5035_v58 = vadd.f32 %v5034_v29, %v11969_v51  ;;  %p7238_p13 = pnand %p7237_p12, %p7373_p4  ;;  %p7243_p3 = por %p7242_p2, %p7241_p1 }
 0x843   : > { %v5802_v23 = vmax.f32 %v5770_v32, 0.0  ;;  %v5487_v40 = vadd.f32 %v5486_v18, %v5398_v14  ;;  %v5741_v32 = vunpack.c.l.bf16 %v5675_v10 }
 0x844   : > { %p7239_p0 = pneg %p7238_p13 }
 0x845   : > { %v7023_v62 = vpack.c.bf16 %v5802_v23, %v5801_v22  ;;  %v5524_v63 = vadd.f32 %v5487_v40, %v5028_v0  ;;  %v5742_v23 = vunpack.c.l.bf16 %v5678_v33 }
 0x846   : > { %p7244_p5 = pnand %p7243_p3, %p7239_p0 }
 0x847   : > { %7076 = vst [vmem:[%s10621_s13 + $0x68] sm:$0xff] %v7023_v62   ;;  %v5560_v48 = vadd.f32 %v10577_v9, %v5524_v63 }
 0x849   : > { %v5771_v38 = vadd.f32 %v5739_v56, %v5560_v48 }
 0x84a   : > { %v5488_v37 = vpop.f32.mrf.mxu2 }
 0x84b   : > { %v5489_v5 = vadd.f32 %v5488_v37, %v5400_v31  ;;  %v5803_v3 = vmax.f32 %v5771_v38, 0.0 }
 0x84d   : > { %v5525_v39 = vadd.f32 %v5489_v5, %v5030_v2 }
 0x84f   : > { %v5561_v53 = vadd.f32 %v10577_v9, %v5525_v39 }
 0x851   : > { %v5772_v47 = vadd.f32 %v5740_v28, %v5561_v53 }
 0x852   : > { %v5491_v44 = vpop.f32.mrf.mxu2 }
 0x853   : > { %v5804_v13 = vmax.f32 %v5772_v47, 0.0  ;;  %v5492_v15 = vadd.f32 %v5491_v44, %v5403_v43 }
 0x855   : > { %v7028_v30 = vpack.c.bf16 %v5804_v13, %v5803_v3  ;;  %v5526_v45 = vadd.f32 %v5492_v15, %v5033_v25 }
 0x857   : > { %7077 = vst [vmem:[%s10621_s13 + $0x70] sm:$0xff] %v7028_v30   ;;  %v5562_v14 = vadd.f32 %v10577_v9, %v5526_v45 }
 0x859   : > { %v5773_v40 = vadd.f32 %v5741_v32, %v5562_v14 }
 0x85a   : > { %v5493_v52 = vpop.f32.mrf.mxu2 }
 0x85b   : > { %v5494_v18 = vadd.f32 %v5493_v52, %v5405_v20  ;;  %v5805_v17 = vmax.f32 %v5773_v40, 0.0 }
 0x85d   : > { %v5527_v22 = vadd.f32 %v5494_v18, %v5035_v58 }
 0x85f   : > { %v5563_v1 = vadd.f32 %v10577_v9, %v5527_v22 }
 0x861   : > { %v5774_v21 = vadd.f32 %v5742_v23, %v5563_v1 }
 0x863   : > { %v5806_v61 = vmax.f32 %v5774_v21, 0.0 }
 0x865   : > { %v7033_v24 = vpack.c.bf16 %v5806_v61, %v5805_v17 }
 0x867   : > { %7078 = vst [vmem:[%s10621_s13 + $0x78] sm:$0xff] %v7033_v24  }
 0x868   : > { %7247 = shalt.err (!%p7244_p5)
}
 0x869   : > { %s7301_s10 = smov 64   ;;  %s7302_s13 = smov 4  }
 0x86a   : > { %7096 = dma.vmem_to_hbm [thread:$0]  (%p7373_p4), %s5887_s17, 2048, %s5889_s24, %s5872_s21, %s7301_s10, %s7301_s10, %s7302_s13  }
 0x86b PF: > { %p7102_p6 = scmp.ge.s32.totalorder %s7298_s23, 2  ;;  %s5903_s12 = sand.u32 1, %s7278_s18  }
 0x86c   : > { %s5904_s14 = scalar_lea.sflag [#allocation4], %s5903_s12 }
 0x86d   : > { %p7099_p7 = pnand %p7102_p6, %p7380_p8 }
 0x86f   : > { %p7100_p9 = pneg %p7099_p7 }
 0x871   : > { %7273 = dma.done.wait (%p7100_p9), %s5904_s14, 2048  }
 0x872   : > { %7275 = vsyncadd (%p7100_p9), %s5904_s14, 4294965248  ;;  %s18_s23 = sadd.s32 1, %s7298_s23   ;;  %s11970_s18 = smov %s7282_s19 }
 0x873   : > { %p15_p10 = scmp.ge.s32.totalorder %s18_s23, 4   ;;  %s11971_s19 = smov %s7286_s20 }
 0x874   : > { %s11972_s20 = smov %s7386_s6  ;;  %s11973_s21 = smov %s7294_s22 }
 0x875   : > { %s11974_s22 = smov %s11976_s26  ;;  %17 = sbr.rel (!%p15_p10) target bundleno = 4 (0x4), region = 81 }
 0x87a   :  { %5910 = vsyncpa [#allocation4], 1 }
 0x87b   :  { %5912 = vsyncpa [#allocation4 + $0x1], 1 }

</bundles_post_ra>
